<compile_context>
chip_gen: v7x
topology: tpu7x:2x2x1
jax: 0.10.0
libtpu: 0.0.40
codegen_flags: <defaults>
</compile_context>

<pallas_src>
import jax
import jax.numpy as jnp
from jax.experimental import pallas as pl
from jax.experimental.pallas import tpu as pltpu

# ---------------- configuration (small shapes) ----------------
NUM_CLASS    = 32
NUM_SEGMENTS = 8          # T (> 3, so the transpose(1,2) branch is exercised)
BATCH        = 2          # N
H = W        = 16
SAMPLE_LEN   = 3          # 3 * new_length for RGB
FEATURE_DIM  = 128        # stand-in for resnet101 fc.in_features (=2048) at small scale
HW           = H * W


# ---------------- Pallas kernel ----------------
def tsn_kernel(x_ref, w1t_ref, b1_ref, w2_ref, b2_ref, o_ref):
    """Single grid step: all groups, all segments, full reduction in-kernel.

    x_ref  : (G, T, C, HW)            frames, lane-dense (HW on lanes)
    w1t_ref: (FEATURE_DIM, C)         backbone-stub 1x1 conv weight (transposed)
    b1_ref : (FEATURE_DIM, 1)         backbone-stub bias (column)
    w2_ref : (FEATURE_DIM, NUM_CLASS) new_fc weight
    b2_ref : (1, NUM_CLASS)           new_fc bias
    o_ref  : (G, NUM_CLASS)
    """
    num_groups, num_segments, sample_len, hw = x_ref.shape
    feat_dim = w1t_ref.shape[0]
    pool_scale = 1.0 / (hw * num_segments)   # fused AdaptiveAvgPool2d(1) + avg consensus

    # Hoist loop-invariant broadcasts of the tiny 1x1-conv weight / bias
    # (JAX does not CSE broadcast_in_dim inside the unrolled frame loop).
    w1b = [jnp.broadcast_to(w1t_ref[:, c:c + 1], (feat_dim, hw)) for c in range(sample_len)]
    b1b = jnp.broadcast_to(b1_ref[...], (feat_dim, hw))

    rows = []
    for g in range(num_groups):
        col = jnp.zeros((feat_dim, 1), jnp.float32)
        for t in range(num_segments):
            xc = x_ref[g, t]                         # (C, HW) view of one frame, no concat
            # Backbone stub (1x1 conv) as VPU broadcast-FMAs, fused with ReLU.
            h = b1b
            for c in range(sample_len):
                h = h + w1b[c] * xc[c:c + 1]
            h = jnp.maximum(h, 0.0)                  # (feat_dim, hw) -- only live intermediate
            # AdaptiveAvgPool2d(1) + avg consensus: accumulate the cross-lane sum.
            col = col + jnp.sum(h, axis=1, keepdims=True)        # (feat_dim, 1)
        feat = col * pool_scale                      # pooled + consensus features of group g
        # Dropout(p=0.5) in eval mode -> identity.
        # TODO(synk): training-mode dropout (RNG mask) not implemented.
        # new_fc hoisted after the consensus (exact: Linear is affine).
        rows.append(jnp.sum(w2_ref[...] * feat, axis=0, keepdims=True))   # (1, NUM_CLASS)

    # Single (G, NUM_CLASS) store for the whole kernel.
    o_ref[...] = jnp.concatenate(rows, axis=0) + b2_ref[...]


def tsn_forward(x_5d, w1, b1, w2, b2):
    """x_5d: (N, T, C, H, W) float32 -> (N, num_class) float32."""
    # --- glue: reproduce torch's transpose + contiguous view exactly ---
    if x_5d.shape[1] > 3:
        x_5d = jnp.swapaxes(x_5d, 1, 2)                          # (N, C, T, H, W)
    frames = x_5d.reshape((-1, SAMPLE_LEN) + x_5d.shape[-2:])    # (F, 3, H, W)
    num_groups = frames.shape[0] // NUM_SEGMENTS
    # Lane-dense kernel layout (G, T, C, HW): pure reshape, no transpose, no in-kernel concat.
    frames = frames.reshape(num_groups, NUM_SEGMENTS, SAMPLE_LEN, HW)

    # Tiny one-shot parameter relayouts for the kernel.
    w1t = jnp.transpose(w1)                     # (FEATURE_DIM, SAMPLE_LEN)
    b1c = jnp.reshape(b1, (FEATURE_DIM, 1))     # column
    b2r = jnp.reshape(b2, (1, NUM_CLASS))

    out = pl.pallas_call(
        tsn_kernel,
        out_shape=jax.ShapeDtypeStruct((num_groups, NUM_CLASS), jnp.float32),
        grid_spec=pltpu.PrefetchScalarGridSpec(
            num_scalar_prefetch=0,
            grid=(1,),   # collapsed grid: one step, no per-group step overhead
            in_specs=[
                pl.BlockSpec((num_groups, NUM_SEGMENTS, SAMPLE_LEN, HW),
                             lambda i: (0, 0, 0, 0)),
                pl.BlockSpec((FEATURE_DIM, SAMPLE_LEN), lambda i: (0, 0)),
                pl.BlockSpec((FEATURE_DIM, 1),          lambda i: (0, 0)),
                pl.BlockSpec((FEATURE_DIM, NUM_CLASS),  lambda i: (0, 0)),
                pl.BlockSpec((1, NUM_CLASS),            lambda i: (0, 0)),
            ],
            out_specs=pl.BlockSpec((num_groups, NUM_CLASS), lambda i: (0, 0)),
        ),
        compiler_params=pltpu.CompilerParams(
            dimension_semantics=("arbitrary",)),
    )(frames, w1t, b1c, w2, b2r)

    # consensus output is (N, 1, num_class) in torch; the .squeeze(1) is folded in here.
    return out


# ---------------- pure-JAX reference (same math) ----------------
def tsn_reference(x_5d, w1, b1, w2, b2):
    if x_5d.shape[1] > 3:
        x_5d = jnp.swapaxes(x_5d, 1, 2)
    frames_nchw = x_5d.reshape((-1, SAMPLE_LEN) + x_5d.shape[-2:])
    frames = jnp.transpose(frames_nchw, (0, 2, 3, 1)).reshape(-1, HW, SAMPLE_LEN)
    h = jnp.maximum(jnp.einsum('fpc,cd->fpd', frames, w1) + b1[0], 0.0)
    feat = h.mean(axis=1)
    logits = feat @ w2 + b2[0]
    return logits.reshape(-1, NUM_SEGMENTS, NUM_CLASS).mean(axis=1)


if __name__ == "__main__":
    key = jax.random.PRNGKey(0)
    k_x, k_w1, k_w2 = jax.random.split(key, 3)

    # deterministic synthetic input: (N, T, C, H, W)
    x = jax.random.normal(k_x, (BATCH, NUM_SEGMENTS, SAMPLE_LEN, H, W), jnp.float32)

    # backbone-stub parameters (deterministic)
    w1 = jax.random.normal(k_w1, (SAMPLE_LEN, FEATURE_DIM), jnp.float32) * 0.05
    b1 = jnp.zeros((1, FEATURE_DIM), jnp.float32)
    # new_fc: normal_(weight, 0, 0.001), constant_(bias, 0)  -- as in _prepare_tsn
    w2 = jax.random.normal(k_w2, (FEATURE_DIM, NUM_CLASS), jnp.float32) * 0.001
    b2 = jnp.zeros((1, NUM_CLASS), jnp.float32)

    out = jax.block_until_ready(tsn_forward(x, w1, b1, w2, b2))
    ref = jax.block_until_ready(tsn_reference(x, w1, b1, w2, b2))

    assert out.shape == (BATCH, NUM_CLASS), out.shape
    assert jnp.allclose(out, ref, rtol=1e-5, atol=1e-5), (out, ref)
    print("KERNEL_OK")
</pallas_src>

<mosaic_0001>
module attributes {stable_mosaic.version = 11 : i64} {
  func.func @tsn_kernel(%arg0: i32, %arg1: memref<2x8x3x256xf32, #tpu.memory_space<vmem>>, %arg2: memref<128x3xf32, #tpu.memory_space<vmem>>, %arg3: memref<128x1xf32, #tpu.memory_space<vmem>>, %arg4: memref<128x32xf32, #tpu.memory_space<vmem>>, %arg5: memref<1x32xf32, #tpu.memory_space<vmem>>, %arg6: memref<2x32xf32, #tpu.memory_space<vmem>>) attributes {dimension_semantics = [#tpu.dimension_semantics<arbitrary>], iteration_bounds = array<i64: 1>, scalar_prefetch = 0 : i64, scratch_operands = 0 : i64, tpu.core_type = #tpu.core_type<tc>, window_params = [{pipeline_mode = #tpu.pipeline_mode<synchronous>, transform_indices = @transform_0, window_bounds = array<i64: 2, 8, 3, 256>}, {pipeline_mode = #tpu.pipeline_mode<synchronous>, transform_indices = @transform_1, window_bounds = array<i64: 128, 3>}, {pipeline_mode = #tpu.pipeline_mode<synchronous>, transform_indices = @transform_2, window_bounds = array<i64: 128, 1>}, {pipeline_mode = #tpu.pipeline_mode<synchronous>, transform_indices = @transform_3, window_bounds = array<i64: 128, 32>}, {pipeline_mode = #tpu.pipeline_mode<synchronous>, transform_indices = @transform_4, window_bounds = array<i64: 1, 32>}, {pipeline_mode = #tpu.pipeline_mode<synchronous>, transform_indices = @transform_5, window_bounds = array<i64: 2, 32>}]} {
    %c0 = arith.constant 0 : index
    %c0_0 = arith.constant 0 : index
    %0 = vector.load %arg2[%c0, %c0_0] : memref<128x3xf32, #tpu.memory_space<vmem>>, vector<128x1xf32>
    %1 = vector.shape_cast %0 : vector<128x1xf32> to vector<128x1xf32>
    %2 = vector.broadcast %1 : vector<128x1xf32> to vector<128x256xf32>
    %c0_1 = arith.constant 0 : index
    %c1 = arith.constant 1 : index
    %3 = vector.load %arg2[%c0_1, %c1] : memref<128x3xf32, #tpu.memory_space<vmem>>, vector<128x1xf32>
    %4 = vector.shape_cast %3 : vector<128x1xf32> to vector<128x1xf32>
    %5 = vector.broadcast %4 : vector<128x1xf32> to vector<128x256xf32>
    %c0_2 = arith.constant 0 : index
    %c2 = arith.constant 2 : index
    %6 = vector.load %arg2[%c0_2, %c2] : memref<128x3xf32, #tpu.memory_space<vmem>>, vector<128x1xf32>
    %7 = vector.shape_cast %6 : vector<128x1xf32> to vector<128x1xf32>
    %8 = vector.broadcast %7 : vector<128x1xf32> to vector<128x256xf32>
    %c0_3 = arith.constant 0 : index
    %c0_4 = arith.constant 0 : index
    %9 = vector.load %arg3[%c0_3, %c0_4] : memref<128x1xf32, #tpu.memory_space<vmem>>, vector<128x1xf32>
    %10 = vector.shape_cast %9 : vector<128x1xf32> to vector<128x1xf32>
    %11 = vector.broadcast %10 : vector<128x1xf32> to vector<128x256xf32>
    %cst = arith.constant 0.000000e+00 : f32
    %12 = vector.broadcast %cst : f32 to vector<128x1xf32>
    %c0_5 = arith.constant 0 : index
    %c0_6 = arith.constant 0 : index
    %c0_7 = arith.constant 0 : index
    %c0_8 = arith.constant 0 : index
    %13 = vector.load %arg1[%c0_5, %c0_6, %c0_7, %c0_8] : memref<2x8x3x256xf32, #tpu.memory_space<vmem>>, vector<1x1x3x256xf32>
    %14 = vector.shape_cast %13 : vector<1x1x3x256xf32> to vector<3x256xf32>
    %15 = vector.extract_strided_slice %14 {offsets = [0, 0], sizes = [1, 256], strides = [1, 1]} : vector<3x256xf32> to vector<1x256xf32>
    %16 = vector.broadcast %15 : vector<1x256xf32> to vector<128x256xf32>
    %17 = arith.mulf %2, %16 : vector<128x256xf32>
    %18 = arith.addf %11, %17 : vector<128x256xf32>
    %19 = vector.extract_strided_slice %14 {offsets = [1, 0], sizes = [1, 256], strides = [1, 1]} : vector<3x256xf32> to vector<1x256xf32>
    %20 = vector.broadcast %19 : vector<1x256xf32> to vector<128x256xf32>
    %21 = arith.mulf %5, %20 : vector<128x256xf32>
    %22 = arith.addf %18, %21 : vector<128x256xf32>
    %23 = vector.extract_strided_slice %14 {offsets = [2, 0], sizes = [1, 256], strides = [1, 1]} : vector<3x256xf32> to vector<1x256xf32>
    %24 = vector.broadcast %23 : vector<1x256xf32> to vector<128x256xf32>
    %25 = arith.mulf %8, %24 : vector<128x256xf32>
    %26 = arith.addf %22, %25 : vector<128x256xf32>
    %cst_9 = arith.constant 0.000000e+00 : f32
    %27 = vector.broadcast %cst_9 : f32 to vector<128x256xf32>
    %28 = arith.maximumf %26, %27 : vector<128x256xf32>
    %cst_10 = arith.constant dense<0.000000e+00> : vector<128xf32>
    %29 = vector.multi_reduction <add>, %28, %cst_10 [1] : vector<128x256xf32> to vector<128xf32>
    %30 = vector.shape_cast %29 : vector<128xf32> to vector<128x1xf32>
    %31 = arith.addf %12, %30 : vector<128x1xf32>
    %c0_11 = arith.constant 0 : index
    %c1_12 = arith.constant 1 : index
    %c0_13 = arith.constant 0 : index
    %c0_14 = arith.constant 0 : index
    %32 = vector.load %arg1[%c0_11, %c1_12, %c0_13, %c0_14] : memref<2x8x3x256xf32, #tpu.memory_space<vmem>>, vector<1x1x3x256xf32>
    %33 = vector.shape_cast %32 : vector<1x1x3x256xf32> to vector<3x256xf32>
    %34 = vector.extract_strided_slice %33 {offsets = [0, 0], sizes = [1, 256], strides = [1, 1]} : vector<3x256xf32> to vector<1x256xf32>
    %35 = vector.broadcast %34 : vector<1x256xf32> to vector<128x256xf32>
    %36 = arith.mulf %2, %35 : vector<128x256xf32>
    %37 = arith.addf %11, %36 : vector<128x256xf32>
    %38 = vector.extract_strided_slice %33 {offsets = [1, 0], sizes = [1, 256], strides = [1, 1]} : vector<3x256xf32> to vector<1x256xf32>
    %39 = vector.broadcast %38 : vector<1x256xf32> to vector<128x256xf32>
    %40 = arith.mulf %5, %39 : vector<128x256xf32>
    %41 = arith.addf %37, %40 : vector<128x256xf32>
    %42 = vector.extract_strided_slice %33 {offsets = [2, 0], sizes = [1, 256], strides = [1, 1]} : vector<3x256xf32> to vector<1x256xf32>
    %43 = vector.broadcast %42 : vector<1x256xf32> to vector<128x256xf32>
    %44 = arith.mulf %8, %43 : vector<128x256xf32>
    %45 = arith.addf %41, %44 : vector<128x256xf32>
    %cst_15 = arith.constant 0.000000e+00 : f32
    %46 = vector.broadcast %cst_15 : f32 to vector<128x256xf32>
    %47 = arith.maximumf %45, %46 : vector<128x256xf32>
    %cst_16 = arith.constant dense<0.000000e+00> : vector<128xf32>
    %48 = vector.multi_reduction <add>, %47, %cst_16 [1] : vector<128x256xf32> to vector<128xf32>
    %49 = vector.shape_cast %48 : vector<128xf32> to vector<128x1xf32>
    %50 = arith.addf %31, %49 : vector<128x1xf32>
    %c0_17 = arith.constant 0 : index
    %c2_18 = arith.constant 2 : index
    %c0_19 = arith.constant 0 : index
    %c0_20 = arith.constant 0 : index
    %51 = vector.load %arg1[%c0_17, %c2_18, %c0_19, %c0_20] : memref<2x8x3x256xf32, #tpu.memory_space<vmem>>, vector<1x1x3x256xf32>
    %52 = vector.shape_cast %51 : vector<1x1x3x256xf32> to vector<3x256xf32>
    %53 = vector.extract_strided_slice %52 {offsets = [0, 0], sizes = [1, 256], strides = [1, 1]} : vector<3x256xf32> to vector<1x256xf32>
    %54 = vector.broadcast %53 : vector<1x256xf32> to vector<128x256xf32>
    %55 = arith.mulf %2, %54 : vector<128x256xf32>
    %56 = arith.addf %11, %55 : vector<128x256xf32>
    %57 = vector.extract_strided_slice %52 {offsets = [1, 0], sizes = [1, 256], strides = [1, 1]} : vector<3x256xf32> to vector<1x256xf32>
    %58 = vector.broadcast %57 : vector<1x256xf32> to vector<128x256xf32>
    %59 = arith.mulf %5, %58 : vector<128x256xf32>
    %60 = arith.addf %56, %59 : vector<128x256xf32>
    %61 = vector.extract_strided_slice %52 {offsets = [2, 0], sizes = [1, 256], strides = [1, 1]} : vector<3x256xf32> to vector<1x256xf32>
    %62 = vector.broadcast %61 : vector<1x256xf32> to vector<128x256xf32>
    %63 = arith.mulf %8, %62 : vector<128x256xf32>
    %64 = arith.addf %60, %63 : vector<128x256xf32>
    %cst_21 = arith.constant 0.000000e+00 : f32
    %65 = vector.broadcast %cst_21 : f32 to vector<128x256xf32>
    %66 = arith.maximumf %64, %65 : vector<128x256xf32>
    %cst_22 = arith.constant dense<0.000000e+00> : vector<128xf32>
    %67 = vector.multi_reduction <add>, %66, %cst_22 [1] : vector<128x256xf32> to vector<128xf32>
    %68 = vector.shape_cast %67 : vector<128xf32> to vector<128x1xf32>
    %69 = arith.addf %50, %68 : vector<128x1xf32>
    %c0_23 = arith.constant 0 : index
    %c3 = arith.constant 3 : index
    %c0_24 = arith.constant 0 : index
    %c0_25 = arith.constant 0 : index
    %70 = vector.load %arg1[%c0_23, %c3, %c0_24, %c0_25] : memref<2x8x3x256xf32, #tpu.memory_space<vmem>>, vector<1x1x3x256xf32>
    %71 = vector.shape_cast %70 : vector<1x1x3x256xf32> to vector<3x256xf32>
    %72 = vector.extract_strided_slice %71 {offsets = [0, 0], sizes = [1, 256], strides = [1, 1]} : vector<3x256xf32> to vector<1x256xf32>
    %73 = vector.broadcast %72 : vector<1x256xf32> to vector<128x256xf32>
    %74 = arith.mulf %2, %73 : vector<128x256xf32>
    %75 = arith.addf %11, %74 : vector<128x256xf32>
    %76 = vector.extract_strided_slice %71 {offsets = [1, 0], sizes = [1, 256], strides = [1, 1]} : vector<3x256xf32> to vector<1x256xf32>
    %77 = vector.broadcast %76 : vector<1x256xf32> to vector<128x256xf32>
    %78 = arith.mulf %5, %77 : vector<128x256xf32>
    %79 = arith.addf %75, %78 : vector<128x256xf32>
    %80 = vector.extract_strided_slice %71 {offsets = [2, 0], sizes = [1, 256], strides = [1, 1]} : vector<3x256xf32> to vector<1x256xf32>
    %81 = vector.broadcast %80 : vector<1x256xf32> to vector<128x256xf32>
    %82 = arith.mulf %8, %81 : vector<128x256xf32>
    %83 = arith.addf %79, %82 : vector<128x256xf32>
    %cst_26 = arith.constant 0.000000e+00 : f32
    %84 = vector.broadcast %cst_26 : f32 to vector<128x256xf32>
    %85 = arith.maximumf %83, %84 : vector<128x256xf32>
    %cst_27 = arith.constant dense<0.000000e+00> : vector<128xf32>
    %86 = vector.multi_reduction <add>, %85, %cst_27 [1] : vector<128x256xf32> to vector<128xf32>
    %87 = vector.shape_cast %86 : vector<128xf32> to vector<128x1xf32>
    %88 = arith.addf %69, %87 : vector<128x1xf32>
    %c0_28 = arith.constant 0 : index
    %c4 = arith.constant 4 : index
    %c0_29 = arith.constant 0 : index
    %c0_30 = arith.constant 0 : index
    %89 = vector.load %arg1[%c0_28, %c4, %c0_29, %c0_30] : memref<2x8x3x256xf32, #tpu.memory_space<vmem>>, vector<1x1x3x256xf32>
    %90 = vector.shape_cast %89 : vector<1x1x3x256xf32> to vector<3x256xf32>
    %91 = vector.extract_strided_slice %90 {offsets = [0, 0], sizes = [1, 256], strides = [1, 1]} : vector<3x256xf32> to vector<1x256xf32>
    %92 = vector.broadcast %91 : vector<1x256xf32> to vector<128x256xf32>
    %93 = arith.mulf %2, %92 : vector<128x256xf32>
    %94 = arith.addf %11, %93 : vector<128x256xf32>
    %95 = vector.extract_strided_slice %90 {offsets = [1, 0], sizes = [1, 256], strides = [1, 1]} : vector<3x256xf32> to vector<1x256xf32>
    %96 = vector.broadcast %95 : vector<1x256xf32> to vector<128x256xf32>
    %97 = arith.mulf %5, %96 : vector<128x256xf32>
    %98 = arith.addf %94, %97 : vector<128x256xf32>
    %99 = vector.extract_strided_slice %90 {offsets = [2, 0], sizes = [1, 256], strides = [1, 1]} : vector<3x256xf32> to vector<1x256xf32>
    %100 = vector.broadcast %99 : vector<1x256xf32> to vector<128x256xf32>
    %101 = arith.mulf %8, %100 : vector<128x256xf32>
    %102 = arith.addf %98, %101 : vector<128x256xf32>
    %cst_31 = arith.constant 0.000000e+00 : f32
    %103 = vector.broadcast %cst_31 : f32 to vector<128x256xf32>
    %104 = arith.maximumf %102, %103 : vector<128x256xf32>
    %cst_32 = arith.constant dense<0.000000e+00> : vector<128xf32>
    %105 = vector.multi_reduction <add>, %104, %cst_32 [1] : vector<128x256xf32> to vector<128xf32>
    %106 = vector.shape_cast %105 : vector<128xf32> to vector<128x1xf32>
    %107 = arith.addf %88, %106 : vector<128x1xf32>
    %c0_33 = arith.constant 0 : index
    %c5 = arith.constant 5 : index
    %c0_34 = arith.constant 0 : index
    %c0_35 = arith.constant 0 : index
    %108 = vector.load %arg1[%c0_33, %c5, %c0_34, %c0_35] : memref<2x8x3x256xf32, #tpu.memory_space<vmem>>, vector<1x1x3x256xf32>
    %109 = vector.shape_cast %108 : vector<1x1x3x256xf32> to vector<3x256xf32>
    %110 = vector.extract_strided_slice %109 {offsets = [0, 0], sizes = [1, 256], strides = [1, 1]} : vector<3x256xf32> to vector<1x256xf32>
    %111 = vector.broadcast %110 : vector<1x256xf32> to vector<128x256xf32>
    %112 = arith.mulf %2, %111 : vector<128x256xf32>
    %113 = arith.addf %11, %112 : vector<128x256xf32>
    %114 = vector.extract_strided_slice %109 {offsets = [1, 0], sizes = [1, 256], strides = [1, 1]} : vector<3x256xf32> to vector<1x256xf32>
    %115 = vector.broadcast %114 : vector<1x256xf32> to vector<128x256xf32>
    %116 = arith.mulf %5, %115 : vector<128x256xf32>
    %117 = arith.addf %113, %116 : vector<128x256xf32>
    %118 = vector.extract_strided_slice %109 {offsets = [2, 0], sizes = [1, 256], strides = [1, 1]} : vector<3x256xf32> to vector<1x256xf32>
    %119 = vector.broadcast %118 : vector<1x256xf32> to vector<128x256xf32>
    %120 = arith.mulf %8, %119 : vector<128x256xf32>
    %121 = arith.addf %117, %120 : vector<128x256xf32>
    %cst_36 = arith.constant 0.000000e+00 : f32
    %122 = vector.broadcast %cst_36 : f32 to vector<128x256xf32>
    %123 = arith.maximumf %121, %122 : vector<128x256xf32>
    %cst_37 = arith.constant dense<0.000000e+00> : vector<128xf32>
    %124 = vector.multi_reduction <add>, %123, %cst_37 [1] : vector<128x256xf32> to vector<128xf32>
    %125 = vector.shape_cast %124 : vector<128xf32> to vector<128x1xf32>
    %126 = arith.addf %107, %125 : vector<128x1xf32>
    %c0_38 = arith.constant 0 : index
    %c6 = arith.constant 6 : index
    %c0_39 = arith.constant 0 : index
    %c0_40 = arith.constant 0 : index
    %127 = vector.load %arg1[%c0_38, %c6, %c0_39, %c0_40] : memref<2x8x3x256xf32, #tpu.memory_space<vmem>>, vector<1x1x3x256xf32>
    %128 = vector.shape_cast %127 : vector<1x1x3x256xf32> to vector<3x256xf32>
    %129 = vector.extract_strided_slice %128 {offsets = [0, 0], sizes = [1, 256], strides = [1, 1]} : vector<3x256xf32> to vector<1x256xf32>
    %130 = vector.broadcast %129 : vector<1x256xf32> to vector<128x256xf32>
    %131 = arith.mulf %2, %130 : vector<128x256xf32>
    %132 = arith.addf %11, %131 : vector<128x256xf32>
    %133 = vector.extract_strided_slice %128 {offsets = [1, 0], sizes = [1, 256], strides = [1, 1]} : vector<3x256xf32> to vector<1x256xf32>
    %134 = vector.broadcast %133 : vector<1x256xf32> to vector<128x256xf32>
    %135 = arith.mulf %5, %134 : vector<128x256xf32>
    %136 = arith.addf %132, %135 : vector<128x256xf32>
    %137 = vector.extract_strided_slice %128 {offsets = [2, 0], sizes = [1, 256], strides = [1, 1]} : vector<3x256xf32> to vector<1x256xf32>
    %138 = vector.broadcast %137 : vector<1x256xf32> to vector<128x256xf32>
    %139 = arith.mulf %8, %138 : vector<128x256xf32>
    %140 = arith.addf %136, %139 : vector<128x256xf32>
    %cst_41 = arith.constant 0.000000e+00 : f32
    %141 = vector.broadcast %cst_41 : f32 to vector<128x256xf32>
    %142 = arith.maximumf %140, %141 : vector<128x256xf32>
    %cst_42 = arith.constant dense<0.000000e+00> : vector<128xf32>
    %143 = vector.multi_reduction <add>, %142, %cst_42 [1] : vector<128x256xf32> to vector<128xf32>
    %144 = vector.shape_cast %143 : vector<128xf32> to vector<128x1xf32>
    %145 = arith.addf %126, %144 : vector<128x1xf32>
    %c0_43 = arith.constant 0 : index
    %c7 = arith.constant 7 : index
    %c0_44 = arith.constant 0 : index
    %c0_45 = arith.constant 0 : index
    %146 = vector.load %arg1[%c0_43, %c7, %c0_44, %c0_45] : memref<2x8x3x256xf32, #tpu.memory_space<vmem>>, vector<1x1x3x256xf32>
    %147 = vector.shape_cast %146 : vector<1x1x3x256xf32> to vector<3x256xf32>
    %148 = vector.extract_strided_slice %147 {offsets = [0, 0], sizes = [1, 256], strides = [1, 1]} : vector<3x256xf32> to vector<1x256xf32>
    %149 = vector.broadcast %148 : vector<1x256xf32> to vector<128x256xf32>
    %150 = arith.mulf %2, %149 : vector<128x256xf32>
    %151 = arith.addf %11, %150 : vector<128x256xf32>
    %152 = vector.extract_strided_slice %147 {offsets = [1, 0], sizes = [1, 256], strides = [1, 1]} : vector<3x256xf32> to vector<1x256xf32>
    %153 = vector.broadcast %152 : vector<1x256xf32> to vector<128x256xf32>
    %154 = arith.mulf %5, %153 : vector<128x256xf32>
    %155 = arith.addf %151, %154 : vector<128x256xf32>
    %156 = vector.extract_strided_slice %147 {offsets = [2, 0], sizes = [1, 256], strides = [1, 1]} : vector<3x256xf32> to vector<1x256xf32>
    %157 = vector.broadcast %156 : vector<1x256xf32> to vector<128x256xf32>
    %158 = arith.mulf %8, %157 : vector<128x256xf32>
    %159 = arith.addf %155, %158 : vector<128x256xf32>
    %cst_46 = arith.constant 0.000000e+00 : f32
    %160 = vector.broadcast %cst_46 : f32 to vector<128x256xf32>
    %161 = arith.maximumf %159, %160 : vector<128x256xf32>
    %cst_47 = arith.constant dense<0.000000e+00> : vector<128xf32>
    %162 = vector.multi_reduction <add>, %161, %cst_47 [1] : vector<128x256xf32> to vector<128xf32>
    %163 = vector.shape_cast %162 : vector<128xf32> to vector<128x1xf32>
    %164 = arith.addf %145, %163 : vector<128x1xf32>
    %cst_48 = arith.constant 4.8828125E-4 : f32
    %165 = vector.broadcast %cst_48 : f32 to vector<128x1xf32>
    %166 = arith.mulf %164, %165 : vector<128x1xf32>
    %c0_49 = arith.constant 0 : index
    %c0_50 = arith.constant 0 : index
    %167 = vector.load %arg4[%c0_49, %c0_50] : memref<128x32xf32, #tpu.memory_space<vmem>>, vector<128x32xf32>
    %168 = vector.broadcast %166 : vector<128x1xf32> to vector<128x32xf32>
    %169 = arith.mulf %167, %168 : vector<128x32xf32>
    %cst_51 = arith.constant dense<0.000000e+00> : vector<32xf32>
    %170 = vector.multi_reduction <add>, %169, %cst_51 [0] : vector<128x32xf32> to vector<32xf32>
    %171 = vector.shape_cast %170 : vector<32xf32> to vector<1x32xf32>
    %cst_52 = arith.constant 0.000000e+00 : f32
    %172 = vector.broadcast %cst_52 : f32 to vector<128x1xf32>
    %c1_53 = arith.constant 1 : index
    %c0_54 = arith.constant 0 : index
    %c0_55 = arith.constant 0 : index
    %c0_56 = arith.constant 0 : index
    %173 = vector.load %arg1[%c1_53, %c0_54, %c0_55, %c0_56] : memref<2x8x3x256xf32, #tpu.memory_space<vmem>>, vector<1x1x3x256xf32>
    %174 = vector.shape_cast %173 : vector<1x1x3x256xf32> to vector<3x256xf32>
    %175 = vector.extract_strided_slice %174 {offsets = [0, 0], sizes = [1, 256], strides = [1, 1]} : vector<3x256xf32> to vector<1x256xf32>
    %176 = vector.broadcast %175 : vector<1x256xf32> to vector<128x256xf32>
    %177 = arith.mulf %2, %176 : vector<128x256xf32>
    %178 = arith.addf %11, %177 : vector<128x256xf32>
    %179 = vector.extract_strided_slice %174 {offsets = [1, 0], sizes = [1, 256], strides = [1, 1]} : vector<3x256xf32> to vector<1x256xf32>
    %180 = vector.broadcast %179 : vector<1x256xf32> to vector<128x256xf32>
    %181 = arith.mulf %5, %180 : vector<128x256xf32>
    %182 = arith.addf %178, %181 : vector<128x256xf32>
    %183 = vector.extract_strided_slice %174 {offsets = [2, 0], sizes = [1, 256], strides = [1, 1]} : vector<3x256xf32> to vector<1x256xf32>
    %184 = vector.broadcast %183 : vector<1x256xf32> to vector<128x256xf32>
    %185 = arith.mulf %8, %184 : vector<128x256xf32>
    %186 = arith.addf %182, %185 : vector<128x256xf32>
    %cst_57 = arith.constant 0.000000e+00 : f32
    %187 = vector.broadcast %cst_57 : f32 to vector<128x256xf32>
    %188 = arith.maximumf %186, %187 : vector<128x256xf32>
    %cst_58 = arith.constant dense<0.000000e+00> : vector<128xf32>
    %189 = vector.multi_reduction <add>, %188, %cst_58 [1] : vector<128x256xf32> to vector<128xf32>
    %190 = vector.shape_cast %189 : vector<128xf32> to vector<128x1xf32>
    %191 = arith.addf %172, %190 : vector<128x1xf32>
    %c1_59 = arith.constant 1 : index
    %c1_60 = arith.constant 1 : index
    %c0_61 = arith.constant 0 : index
    %c0_62 = arith.constant 0 : index
    %192 = vector.load %arg1[%c1_59, %c1_60, %c0_61, %c0_62] : memref<2x8x3x256xf32, #tpu.memory_space<vmem>>, vector<1x1x3x256xf32>
    %193 = vector.shape_cast %192 : vector<1x1x3x256xf32> to vector<3x256xf32>
    %194 = vector.extract_strided_slice %193 {offsets = [0, 0], sizes = [1, 256], strides = [1, 1]} : vector<3x256xf32> to vector<1x256xf32>
    %195 = vector.broadcast %194 : vector<1x256xf32> to vector<128x256xf32>
    %196 = arith.mulf %2, %195 : vector<128x256xf32>
    %197 = arith.addf %11, %196 : vector<128x256xf32>
    %198 = vector.extract_strided_slice %193 {offsets = [1, 0], sizes = [1, 256], strides = [1, 1]} : vector<3x256xf32> to vector<1x256xf32>
    %199 = vector.broadcast %198 : vector<1x256xf32> to vector<128x256xf32>
    %200 = arith.mulf %5, %199 : vector<128x256xf32>
    %201 = arith.addf %197, %200 : vector<128x256xf32>
    %202 = vector.extract_strided_slice %193 {offsets = [2, 0], sizes = [1, 256], strides = [1, 1]} : vector<3x256xf32> to vector<1x256xf32>
    %203 = vector.broadcast %202 : vector<1x256xf32> to vector<128x256xf32>
    %204 = arith.mulf %8, %203 : vector<128x256xf32>
    %205 = arith.addf %201, %204 : vector<128x256xf32>
    %cst_63 = arith.constant 0.000000e+00 : f32
    %206 = vector.broadcast %cst_63 : f32 to vector<128x256xf32>
    %207 = arith.maximumf %205, %206 : vector<128x256xf32>
    %cst_64 = arith.constant dense<0.000000e+00> : vector<128xf32>
    %208 = vector.multi_reduction <add>, %207, %cst_64 [1] : vector<128x256xf32> to vector<128xf32>
    %209 = vector.shape_cast %208 : vector<128xf32> to vector<128x1xf32>
    %210 = arith.addf %191, %209 : vector<128x1xf32>
    %c1_65 = arith.constant 1 : index
    %c2_66 = arith.constant 2 : index
    %c0_67 = arith.constant 0 : index
    %c0_68 = arith.constant 0 : index
    %211 = vector.load %arg1[%c1_65, %c2_66, %c0_67, %c0_68] : memref<2x8x3x256xf32, #tpu.memory_space<vmem>>, vector<1x1x3x256xf32>
    %212 = vector.shape_cast %211 : vector<1x1x3x256xf32> to vector<3x256xf32>
    %213 = vector.extract_strided_slice %212 {offsets = [0, 0], sizes = [1, 256], strides = [1, 1]} : vector<3x256xf32> to vector<1x256xf32>
    %214 = vector.broadcast %213 : vector<1x256xf32> to vector<128x256xf32>
    %215 = arith.mulf %2, %214 : vector<128x256xf32>
    %216 = arith.addf %11, %215 : vector<128x256xf32>
    %217 = vector.extract_strided_slice %212 {offsets = [1, 0], sizes = [1, 256], strides = [1, 1]} : vector<3x256xf32> to vector<1x256xf32>
    %218 = vector.broadcast %217 : vector<1x256xf32> to vector<128x256xf32>
    %219 = arith.mulf %5, %218 : vector<128x256xf32>
    %220 = arith.addf %216, %219 : vector<128x256xf32>
    %221 = vector.extract_strided_slice %212 {offsets = [2, 0], sizes = [1, 256], strides = [1, 1]} : vector<3x256xf32> to vector<1x256xf32>
    %222 = vector.broadcast %221 : vector<1x256xf32> to vector<128x256xf32>
    %223 = arith.mulf %8, %222 : vector<128x256xf32>
    %224 = arith.addf %220, %223 : vector<128x256xf32>
    %cst_69 = arith.constant 0.000000e+00 : f32
    %225 = vector.broadcast %cst_69 : f32 to vector<128x256xf32>
    %226 = arith.maximumf %224, %225 : vector<128x256xf32>
    %cst_70 = arith.constant dense<0.000000e+00> : vector<128xf32>
    %227 = vector.multi_reduction <add>, %226, %cst_70 [1] : vector<128x256xf32> to vector<128xf32>
    %228 = vector.shape_cast %227 : vector<128xf32> to vector<128x1xf32>
    %229 = arith.addf %210, %228 : vector<128x1xf32>
    %c1_71 = arith.constant 1 : index
    %c3_72 = arith.constant 3 : index
    %c0_73 = arith.constant 0 : index
    %c0_74 = arith.constant 0 : index
    %230 = vector.load %arg1[%c1_71, %c3_72, %c0_73, %c0_74] : memref<2x8x3x256xf32, #tpu.memory_space<vmem>>, vector<1x1x3x256xf32>
    %231 = vector.shape_cast %230 : vector<1x1x3x256xf32> to vector<3x256xf32>
    %232 = vector.extract_strided_slice %231 {offsets = [0, 0], sizes = [1, 256], strides = [1, 1]} : vector<3x256xf32> to vector<1x256xf32>
    %233 = vector.broadcast %232 : vector<1x256xf32> to vector<128x256xf32>
    %234 = arith.mulf %2, %233 : vector<128x256xf32>
    %235 = arith.addf %11, %234 : vector<128x256xf32>
    %236 = vector.extract_strided_slice %231 {offsets = [1, 0], sizes = [1, 256], strides = [1, 1]} : vector<3x256xf32> to vector<1x256xf32>
    %237 = vector.broadcast %236 : vector<1x256xf32> to vector<128x256xf32>
    %238 = arith.mulf %5, %237 : vector<128x256xf32>
    %239 = arith.addf %235, %238 : vector<128x256xf32>
    %240 = vector.extract_strided_slice %231 {offsets = [2, 0], sizes = [1, 256], strides = [1, 1]} : vector<3x256xf32> to vector<1x256xf32>
    %241 = vector.broadcast %240 : vector<1x256xf32> to vector<128x256xf32>
    %242 = arith.mulf %8, %241 : vector<128x256xf32>
    %243 = arith.addf %239, %242 : vector<128x256xf32>
    %cst_75 = arith.constant 0.000000e+00 : f32
    %244 = vector.broadcast %cst_75 : f32 to vector<128x256xf32>
    %245 = arith.maximumf %243, %244 : vector<128x256xf32>
    %cst_76 = arith.constant dense<0.000000e+00> : vector<128xf32>
    %246 = vector.multi_reduction <add>, %245, %cst_76 [1] : vector<128x256xf32> to vector<128xf32>
    %247 = vector.shape_cast %246 : vector<128xf32> to vector<128x1xf32>
    %248 = arith.addf %229, %247 : vector<128x1xf32>
    %c1_77 = arith.constant 1 : index
    %c4_78 = arith.constant 4 : index
    %c0_79 = arith.constant 0 : index
    %c0_80 = arith.constant 0 : index
    %249 = vector.load %arg1[%c1_77, %c4_78, %c0_79, %c0_80] : memref<2x8x3x256xf32, #tpu.memory_space<vmem>>, vector<1x1x3x256xf32>
    %250 = vector.shape_cast %249 : vector<1x1x3x256xf32> to vector<3x256xf32>
    %251 = vector.extract_strided_slice %250 {offsets = [0, 0], sizes = [1, 256], strides = [1, 1]} : vector<3x256xf32> to vector<1x256xf32>
    %252 = vector.broadcast %251 : vector<1x256xf32> to vector<128x256xf32>
    %253 = arith.mulf %2, %252 : vector<128x256xf32>
    %254 = arith.addf %11, %253 : vector<128x256xf32>
    %255 = vector.extract_strided_slice %250 {offsets = [1, 0], sizes = [1, 256], strides = [1, 1]} : vector<3x256xf32> to vector<1x256xf32>
    %256 = vector.broadcast %255 : vector<1x256xf32> to vector<128x256xf32>
    %257 = arith.mulf %5, %256 : vector<128x256xf32>
    %258 = arith.addf %254, %257 : vector<128x256xf32>
    %259 = vector.extract_strided_slice %250 {offsets = [2, 0], sizes = [1, 256], strides = [1, 1]} : vector<3x256xf32> to vector<1x256xf32>
    %260 = vector.broadcast %259 : vector<1x256xf32> to vector<128x256xf32>
    %261 = arith.mulf %8, %260 : vector<128x256xf32>
    %262 = arith.addf %258, %261 : vector<128x256xf32>
    %cst_81 = arith.constant 0.000000e+00 : f32
    %263 = vector.broadcast %cst_81 : f32 to vector<128x256xf32>
    %264 = arith.maximumf %262, %263 : vector<128x256xf32>
    %cst_82 = arith.constant dense<0.000000e+00> : vector<128xf32>
    %265 = vector.multi_reduction <add>, %264, %cst_82 [1] : vector<128x256xf32> to vector<128xf32>
    %266 = vector.shape_cast %265 : vector<128xf32> to vector<128x1xf32>
    %267 = arith.addf %248, %266 : vector<128x1xf32>
    %c1_83 = arith.constant 1 : index
    %c5_84 = arith.constant 5 : index
    %c0_85 = arith.constant 0 : index
    %c0_86 = arith.constant 0 : index
    %268 = vector.load %arg1[%c1_83, %c5_84, %c0_85, %c0_86] : memref<2x8x3x256xf32, #tpu.memory_space<vmem>>, vector<1x1x3x256xf32>
    %269 = vector.shape_cast %268 : vector<1x1x3x256xf32> to vector<3x256xf32>
    %270 = vector.extract_strided_slice %269 {offsets = [0, 0], sizes = [1, 256], strides = [1, 1]} : vector<3x256xf32> to vector<1x256xf32>
    %271 = vector.broadcast %270 : vector<1x256xf32> to vector<128x256xf32>
    %272 = arith.mulf %2, %271 : vector<128x256xf32>
    %273 = arith.addf %11, %272 : vector<128x256xf32>
    %274 = vector.extract_strided_slice %269 {offsets = [1, 0], sizes = [1, 256], strides = [1, 1]} : vector<3x256xf32> to vector<1x256xf32>
    %275 = vector.broadcast %274 : vector<1x256xf32> to vector<128x256xf32>
    %276 = arith.mulf %5, %275 : vector<128x256xf32>
    %277 = arith.addf %273, %276 : vector<128x256xf32>
    %278 = vector.extract_strided_slice %269 {offsets = [2, 0], sizes = [1, 256], strides = [1, 1]} : vector<3x256xf32> to vector<1x256xf32>
    %279 = vector.broadcast %278 : vector<1x256xf32> to vector<128x256xf32>
    %280 = arith.mulf %8, %279 : vector<128x256xf32>
    %281 = arith.addf %277, %280 : vector<128x256xf32>
    %cst_87 = arith.constant 0.000000e+00 : f32
    %282 = vector.broadcast %cst_87 : f32 to vector<128x256xf32>
    %283 = arith.maximumf %281, %282 : vector<128x256xf32>
    %cst_88 = arith.constant dense<0.000000e+00> : vector<128xf32>
    %284 = vector.multi_reduction <add>, %283, %cst_88 [1] : vector<128x256xf32> to vector<128xf32>
    %285 = vector.shape_cast %284 : vector<128xf32> to vector<128x1xf32>
    %286 = arith.addf %267, %285 : vector<128x1xf32>
    %c1_89 = arith.constant 1 : index
    %c6_90 = arith.constant 6 : index
    %c0_91 = arith.constant 0 : index
    %c0_92 = arith.constant 0 : index
    %287 = vector.load %arg1[%c1_89, %c6_90, %c0_91, %c0_92] : memref<2x8x3x256xf32, #tpu.memory_space<vmem>>, vector<1x1x3x256xf32>
    %288 = vector.shape_cast %287 : vector<1x1x3x256xf32> to vector<3x256xf32>
    %289 = vector.extract_strided_slice %288 {offsets = [0, 0], sizes = [1, 256], strides = [1, 1]} : vector<3x256xf32> to vector<1x256xf32>
    %290 = vector.broadcast %289 : vector<1x256xf32> to vector<128x256xf32>
    %291 = arith.mulf %2, %290 : vector<128x256xf32>
    %292 = arith.addf %11, %291 : vector<128x256xf32>
    %293 = vector.extract_strided_slice %288 {offsets = [1, 0], sizes = [1, 256], strides = [1, 1]} : vector<3x256xf32> to vector<1x256xf32>
    %294 = vector.broadcast %293 : vector<1x256xf32> to vector<128x256xf32>
    %295 = arith.mulf %5, %294 : vector<128x256xf32>
    %296 = arith.addf %292, %295 : vector<128x256xf32>
    %297 = vector.extract_strided_slice %288 {offsets = [2, 0], sizes = [1, 256], strides = [1, 1]} : vector<3x256xf32> to vector<1x256xf32>
    %298 = vector.broadcast %297 : vector<1x256xf32> to vector<128x256xf32>
    %299 = arith.mulf %8, %298 : vector<128x256xf32>
    %300 = arith.addf %296, %299 : vector<128x256xf32>
    %cst_93 = arith.constant 0.000000e+00 : f32
    %301 = vector.broadcast %cst_93 : f32 to vector<128x256xf32>
    %302 = arith.maximumf %300, %301 : vector<128x256xf32>
    %cst_94 = arith.constant dense<0.000000e+00> : vector<128xf32>
    %303 = vector.multi_reduction <add>, %302, %cst_94 [1] : vector<128x256xf32> to vector<128xf32>
    %304 = vector.shape_cast %303 : vector<128xf32> to vector<128x1xf32>
    %305 = arith.addf %286, %304 : vector<128x1xf32>
    %c1_95 = arith.constant 1 : index
    %c7_96 = arith.constant 7 : index
    %c0_97 = arith.constant 0 : index
    %c0_98 = arith.constant 0 : index
    %306 = vector.load %arg1[%c1_95, %c7_96, %c0_97, %c0_98] : memref<2x8x3x256xf32, #tpu.memory_space<vmem>>, vector<1x1x3x256xf32>
    %307 = vector.shape_cast %306 : vector<1x1x3x256xf32> to vector<3x256xf32>
    %308 = vector.extract_strided_slice %307 {offsets = [0, 0], sizes = [1, 256], strides = [1, 1]} : vector<3x256xf32> to vector<1x256xf32>
    %309 = vector.broadcast %308 : vector<1x256xf32> to vector<128x256xf32>
    %310 = arith.mulf %2, %309 : vector<128x256xf32>
    %311 = arith.addf %11, %310 : vector<128x256xf32>
    %312 = vector.extract_strided_slice %307 {offsets = [1, 0], sizes = [1, 256], strides = [1, 1]} : vector<3x256xf32> to vector<1x256xf32>
    %313 = vector.broadcast %312 : vector<1x256xf32> to vector<128x256xf32>
    %314 = arith.mulf %5, %313 : vector<128x256xf32>
    %315 = arith.addf %311, %314 : vector<128x256xf32>
    %316 = vector.extract_strided_slice %307 {offsets = [2, 0], sizes = [1, 256], strides = [1, 1]} : vector<3x256xf32> to vector<1x256xf32>
    %317 = vector.broadcast %316 : vector<1x256xf32> to vector<128x256xf32>
    %318 = arith.mulf %8, %317 : vector<128x256xf32>
    %319 = arith.addf %315, %318 : vector<128x256xf32>
    %cst_99 = arith.constant 0.000000e+00 : f32
    %320 = vector.broadcast %cst_99 : f32 to vector<128x256xf32>
    %321 = arith.maximumf %319, %320 : vector<128x256xf32>
    %cst_100 = arith.constant dense<0.000000e+00> : vector<128xf32>
    %322 = vector.multi_reduction <add>, %321, %cst_100 [1] : vector<128x256xf32> to vector<128xf32>
    %323 = vector.shape_cast %322 : vector<128xf32> to vector<128x1xf32>
    %324 = arith.addf %305, %323 : vector<128x1xf32>
    %cst_101 = arith.constant 4.8828125E-4 : f32
    %325 = vector.broadcast %cst_101 : f32 to vector<128x1xf32>
    %326 = arith.mulf %324, %325 : vector<128x1xf32>
    %c0_102 = arith.constant 0 : index
    %c0_103 = arith.constant 0 : index
    %327 = vector.load %arg4[%c0_102, %c0_103] : memref<128x32xf32, #tpu.memory_space<vmem>>, vector<128x32xf32>
    %328 = vector.broadcast %326 : vector<128x1xf32> to vector<128x32xf32>
    %329 = arith.mulf %327, %328 : vector<128x32xf32>
    %cst_104 = arith.constant dense<0.000000e+00> : vector<32xf32>
    %330 = vector.multi_reduction <add>, %329, %cst_104 [0] : vector<128x32xf32> to vector<32xf32>
    %331 = vector.shape_cast %330 : vector<32xf32> to vector<1x32xf32>
    %332 = tpu.concatenate %171, %331 in 0 : vector<1x32xf32>, vector<1x32xf32> -> vector<2x32xf32>
    %c0_105 = arith.constant 0 : index
    %c0_106 = arith.constant 0 : index
    %333 = vector.load %arg5[%c0_105, %c0_106] : memref<1x32xf32, #tpu.memory_space<vmem>>, vector<1x32xf32>
    %334 = vector.broadcast %333 : vector<1x32xf32> to vector<2x32xf32>
    %335 = arith.addf %332, %334 : vector<2x32xf32>
    %c0_107 = arith.constant 0 : index
    %c0_108 = arith.constant 0 : index
    %336 = vector.load %arg6[%c0_107, %c0_108] : memref<2x32xf32, #tpu.memory_space<vmem>>, vector<2x32xf32>
    tpu.vector_store %arg6[%c0_107, %c0_108], %335 {strides = array<i32>} : memref<2x32xf32, #tpu.memory_space<vmem>>, vector<2x32xf32>,
    return
  }
  func.func @transform_0(%arg0: i32) -> (i32, i32, i32, i32) {
    %c0_i32 = arith.constant 0 : i32
    %c0_i32_0 = arith.constant 0 : i32
    %c0_i32_1 = arith.constant 0 : i32
    %c0_i32_2 = arith.constant 0 : i32
    %c0_i32_3 = arith.constant 0 : i32
    return %c0_i32, %c0_i32_0, %c0_i32_1, %c0_i32_2 : i32, i32, i32, i32
  }
  func.func @transform_1(%arg0: i32) -> (i32, i32) {
    %c0_i32 = arith.constant 0 : i32
    %c0_i32_0 = arith.constant 0 : i32
    %c0_i32_1 = arith.constant 0 : i32
    return %c0_i32, %c0_i32_0 : i32, i32
  }
  func.func @transform_2(%arg0: i32) -> (i32, i32) {
    %c0_i32 = arith.constant 0 : i32
    %c0_i32_0 = arith.constant 0 : i32
    %c0_i32_1 = arith.constant 0 : i32
    return %c0_i32, %c0_i32_0 : i32, i32
  }
  func.func @transform_3(%arg0: i32) -> (i32, i32) {
    %c0_i32 = arith.constant 0 : i32
    %c0_i32_0 = arith.constant 0 : i32
    %c0_i32_1 = arith.constant 0 : i32
    return %c0_i32, %c0_i32_0 : i32, i32
  }
  func.func @transform_4(%arg0: i32) -> (i32, i32) {
    %c0_i32 = arith.constant 0 : i32
    %c0_i32_0 = arith.constant 0 : i32
    %c0_i32_1 = arith.constant 0 : i32
    return %c0_i32, %c0_i32_0 : i32, i32
  }
  func.func @transform_5(%arg0: i32) -> (i32, i32) {
    %c0_i32 = arith.constant 0 : i32
    %c0_i32_0 = arith.constant 0 : i32
    %c0_i32_1 = arith.constant 0 : i32
    return %c0_i32, %c0_i32_0 : i32, i32
  }
}

</mosaic_0001>

<bundles_post_ra>
// kernel: tpu_custom_call.1
= control target key start
LH: loop header
LB: loop body
LE: loop exit
PB: predicated region body
PF: predicated region fallthrough
CT: control target
= control target key end

     0   :  { %v6092_v2 = vmov 1   ;;  %v6093_v3 = vmov 0   ;;  %s12439_s0 = inlined_call_operand.vmem [shape: f32[2,8,3,256], index: 0, kind: input, shape index: {}]   ;;  %s12440_s1 = inlined_call_operand.vmem [shape: f32[128,3], index: 1, kind: input, shape index: {}]   ;;  %s12441_s2 = inlined_call_operand.vmem [shape: f32[128,1], index: 2, kind: input, shape index: {}]   ;;  %s12442_s3 = inlined_call_operand.vmem [shape: f32[128,32], index: 3, kind: input, shape index: {}]   ;;  %s12443_s4 = inlined_call_operand.vmem [shape: f32[1,32], index: 4, kind: input, shape index: {}]   ;;  %s12444_s5 = inlined_call_operand.hbm [shape: f32[2,32], index: 5, kind: output, shape index: {}]  }
   0x1   :  { %v23_v0 = vld [vmem:[%s12440_s1 + $0x10] sm:$0xff]  ;;  %v21_v1 = vld [vmem:[%s12440_s1] sm:$0xff]  ;;  %6062 = vset.pattern.permute.xlu0 %v6092_v2  ;;  %6061 = vset.pattern.permute.xlu1 %v6093_v3  ;;  %v24_v4 = vld [vmem:[%s12440_s1 + $0x18] sm:$0xff] }
   0x2   :  { %49 = vperm.xlu1 %6061, %v23_v0   ;;  %118 = vperm.xlu0 %6062, %v21_v1   ;;  %v26_v5 = vld [vmem:[%s12440_s1 + $0x28] sm:$0xff]  ;;  %v28_v6 = vld [vmem:[%s12440_s1 + $0x38] sm:$0xff] }
   0x6   :  { %54 = vperm.xlu1 %6061, %v24_v4   ;;  %130 = vperm.xlu0 %6062, %v24_v4  }
   0xa   :  { %64 = vperm.xlu1 %6061, %v26_v5   ;;  %138 = vperm.xlu0 %6062, %v26_v5  }
   0xb   :  { %10 = vsyncpa [#allocation3], 0  ;;  %v30_v7 = vld [vmem:[%s12440_s1 + $0x48] sm:$0xff]  ;;  %v32_v8 = vld [vmem:[%s12440_s1 + $0x58] sm:$0xff]  ;;  %v6094_v12 = vmov 2   ;;  %v343_v24 = vlaneseq  ;;  %vm3148_vm0 = vcmask 261120  }
   0xc   :  { %v34_v9 = vld [vmem:[%s12440_s1 + $0x68] sm:$0xff]  ;;  %v36_v10 = vld [vmem:[%s12440_s1 + $0x78] sm:$0xff]  ;;  %v25_v13 = vld [vmem:[%s12440_s1 + $0x20] sm:$0xff]  ;;  %vm6015_vm1 = vcmask 1040384   ;;  %s6095_s13 = smov [#allocation2]   ;;  %vm6025_vm2 = vcmask 254976  }
   0xd   :  { %v22_v11 = vld [vmem:[%s12440_s1 + $0x8] sm:$0xff]  ;;  %v27_v14 = vld [vmem:[%s12440_s1 + $0x30] sm:$0xff]  ;;  %v29_v15 = vld [vmem:[%s12440_s1 + $0x40] sm:$0xff]  ;;  %v344_v27 = vshrl.u32 %v343_v24, 7  ;;  %s6033_s14 = sshll.u32 %s6095_s13, 4  ;;  %s6034_s14 = int_to_ptr.vmem [resolvable:$true] %s6033_s14 }
   0xe   :  { %74 = vperm.xlu1 %6061, %v28_v6   ;;  %146 = vperm.xlu0 %6062, %v28_v6   ;;  %v31_v16 = vld [vmem:[%s12440_s1 + $0x50] sm:$0xff]  ;;  %v33_v17 = vld [vmem:[%s12440_s1 + $0x60] sm:$0xff]  ;;  %v248_v20 = vld [vmem:[%s12441_s2 + $0x18] sm:$0xff]  ;;  %s6068_s15 = scalar_lea.vmem %s6034_s14, 32  ;;  %p6073_p1 = scmp.lt.s32.totalorder %s6034_s14, %s6034_s14 }
   0xf   :  { %v35_v18 = vld [vmem:[%s12440_s1 + $0x70] sm:$0xff]  ;;  %v245_v19 = vld [vmem:[%s12441_s2] sm:$0xff]  ;;  %v250_v21 = vld [vmem:[%s12441_s2 + $0x28] sm:$0xff]  ;;  %v6204_v30 = vsub.s32 0, %v344_v27  ;;  %v6206_v31 = vsub.s32 4, %v344_v27  ;;  %v6208_v32 = vsub.s32 1, %v344_v27  ;;  %p6069_p0 = scmp.ne.s32.totalorder %s6034_s14, %s6068_s15  ;;  %p6074_p2 = scmp.lt.s32.totalorder %s6068_s15, %s6068_s15 }
  0x10   :  { %v246_v22 = vld [vmem:[%s12441_s2 + $0x8] sm:$0xff]  ;;  %v252_v23 = vld [vmem:[%s12441_s2 + $0x38] sm:$0xff]  ;;  %v247_v25 = vld [vmem:[%s12441_s2 + $0x10] sm:$0xff]  ;;  %v6210_v33 = vsub.s32 5, %v344_v27  ;;  %v6233_v45 = vsub.s32 2, %v344_v27  ;;  %v6235_v46 = vsub.s32 6, %v344_v27 }
  0x11   :  { %v254_v26 = vld [vmem:[%s12441_s2 + $0x48] sm:$0xff]  ;;  %v249_v28 = vld [vmem:[%s12441_s2 + $0x20] sm:$0xff]  ;;  %v256_v29 = vld [vmem:[%s12441_s2 + $0x58] sm:$0xff]  ;;  %12924 = vst [vmem:[#allocation5_spill] sm:$0xff] %v6204_v30  ;;  %p6075_p3 = por %p6074_p2, %p6073_p1 }
  0x12   :  { %84 = vperm.xlu1 %6061, %v30_v7   ;;  %154 = vperm.xlu0 %6062, %v30_v7   ;;  %12925 = vst [vmem:[#allocation6_spill] sm:$0xff] %v6206_v31  ;;  %12926 = vst [vmem:[#allocation7_spill] sm:$0xff] %v6208_v32  ;;  %v251_v34 = vld [vmem:[%s12441_s2 + $0x30] sm:$0xff]  ;;  %v341_v35 = vld [vmem:[%s12439_s0] sm:$0x77] }
  0x13   :  { %12927 = vst [vmem:[#allocation8_spill] sm:$0xff] %v6210_v33  ;;  %v6041_v36 = vld [vmem:[%s12439_s0 + $0x8] sm:$0x77]  ;;  %v346_v38 = vrot.slane %v341_v35, %v6204_v30  ;;  %v350_v39 = vrot.slane %v341_v35, %v6206_v31  ;;  %v428_v40 = vrot.slane %v341_v35, %v6208_v32  ;;  %v432_v41 = vrot.slane %v341_v35, %v6210_v33  ;;  %v253_v42 = vld [vmem:[%s12441_s2 + $0x40] sm:$0xff]  ;;  %v6042_v47 = vld [vmem:[%s12439_s0 + $0x10] sm:$0x77]  ;;  %p6076_p4 = pnand %p6075_p3, %p6069_p0 }
  0x14   :  { %v258_v37 = vld [vmem:[%s12441_s2 + $0x68] sm:$0xff]  ;;  %v691_v43 = vrot.slane %v6041_v36, %v6204_v30  ;;  %v695_v44 = vrot.slane %v6041_v36, %v6206_v31  ;;  %12928 = vst [vmem:[#allocation9_spill] sm:$0xff] %v6233_v45  ;;  %12929 = vst [vmem:[#allocation10_spill] sm:$0xff] %v6235_v46  ;;  %v260_v48 = vld [vmem:[%s12441_s2 + $0x78] sm:$0xff]  ;;  %v773_v56 = vrot.slane %v6041_v36, %v6208_v32 }
  0x15   :  { %v6244_v49 = vrot.slane %v346_v38, %v6204_v30  ;;  %v6247_v50 = vrot.slane %v350_v39, %v6204_v30  ;;  %v6250_v51 = vrot.slane %v428_v40, %v6208_v32  ;;  %v6253_v52 = vrot.slane %v432_v41, %v6208_v32  ;;  %v255_v53 = vld [vmem:[%s12441_s2 + $0x50] sm:$0xff]  ;;  %v6269_v58 = vld [vmem:[%s12439_s0 + $0x18] sm:$0x77] }
  0x16   :  { %94 = vperm.xlu1 %6061, %v32_v8   ;;  %162 = vperm.xlu0 %6062, %v32_v8   ;;  %v6259_v54 = vrot.slane %v691_v43, %v6204_v30  ;;  %v6262_v55 = vrot.slane %v695_v44, %v6204_v30  ;;  %v777_v57 = vrot.slane %v6041_v36, %v6210_v33 }
  0x17   :  { %v510_v59 = vrot.slane %v341_v35, %v6233_v45  ;;  %v514_v60 = vrot.slane %v341_v35, %v6235_v46  ;;  %v1036_v61 = vrot.slane %v6042_v47, %v6204_v30  ;;  %v1040_v62 = vrot.slane %v6042_v47, %v6206_v31 }
  0x18   :  { %v855_v63 = vrot.slane %v6041_v36, %v6233_v45 }
  0x1a   :  { %104 = vperm.xlu1 %6061, %v34_v9   ;;  %170 = vperm.xlu0 %6062, %v34_v9  }
  0x1e   :  { %114 = vperm.xlu1 %6061, %v36_v10   ;;  %178 = vperm.xlu0 %6062, %v36_v10  }
  0x22   :  { %6063 = vset.pattern.permute.xlu1 %v6092_v2  ;;  %6065 = vset.pattern.permute.xlu0 %v6094_v12  ;;  %v1122_v2 = vrot.slane %v6042_v47, %v6210_v33 }
  0x23   :  { %122 = vperm.xlu1 %6063, %v22_v11   ;;  %186 = vperm.xlu0 %6065, %v22_v11  }
  0x27   :  { %126 = vperm.xlu1 %6063, %v23_v0   ;;  %198 = vperm.xlu0 %6065, %v25_v13  }
  0x2b   :  { %134 = vperm.xlu1 %6063, %v25_v13   ;;  %206 = vperm.xlu0 %6065, %v27_v14  }
  0x2f   :  { %142 = vperm.xlu1 %6063, %v27_v14   ;;  %214 = vperm.xlu0 %6065, %v29_v15  }
  0x33   :  { %150 = vperm.xlu1 %6063, %v29_v15   ;;  %222 = vperm.xlu0 %6065, %v31_v16  }
  0x37   :  { %158 = vperm.xlu1 %6063, %v31_v16   ;;  %230 = vperm.xlu0 %6065, %v33_v17  }
  0x3b   :  { %166 = vperm.xlu1 %6063, %v33_v17   ;;  %238 = vperm.xlu0 %6065, %v35_v18  }
  0x3f   :  { %174 = vperm.xlu1 %6063, %v35_v18   ;;  %6066 = vset.pattern.permute.xlu0 %v6093_v3 }
  0x40   :  { %39 = vperm.xlu0 %6066, %v21_v1  }
  0x43   :  { %6064 = vset.pattern.permute.xlu1 %v6094_v12  ;;  %v6299_v12 = vrot.slane %v510_v59, %v6233_v45 }
  0x44   :  { %182 = vperm.xlu1 %6064, %v21_v1   ;;  %44 = vperm.xlu0 %6066, %v22_v11   ;;  %v1118_v1 = vrot.slane %v6042_v47, %v6208_v32  ;;  %v1204_v11 = vrot.slane %v6042_v47, %v6235_v46 }
  0x48   :  { %190 = vperm.xlu1 %6064, %v23_v0   ;;  %59 = vperm.xlu0 %6066, %v25_v13   ;;  %v859_v0 = vrot.slane %v6041_v36, %v6235_v46  ;;  %v6302_v13 = vrot.slane %v514_v60, %v6233_v45 }
  0x4c   :  { %194 = vperm.xlu1 %6064, %v24_v4   ;;  %69 = vperm.xlu0 %6066, %v27_v14   ;;  %v1385_v4 = vrot.slane %v6269_v58, %v6206_v31  ;;  %v6305_v14 = vrot.slane %v1036_v61, %v6204_v30 }
  0x50   :  { %202 = vperm.xlu1 %6064, %v26_v5   ;;  %79 = vperm.xlu0 %6066, %v29_v15   ;;  %v1463_v5 = vrot.slane %v6269_v58, %v6208_v32  ;;  %v6308_v15 = vrot.slane %v1040_v62, %v6204_v30 }
  0x52   :  { %v6333_v24 = vrot.slane %v1463_v5, %v6208_v32 }
  0x54   :  { %210 = vperm.xlu1 %6064, %v28_v6   ;;  %89 = vperm.xlu0 %6066, %v31_v16   ;;  %v1467_v6 = vrot.slane %v6269_v58, %v6210_v33  ;;  %v6311_v16 = vrot.slane %v855_v63, %v6233_v45  ;;  %12934 = vst [vmem:[#allocation15_spill] sm:$0xff] %v6333_v24 }
  0x58   :  { %218 = vperm.xlu1 %6064, %v30_v7   ;;  %99 = vperm.xlu0 %6066, %v33_v17   ;;  %v257_v7 = vld [vmem:[%s12441_s2 + $0x60] sm:$0xff]  ;;  %v6314_v17 = vrot.slane %v859_v0, %v6233_v45 }
  0x5c   :  { %226 = vperm.xlu1 %6064, %v32_v8   ;;  %109 = vperm.xlu0 %6066, %v35_v18   ;;  %v6291_v8 = vrot.slane %v773_v56, %v6208_v32  ;;  %v6317_v18 = vrot.slane %v1118_v1, %v6208_v32 }
  0x60   :  { %234 = vperm.xlu1 %6064, %v34_v9   ;;  %263 = vperm.xlu0 %6066, %v245_v19   ;;  %v6294_v9 = vrot.slane %v777_v57, %v6208_v32  ;;  %v6320_v19 = vrot.slane %v1122_v2, %v6208_v32 }
  0x64   :  { %242 = vperm.xlu1 %6064, %v36_v10   ;;  %278 = vperm.xlu0 %6066, %v248_v20   ;;  %v1200_v10 = vrot.slane %v6042_v47, %v6233_v45 }
  0x68   :  { %6067 = vset.pattern.permute.xlu1 %v6093_v3  ;;  %288 = vperm.xlu0 %6066, %v250_v21   ;;  %v1381_v3 = vrot.slane %v6269_v58, %v6204_v30 }
  0x69   :  { %268 = vperm.xlu1 %6067, %v246_v22  }
  0x6a   :  { %v6327_v22 = vrot.slane %v1381_v3, %v6204_v30 }
  0x6c   :  { %298 = vperm.xlu0 %6066, %v252_v23   ;;  %12932 = vst [vmem:[#allocation13_spill] sm:$0xff] %v6327_v22  ;;  %v6330_v23 = vrot.slane %v1385_v4, %v6204_v30 }
  0x6d   :  { %273 = vperm.xlu1 %6067, %v247_v25   ;;  %v6336_v25 = vrot.slane %v1467_v6, %v6208_v32 }
  0x6e   :  { %12933 = vst [vmem:[#allocation14_spill] sm:$0xff] %v6330_v23 }
  0x6f   :  { %12935 = vst [vmem:[#allocation16_spill] sm:$0xff] %v6336_v25 }
  0x70   :  { %308 = vperm.xlu0 %6066, %v254_v26   ;;  %v259_v26 = vld [vmem:[%s12441_s2 + $0x70] sm:$0xff] }
  0x71   :  { %283 = vperm.xlu1 %6067, %v249_v28  }
  0x74   :  { %318 = vperm.xlu0 %6066, %v256_v29   ;;  %v6350_v29 = vrot.slane %v1200_v10, %v6233_v45 }
  0x75   :  { %293 = vperm.xlu1 %6067, %v251_v34   ;;  %v6353_v34 = vrot.slane %v1204_v11, %v6233_v45 }
  0x78   :  { %328 = vperm.xlu0 %6066, %v258_v37  }
  0x79   :  { %303 = vperm.xlu1 %6067, %v253_v42  }
  0x7c   :  { %338 = vperm.xlu0 %6066, %v260_v48  }
  0x7d   :  { %313 = vperm.xlu1 %6067, %v255_v53  }
  0x81   :  { %v6322_v20 = vpop.permute.xlu1 %49  ;;  %323 = vperm.xlu1 %6067, %v257_v7   ;;  %v6324_v21 = vpop.permute.xlu0 %118 }
  0x82   :  { %12930 = vst [vmem:[#allocation11_spill] sm:$0xff] %v6322_v20  ;;  %12931 = vst [vmem:[#allocation12_spill] sm:$0xff] %v6324_v21  ;;  %v6343_v27 = vmul.f32 %v6250_v51, %v6324_v21  ;;  %v6347_v28 = vmul.f32 %v6253_v52, %v6324_v21  ;;  %v6357_v35 = vmul.f32 %v6244_v49, %v6322_v20 }
  0x83   :  { %v6361_v36 = vmul.f32 %v6247_v50, %v6322_v20  ;;  %v6365_v37 = vmul.f32 %v6291_v8, %v6324_v21  ;;  %v6369_v38 = vmul.f32 %v6294_v9, %v6324_v21  ;;  %v6373_v39 = vmul.f32 %v6259_v54, %v6322_v20 }
  0x84   :  { %12936 = vst [vmem:[#allocation17_spill] sm:$0xff] %v6357_v35  ;;  %v6377_v40 = vmul.f32 %v6262_v55, %v6322_v20  ;;  %v6381_v41 = vmul.f32 %v6317_v18, %v6324_v21  ;;  %v6385_v42 = vmul.f32 %v6320_v19, %v6324_v21  ;;  %v6393_v47 = vmul.f32 %v6305_v14, %v6322_v20 }
  0x85   :  { %12937 = vst [vmem:[#allocation18_spill] sm:$0xff] %v6361_v36  ;;  %12938 = vst [vmem:[#allocation19_spill] sm:$0xff] %v6373_v39  ;;  %v6387_v43 = vpop.permute.xlu1 %54  ;;  %333 = vperm.xlu1 %6067, %v259_v26   ;;  %v6389_v44 = vpop.permute.xlu0 %130  ;;  %v6397_v48 = vmul.f32 %v6308_v15, %v6322_v20  ;;  %v6401_v53 = vmul.f32 %v6333_v24, %v6324_v21  ;;  %v6405_v56 = vmul.f32 %v6336_v25, %v6324_v21 }
  0x86   :  { %12939 = vst [vmem:[#allocation20_spill] sm:$0xff] %v6377_v40  ;;  %12940 = vst [vmem:[#allocation21_spill] sm:$0xff] %v6381_v41  ;;  %v6409_v57 = vmul.f32 %v6244_v49, %v6387_v43  ;;  %v6413_v59 = vmul.f32 %v6247_v50, %v6387_v43  ;;  %v6417_v60 = vmul.f32 %v6327_v22, %v6322_v20 }
  0x87   :  { %12941 = vst [vmem:[#allocation22_spill] sm:$0xff] %v6385_v42  ;;  %12942 = vst [vmem:[#allocation23_spill] sm:$0xff] %v6387_v43  ;;  %v6421_v61 = vmul.f32 %v6330_v23, %v6322_v20  ;;  %v6425_v62 = vmul.f32 %v6250_v51, %v6389_v44  ;;  %v6429_v63 = vmul.f32 %v6253_v52, %v6389_v44 }
  0x88   :  { %12943 = vst [vmem:[#allocation24_spill] sm:$0xff] %v6389_v44  ;;  %12944 = vst [vmem:[#allocation25_spill] sm:$0xff] %v6393_v47  ;;  %v6433_v0 = vmul.f32 %v6259_v54, %v6387_v43  ;;  %v6437_v1 = vmul.f32 %v6262_v55, %v6387_v43  ;;  %v6441_v2 = vmul.f32 %v6291_v8, %v6389_v44 }
  0x89   :  { %12945 = vst [vmem:[#allocation26_spill] sm:$0xff] %v6397_v48  ;;  %12946 = vst [vmem:[#allocation27_spill] sm:$0xff] %v6401_v53  ;;  %v6445_v3 = vmul.f32 %v6294_v9, %v6389_v44  ;;  %v6449_v4 = vmul.f32 %v6305_v14, %v6387_v43  ;;  %v6453_v5 = vmul.f32 %v6308_v15, %v6387_v43  ;;  %v6455_v6 = vpop.permute.xlu1 %64  ;;  %v6457_v7 = vpop.permute.xlu0 %138 }
  0x8a   :  { %12947 = vst [vmem:[#allocation28_spill] sm:$0xff] %v6405_v56  ;;  %12948 = vst [vmem:[#allocation29_spill] sm:$0xff] %v6417_v60  ;;  %v6461_v10 = vmul.f32 %v6317_v18, %v6389_v44  ;;  %v6465_v11 = vmul.f32 %v6320_v19, %v6389_v44  ;;  %v6469_v26 = vmul.f32 %v6327_v22, %v6387_v43 }
  0x8b   :  { %12949 = vst [vmem:[#allocation30_spill] sm:$0xff] %v6421_v61  ;;  %12950 = vst [vmem:[#allocation31_spill] sm:$0xff] %v6449_v4  ;;  %v6473_v20 = vmul.f32 %v6330_v23, %v6387_v43  ;;  %v6477_v21 = vmul.f32 %v6244_v49, %v6455_v6  ;;  %v6481_v61 = vmul.f32 %v6247_v50, %v6455_v6 }
  0x8c   :  { %12951 = vst [vmem:[#allocation32_spill] sm:$0xff] %v6453_v5  ;;  %12952 = vst [vmem:[#allocation33_spill] sm:$0xff] %v6455_v6  ;;  %v6485_v60 = vmul.f32 %v6333_v24, %v6389_v44  ;;  %v6489_v56 = vmul.f32 %v6336_v25, %v6389_v44  ;;  %v6493_v43 = vmul.f32 %v6250_v51, %v6457_v7 }
  0x8d   :  { %12953 = vst [vmem:[#allocation34_spill] sm:$0xff] %v6457_v7  ;;  %12954 = vst [vmem:[#allocation35_spill] sm:$0xff] %v6461_v10  ;;  %v6497_v53 = vmul.f32 %v6253_v52, %v6457_v7  ;;  %v6509_v44 = vmul.f32 %v6291_v8, %v6457_v7  ;;  %v6521_v48 = vmul.f32 %v6308_v15, %v6455_v6  ;;  %v6523_v47 = vpop.permute.xlu1 %74  ;;  %v6525_v42 = vpop.permute.xlu0 %146 }
  0x8e   :  { %12955 = vst [vmem:[#allocation36_spill] sm:$0xff] %v6465_v11  ;;  %12956 = vst [vmem:[#allocation37_spill] sm:$0xff] %v6469_v26  ;;  %v6505_v26 = vmul.f32 %v6262_v55, %v6455_v6  ;;  %v6529_v41 = vmul.f32 %v6317_v18, %v6457_v7  ;;  %v6533_v11 = vmul.f32 %v6320_v19, %v6457_v7 }
  0x8f   :  { %12957 = vst [vmem:[#allocation38_spill] sm:$0xff] %v6473_v20  ;;  %12958 = vst [vmem:[#allocation39_spill] sm:$0xff] %v6485_v60  ;;  %v6501_v20 = vmul.f32 %v6259_v54, %v6455_v6  ;;  %v6517_v60 = vmul.f32 %v6305_v14, %v6455_v6  ;;  %v1545_v10 = vrot.slane %v6269_v58, %v6233_v45 }
  0x90   :  { %12959 = vst [vmem:[#allocation40_spill] sm:$0xff] %v6489_v56  ;;  %12961 = vst [vmem:[#allocation42_spill] sm:$0xff] %v6505_v26  ;;  %v6513_v56 = vmul.f32 %v6294_v9, %v6457_v7  ;;  %v6545_v5 = vmul.f32 %v6247_v50, %v6523_v47  ;;  %v6557_v4 = vmul.f32 %v6250_v51, %v6525_v42 }
  0x91   :  { %12960 = vst [vmem:[#allocation41_spill] sm:$0xff] %v6501_v20  ;;  %12962 = vst [vmem:[#allocation43_spill] sm:$0xff] %v6509_v44  ;;  %v6565_v40 = vmul.f32 %v6259_v54, %v6523_v47  ;;  %v6569_v39 = vmul.f32 %v6262_v55, %v6523_v47  ;;  %v6589_v44 = vpop.permute.xlu0 %154 }
  0x92   :  { %12963 = vst [vmem:[#allocation44_spill] sm:$0xff] %v6513_v56  ;;  %12964 = vst [vmem:[#allocation45_spill] sm:$0xff] %v6517_v60  ;;  %v1549_v60 = vrot.slane %v6269_v58, %v6235_v46  ;;  %v6561_v58 = vmul.f32 %v6253_v52, %v6525_v42  ;;  %v6585_v56 = vmul.f32 %v6308_v15, %v6523_v47 }
  0x93   :  { %12965 = vst [vmem:[#allocation46_spill] sm:$0xff] %v6521_v48  ;;  %12966 = vst [vmem:[#allocation47_spill] sm:$0xff] %v6523_v47  ;;  %v6541_v48 = vmul.f32 %v6244_v49, %v6523_v47 }
  0x94   :  { %12967 = vst [vmem:[#allocation48_spill] sm:$0xff] %v6525_v42  ;;  %12968 = vst [vmem:[#allocation49_spill] sm:$0xff] %v6529_v41  ;;  %v6549_v41 = vmul.f32 %v6327_v22, %v6455_v6 }
  0x95   :  { %12969 = vst [vmem:[#allocation50_spill] sm:$0xff] %v6533_v11  ;;  %12970 = vst [vmem:[#allocation51_spill] sm:$0xff] %v6541_v48  ;;  %v6553_v11 = vmul.f32 %v6330_v23, %v6455_v6  ;;  %v6573_v6 = vmul.f32 %v6291_v8, %v6525_v42 }
  0x96   :  { %12971 = vst [vmem:[#allocation52_spill] sm:$0xff] %v6545_v5  ;;  %12972 = vst [vmem:[#allocation53_spill] sm:$0xff] %v6549_v41  ;;  %v6581_v41 = vmul.f32 %v6305_v14, %v6523_v47 }
  0x97   :  { %12973 = vst [vmem:[#allocation54_spill] sm:$0xff] %v6553_v11  ;;  %12974 = vst [vmem:[#allocation55_spill] sm:$0xff] %v6557_v4  ;;  %v6577_v11 = vmul.f32 %v6294_v9, %v6525_v42 }
  0x98   :  { %12975 = vst [vmem:[#allocation56_spill] sm:$0xff] %v6561_v58  ;;  %12976 = vst [vmem:[#allocation57_spill] sm:$0xff] %v6565_v40  ;;  %v6587_v40 = vpop.permute.xlu1 %84 }
  0x99   :  { %12977 = vst [vmem:[#allocation58_spill] sm:$0xff] %v6569_v39  ;;  %12978 = vst [vmem:[#allocation59_spill] sm:$0xff] %v6573_v6  ;;  %v6593_v39 = vmul.f32 %v6317_v18, %v6525_v42  ;;  %v6597_v6 = vmul.f32 %v6320_v19, %v6525_v42  ;;  %v6611_v26 = vmul.f32 %v6247_v50, %v6587_v40 }
  0x9a   :  { %12979 = vst [vmem:[#allocation60_spill] sm:$0xff] %v6577_v11  ;;  %12980 = vst [vmem:[#allocation61_spill] sm:$0xff] %v6581_v41  ;;  %v6600_v11 = vrot.slane %v1545_v10, %v6233_v45  ;;  %v6603_v41 = vrot.slane %v1549_v60, %v6233_v45  ;;  %v6623_v60 = vmul.f32 %v6250_v51, %v6589_v44 }
  0x9b   :  { %12981 = vst [vmem:[#allocation62_spill] sm:$0xff] %v6585_v56  ;;  %12982 = vst [vmem:[#allocation63_spill] sm:$0xff] %v6587_v40  ;;  %v6607_v56 = vmul.f32 %v6244_v49, %v6587_v40  ;;  %v6627_v10 = vmul.f32 %v6253_v52, %v6589_v44  ;;  %v6631_v20 = vmul.f32 %v6259_v54, %v6587_v40 }
  0x9c   :  { %12983 = vst [vmem:[#allocation64_spill] sm:$0xff] %v6589_v44  ;;  %12984 = vst [vmem:[#allocation65_spill] sm:$0xff] %v6593_v39  ;;  %v6615_v39 = vmul.f32 %v6333_v24, %v6457_v7 }
  0x9d   :  { %12985 = vst [vmem:[#allocation66_spill] sm:$0xff] %v6597_v6  ;;  %12986 = vst [vmem:[#allocation67_spill] sm:$0xff] %v6600_v11  ;;  %v6619_v6 = vmul.f32 %v6336_v25, %v6457_v7  ;;  %v6639_v7 = vmul.f32 %v6291_v8, %v6589_v44 }
  0x9e   :  { %12987 = vst [vmem:[#allocation68_spill] sm:$0xff] %v6603_v41  ;;  %12988 = vst [vmem:[#allocation69_spill] sm:$0xff] %v6607_v56 }
  0x9f   :  { %12989 = vst [vmem:[#allocation70_spill] sm:$0xff] %v6611_v26  ;;  %12990 = vst [vmem:[#allocation71_spill] sm:$0xff] %v6615_v39  ;;  %v6635_v26 = vmul.f32 %v6262_v55, %v6587_v40  ;;  %v6647_v39 = vmul.f32 %v6305_v14, %v6587_v40 }
  0xa0   :  { %12991 = vst [vmem:[#allocation72_spill] sm:$0xff] %v6619_v6  ;;  %12992 = vst [vmem:[#allocation73_spill] sm:$0xff] %v6623_v60  ;;  %v6643_v6 = vmul.f32 %v6294_v9, %v6589_v44  ;;  %v6655_v60 = vpop.permute.xlu0 %162 }
  0xa1   :  { %12993 = vst [vmem:[#allocation74_spill] sm:$0xff] %v6627_v10  ;;  %12994 = vst [vmem:[#allocation75_spill] sm:$0xff] %v6631_v20  ;;  %v6651_v10 = vmul.f32 %v6308_v15, %v6587_v40  ;;  %v6653_v20 = vpop.permute.xlu1 %94 }
  0xa2   :  { %12995 = vst [vmem:[#allocation76_spill] sm:$0xff] %v6635_v26  ;;  %12996 = vst [vmem:[#allocation77_spill] sm:$0xff] %v6639_v7  ;;  %v6659_v26 = vmul.f32 %v6317_v18, %v6589_v44  ;;  %v6663_v7 = vmul.f32 %v6320_v19, %v6589_v44  ;;  %v6679_v56 = vmul.f32 %v6247_v50, %v6653_v20 }
  0xa3   :  { %12997 = vst [vmem:[#allocation78_spill] sm:$0xff] %v6643_v6  ;;  %12998 = vst [vmem:[#allocation79_spill] sm:$0xff] %v6647_v39  ;;  %v6667_v6 = vmul.f32 %v6327_v22, %v6523_v47  ;;  %v6671_v39 = vmul.f32 %v6330_v23, %v6523_v47  ;;  %v6691_v47 = vmul.f32 %v6250_v51, %v6655_v60 }
  0xa4   :  { %12999 = vst [vmem:[#allocation80_spill] sm:$0xff] %v6651_v10  ;;  %13000 = vst [vmem:[#allocation81_spill] sm:$0xff] %v6653_v20  ;;  %v6675_v10 = vmul.f32 %v6244_v49, %v6653_v20 }
  0xa5   :  { %13001 = vst [vmem:[#allocation82_spill] sm:$0xff] %v6655_v60  ;;  %13002 = vst [vmem:[#allocation83_spill] sm:$0xff] %v6659_v26  ;;  %v6683_v26 = vmul.f32 %v6333_v24, %v6525_v42 }
  0xa6   :  { %13003 = vst [vmem:[#allocation84_spill] sm:$0xff] %v6663_v7  ;;  %13004 = vst [vmem:[#allocation85_spill] sm:$0xff] %v6667_v6  ;;  %v6687_v7 = vmul.f32 %v6336_v25, %v6525_v42  ;;  %v6699_v6 = vmul.f32 %v6259_v54, %v6653_v20  ;;  %v6707_v42 = vmul.f32 %v6291_v8, %v6655_v60 }
  0xa7   :  { %13005 = vst [vmem:[#allocation86_spill] sm:$0xff] %v6671_v39  ;;  %13006 = vst [vmem:[#allocation87_spill] sm:$0xff] %v6675_v10  ;;  %v6695_v39 = vmul.f32 %v6253_v52, %v6655_v60 }
  0xa8   :  { %13007 = vst [vmem:[#allocation88_spill] sm:$0xff] %v6679_v56  ;;  %13008 = vst [vmem:[#allocation89_spill] sm:$0xff] %v6683_v26  ;;  %v6703_v56 = vmul.f32 %v6262_v55, %v6653_v20  ;;  %v6715_v26 = vmul.f32 %v6305_v14, %v6653_v20 }
  0xa9   :  { %13009 = vst [vmem:[#allocation90_spill] sm:$0xff] %v6687_v7  ;;  %13010 = vst [vmem:[#allocation91_spill] sm:$0xff] %v6691_v47  ;;  %v6711_v7 = vmul.f32 %v6294_v9, %v6655_v60  ;;  %v6723_v47 = vpop.permute.xlu0 %170 }
  0xaa   :  { %13011 = vst [vmem:[#allocation92_spill] sm:$0xff] %v6695_v39  ;;  %13012 = vst [vmem:[#allocation93_spill] sm:$0xff] %v6699_v6  ;;  %v6719_v39 = vmul.f32 %v6308_v15, %v6653_v20  ;;  %v6721_v6 = vpop.permute.xlu1 %104 }
  0xab   :  { %13013 = vst [vmem:[#allocation94_spill] sm:$0xff] %v6703_v56  ;;  %13014 = vst [vmem:[#allocation95_spill] sm:$0xff] %v6707_v42  ;;  %v6727_v56 = vmul.f32 %v6317_v18, %v6655_v60  ;;  %v6731_v42 = vmul.f32 %v6320_v19, %v6655_v60  ;;  %v6747_v10 = vmul.f32 %v6247_v50, %v6721_v6 }
  0xac   :  { %13015 = vst [vmem:[#allocation96_spill] sm:$0xff] %v6711_v7  ;;  %13016 = vst [vmem:[#allocation97_spill] sm:$0xff] %v6715_v26  ;;  %v6735_v7 = vmul.f32 %v6327_v22, %v6587_v40  ;;  %v6739_v26 = vmul.f32 %v6330_v23, %v6587_v40  ;;  %v6759_v40 = vmul.f32 %v6250_v51, %v6723_v47 }
  0xad   :  { %13017 = vst [vmem:[#allocation98_spill] sm:$0xff] %v6719_v39  ;;  %13018 = vst [vmem:[#allocation99_spill] sm:$0xff] %v6721_v6  ;;  %v6743_v39 = vmul.f32 %v6244_v49, %v6721_v6 }
  0xae   :  { %13019 = vst [vmem:[#allocation100_spill] sm:$0xff] %v6723_v47  ;;  %13020 = vst [vmem:[#allocation101_spill] sm:$0xff] %v6727_v56  ;;  %v6751_v56 = vmul.f32 %v6333_v24, %v6589_v44 }
  0xaf   :  { %13021 = vst [vmem:[#allocation102_spill] sm:$0xff] %v6731_v42  ;;  %13022 = vst [vmem:[#allocation103_spill] sm:$0xff] %v6735_v7  ;;  %v6755_v42 = vmul.f32 %v6336_v25, %v6589_v44  ;;  %v6767_v7 = vmul.f32 %v6259_v54, %v6721_v6  ;;  %v6775_v44 = vmul.f32 %v6291_v8, %v6723_v47 }
  0xb0   :  { %13023 = vst [vmem:[#allocation104_spill] sm:$0xff] %v6739_v26  ;;  %13024 = vst [vmem:[#allocation105_spill] sm:$0xff] %v6743_v39  ;;  %v6763_v26 = vmul.f32 %v6253_v52, %v6723_v47 }
  0xb1   :  { %13025 = vst [vmem:[#allocation106_spill] sm:$0xff] %v6747_v10  ;;  %13026 = vst [vmem:[#allocation107_spill] sm:$0xff] %v6751_v56  ;;  %v6771_v10 = vmul.f32 %v6262_v55, %v6721_v6  ;;  %v6783_v56 = vmul.f32 %v6305_v14, %v6721_v6 }
  0xb2   :  { %13027 = vst [vmem:[#allocation108_spill] sm:$0xff] %v6755_v42  ;;  %13028 = vst [vmem:[#allocation109_spill] sm:$0xff] %v6759_v40  ;;  %v6779_v42 = vmul.f32 %v6294_v9, %v6723_v47  ;;  %v6791_v40 = vpop.permute.xlu0 %178 }
  0xb3   :  { %13029 = vst [vmem:[#allocation110_spill] sm:$0xff] %v6763_v26  ;;  %13030 = vst [vmem:[#allocation111_spill] sm:$0xff] %v6767_v7  ;;  %v6787_v26 = vmul.f32 %v6308_v15, %v6721_v6  ;;  %v6789_v7 = vpop.permute.xlu1 %114 }
  0xb4   :  { %13031 = vst [vmem:[#allocation112_spill] sm:$0xff] %v6771_v10  ;;  %13032 = vst [vmem:[#allocation113_spill] sm:$0xff] %v6775_v44  ;;  %v6795_v10 = vmul.f32 %v6317_v18, %v6723_v47  ;;  %v6799_v44 = vmul.f32 %v6320_v19, %v6723_v47  ;;  %v6815_v39 = vmul.f32 %v6247_v50, %v6789_v7 }
  0xb5   :  { %13033 = vst [vmem:[#allocation114_spill] sm:$0xff] %v6779_v42  ;;  %13034 = vst [vmem:[#allocation115_spill] sm:$0xff] %v6783_v56  ;;  %v6803_v42 = vmul.f32 %v6327_v22, %v6653_v20  ;;  %v6807_v56 = vmul.f32 %v6330_v23, %v6653_v20  ;;  %v6827_v20 = vmul.f32 %v6250_v51, %v6791_v40 }
  0xb6   :  { %13035 = vst [vmem:[#allocation116_spill] sm:$0xff] %v6787_v26  ;;  %13036 = vst [vmem:[#allocation117_spill] sm:$0xff] %v6789_v7  ;;  %v6811_v26 = vmul.f32 %v6244_v49, %v6789_v7 }
  0xb7   :  { %13037 = vst [vmem:[#allocation118_spill] sm:$0xff] %v6791_v40  ;;  %13038 = vst [vmem:[#allocation119_spill] sm:$0xff] %v6795_v10  ;;  %v6819_v10 = vmul.f32 %v6333_v24, %v6655_v60 }
  0xb8   :  { %13039 = vst [vmem:[#allocation120_spill] sm:$0xff] %v6799_v44  ;;  %13040 = vst [vmem:[#allocation121_spill] sm:$0xff] %v6803_v42  ;;  %v6823_v44 = vmul.f32 %v6336_v25, %v6655_v60  ;;  %v6835_v42 = vmul.f32 %v6259_v54, %v6789_v7  ;;  %v6844_v60 = vld [vmem:[%s12439_s0 + $0x20] sm:$0x77] }
  0xb9   :  { %13041 = vst [vmem:[#allocation122_spill] sm:$0xff] %v6807_v56  ;;  %13042 = vst [vmem:[#allocation123_spill] sm:$0xff] %v6811_v26  ;;  %v6831_v56 = vmul.f32 %v6253_v52, %v6791_v40  ;;  %v6880_v26 = vpop.permute.xlu0 %186 }
  0xba   :  { %13043 = vst [vmem:[#allocation124_spill] sm:$0xff] %v6815_v39  ;;  %13044 = vst [vmem:[#allocation125_spill] sm:$0xff] %v6819_v10  ;;  %v6839_v39 = vmul.f32 %v6262_v55, %v6789_v7  ;;  %v6852_v10 = vmul.f32 %v6294_v9, %v6791_v40 }
  0xbb   :  { %13045 = vst [vmem:[#allocation126_spill] sm:$0xff] %v6823_v44  ;;  %13046 = vst [vmem:[#allocation127_spill] sm:$0xff] %v6827_v20  ;;  %v6848_v44 = vmul.f32 %v6291_v8, %v6791_v40  ;;  %v6868_v20 = vmul.f32 %v6320_v19, %v6791_v40 }
  0xbc   :  { %13047 = vst [vmem:[#allocation128_spill] sm:$0xff] %v6831_v56  ;;  %13048 = vst [vmem:[#allocation129_spill] sm:$0xff] %v6835_v42  ;;  %v6856_v42 = vmul.f32 %v6305_v14, %v6789_v7  ;;  %v6864_v56 = vmul.f32 %v6317_v18, %v6791_v40 }
  0xbd   :  { %13049 = vst [vmem:[#allocation130_spill] sm:$0xff] %v6839_v39  ;;  %13050 = vst [vmem:[#allocation131_spill] sm:$0xff] %v6844_v60  ;;  %v6860_v39 = vmul.f32 %v6308_v15, %v6789_v7 }
  0xbe   :  { %13051 = vst [vmem:[#allocation132_spill] sm:$0xff] %v6848_v44  ;;  %13052 = vst [vmem:[#allocation133_spill] sm:$0xff] %v6852_v10  ;;  %v6872_v44 = vmul.f32 %v6327_v22, %v6721_v6  ;;  %v6876_v10 = vmul.f32 %v6330_v23, %v6721_v6 }
  0xbf   :  { %13053 = vst [vmem:[#allocation134_spill] sm:$0xff] %v6856_v42  ;;  %13054 = vst [vmem:[#allocation135_spill] sm:$0xff] %v6860_v39  ;;  %v6878_v42 = vpop.permute.xlu1 %122  ;;  %v6884_v39 = vmul.f32 %v6333_v24, %v6723_v47 }
  0xc0   :  { %13055 = vst [vmem:[#allocation136_spill] sm:$0xff] %v6864_v56  ;;  %13056 = vst [vmem:[#allocation137_spill] sm:$0xff] %v6868_v20  ;;  %v6888_v56 = vmul.f32 %v6336_v25, %v6723_v47  ;;  %v6896_v6 = vmul.f32 %v6250_v51, %v6878_v42  ;;  %v6908_v20 = vmul.f32 %v6299_v12, %v6880_v26 }
  0xc1   :  { %13057 = vst [vmem:[#allocation138_spill] sm:$0xff] %v6872_v44  ;;  %13058 = vst [vmem:[#allocation139_spill] sm:$0xff] %v6876_v10  ;;  %v6900_v10 = vmul.f32 %v6253_v52, %v6878_v42  ;;  %v6912_v44 = vmul.f32 %v6302_v13, %v6880_v26  ;;  %v6920_v36 = vmul.f32 %v6294_v9, %v6878_v42 }
  0xc2   :  { %13059 = vst [vmem:[#allocation140_spill] sm:$0xff] %v6878_v42  ;;  %13060 = vst [vmem:[#allocation141_spill] sm:$0xff] %v6880_v26  ;;  %v6928_v47 = vmul.f32 %v6314_v17, %v6880_v26  ;;  %v6932_v58 = vmul.f32 %v6317_v18, %v6878_v42  ;;  %v6936_v4 = vmul.f32 %v6320_v19, %v6878_v42 }
  0xc3   :  { %13061 = vst [vmem:[#allocation142_spill] sm:$0xff] %v6884_v39  ;;  %13062 = vst [vmem:[#allocation143_spill] sm:$0xff] %v6888_v56  ;;  %v6916_v56 = vmul.f32 %v6291_v8, %v6878_v42  ;;  %v6924_v39 = vmul.f32 %v6311_v16, %v6880_v26  ;;  %v6938_v35 = vpop.permute.xlu1 %126 }
  0xc4   :  { %13063 = vst [vmem:[#allocation144_spill] sm:$0xff] %v6896_v6  ;;  %13064 = vst [vmem:[#allocation145_spill] sm:$0xff] %v6900_v10 }
  0xc5   :  { %13065 = vst [vmem:[#allocation146_spill] sm:$0xff] %v6908_v20  ;;  %13066 = vst [vmem:[#allocation147_spill] sm:$0xff] %v6912_v44  ;;  %v6940_v44 = vpop.permute.xlu0 %198  ;;  %v6964_v20 = vmul.f32 %v6253_v52, %v6938_v35 }
  0xc6   :  { %13067 = vst [vmem:[#allocation148_spill] sm:$0xff] %v6916_v56  ;;  %13068 = vst [vmem:[#allocation149_spill] sm:$0xff] %v6920_v36  ;;  %v6944_v36 = vmul.f32 %v6350_v29, %v6880_v26 }
  0xc7   :  { %13069 = vst [vmem:[#allocation150_spill] sm:$0xff] %v6924_v39  ;;  %13070 = vst [vmem:[#allocation151_spill] sm:$0xff] %v6928_v47  ;;  %v6948_v39 = vmul.f32 %v6353_v34, %v6880_v26  ;;  %v6952_v47 = vmul.f32 %v6333_v24, %v6878_v42 }
  0xc8   :  { %13071 = vst [vmem:[#allocation152_spill] sm:$0xff] %v6932_v58  ;;  %13072 = vst [vmem:[#allocation153_spill] sm:$0xff] %v6936_v4  ;;  %v6956_v58 = vmul.f32 %v6336_v25, %v6878_v42  ;;  %v6960_v4 = vmul.f32 %v6250_v51, %v6938_v35 }
  0xc9   :  { %13073 = vst [vmem:[#allocation154_spill] sm:$0xff] %v6938_v35  ;;  %13074 = vst [vmem:[#allocation155_spill] sm:$0xff] %v6940_v44 }
  0xca   :  { %13075 = vst [vmem:[#allocation156_spill] sm:$0xff] %v6944_v36  ;;  %13076 = vst [vmem:[#allocation157_spill] sm:$0xff] %v6948_v39  ;;  %v6968_v36 = vmul.f32 %v6600_v11, %v6880_v26  ;;  %v6972_v39 = vmul.f32 %v6603_v41, %v6880_v26  ;;  %v6992_v26 = vmul.f32 %v6311_v16, %v6940_v44 }
  0xcb   :  { %13077 = vst [vmem:[#allocation158_spill] sm:$0xff] %v6952_v47  ;;  %13078 = vst [vmem:[#allocation159_spill] sm:$0xff] %v6956_v58  ;;  %v6976_v47 = vmul.f32 %v6299_v12, %v6940_v44  ;;  %v6980_v58 = vmul.f32 %v6302_v13, %v6940_v44 }
  0xcc   :  { %13079 = vst [vmem:[#allocation160_spill] sm:$0xff] %v6960_v4  ;;  %13080 = vst [vmem:[#allocation161_spill] sm:$0xff] %v6964_v20  ;;  %v6984_v4 = vmul.f32 %v6291_v8, %v6938_v35  ;;  %v6988_v20 = vmul.f32 %v6294_v9, %v6938_v35 }
  0xcd   :  { %13081 = vst [vmem:[#allocation162_spill] sm:$0xff] %v6968_v36  ;;  %13082 = vst [vmem:[#allocation163_spill] sm:$0xff] %v6972_v39  ;;  %v6996_v39 = vmul.f32 %v6314_v17, %v6940_v44  ;;  %v7000_v36 = vmul.f32 %v6317_v18, %v6938_v35 }
  0xce   :  { %13083 = vst [vmem:[#allocation164_spill] sm:$0xff] %v6976_v47  ;;  %13084 = vst [vmem:[#allocation165_spill] sm:$0xff] %v6980_v58  ;;  %v7004_v58 = vmul.f32 %v6320_v19, %v6938_v35  ;;  %v7008_v47 = vpop.permute.xlu0 %206 }
  0xcf   :  { %13085 = vst [vmem:[#allocation166_spill] sm:$0xff] %v6984_v4  ;;  %13086 = vst [vmem:[#allocation167_spill] sm:$0xff] %v6988_v20  ;;  %v7006_v4 = vpop.permute.xlu1 %134  ;;  %v7012_v20 = vmul.f32 %v6350_v29, %v6940_v44 }
  0xd0   :  { %13087 = vst [vmem:[#allocation168_spill] sm:$0xff] %v6992_v26  ;;  %13088 = vst [vmem:[#allocation169_spill] sm:$0xff] %v6996_v39  ;;  %v7016_v26 = vmul.f32 %v6353_v34, %v6940_v44  ;;  %v7020_v39 = vmul.f32 %v6333_v24, %v6938_v35  ;;  %v7032_v5 = vmul.f32 %v6253_v52, %v7006_v4 }
  0xd1   :  { %13089 = vst [vmem:[#allocation170_spill] sm:$0xff] %v7000_v36  ;;  %13090 = vst [vmem:[#allocation171_spill] sm:$0xff] %v7004_v58  ;;  %v7024_v36 = vmul.f32 %v6336_v25, %v6938_v35  ;;  %v7028_v58 = vmul.f32 %v6250_v51, %v7006_v4  ;;  %v7044_v35 = vmul.f32 %v6299_v12, %v7008_v47 }
  0xd2   :  { %13091 = vst [vmem:[#allocation172_spill] sm:$0xff] %v7006_v4  ;;  %13092 = vst [vmem:[#allocation173_spill] sm:$0xff] %v7008_v47 }
  0xd3   :  { %13093 = vst [vmem:[#allocation174_spill] sm:$0xff] %v7012_v20  ;;  %13094 = vst [vmem:[#allocation175_spill] sm:$0xff] %v7016_v26  ;;  %v7036_v20 = vmul.f32 %v6600_v11, %v6940_v44  ;;  %v7040_v26 = vmul.f32 %v6603_v41, %v6940_v44  ;;  %v7060_v44 = vmul.f32 %v6311_v16, %v7008_v47 }
  0xd4   :  { %13095 = vst [vmem:[#allocation176_spill] sm:$0xff] %v7020_v39  ;;  %13096 = vst [vmem:[#allocation177_spill] sm:$0xff] %v7024_v36  ;;  %v7048_v36 = vmul.f32 %v6302_v13, %v7008_v47  ;;  %v7052_v39 = vmul.f32 %v6291_v8, %v7006_v4 }
  0xd5   :  { %13097 = vst [vmem:[#allocation178_spill] sm:$0xff] %v7028_v58  ;;  %13098 = vst [vmem:[#allocation179_spill] sm:$0xff] %v7032_v5  ;;  %v7056_v5 = vmul.f32 %v6294_v9, %v7006_v4 }
  0xd6   :  { %13099 = vst [vmem:[#allocation180_spill] sm:$0xff] %v7036_v20  ;;  %13100 = vst [vmem:[#allocation181_spill] sm:$0xff] %v7040_v26  ;;  %v7064_v26 = vmul.f32 %v6314_v17, %v7008_v47  ;;  %v7068_v20 = vmul.f32 %v6317_v18, %v7006_v4 }
  0xd7   :  { %13101 = vst [vmem:[#allocation182_spill] sm:$0xff] %v7044_v35  ;;  %13102 = vst [vmem:[#allocation183_spill] sm:$0xff] %v7048_v36  ;;  %v7072_v36 = vmul.f32 %v6320_v19, %v7006_v4  ;;  %v7076_v35 = vpop.permute.xlu0 %214 }
  0xd8   :  { %13103 = vst [vmem:[#allocation184_spill] sm:$0xff] %v7052_v39  ;;  %13104 = vst [vmem:[#allocation185_spill] sm:$0xff] %v7056_v5  ;;  %v7074_v39 = vpop.permute.xlu1 %142  ;;  %v7080_v5 = vmul.f32 %v6350_v29, %v7008_v47 }
  0xd9   :  { %13105 = vst [vmem:[#allocation186_spill] sm:$0xff] %v7060_v44  ;;  %13106 = vst [vmem:[#allocation187_spill] sm:$0xff] %v7064_v26  ;;  %v7084_v44 = vmul.f32 %v6353_v34, %v7008_v47  ;;  %v7088_v26 = vmul.f32 %v6333_v24, %v7006_v4  ;;  %v7100_v58 = vmul.f32 %v6253_v52, %v7074_v39 }
  0xda   :  { %13107 = vst [vmem:[#allocation188_spill] sm:$0xff] %v7068_v20  ;;  %13108 = vst [vmem:[#allocation189_spill] sm:$0xff] %v7072_v36  ;;  %v7092_v20 = vmul.f32 %v6336_v25, %v7006_v4  ;;  %v7096_v36 = vmul.f32 %v6250_v51, %v7074_v39  ;;  %v7112_v4 = vmul.f32 %v6299_v12, %v7076_v35 }
  0xdb   :  { %13109 = vst [vmem:[#allocation190_spill] sm:$0xff] %v7074_v39  ;;  %13110 = vst [vmem:[#allocation191_spill] sm:$0xff] %v7076_v35 }
  0xdc   :  { %13111 = vst [vmem:[#allocation192_spill] sm:$0xff] %v7080_v5  ;;  %13112 = vst [vmem:[#allocation193_spill] sm:$0xff] %v7084_v44  ;;  %v7104_v5 = vmul.f32 %v6600_v11, %v7008_v47  ;;  %v7108_v44 = vmul.f32 %v6603_v41, %v7008_v47  ;;  %v7128_v47 = vmul.f32 %v6311_v16, %v7076_v35 }
  0xdd   :  { %13113 = vst [vmem:[#allocation194_spill] sm:$0xff] %v7088_v26  ;;  %13114 = vst [vmem:[#allocation195_spill] sm:$0xff] %v7092_v20  ;;  %v7116_v20 = vmul.f32 %v6302_v13, %v7076_v35  ;;  %v7120_v26 = vmul.f32 %v6291_v8, %v7074_v39 }
  0xde   :  { %13115 = vst [vmem:[#allocation196_spill] sm:$0xff] %v7096_v36  ;;  %13116 = vst [vmem:[#allocation197_spill] sm:$0xff] %v7100_v58  ;;  %v7124_v58 = vmul.f32 %v6294_v9, %v7074_v39 }
  0xdf   :  { %13117 = vst [vmem:[#allocation198_spill] sm:$0xff] %v7104_v5  ;;  %13118 = vst [vmem:[#allocation199_spill] sm:$0xff] %v7108_v44  ;;  %v7132_v44 = vmul.f32 %v6314_v17, %v7076_v35  ;;  %v7136_v5 = vmul.f32 %v6317_v18, %v7074_v39 }
  0xe0   :  { %13119 = vst [vmem:[#allocation200_spill] sm:$0xff] %v7112_v4  ;;  %13120 = vst [vmem:[#allocation201_spill] sm:$0xff] %v7116_v20  ;;  %v7140_v20 = vmul.f32 %v6320_v19, %v7074_v39  ;;  %v7144_v4 = vpop.permute.xlu0 %222 }
  0xe1   :  { %13121 = vst [vmem:[#allocation202_spill] sm:$0xff] %v7120_v26  ;;  %13122 = vst [vmem:[#allocation203_spill] sm:$0xff] %v7124_v58  ;;  %v7142_v26 = vpop.permute.xlu1 %150  ;;  %v7148_v58 = vmul.f32 %v6350_v29, %v7076_v35 }
  0xe2   :  { %13123 = vst [vmem:[#allocation204_spill] sm:$0xff] %v7128_v47  ;;  %13124 = vst [vmem:[#allocation205_spill] sm:$0xff] %v7132_v44  ;;  %v7152_v47 = vmul.f32 %v6353_v34, %v7076_v35  ;;  %v7156_v44 = vmul.f32 %v6333_v24, %v7074_v39  ;;  %v7168_v36 = vmul.f32 %v6253_v52, %v7142_v26 }
  0xe3   :  { %13125 = vst [vmem:[#allocation206_spill] sm:$0xff] %v7136_v5  ;;  %13126 = vst [vmem:[#allocation207_spill] sm:$0xff] %v7140_v20  ;;  %v7160_v5 = vmul.f32 %v6336_v25, %v7074_v39  ;;  %v7164_v20 = vmul.f32 %v6250_v51, %v7142_v26  ;;  %v7180_v39 = vmul.f32 %v6299_v12, %v7144_v4 }
  0xe4   :  { %13127 = vst [vmem:[#allocation208_spill] sm:$0xff] %v7142_v26  ;;  %13128 = vst [vmem:[#allocation209_spill] sm:$0xff] %v7144_v4 }
  0xe5   :  { %13129 = vst [vmem:[#allocation210_spill] sm:$0xff] %v7148_v58  ;;  %13130 = vst [vmem:[#allocation211_spill] sm:$0xff] %v7152_v47  ;;  %v7172_v58 = vmul.f32 %v6327_v22, %v6789_v7  ;;  %v7176_v47 = vmul.f32 %v6330_v23, %v6789_v7  ;;  %v7196_v7 = vmul.f32 %v6311_v16, %v7144_v4 }
  0xe6   :  { %13131 = vst [vmem:[#allocation212_spill] sm:$0xff] %v7156_v44  ;;  %13132 = vst [vmem:[#allocation213_spill] sm:$0xff] %v7160_v5  ;;  %v7184_v5 = vmul.f32 %v6302_v13, %v7144_v4  ;;  %v7188_v44 = vmul.f32 %v6291_v8, %v7142_v26 }
  0xe7   :  { %13133 = vst [vmem:[#allocation214_spill] sm:$0xff] %v7164_v20  ;;  %13134 = vst [vmem:[#allocation215_spill] sm:$0xff] %v7168_v36  ;;  %v7192_v36 = vmul.f32 %v6294_v9, %v7142_v26 }
  0xe8   :  { %13135 = vst [vmem:[#allocation216_spill] sm:$0xff] %v7172_v58  ;;  %13136 = vst [vmem:[#allocation217_spill] sm:$0xff] %v7176_v47  ;;  %v7200_v47 = vmul.f32 %v6314_v17, %v7144_v4  ;;  %v7204_v58 = vmul.f32 %v6317_v18, %v7142_v26 }
  0xe9   :  { %13137 = vst [vmem:[#allocation218_spill] sm:$0xff] %v7180_v39  ;;  %13138 = vst [vmem:[#allocation219_spill] sm:$0xff] %v7184_v5  ;;  %v7208_v5 = vmul.f32 %v6320_v19, %v7142_v26  ;;  %v7212_v39 = vpop.permute.xlu0 %230 }
  0xea   :  { %13139 = vst [vmem:[#allocation220_spill] sm:$0xff] %v7188_v44  ;;  %13140 = vst [vmem:[#allocation221_spill] sm:$0xff] %v7192_v36  ;;  %v7210_v44 = vpop.permute.xlu1 %158  ;;  %v7216_v36 = vmul.f32 %v6350_v29, %v7144_v4 }
  0xeb   :  { %13141 = vst [vmem:[#allocation222_spill] sm:$0xff] %v7196_v7  ;;  %13142 = vst [vmem:[#allocation223_spill] sm:$0xff] %v7200_v47  ;;  %v7220_v7 = vmul.f32 %v6353_v34, %v7144_v4  ;;  %v7224_v47 = vmul.f32 %v6600_v11, %v7076_v35  ;;  %v7236_v20 = vmul.f32 %v6253_v52, %v7210_v44 }
  0xec   :  { %13143 = vst [vmem:[#allocation224_spill] sm:$0xff] %v7204_v58  ;;  %13144 = vst [vmem:[#allocation225_spill] sm:$0xff] %v7208_v5  ;;  %v7228_v58 = vmul.f32 %v6603_v41, %v7076_v35  ;;  %v7232_v5 = vmul.f32 %v6250_v51, %v7210_v44  ;;  %v7248_v35 = vmul.f32 %v6299_v12, %v7212_v39 }
  0xed   :  { %13145 = vst [vmem:[#allocation226_spill] sm:$0xff] %v7210_v44  ;;  %13146 = vst [vmem:[#allocation227_spill] sm:$0xff] %v7212_v39 }
  0xee   :  { %13147 = vst [vmem:[#allocation228_spill] sm:$0xff] %v7216_v36  ;;  %13148 = vst [vmem:[#allocation229_spill] sm:$0xff] %v7220_v7  ;;  %v7240_v36 = vmul.f32 %v6333_v24, %v6791_v40  ;;  %v7244_v7 = vmul.f32 %v6336_v25, %v6791_v40  ;;  %v7264_v40 = vmul.f32 %v6311_v16, %v7212_v39 }
  0xef   :  { %13149 = vst [vmem:[#allocation230_spill] sm:$0xff] %v7224_v47  ;;  %13150 = vst [vmem:[#allocation231_spill] sm:$0xff] %v7228_v58  ;;  %v7252_v58 = vmul.f32 %v6302_v13, %v7212_v39  ;;  %v7256_v47 = vmul.f32 %v6291_v8, %v7210_v44 }
  0xf0   :  { %13151 = vst [vmem:[#allocation232_spill] sm:$0xff] %v7232_v5  ;;  %13152 = vst [vmem:[#allocation233_spill] sm:$0xff] %v7236_v20  ;;  %v7260_v20 = vmul.f32 %v6294_v9, %v7210_v44 }
  0xf1   :  { %13153 = vst [vmem:[#allocation234_spill] sm:$0xff] %v7240_v36  ;;  %13154 = vst [vmem:[#allocation235_spill] sm:$0xff] %v7244_v7  ;;  %v7268_v7 = vmul.f32 %v6314_v17, %v7212_v39  ;;  %v7272_v36 = vmul.f32 %v6317_v18, %v7210_v44 }
  0xf2   :  { %13155 = vst [vmem:[#allocation236_spill] sm:$0xff] %v7248_v35  ;;  %13156 = vst [vmem:[#allocation237_spill] sm:$0xff] %v7252_v58  ;;  %v7276_v58 = vmul.f32 %v6320_v19, %v7210_v44  ;;  %v7280_v35 = vpop.permute.xlu0 %238 }
  0xf3   :  { %13157 = vst [vmem:[#allocation238_spill] sm:$0xff] %v7256_v47  ;;  %13158 = vst [vmem:[#allocation239_spill] sm:$0xff] %v7260_v20  ;;  %v7278_v47 = vpop.permute.xlu1 %166  ;;  %v7284_v20 = vmul.f32 %v6350_v29, %v7212_v39 }
  0xf4   :  { %13159 = vst [vmem:[#allocation240_spill] sm:$0xff] %v7264_v40  ;;  %13160 = vst [vmem:[#allocation241_spill] sm:$0xff] %v7268_v7  ;;  %v7288_v40 = vmul.f32 %v6353_v34, %v7212_v39  ;;  %v7292_v7 = vmul.f32 %v6333_v24, %v7142_v26  ;;  %v7304_v5 = vmul.f32 %v6253_v52, %v7278_v47 }
  0xf5   :  { %13161 = vst [vmem:[#allocation242_spill] sm:$0xff] %v7272_v36  ;;  %13162 = vst [vmem:[#allocation243_spill] sm:$0xff] %v7276_v58  ;;  %v7296_v36 = vmul.f32 %v6336_v25, %v7142_v26  ;;  %v7300_v58 = vmul.f32 %v6250_v51, %v7278_v47  ;;  %v7308_v39 = vmul.f32 %v6600_v11, %v7144_v4 }
  0xf6   :  { %13163 = vst [vmem:[#allocation244_spill] sm:$0xff] %v7278_v47  ;;  %13164 = vst [vmem:[#allocation245_spill] sm:$0xff] %v7280_v35  ;;  %v7316_v26 = vmul.f32 %v6299_v12, %v7280_v35 }
  0xf7   :  { %13165 = vst [vmem:[#allocation246_spill] sm:$0xff] %v7284_v20  ;;  %13166 = vst [vmem:[#allocation247_spill] sm:$0xff] %v7288_v40  ;;  %v7312_v40 = vmul.f32 %v6603_v41, %v7144_v4  ;;  %v7328_v20 = vmul.f32 %v6294_v9, %v7278_v47  ;;  %v7332_v4 = vmul.f32 %v6311_v16, %v7280_v35 }
  0xf8   :  { %13167 = vst [vmem:[#allocation248_spill] sm:$0xff] %v7292_v7  ;;  %13168 = vst [vmem:[#allocation249_spill] sm:$0xff] %v7296_v36  ;;  %v7320_v36 = vmul.f32 %v6302_v13, %v7280_v35  ;;  %v7324_v7 = vmul.f32 %v6291_v8, %v7278_v47 }
  0xf9   :  { %13169 = vst [vmem:[#allocation250_spill] sm:$0xff] %v7300_v58  ;;  %13170 = vst [vmem:[#allocation251_spill] sm:$0xff] %v7304_v5 }
  0xfa   :  { %13171 = vst [vmem:[#allocation252_spill] sm:$0xff] %v7308_v39  ;;  %13172 = vst [vmem:[#allocation253_spill] sm:$0xff] %v7312_v40  ;;  %v7336_v40 = vmul.f32 %v6314_v17, %v7280_v35  ;;  %v7340_v39 = vmul.f32 %v6317_v18, %v7278_v47 }
  0xfb   :  { %13173 = vst [vmem:[#allocation254_spill] sm:$0xff] %v7316_v26  ;;  %13174 = vst [vmem:[#allocation255_spill] sm:$0xff] %v7320_v36  ;;  %v7344_v36 = vmul.f32 %v6320_v19, %v7278_v47  ;;  %v7364_v47 = vpop.permute.xlu0 %39 }
  0xfc   :  { %13175 = vst [vmem:[#allocation256_spill] sm:$0xff] %v7324_v7  ;;  %13176 = vst [vmem:[#allocation257_spill] sm:$0xff] %v7328_v20  ;;  %v7346_v7 = vpop.permute.xlu1 %174  ;;  %v7350_v20 = vmul.f32 %v6350_v29, %v7280_v35 }
  0xfd   :  { %13177 = vst [vmem:[#allocation258_spill] sm:$0xff] %v7332_v4  ;;  %13178 = vst [vmem:[#allocation259_spill] sm:$0xff] %v7336_v40  ;;  %v7354_v4 = vmul.f32 %v6353_v34, %v7280_v35  ;;  %v7358_v40 = vmul.f32 %v6333_v24, %v7210_v44  ;;  %v13189_v35 = vrot.slane %v6844_v60, %v6204_v30 }
  0xfe   :  { %13179 = vst [vmem:[#allocation260_spill] sm:$0xff] %v7340_v39  ;;  %13180 = vst [vmem:[#allocation261_spill] sm:$0xff] %v7344_v36  ;;  %v7362_v39 = vmul.f32 %v6336_v25, %v7210_v44  ;;  %v7368_v36 = vmul.f32 %v6250_v51, %v7346_v7  ;;  %v13191_v44 = vrot.slane %v6844_v60, %v6206_v31 }
  0xff   :  { %13181 = vst [vmem:[#allocation262_spill] sm:$0xff] %v7346_v7  ;;  %13182 = vst [vmem:[#allocation263_spill] sm:$0xff] %v7350_v20  ;;  %v7372_v20 = vmul.f32 %v6253_v52, %v7346_v7  ;;  %v7378_v24 = vrot.slane %v13189_v35, %v6204_v30  ;;  %v7388_v51 = vmul.f32 %v6244_v49, %v7364_v47  ;;  %v7436_v26 = vpop.permute.xlu0 %44 }
 0x100   :  { %13183 = vst [vmem:[#allocation264_spill] sm:$0xff] %v7354_v4  ;;  %13184 = vst [vmem:[#allocation265_spill] sm:$0xff] %v7358_v40  ;;  %v7384_v25 = vrot.slane %v13191_v44, %v6204_v30  ;;  %v7392_v52 = vmul.f32 %v6247_v50, %v7364_v47  ;;  %v7400_v35 = vmul.f32 %v6294_v9, %v7346_v7 }
 0x101   :  { %13185 = vst [vmem:[#allocation266_spill] sm:$0xff] %v7362_v39  ;;  %13186 = vst [vmem:[#allocation267_spill] sm:$0xff] %v7364_v47  ;;  %v7396_v39 = vmul.f32 %v6291_v8, %v7346_v7  ;;  %v7404_v44 = vmul.f32 %v6259_v54, %v7364_v47  ;;  %v7408_v31 = vmul.f32 %v6262_v55, %v7364_v47 }
 0x102   :  { %13187 = vst [vmem:[#allocation268_spill] sm:$0xff] %v7368_v36  ;;  %13188 = vst [vmem:[#allocation269_spill] sm:$0xff] %v7372_v20  ;;  %v7412_v30 = vmul.f32 %v6305_v14, %v7364_v47  ;;  %v7416_v8 = vmul.f32 %v6308_v15, %v7364_v47  ;;  %v7420_v9 = vmul.f32 %v6317_v18, %v7346_v7 }
 0x103   :  { %13190 = vst [vmem:[#allocation270_spill] sm:$0xff] %v7378_v24  ;;  %13192 = vst [vmem:[#allocation271_spill] sm:$0xff] %v7384_v25  ;;  %v7424_v40 = vmul.f32 %v6320_v19, %v7346_v7  ;;  %v7428_v4 = vmul.f32 %v6327_v22, %v7364_v47  ;;  %v13201_v18 = vrot.slane %v6844_v60, %v6208_v32  ;;  %v7504_v5 = vpop.permute.xlu0 %59 }
 0x104   :  { %13193 = vst [vmem:[#allocation272_spill] sm:$0xff] %v7396_v39  ;;  %13194 = vst [vmem:[#allocation273_spill] sm:$0xff] %v7400_v35  ;;  %v7432_v35 = vmul.f32 %v6330_v23, %v7364_v47  ;;  %v7434_v39 = vpop.permute.xlu1 %182  ;;  %v13203_v19 = vrot.slane %v6844_v60, %v6210_v33  ;;  %v7472_v47 = vmul.f32 %v6259_v54, %v7436_v26 }
 0x105   :  { %13195 = vst [vmem:[#allocation274_spill] sm:$0xff] %v7420_v9  ;;  %13196 = vst [vmem:[#allocation275_spill] sm:$0xff] %v7424_v40  ;;  %v7442_v9 = vrot.slane %v13201_v18, %v6208_v32  ;;  %v7460_v18 = vmul.f32 %v6302_v13, %v7434_v39  ;;  %v7464_v40 = vmul.f32 %v6244_v49, %v7436_v26 }
 0x106   :  { %13197 = vst [vmem:[#allocation276_spill] sm:$0xff] %v7428_v4  ;;  %13198 = vst [vmem:[#allocation277_spill] sm:$0xff] %v7432_v35  ;;  %v7448_v7 = vrot.slane %v13203_v19, %v6208_v32  ;;  %v7456_v4 = vmul.f32 %v6299_v12, %v7434_v39  ;;  %v7468_v19 = vmul.f32 %v6247_v50, %v7436_v26 }
 0x107   :  { %13199 = vst [vmem:[#allocation278_spill] sm:$0xff] %v7434_v39  ;;  %13200 = vst [vmem:[#allocation279_spill] sm:$0xff] %v7436_v26  ;;  %v7476_v35 = vmul.f32 %v6262_v55, %v7436_v26  ;;  %v7480_v33 = vmul.f32 %v6311_v16, %v7434_v39  ;;  %v7484_v32 = vmul.f32 %v6314_v17, %v7434_v39 }
 0x108   :  { %13202 = vst [vmem:[#allocation280_spill] sm:$0xff] %v7442_v9  ;;  %13204 = vst [vmem:[#allocation281_spill] sm:$0xff] %v7448_v7  ;;  %v7488_v46 = vmul.f32 %v6305_v14, %v7436_v26  ;;  %v7492_v60 = vmul.f32 %v6308_v15, %v7436_v26  ;;  %v7496_v45 = vmul.f32 %v6350_v29, %v7434_v39  ;;  %v7502_v36 = vpop.permute.xlu1 %190 }
 0x109   :  { %v7500_v20 = vmul.f32 %v6353_v34, %v7434_v39  ;;  %13209 = vst [vmem:[#allocation286_spill] sm:$0xff] %v7502_v36  ;;  %13210 = vst [vmem:[#allocation287_spill] sm:$0xff] %v7504_v5  ;;  %v7508_v58 = vmul.f32 %v6327_v22, %v7436_v26  ;;  %v7528_v48 = vmul.f32 %v6302_v13, %v7502_v36 }
 0x10a   :  { %13205 = vst [vmem:[#allocation282_spill] sm:$0xff] %v7488_v46  ;;  %13206 = vst [vmem:[#allocation283_spill] sm:$0xff] %v7492_v60  ;;  %v7512_v46 = vmul.f32 %v6330_v23, %v7436_v26  ;;  %v7516_v60 = vmul.f32 %v6600_v11, %v7434_v39 }
 0x10b   :  { %13207 = vst [vmem:[#allocation284_spill] sm:$0xff] %v7496_v45  ;;  %13208 = vst [vmem:[#allocation285_spill] sm:$0xff] %v7500_v20  ;;  %v7520_v45 = vmul.f32 %v6603_v41, %v7434_v39  ;;  %v7524_v20 = vmul.f32 %v6299_v12, %v7502_v36  ;;  %v7540_v39 = vmul.f32 %v6311_v16, %v7502_v36 }
 0x10c   :  { %13211 = vst [vmem:[#allocation288_spill] sm:$0xff] %v7508_v58  ;;  %13212 = vst [vmem:[#allocation289_spill] sm:$0xff] %v7512_v46  ;;  %v7532_v58 = vmul.f32 %v6244_v49, %v7504_v5  ;;  %v7536_v46 = vmul.f32 %v6247_v50, %v7504_v5 }
 0x10d   :  { %13213 = vst [vmem:[#allocation290_spill] sm:$0xff] %v7516_v60  ;;  %13214 = vst [vmem:[#allocation291_spill] sm:$0xff] %v7520_v45  ;;  %v7544_v45 = vmul.f32 %v6314_v17, %v7502_v36  ;;  %v7548_v60 = vmul.f32 %v6259_v54, %v7504_v5 }
 0x10e   :  { %13215 = vst [vmem:[#allocation292_spill] sm:$0xff] %v7524_v20  ;;  %13216 = vst [vmem:[#allocation293_spill] sm:$0xff] %v7528_v48  ;;  %v7552_v48 = vmul.f32 %v6262_v55, %v7504_v5  ;;  %v7572_v20 = vpop.permute.xlu0 %69 }
 0x10f   :  { %13217 = vst [vmem:[#allocation294_spill] sm:$0xff] %v7532_v58  ;;  %13218 = vst [vmem:[#allocation295_spill] sm:$0xff] %v7536_v46  ;;  %v7556_v58 = vmul.f32 %v6350_v29, %v7502_v36  ;;  %v7560_v46 = vmul.f32 %v6353_v34, %v7502_v36 }
 0x110   :  { %13219 = vst [vmem:[#allocation296_spill] sm:$0xff] %v7540_v39  ;;  %13220 = vst [vmem:[#allocation297_spill] sm:$0xff] %v7544_v45  ;;  %v7564_v39 = vmul.f32 %v6305_v14, %v7504_v5  ;;  %v7568_v45 = vmul.f32 %v6308_v15, %v7504_v5 }
 0x111   :  { %13221 = vst [vmem:[#allocation298_spill] sm:$0xff] %v7548_v60  ;;  %13222 = vst [vmem:[#allocation299_spill] sm:$0xff] %v7552_v48  ;;  %v7570_v60 = vpop.permute.xlu1 %194  ;;  %v7576_v48 = vmul.f32 %v6600_v11, %v7502_v36 }
 0x112   :  { %13223 = vst [vmem:[#allocation300_spill] sm:$0xff] %v7556_v58  ;;  %13224 = vst [vmem:[#allocation301_spill] sm:$0xff] %v7560_v46  ;;  %v7580_v58 = vmul.f32 %v6603_v41, %v7502_v36  ;;  %v7584_v46 = vmul.f32 %v6327_v22, %v7504_v5  ;;  %v7596_v56 = vmul.f32 %v6302_v13, %v7570_v60  ;;  %v7640_v10 = vpop.permute.xlu0 %79 }
 0x113   :  { %13225 = vst [vmem:[#allocation302_spill] sm:$0xff] %v7564_v39  ;;  %13226 = vst [vmem:[#allocation303_spill] sm:$0xff] %v7568_v45  ;;  %v7588_v39 = vmul.f32 %v6330_v23, %v7504_v5  ;;  %v7592_v45 = vmul.f32 %v6299_v12, %v7570_v60  ;;  %v7600_v36 = vmul.f32 %v6244_v49, %v7572_v20 }
 0x114   :  { %13227 = vst [vmem:[#allocation304_spill] sm:$0xff] %v7570_v60  ;;  %13228 = vst [vmem:[#allocation305_spill] sm:$0xff] %v7572_v20  ;;  %v7608_v5 = vmul.f32 %v6311_v16, %v7570_v60 }
 0x115   :  { %13229 = vst [vmem:[#allocation306_spill] sm:$0xff] %v7576_v48  ;;  %13230 = vst [vmem:[#allocation307_spill] sm:$0xff] %v7580_v58  ;;  %v7604_v58 = vmul.f32 %v6247_v50, %v7572_v20  ;;  %v7620_v48 = vmul.f32 %v6262_v55, %v7572_v20 }
 0x116   :  { %13231 = vst [vmem:[#allocation308_spill] sm:$0xff] %v7584_v46  ;;  %13232 = vst [vmem:[#allocation309_spill] sm:$0xff] %v7588_v39  ;;  %v7612_v39 = vmul.f32 %v6314_v17, %v7570_v60  ;;  %v7616_v46 = vmul.f32 %v6259_v54, %v7572_v20 }
 0x117   :  { %13233 = vst [vmem:[#allocation310_spill] sm:$0xff] %v7600_v36  ;;  %13234 = vst [vmem:[#allocation311_spill] sm:$0xff] %v7604_v58  ;;  %v7624_v36 = vmul.f32 %v6350_v29, %v7570_v60  ;;  %v7628_v58 = vmul.f32 %v6353_v34, %v7570_v60 }
 0x118   :  { %13235 = vst [vmem:[#allocation312_spill] sm:$0xff] %v7608_v5  ;;  %13236 = vst [vmem:[#allocation313_spill] sm:$0xff] %v7612_v39  ;;  %v7632_v5 = vmul.f32 %v6305_v14, %v7572_v20  ;;  %v7636_v39 = vmul.f32 %v6308_v15, %v7572_v20 }
 0x119   :  { %13237 = vst [vmem:[#allocation314_spill] sm:$0xff] %v7616_v46  ;;  %13238 = vst [vmem:[#allocation315_spill] sm:$0xff] %v7620_v48  ;;  %v7638_v46 = vpop.permute.xlu1 %202  ;;  %v7644_v48 = vmul.f32 %v6600_v11, %v7570_v60 }
 0x11a   :  { %13239 = vst [vmem:[#allocation316_spill] sm:$0xff] %v7624_v36  ;;  %13240 = vst [vmem:[#allocation317_spill] sm:$0xff] %v7628_v58  ;;  %v7648_v36 = vmul.f32 %v6603_v41, %v7570_v60  ;;  %v7652_v58 = vmul.f32 %v6327_v22, %v7572_v20  ;;  %v7664_v6 = vmul.f32 %v6302_v13, %v7638_v46 }
 0x11b   :  { %13241 = vst [vmem:[#allocation318_spill] sm:$0xff] %v7632_v5  ;;  %13242 = vst [vmem:[#allocation319_spill] sm:$0xff] %v7636_v39  ;;  %v7656_v5 = vmul.f32 %v6330_v23, %v7572_v20  ;;  %v7660_v39 = vmul.f32 %v6299_v12, %v7638_v46  ;;  %v7668_v60 = vmul.f32 %v6244_v49, %v7640_v10 }
 0x11c   :  { %13243 = vst [vmem:[#allocation320_spill] sm:$0xff] %v7638_v46  ;;  %13244 = vst [vmem:[#allocation321_spill] sm:$0xff] %v7640_v10  ;;  %v7676_v20 = vmul.f32 %v6311_v16, %v7638_v46 }
 0x11d   :  { %13245 = vst [vmem:[#allocation322_spill] sm:$0xff] %v7644_v48  ;;  %13246 = vst [vmem:[#allocation323_spill] sm:$0xff] %v7648_v36  ;;  %v7672_v36 = vmul.f32 %v6247_v50, %v7640_v10  ;;  %v7688_v48 = vmul.f32 %v6262_v55, %v7640_v10 }
 0x11e   :  { %13247 = vst [vmem:[#allocation324_spill] sm:$0xff] %v7652_v58  ;;  %13248 = vst [vmem:[#allocation325_spill] sm:$0xff] %v7656_v5  ;;  %v7680_v5 = vmul.f32 %v6314_v17, %v7638_v46  ;;  %v7684_v58 = vmul.f32 %v6259_v54, %v7640_v10 }
 0x11f   :  { %13249 = vst [vmem:[#allocation326_spill] sm:$0xff] %v7660_v39  ;;  %13250 = vst [vmem:[#allocation327_spill] sm:$0xff] %v7664_v6  ;;  %v7708_v6 = vpop.permute.xlu0 %89 }
 0x120   :  { %13251 = vst [vmem:[#allocation328_spill] sm:$0xff] %v7668_v60  ;;  %13252 = vst [vmem:[#allocation329_spill] sm:$0xff] %v7672_v36  ;;  %v7692_v60 = vmul.f32 %v6350_v29, %v7638_v46  ;;  %v7696_v36 = vmul.f32 %v6353_v34, %v7638_v46 }
 0x121   :  { %13253 = vst [vmem:[#allocation330_spill] sm:$0xff] %v7676_v20  ;;  %13254 = vst [vmem:[#allocation331_spill] sm:$0xff] %v7680_v5  ;;  %v7700_v20 = vmul.f32 %v6305_v14, %v7640_v10  ;;  %v7704_v5 = vmul.f32 %v6308_v15, %v7640_v10 }
 0x122   :  { %13255 = vst [vmem:[#allocation332_spill] sm:$0xff] %v7684_v58  ;;  %13256 = vst [vmem:[#allocation333_spill] sm:$0xff] %v7688_v48  ;;  %v7706_v58 = vpop.permute.xlu1 %210  ;;  %v7712_v48 = vmul.f32 %v6600_v11, %v7638_v46 }
 0x123   :  { %13257 = vst [vmem:[#allocation334_spill] sm:$0xff] %v7692_v60  ;;  %13258 = vst [vmem:[#allocation335_spill] sm:$0xff] %v7696_v36  ;;  %v7716_v60 = vmul.f32 %v6603_v41, %v7638_v46  ;;  %v7720_v36 = vmul.f32 %v7378_v24, %v7436_v26  ;;  %v7732_v39 = vmul.f32 %v6302_v13, %v7706_v58 }
 0x124   :  { %13259 = vst [vmem:[#allocation336_spill] sm:$0xff] %v7700_v20  ;;  %13260 = vst [vmem:[#allocation337_spill] sm:$0xff] %v7704_v5  ;;  %v7724_v20 = vmul.f32 %v7384_v25, %v7436_v26  ;;  %v7728_v5 = vmul.f32 %v6299_v12, %v7706_v58  ;;  %v7736_v46 = vmul.f32 %v6244_v49, %v7708_v6 }
 0x125   :  { %13261 = vst [vmem:[#allocation338_spill] sm:$0xff] %v7706_v58  ;;  %13262 = vst [vmem:[#allocation339_spill] sm:$0xff] %v7708_v6  ;;  %v7740_v24 = vmul.f32 %v6247_v50, %v7708_v6  ;;  %v7744_v26 = vmul.f32 %v6311_v16, %v7706_v58  ;;  %v7748_v25 = vmul.f32 %v6314_v17, %v7706_v58 }
 0x126   :  { %13263 = vst [vmem:[#allocation340_spill] sm:$0xff] %v7712_v48  ;;  %13264 = vst [vmem:[#allocation341_spill] sm:$0xff] %v7716_v60  ;;  %v7760_v60 = vmul.f32 %v6350_v29, %v7706_v58  ;;  %v7764_v48 = vmul.f32 %v6353_v34, %v7706_v58 }
 0x127   :  { %13265 = vst [vmem:[#allocation342_spill] sm:$0xff] %v7720_v36  ;;  %13266 = vst [vmem:[#allocation343_spill] sm:$0xff] %v7724_v20  ;;  %v7752_v20 = vmul.f32 %v6259_v54, %v7708_v6  ;;  %v7756_v36 = vmul.f32 %v6262_v55, %v7708_v6 }
 0x128   :  { %13267 = vst [vmem:[#allocation344_spill] sm:$0xff] %v7736_v46  ;;  %13268 = vst [vmem:[#allocation345_spill] sm:$0xff] %v7740_v24  ;;  %v7776_v24 = vpop.permute.xlu0 %99 }
 0x129   :  { %13269 = vst [vmem:[#allocation346_spill] sm:$0xff] %v7744_v26  ;;  %13270 = vst [vmem:[#allocation347_spill] sm:$0xff] %v7748_v25  ;;  %v7768_v26 = vmul.f32 %v6305_v14, %v7708_v6  ;;  %v7772_v25 = vmul.f32 %v6308_v15, %v7708_v6 }
 0x12a   :  { %13271 = vst [vmem:[#allocation348_spill] sm:$0xff] %v7752_v20  ;;  %13272 = vst [vmem:[#allocation349_spill] sm:$0xff] %v7756_v36  ;;  %v7774_v20 = vpop.permute.xlu1 %218  ;;  %v7780_v36 = vmul.f32 %v6600_v11, %v7706_v58 }
 0x12b   :  { %13273 = vst [vmem:[#allocation350_spill] sm:$0xff] %v7760_v60  ;;  %13274 = vst [vmem:[#allocation351_spill] sm:$0xff] %v7764_v48  ;;  %v7784_v60 = vmul.f32 %v6603_v41, %v7706_v58  ;;  %v7788_v48 = vmul.f32 %v6327_v22, %v7640_v10  ;;  %v7800_v46 = vmul.f32 %v6302_v13, %v7774_v20 }
 0x12c   :  { %13275 = vst [vmem:[#allocation352_spill] sm:$0xff] %v7768_v26  ;;  %13276 = vst [vmem:[#allocation353_spill] sm:$0xff] %v7772_v25  ;;  %v7792_v26 = vmul.f32 %v6330_v23, %v7640_v10  ;;  %v7796_v25 = vmul.f32 %v6299_v12, %v7774_v20  ;;  %v7804_v58 = vmul.f32 %v6244_v49, %v7776_v24 }
 0x12d   :  { %13277 = vst [vmem:[#allocation354_spill] sm:$0xff] %v7774_v20  ;;  %13278 = vst [vmem:[#allocation355_spill] sm:$0xff] %v7776_v24  ;;  %v7812_v10 = vmul.f32 %v6311_v16, %v7774_v20 }
 0x12e   :  { %13279 = vst [vmem:[#allocation356_spill] sm:$0xff] %v7780_v36  ;;  %13280 = vst [vmem:[#allocation357_spill] sm:$0xff] %v7784_v60  ;;  %v7808_v60 = vmul.f32 %v6247_v50, %v7776_v24  ;;  %v7824_v36 = vmul.f32 %v6262_v55, %v7776_v24 }
 0x12f   :  { %13281 = vst [vmem:[#allocation358_spill] sm:$0xff] %v7788_v48  ;;  %13282 = vst [vmem:[#allocation359_spill] sm:$0xff] %v7792_v26  ;;  %v7816_v26 = vmul.f32 %v6314_v17, %v7774_v20  ;;  %v7820_v48 = vmul.f32 %v6259_v54, %v7776_v24 }
 0x130   :  { %13283 = vst [vmem:[#allocation360_spill] sm:$0xff] %v7800_v46  ;;  %13284 = vst [vmem:[#allocation361_spill] sm:$0xff] %v7804_v58  ;;  %v7828_v58 = vmul.f32 %v6350_v29, %v7774_v20  ;;  %v7844_v46 = vpop.permute.xlu0 %109 }
 0x131   :  { %13285 = vst [vmem:[#allocation362_spill] sm:$0xff] %v7808_v60  ;;  %13286 = vst [vmem:[#allocation363_spill] sm:$0xff] %v7812_v10  ;;  %v7832_v60 = vmul.f32 %v6353_v34, %v7774_v20  ;;  %v7836_v10 = vmul.f32 %v6305_v14, %v7776_v24 }
 0x132   :  { %13287 = vst [vmem:[#allocation364_spill] sm:$0xff] %v7816_v26  ;;  %13288 = vst [vmem:[#allocation365_spill] sm:$0xff] %v7820_v48  ;;  %v7840_v26 = vmul.f32 %v6308_v15, %v7776_v24  ;;  %v7842_v48 = vpop.permute.xlu1 %226  ;;  %v7860_v24 = vmul.f32 %v6330_v23, %v7708_v6 }
 0x133   :  { %13289 = vst [vmem:[#allocation366_spill] sm:$0xff] %v7824_v36  ;;  %13290 = vst [vmem:[#allocation367_spill] sm:$0xff] %v7828_v58  ;;  %v7848_v36 = vmul.f32 %v6600_v11, %v7774_v20  ;;  %v7852_v58 = vmul.f32 %v6603_v41, %v7774_v20  ;;  %v7872_v20 = vmul.f32 %v6244_v49, %v7844_v46 }
 0x134   :  { %13291 = vst [vmem:[#allocation368_spill] sm:$0xff] %v7832_v60  ;;  %13292 = vst [vmem:[#allocation369_spill] sm:$0xff] %v7836_v10  ;;  %v7856_v60 = vmul.f32 %v6327_v22, %v7708_v6  ;;  %v7868_v10 = vmul.f32 %v6302_v13, %v7842_v48  ;;  %v7876_v22 = vmul.f32 %v6247_v50, %v7844_v46 }
 0x135   :  { %13293 = vst [vmem:[#allocation370_spill] sm:$0xff] %v7840_v26  ;;  %13294 = vst [vmem:[#allocation371_spill] sm:$0xff] %v7842_v48  ;;  %v7864_v26 = vmul.f32 %v6299_v12, %v7842_v48  ;;  %v7880_v6 = vmul.f32 %v6311_v16, %v7842_v48  ;;  %v7884_v23 = vmul.f32 %v6314_v17, %v7842_v48 }
 0x136   :  { %13295 = vst [vmem:[#allocation372_spill] sm:$0xff] %v7844_v46  ;;  %13296 = vst [vmem:[#allocation373_spill] sm:$0xff] %v7848_v36  ;;  %v7892_v49 = vmul.f32 %v6262_v55, %v7844_v46  ;;  %v7896_v50 = vmul.f32 %v6350_v29, %v7842_v48  ;;  %v7910_v36 = vpop.permute.xlu1 %234  ;;  %v7912_v55 = vpop.permute.xlu0 %263 }
 0x137   :  { %13297 = vst [vmem:[#allocation374_spill] sm:$0xff] %v7852_v58  ;;  %13298 = vst [vmem:[#allocation375_spill] sm:$0xff] %v7856_v60  ;;  %v7900_v60 = vmul.f32 %v6353_v34, %v7842_v48  ;;  %v7904_v58 = vmul.f32 %v6305_v14, %v7844_v46  ;;  %v7924_v14 = vmul.f32 %v7442_v9, %v6878_v42 }
 0x138   :  { %13299 = vst [vmem:[#allocation376_spill] sm:$0xff] %v7860_v24  ;;  %v7888_v24 = vmul.f32 %v6259_v54, %v7844_v46  ;;  %13300 = vst [vmem:[#allocation377_spill] sm:$0xff] %v7892_v49  ;;  %v7908_v54 = vmul.f32 %v6308_v15, %v7844_v46  ;;  %v7916_v49 = vmul.f32 %v6600_v11, %v7842_v48 }
 0x139   :  { %13301 = vst [vmem:[#allocation378_spill] sm:$0xff] %v7896_v50  ;;  %13302 = vst [vmem:[#allocation379_spill] sm:$0xff] %v7904_v58  ;;  %v7920_v50 = vmul.f32 %v6603_v41, %v7842_v48  ;;  %v7928_v15 = vmul.f32 %v7448_v7, %v6878_v42  ;;  %v393_v46 = vadd.f32 %v7388_v51, %v7912_v55  ;;  %v13335_v58 = vld [vmem:[#allocation73_spill] sm:$0xff] }
 0x13a   :  { %13303 = vst [vmem:[#allocation380_spill] sm:$0xff] %v7908_v54  ;;  %13304 = vst [vmem:[#allocation381_spill] sm:$0xff] %v7910_v36  ;;  %v394_v54 = vadd.f32 %v7392_v52, %v7912_v55  ;;  %v7936_v11 = vmul.f32 %v6299_v12, %v7910_v36  ;;  %v7940_v48 = vmul.f32 %v6302_v13, %v7910_v36  ;;  %v7966_v41 = vpop.permute.xlu0 %278 }
 0x13b   :  { %13305 = vst [vmem:[#allocation382_spill] sm:$0xff] %v7912_v55  ;;  %13306 = vst [vmem:[#allocation383_spill] sm:$0xff] %v7916_v49  ;;  %v738_v9 = vadd.f32 %v7404_v44, %v7912_v55  ;;  %v739_v42 = vadd.f32 %v7408_v31, %v7912_v55  ;;  %v7948_v51 = vmul.f32 %v6311_v16, %v7910_v36  ;;  %v7964_v31 = vpop.permute.xlu1 %242 }
 0x13c   :  { %13307 = vst [vmem:[#allocation384_spill] sm:$0xff] %v7920_v50  ;;  %13308 = vst [vmem:[#allocation385_spill] sm:$0xff] %v7924_v14  ;;  %v7952_v52 = vmul.f32 %v6314_v17, %v7910_v36  ;;  %v475_v7 = vadd.f32 %v6343_v27, %v393_v46  ;;  %v7958_v14 = vadd.f32 %v7412_v30, %v7912_v55 }
 0x13d   :  { %13309 = vst [vmem:[#allocation386_spill] sm:$0xff] %v7928_v15  ;;  %v476_v15 = vadd.f32 %v6347_v28, %v394_v54  ;;  %v7962_v44 = vadd.f32 %v7416_v8, %v7912_v55  ;;  %13310 = vst [vmem:[#allocation387_spill] sm:$0xff] %v7964_v31  ;;  %v820_v50 = vadd.f32 %v6365_v37, %v738_v9 }
 0x13e   :  { %v821_v49 = vadd.f32 %v6369_v38, %v739_v42  ;;  %v7972_v46 = vmul.f32 %v6350_v29, %v7910_v36  ;;  %v7976_v30 = vmul.f32 %v6353_v34, %v7910_v36  ;;  %v557_v27 = vadd.f32 %v7456_v4, %v475_v7  ;;  %v7998_v54 = vpop.permute.xlu0 %288 }
 0x13f   :  { %v558_v28 = vadd.f32 %v7460_v18, %v476_v15  ;;  %v399_v8 = vadd.f32 %v6409_v57, %v7966_v41  ;;  %v400_v37 = vadd.f32 %v6413_v59, %v7966_v41  ;;  %v7986_v38 = vmul.f32 %v6299_v12, %v7964_v31 }
 0x140   :  { %v7990_v42 = vmul.f32 %v6302_v13, %v7964_v31  ;;  %v744_v9 = vadd.f32 %v6433_v0, %v7966_v41  ;;  %v745_v4 = vadd.f32 %v6437_v1, %v7966_v41  ;;  %v589_v7 = vmax.f32 %v557_v27, 0.0  ;;  %v8012_v1 = vpop.permute.xlu1 %268 }
 0x141   :  { %v590_v18 = vmax.f32 %v558_v28, 0.0  ;;  %v481_v57 = vadd.f32 %v6425_v62, %v399_v8  ;;  %v482_v59 = vadd.f32 %v6429_v63, %v400_v37  ;;  %v8007_v15 = vadd.f32 %v7480_v33, %v820_v50  ;;  %13311 = vst [vmem:[#allocation388_spill] sm:$0xff] %v8012_v1  ;;  %v13314_v37 = vld [vmem:[#allocation145_spill] sm:$0xff] }
 0x142   :  { %v8001_v12 = vadd.f32 %v6441_v2, %v744_v9  ;;  %v8004_v13 = vadd.f32 %v6445_v3, %v745_v4  ;;  %v8010_v0 = vadd.f32 %v7484_v32, %v821_v49  ;;  %v403_v2 = vadd.f32 %v6477_v21, %v7998_v54  ;;  %v8031_v28 = vpop.permute.xlu0 %298  ;;  %v13315_v9 = vld [vmem:[#allocation148_spill] sm:$0xff] }
 0x143   :  { %v621_v27 = vadd.f32 %v590_v18, %v589_v7  ;;  %v563_v62 = vadd.f32 %v7592_v45, %v481_v57  ;;  %v564_v63 = vadd.f32 %v7596_v56, %v482_v59  ;;  %v404_v3 = vadd.f32 %v6481_v61, %v7998_v54  ;;  %13312 = vst [vmem:[#allocation389_spill] sm:$0xff] %v8031_v28  ;;  %v13317_v18 = vld [vmem:[#allocation326_spill] sm:$0xff]  ;;  %v13318_v57 = vld [vmem:[#allocation51_spill] sm:$0xff]  ;;  %v13319_v59 = vld [vmem:[#allocation52_spill] sm:$0xff] }
 0x144   :  { %v395_v33 = vadd.f32 %v7464_v40, %v8012_v1  ;;  %v396_v32 = vadd.f32 %v7468_v19, %v8012_v1  ;;  %v740_v49 = vadd.f32 %v7472_v47, %v8012_v1  ;;  %v485_v56 = vadd.f32 %v6493_v43, %v403_v2  ;;  %v13313_v40 = vld [vmem:[#allocation144_spill] sm:$0xff]  ;;  %v8039_v47 = vpop.permute.xlu1 %273 }
 0x145   :  { %622 = vadd.xlane.f32.xlu1 %v621_v27  ;;  %v595_v50 = vmax.f32 %v563_v62, 0.0  ;;  %v596_v45 = vmax.f32 %v564_v63, 0.0  ;;  %v8029_v21 = vadd.f32 %v7476_v35, %v8012_v1  ;;  %v486_v61 = vadd.f32 %v6497_v53, %v404_v3  ;;  %13316 = vst [vmem:[#allocation144_spill] sm:$0xff] %v8039_v47  ;;  %v13320_v62 = vld [vmem:[#allocation327_spill] sm:$0xff]  ;;  %v13321_v63 = vld [vmem:[#allocation146_spill] sm:$0xff] }
 0x146   :  { %v477_v8 = vadd.f32 %v13313_v40, %v395_v33  ;;  %v478_v19 = vadd.f32 %v13314_v37, %v396_v32  ;;  %v8037_v4 = vadd.f32 %v13315_v9, %v740_v49  ;;  %v567_v43 = vadd.f32 %v13317_v18, %v485_v56  ;;  %v13322_v3 = vld [vmem:[#allocation147_spill] sm:$0xff]  ;;  %v13323_v32 = vld [vmem:[#allocation17_spill] sm:$0xff]  ;;  %v13325_v56 = vld [vmem:[#allocation56_spill] sm:$0xff] }
 0x147   :  { %v630_v7 = vadd.f32 %v596_v45, %v595_v50  ;;  %v407_v35 = vadd.f32 %v13318_v57, %v8031_v28  ;;  %v408_v27 = vadd.f32 %v13319_v59, %v8031_v28  ;;  %v568_v53 = vadd.f32 %v13320_v62, %v486_v61  ;;  %v13324_v50 = vld [vmem:[#allocation55_spill] sm:$0xff]  ;;  %v13326_v9 = vld [vmem:[#allocation18_spill] sm:$0xff]  ;;  %v8055_v57 = vpop.permute.xlu0 %308 }
 0x148   :  { %v559_v2 = vadd.f32 %v13321_v63, %v477_v8  ;;  %v560_v33 = vadd.f32 %v13322_v3, %v478_v19  ;;  %v397_v49 = vadd.f32 %v13323_v32, %v8039_v47  ;;  %v599_v40 = vmax.f32 %v567_v43, 0.0  ;;  %13327 = vst [vmem:[#allocation145_spill] sm:$0xff] %v8055_v57  ;;  %v13328_v8 = vld [vmem:[#allocation160_spill] sm:$0xff]  ;;  %v8058_v19 = vpop.permute.xlu1 %283  ;;  %v13330_v43 = vld [vmem:[#allocation161_spill] sm:$0xff] }
 0x149   :  { %631 = vadd.xlane.f32.xlu1 %v630_v7  ;;  %v489_v45 = vadd.f32 %v13324_v50, %v407_v35  ;;  %v490_v37 = vadd.f32 %v13325_v56, %v408_v27  ;;  %v398_v18 = vadd.f32 %v13326_v9, %v8039_v47  ;;  %v600_v59 = vmax.f32 %v568_v53, 0.0  ;;  %13329 = vst [vmem:[#allocation148_spill] sm:$0xff] %v8058_v19  ;;  %v13331_v27 = vld [vmem:[#allocation69_spill] sm:$0xff]  ;;  %v13332_v9 = vld [vmem:[#allocation292_spill] sm:$0xff]  ;;  %v13333_v53 = vld [vmem:[#allocation70_spill] sm:$0xff] }
 0x14a   :  { %v591_v61 = vmax.f32 %v559_v2, 0.0  ;;  %v592_v62 = vmax.f32 %v560_v33, 0.0  ;;  %v479_v63 = vadd.f32 %v13328_v8, %v397_v49  ;;  %v411_v32 = vadd.f32 %v13331_v27, %v8055_v57  ;;  %v13334_v8 = vld [vmem:[#allocation293_spill] sm:$0xff]  ;;  %v13342_v27 = vld [vmem:[#allocation360_spill] sm:$0xff] }
 0x14b   :  { %v571_v3 = vadd.f32 %v7728_v5, %v489_v45  ;;  %v572_v7 = vadd.f32 %v7732_v39, %v490_v37  ;;  %v480_v35 = vadd.f32 %v13330_v43, %v398_v18  ;;  %v636_v50 = vadd.f32 %v600_v59, %v599_v40  ;;  %v8070_v39 = vpop.permute.xlu0 %318  ;;  %v13337_v37 = vld [vmem:[#allocation74_spill] sm:$0xff] }
 0x14c   :  { %v624_v56 = vadd.f32 %v592_v62, %v591_v61  ;;  %v561_v36 = vadd.f32 %v13332_v9, %v479_v63  ;;  %v412_v2 = vadd.f32 %v13333_v53, %v8055_v57  ;;  %v493_v5 = vadd.f32 %v13335_v58, %v411_v32  ;;  %13336 = vst [vmem:[#allocation326_spill] sm:$0xff] %v8070_v39  ;;  %v13338_v40 = vld [vmem:[#allocation294_spill] sm:$0xff]  ;;  %v13339_v61 = vld [vmem:[#allocation295_spill] sm:$0xff]  ;;  %v8077_v63 = vpop.permute.xlu1 %293  ;;  %v13345_v53 = vld [vmem:[#allocation88_spill] sm:$0xff] }
 0x14d   :  { %v603_v33 = vmax.f32 %v571_v3, 0.0  ;;  %v604_v49 = vmax.f32 %v572_v7, 0.0  ;;  %v562_v55 = vadd.f32 %v13334_v8, %v480_v35  ;;  %637 = vadd.xlane.f32.xlu1 %v636_v50  ;;  %v401_v59 = vadd.f32 %v13338_v40, %v8058_v19  ;;  %13340 = vst [vmem:[#allocation51_spill] sm:$0xff] %v8077_v63  ;;  %v13341_v58 = vld [vmem:[#allocation87_spill] sm:$0xff] }
 0x14e   :  { %625 = vadd.xlane.f32.xlu0 %v624_v56  ;;  %v593_v45 = vmax.f32 %v561_v36, 0.0  ;;  %v494_v18 = vadd.f32 %v13337_v37, %v412_v2  ;;  %v402_v62 = vadd.f32 %v13339_v61, %v8058_v19  ;;  %v575_v43 = vadd.f32 %v7796_v25, %v493_v5  ;;  %v13343_v36 = vld [vmem:[#allocation178_spill] sm:$0xff]  ;;  %v13344_v56 = vld [vmem:[#allocation179_spill] sm:$0xff]  ;;  %v13349_v5 = vld [vmem:[#allocation164_spill] sm:$0xff] }
 0x14f   :  { %v642_v3 = vadd.f32 %v604_v49, %v603_v33  ;;  %v594_v7 = vmax.f32 %v562_v55, 0.0  ;;  %v415_v35 = vadd.f32 %v13341_v58, %v8070_v39  ;;  %v483_v50 = vadd.f32 %v13343_v36, %v401_v59  ;;  %v13346_v40 = vld [vmem:[#allocation91_spill] sm:$0xff]  ;;  %v13347_v55 = vld [vmem:[#allocation310_spill] sm:$0xff]  ;;  %v8090_v25 = vpop.permute.xlu0 %328  ;;  %v13350_v58 = vld [vmem:[#allocation165_spill] sm:$0xff] }
 0x150   :  { %v576_v32 = vadd.f32 %v13342_v27, %v494_v18  ;;  %v484_v9 = vadd.f32 %v13344_v56, %v402_v62  ;;  %v416_v2 = vadd.f32 %v13345_v53, %v8070_v39  ;;  %v607_v37 = vmax.f32 %v575_v43, 0.0  ;;  %13348 = vst [vmem:[#allocation52_spill] sm:$0xff] %v8090_v25  ;;  %v13351_v27 = vld [vmem:[#allocation92_spill] sm:$0xff]  ;;  %v8095_v36 = vpop.permute.xlu1 %303 }
 0x151   :  { %v627_v8 = vadd.f32 %v594_v7, %v593_v45  ;;  %v497_v61 = vadd.f32 %v13346_v40, %v415_v35  ;;  %v405_v33 = vadd.f32 %v13347_v55, %v8077_v63  ;;  %643 = vadd.xlane.f32.xlu1 %v642_v3  ;;  %v565_v18 = vadd.f32 %v13349_v5, %v483_v50  ;;  %v13353_v7 = vld [vmem:[#allocation311_spill] sm:$0xff]  ;;  %v13354_v35 = vld [vmem:[#allocation196_spill] sm:$0xff]  ;;  %v13355_v3 = vld [vmem:[#allocation105_spill] sm:$0xff] }
 0x152   :  { %v608_v49 = vmax.f32 %v576_v32, 0.0  ;;  %v566_v59 = vadd.f32 %v13350_v58, %v484_v9  ;;  %v498_v62 = vadd.f32 %v13351_v27, %v416_v2  ;;  %13352 = vst [vmem:[#allocation327_spill] sm:$0xff] %v8095_v36  ;;  %v406_v43 = vadd.f32 %v13353_v7, %v8077_v63  ;;  %v13356_v2 = vld [vmem:[#allocation197_spill] sm:$0xff]  ;;  %v13357_v5 = vld [vmem:[#allocation182_spill] sm:$0xff] }
 0x153   :  { %628 = vadd.xlane.f32.xlu0 %v627_v8  ;;  %v579_v45 = vadd.f32 %v7864_v26, %v497_v61  ;;  %v487_v56 = vadd.f32 %v13354_v35, %v405_v33  ;;  %v419_v53 = vadd.f32 %v13355_v3, %v8090_v25  ;;  %v597_v40 = vmax.f32 %v565_v18, 0.0  ;;  %v13358_v26 = vld [vmem:[#allocation106_spill] sm:$0xff]  ;;  %v8108_v7 = vpop.permute.xlu0 %338  ;;  %v13360_v35 = vld [vmem:[#allocation109_spill] sm:$0xff] }
 0x154   :  { %v648_v32 = vadd.f32 %v608_v49, %v607_v37  ;;  %v598_v50 = vmax.f32 %v566_v59, 0.0  ;;  %v580_v9 = vadd.f32 %v7868_v10, %v498_v62  ;;  %v488_v8 = vadd.f32 %v13356_v2, %v406_v43  ;;  %13359 = vst [vmem:[#allocation146_spill] sm:$0xff] %v8108_v7  ;;  %v13361_v37 = vld [vmem:[#allocation328_spill] sm:$0xff]  ;;  %v8113_v18 = vpop.permute.xlu1 %313  ;;  %v13363_v10 = vld [vmem:[#allocation183_spill] sm:$0xff] }
 0x155   :  { %v611_v55 = vmax.f32 %v579_v45, 0.0  ;;  %v569_v58 = vadd.f32 %v13357_v5, %v487_v56  ;;  %v420_v61 = vadd.f32 %v13358_v26, %v8090_v25  ;;  %v501_v3 = vadd.f32 %v13360_v35, %v419_v53  ;;  %13362 = vst [vmem:[#allocation147_spill] sm:$0xff] %v8113_v18  ;;  %v13364_v45 = vld [vmem:[#allocation110_spill] sm:$0xff]  ;;  %v13365_v56 = vld [vmem:[#allocation329_spill] sm:$0xff]  ;;  %v13367_v53 = vld [vmem:[#allocation123_spill] sm:$0xff] }
 0x156   :  { %649 = vadd.xlane.f32.xlu1 %v648_v32  ;;  %v633_v27 = vadd.f32 %v598_v50, %v597_v40  ;;  %v612_v33 = vmax.f32 %v580_v9, 0.0  ;;  %v409_v49 = vadd.f32 %v13361_v37, %v8095_v36  ;;  %v570_v59 = vadd.f32 %v13363_v10, %v488_v8  ;;  %v13366_v50 = vld [vmem:[#allocation214_spill] sm:$0xff]  ;;  %v13368_v37 = vld [vmem:[#allocation215_spill] sm:$0xff] }
 0x157   :  { %v601_v62 = vmax.f32 %v569_v58, 0.0  ;;  %v502_v43 = vadd.f32 %v13364_v45, %v420_v61  ;;  %v410_v2 = vadd.f32 %v13365_v56, %v8095_v36  ;;  %v583_v40 = vadd.f32 %v7936_v11, %v501_v3  ;;  %v13369_v58 = vld [vmem:[#allocation124_spill] sm:$0xff] }
 0x158   :  { %634 = vadd.xlane.f32.xlu0 %v633_v27  ;;  %v654_v32 = vadd.f32 %v612_v33, %v611_v55  ;;  %v491_v9 = vadd.f32 %v13366_v50, %v409_v49  ;;  %v423_v5 = vadd.f32 %v13367_v53, %v8108_v7  ;;  %v602_v26 = vmax.f32 %v570_v59, 0.0  ;;  %v13370_v45 = vld [vmem:[#allocation200_spill] sm:$0xff]  ;;  %v13371_v55 = vld [vmem:[#allocation127_spill] sm:$0xff]  ;;  %v8131_v56 = vpop.permute.xlu1 %323  ;;  %v13374_v50 = vld [vmem:[#allocation201_spill] sm:$0xff] }
 0x159   :  { %v584_v35 = vadd.f32 %v7940_v48, %v502_v43  ;;  %v492_v8 = vadd.f32 %v13368_v37, %v410_v2  ;;  %v424_v61 = vadd.f32 %v13369_v58, %v8108_v7  ;;  %v615_v10 = vmax.f32 %v583_v40, 0.0  ;;  %v13372_v11 = vld [vmem:[#allocation344_spill] sm:$0xff]  ;;  %13373 = vst [vmem:[#allocation17_spill] sm:$0xff] %v8131_v56 }
 0x15a   :  { %655 = vadd.xlane.f32.xlu1 %v654_v32  ;;  %v573_v27 = vadd.f32 %v13370_v45, %v491_v9  ;;  %v505_v33 = vadd.f32 %v13371_v55, %v423_v5  ;;  %v413_v3 = vadd.f32 %v13372_v11, %v8113_v18  ;;  %v639_v49 = vadd.f32 %v602_v26, %v601_v62  ;;  %v13375_v43 = vld [vmem:[#allocation128_spill] sm:$0xff]  ;;  %v13376_v32 = vld [vmem:[#allocation345_spill] sm:$0xff] }
 0x15b   :  { %v616_v59 = vmax.f32 %v584_v35, 0.0  ;;  %v574_v48 = vadd.f32 %v13374_v50, %v492_v8  ;;  %v506_v2 = vadd.f32 %v13375_v43, %v424_v61  ;;  %v414_v40 = vadd.f32 %v13376_v32, %v8113_v18  ;;  %v13377_v9 = vld [vmem:[#allocation232_spill] sm:$0xff]  ;;  %v13378_v26 = vld [vmem:[#allocation149_spill] sm:$0xff]  ;;  %v13380_v61 = vld [vmem:[#allocation218_spill] sm:$0xff] }
 0x15c   :  { %v605_v53 = vmax.f32 %v573_v27, 0.0  ;;  %v587_v37 = vadd.f32 %v7986_v38, %v505_v33  ;;  %v495_v58 = vadd.f32 %v13377_v9, %v413_v3  ;;  %640 = vadd.xlane.f32.xlu0 %v639_v49  ;;  %v823_v35 = vadd.f32 %v13378_v26, %v8029_v21  ;;  %v13379_v8 = vld [vmem:[#allocation233_spill] sm:$0xff]  ;;  %v13381_v38 = vld [vmem:[#allocation150_spill] sm:$0xff]  ;;  %v8146_v43 = vpop.permute.xlu1 %333  ;;  %v13389_v26 = vld [vmem:[#allocation251_spill] sm:$0xff] }
 0x15d   :  { %v660_v5 = vadd.f32 %v616_v59, %v615_v10  ;;  %v606_v45 = vmax.f32 %v574_v48, 0.0  ;;  %v588_v62 = vadd.f32 %v7990_v42, %v506_v2  ;;  %v496_v11 = vadd.f32 %v13379_v8, %v414_v40  ;;  %13382 = vst [vmem:[#allocation55_spill] sm:$0xff] %v8146_v43  ;;  %v13383_v10 = vld [vmem:[#allocation151_spill] sm:$0xff]  ;;  %v13384_v42 = vld [vmem:[#allocation361_spill] sm:$0xff]  ;;  %v13386_v32 = vld [vmem:[#allocation362_spill] sm:$0xff] }
 0x15e   :  { %v619_v55 = vmax.f32 %v587_v37, 0.0  ;;  %v577_v27 = vadd.f32 %v13380_v61, %v495_v58  ;;  %v904_v33 = vadd.f32 %v13381_v38, %v8037_v4  ;;  %v905_v49 = vadd.f32 %v13383_v10, %v823_v35  ;;  %v13385_v48 = vld [vmem:[#allocation219_spill] sm:$0xff]  ;;  %v13387_v58 = vld [vmem:[#allocation250_spill] sm:$0xff]  ;;  %v13390_v8 = vld [vmem:[#allocation313_spill] sm:$0xff] }
 0x15f   :  { %661 = vadd.xlane.f32.xlu1 %v660_v5  ;;  %v645_v50 = vadd.f32 %v606_v45, %v605_v53  ;;  %v620_v3 = vmax.f32 %v588_v62, 0.0  ;;  %v417_v59 = vadd.f32 %v13384_v42, %v8131_v56  ;;  %v578_v21 = vadd.f32 %v13385_v48, %v496_v11  ;;  %v13388_v5 = vld [vmem:[#allocation312_spill] sm:$0xff]  ;;  %v13392_v10 = vld [vmem:[#allocation237_spill] sm:$0xff] }
 0x160   :  { %v609_v2 = vmax.f32 %v577_v27, 0.0  ;;  %v936_v37 = vmax.f32 %v904_v33, 0.0  ;;  %v418_v40 = vadd.f32 %v13386_v32, %v8131_v56  ;;  %v937_v4 = vmax.f32 %v905_v49, 0.0  ;;  %v13391_v38 = vld [vmem:[#allocation236_spill] sm:$0xff]  ;;  %v13395_v32 = vld [vmem:[#allocation41_spill] sm:$0xff] }
 0x161   :  { %646 = vadd.xlane.f32.xlu0 %v645_v50  ;;  %v666_v9 = vadd.f32 %v620_v3, %v619_v55  ;;  %v499_v53 = vadd.f32 %v13387_v58, %v417_v59  ;;  %v908_v45 = vadd.f32 %v13388_v5, %v8001_v12  ;;  %v610_v62 = vmax.f32 %v578_v21, 0.0  ;;  %v13393_v42 = vld [vmem:[#allocation268_spill] sm:$0xff]  ;;  %v13394_v21 = vld [vmem:[#allocation269_spill] sm:$0xff]  ;;  %v13397_v58 = vld [vmem:[#allocation254_spill] sm:$0xff] }
 0x162   :  { %v500_v35 = vadd.f32 %v13389_v26, %v418_v40  ;;  %v909_v61 = vadd.f32 %v13390_v8, %v8004_v13  ;;  %v421_v11 = vadd.f32 %v7872_v20, %v8146_v43  ;;  %v969_v27 = vadd.f32 %v937_v4, %v936_v37  ;;  %v13396_v37 = vld [vmem:[#allocation42_spill] sm:$0xff]  ;;  %v13400_v26 = vld [vmem:[#allocation44_spill] sm:$0xff] }
 0x163   :  { %667 = vadd.xlane.f32.xlu1 %v666_v9  ;;  %v581_v33 = vadd.f32 %v13391_v38, %v499_v53  ;;  %v940_v55 = vmax.f32 %v908_v45, 0.0  ;;  %v422_v50 = vadd.f32 %v7876_v22, %v8146_v43  ;;  %v651_v3 = vadd.f32 %v610_v62, %v609_v2  ;;  %v13398_v53 = vld [vmem:[#allocation255_spill] sm:$0xff]  ;;  %v13401_v38 = vld [vmem:[#allocation57_spill] sm:$0xff] }
 0x164   :  { %v582_v12 = vadd.f32 %v13392_v10, %v500_v35  ;;  %v941_v49 = vmax.f32 %v909_v61, 0.0  ;;  %v503_v59 = vadd.f32 %v13393_v42, %v421_v11  ;;  %v748_v20 = vadd.f32 %v13395_v32, %v7998_v54  ;;  %v13399_v45 = vld [vmem:[#allocation43_spill] sm:$0xff]  ;;  %v13403_v10 = vld [vmem:[#allocation330_spill] sm:$0xff]  ;;  %v13408_v32 = vld [vmem:[#allocation20_spill] sm:$0xff] }
 0x165   :  { %v613_v48 = vmax.f32 %v581_v33, 0.0  ;;  %v504_v13 = vadd.f32 %v13394_v21, %v422_v50  ;;  %v749_v40 = vadd.f32 %v13396_v37, %v7998_v54  ;;  %652 = vadd.xlane.f32.xlu0 %v651_v3  ;;  %v934_v2 = vmax.f32 %v8007_v15, 0.0  ;;  %v13405_v42 = vld [vmem:[#allocation59_spill] sm:$0xff]  ;;  %v13406_v21 = vld [vmem:[#allocation60_spill] sm:$0xff] }
 0x166   :  { %v614_v9 = vmax.f32 %v582_v12, 0.0  ;;  %v975_v4 = vadd.f32 %v941_v49, %v940_v55  ;;  %v585_v22 = vadd.f32 %v13397_v58, %v503_v59  ;;  %v830_v62 = vadd.f32 %v13399_v45, %v748_v20  ;;  %v13402_v55 = vld [vmem:[#allocation58_spill] sm:$0xff]  ;;  %v13409_v58 = vld [vmem:[#allocation75_spill] sm:$0xff] }
 0x167   :  { %970 = vadd.xlane.f32.xlu1 %v969_v27  ;;  %v586_v5 = vadd.f32 %v13398_v53, %v504_v13  ;;  %v831_v35 = vadd.f32 %v13400_v26, %v749_v40  ;;  %v935_v8 = vmax.f32 %v8010_v0, 0.0  ;;  %v752_v33 = vadd.f32 %v13401_v38, %v8031_v28  ;;  %v13404_v27 = vld [vmem:[#allocation331_spill] sm:$0xff]  ;;  %v13410_v53 = vld [vmem:[#allocation346_spill] sm:$0xff]  ;;  %v13414_v38 = vld [vmem:[#allocation76_spill] sm:$0xff] }
 0x168   :  { %v657_v61 = vadd.f32 %v614_v9, %v613_v48  ;;  %v617_v11 = vmax.f32 %v585_v22, 0.0  ;;  %v753_v50 = vadd.f32 %v13402_v55, %v8031_v28  ;;  %v912_v15 = vadd.f32 %v13403_v10, %v830_v62  ;;  %v13407_v0 = vld [vmem:[#allocation19_spill] sm:$0xff]  ;;  %v13412_v62 = vld [vmem:[#allocation166_spill] sm:$0xff]  ;;  %v13415_v55 = vld [vmem:[#allocation77_spill] sm:$0xff] }
 0x169   :  { %v618_v3 = vmax.f32 %v586_v5, 0.0  ;;  %v913_v12 = vadd.f32 %v13404_v27, %v831_v35  ;;  %v966_v49 = vadd.f32 %v935_v8, %v934_v2  ;;  %v834_v59 = vadd.f32 %v13405_v42, %v752_v33  ;;  %v13411_v5 = vld [vmem:[#allocation347_spill] sm:$0xff] }
 0x16a   :  { %658 = vadd.xlane.f32.xlu0 %v657_v61  ;;  %v835_v13 = vadd.f32 %v13406_v21, %v753_v50  ;;  %v742_v48 = vadd.f32 %v13407_v0, %v8039_v47  ;;  %v743_v20 = vadd.f32 %v13408_v32, %v8039_v47  ;;  %v944_v40 = vmax.f32 %v912_v15, 0.0  ;;  %v13413_v35 = vld [vmem:[#allocation167_spill] sm:$0xff]  ;;  %v13417_v15 = vld [vmem:[#allocation296_spill] sm:$0xff] }
 0x16b   :  { %976 = vadd.xlane.f32.xlu1 %v975_v4  ;;  %v663_v37 = vadd.f32 %v618_v3, %v617_v11  ;;  %v945_v9 = vmax.f32 %v913_v12, 0.0  ;;  %v756_v22 = vadd.f32 %v13409_v58, %v8055_v57  ;;  %v916_v2 = vadd.f32 %v13410_v53, %v834_v59  ;;  %v13416_v11 = vld [vmem:[#allocation298_spill] sm:$0xff]  ;;  %v13418_v12 = vld [vmem:[#allocation297_spill] sm:$0xff] }
 0x16c   :  { %v917_v45 = vadd.f32 %v13411_v5, %v835_v13  ;;  %v824_v26 = vadd.f32 %v13412_v62, %v742_v48  ;;  %v825_v8 = vadd.f32 %v13413_v35, %v743_v20  ;;  %v757_v33 = vadd.f32 %v13414_v38, %v8055_v57  ;;  %v13419_v59 = vld [vmem:[#allocation78_spill] sm:$0xff]  ;;  %v13420_v13 = vld [vmem:[#allocation363_spill] sm:$0xff]  ;;  %v13422_v20 = vld [vmem:[#allocation184_spill] sm:$0xff] }
 0x16d   :  { %v981_v61 = vadd.f32 %v945_v9, %v944_v40  ;;  %v838_v4 = vadd.f32 %v13415_v55, %v756_v22  ;;  %v746_v50 = vadd.f32 %v13416_v11, %v8058_v19  ;;  %v948_v3 = vmax.f32 %v916_v2, 0.0  ;;  %v13421_v48 = vld [vmem:[#allocation299_spill] sm:$0xff]  ;;  %v13424_v2 = vld [vmem:[#allocation364_spill] sm:$0xff]  ;;  %v13425_v62 = vld [vmem:[#allocation185_spill] sm:$0xff] }
 0x16e   :  { %664 = vadd.xlane.f32.xlu0 %v663_v37  ;;  %v949_v10 = vmax.f32 %v917_v45, 0.0  ;;  %v906_v27 = vadd.f32 %v13417_v15, %v824_v26  ;;  %v907_v42 = vadd.f32 %v13418_v12, %v825_v8  ;;  %v839_v21 = vadd.f32 %v13419_v59, %v757_v33  ;;  %v13423_v37 = vld [vmem:[#allocation93_spill] sm:$0xff]  ;;  %v13426_v35 = vld [vmem:[#allocation168_spill] sm:$0xff]  ;;  %v13427_v38 = vld [vmem:[#allocation94_spill] sm:$0xff] }
 0x16f   :  { %982 = vadd.xlane.f32.xlu1 %v981_v61  ;;  %v920_v0 = vadd.f32 %v13420_v13, %v838_v4  ;;  %v747_v32 = vadd.f32 %v13421_v48, %v8058_v19  ;;  %v828_v40 = vadd.f32 %v13422_v20, %v746_v50  ;;  %v760_v53 = vadd.f32 %v13423_v37, %v8070_v39  ;;  %v13428_v55 = vld [vmem:[#allocation95_spill] sm:$0xff]  ;;  %v13429_v11 = vld [vmem:[#allocation314_spill] sm:$0xff]  ;;  %v13432_v59 = vld [vmem:[#allocation96_spill] sm:$0xff] }
 0x170   :  { %v987_v9 = vadd.f32 %v949_v10, %v948_v3  ;;  %v938_v58 = vmax.f32 %v906_v27, 0.0  ;;  %v939_v22 = vmax.f32 %v907_v42, 0.0  ;;  %v921_v5 = vadd.f32 %v13424_v2, %v839_v21  ;;  %v13430_v10 = vld [vmem:[#allocation169_spill] sm:$0xff]  ;;  %v13431_v12 = vld [vmem:[#allocation315_spill] sm:$0xff]  ;;  %v13433_v13 = vld [vmem:[#allocation202_spill] sm:$0xff] }
 0x171   :  { %v952_v45 = vmax.f32 %v920_v0, 0.0  ;;  %v829_v26 = vadd.f32 %v13425_v62, %v747_v32  ;;  %v910_v8 = vadd.f32 %v13426_v35, %v828_v40  ;;  %v761_v33 = vadd.f32 %v13427_v38, %v8070_v39  ;;  %v13434_v48 = vld [vmem:[#allocation111_spill] sm:$0xff] }
 0x172   :  { %967 = vadd.xlane.f32.xlu0 %v966_v49  ;;  %v972_v61 = vadd.f32 %v939_v22, %v938_v58  ;;  %v842_v4 = vadd.f32 %v13428_v55, %v760_v53  ;;  %v750_v50 = vadd.f32 %v13429_v11, %v8077_v63  ;;  %v953_v3 = vmax.f32 %v921_v5, 0.0  ;;  %v13435_v58 = vld [vmem:[#allocation203_spill] sm:$0xff]  ;;  %v13436_v22 = vld [vmem:[#allocation112_spill] sm:$0xff]  ;;  %v13437_v5 = vld [vmem:[#allocation186_spill] sm:$0xff] }
 0x173   :  { %988 = vadd.xlane.f32.xlu1 %v987_v9  ;;  %v911_v15 = vadd.f32 %v13430_v10, %v829_v26  ;;  %v942_v27 = vmax.f32 %v910_v8, 0.0  ;;  %v751_v42 = vadd.f32 %v13431_v12, %v8077_v63  ;;  %v843_v21 = vadd.f32 %v13432_v59, %v761_v33  ;;  %v13438_v26 = vld [vmem:[#allocation113_spill] sm:$0xff]  ;;  %v13439_v8 = vld [vmem:[#allocation187_spill] sm:$0xff]  ;;  %v13440_v33 = vld [vmem:[#allocation114_spill] sm:$0xff] }
 0x174   :  { %v924_v49 = vadd.f32 %v7880_v6, %v842_v4  ;;  %v832_v0 = vadd.f32 %v13433_v13, %v750_v50  ;;  %v764_v32 = vadd.f32 %v13434_v48, %v8090_v25  ;;  %v993_v20 = vadd.f32 %v953_v3, %v952_v45  ;;  %v13441_v55 = vld [vmem:[#allocation332_spill] sm:$0xff]  ;;  %v13445_v13 = vld [vmem:[#allocation221_spill] sm:$0xff]  ;;  %v13446_v48 = vld [vmem:[#allocation130_spill] sm:$0xff] }
 0x175   :  { %v943_v40 = vmax.f32 %v911_v15, 0.0  ;;  %v833_v9 = vadd.f32 %v13435_v58, %v751_v42  ;;  %v765_v37 = vadd.f32 %v13436_v22, %v8090_v25  ;;  %v925_v53 = vadd.f32 %v7884_v23, %v843_v21  ;;  %v13442_v23 = vld [vmem:[#allocation333_spill] sm:$0xff]  ;;  %v13443_v12 = vld [vmem:[#allocation220_spill] sm:$0xff] }
 0x176   :  { %973 = vadd.xlane.f32.xlu0 %v972_v61  ;;  %v956_v2 = vmax.f32 %v924_v49, 0.0  ;;  %v914_v62 = vadd.f32 %v13437_v5, %v832_v0  ;;  %v846_v6 = vadd.f32 %v13438_v26, %v764_v32  ;;  %v754_v4 = vadd.f32 %v13441_v55, %v8095_v36 }
 0x177   :  { %994 = vadd.xlane.f32.xlu1 %v993_v20  ;;  %v978_v35 = vadd.f32 %v943_v40, %v942_v27  ;;  %v915_v38 = vadd.f32 %v13439_v8, %v833_v9  ;;  %v847_v45 = vadd.f32 %v13440_v33, %v765_v37  ;;  %v957_v11 = vmax.f32 %v925_v53, 0.0  ;;  %v13444_v27 = vld [vmem:[#allocation129_spill] sm:$0xff]  ;;  %v13447_v40 = vld [vmem:[#allocation204_spill] sm:$0xff] }
 0x178   :  { %v946_v50 = vmax.f32 %v914_v62, 0.0  ;;  %v928_v61 = vadd.f32 %v7948_v51, %v846_v6  ;;  %v755_v3 = vadd.f32 %v13442_v23, %v8095_v36  ;;  %v836_v42 = vadd.f32 %v13443_v12, %v754_v4  ;;  %v13448_v9 = vld [vmem:[#allocation132_spill] sm:$0xff]  ;;  %v13450_v53 = vld [vmem:[#allocation133_spill] sm:$0xff]  ;;  %v13455_v23 = vld [vmem:[#allocation239_spill] sm:$0xff] }
 0x179   :  { %v947_v10 = vmax.f32 %v915_v38, 0.0  ;;  %v929_v15 = vadd.f32 %v7952_v52, %v847_v45  ;;  %v768_v59 = vadd.f32 %v13444_v27, %v8108_v7  ;;  %v999_v21 = vadd.f32 %v957_v11, %v956_v2  ;;  %v13449_v52 = vld [vmem:[#allocation205_spill] sm:$0xff]  ;;  %v13453_v11 = vld [vmem:[#allocation282_spill] sm:$0xff] }
 0x17a   :  { %979 = vadd.xlane.f32.xlu0 %v978_v35  ;;  %v960_v49 = vmax.f32 %v928_v61, 0.0  ;;  %v837_v0 = vadd.f32 %v13445_v13, %v755_v3  ;;  %v769_v32 = vadd.f32 %v13446_v48, %v8108_v7  ;;  %v918_v58 = vadd.f32 %v13447_v40, %v836_v42  ;;  %v13451_v35 = vld [vmem:[#allocation348_spill] sm:$0xff]  ;;  %v13452_v38 = vld [vmem:[#allocation349_spill] sm:$0xff]  ;;  %v13454_v61 = vld [vmem:[#allocation238_spill] sm:$0xff] }
 0x17b   :  { %v984_v51 = vadd.f32 %v947_v10, %v946_v50  ;;  %v961_v20 = vmax.f32 %v929_v15, 0.0  ;;  %v850_v22 = vadd.f32 %v13448_v9, %v768_v59  ;;  %1000 = vadd.xlane.f32.xlu1 %v999_v21  ;;  %v900_v2 = vmul.f32 %v6311_v16, %v7964_v31  ;;  %v13457_v15 = vld [vmem:[#allocation365_spill] sm:$0xff]  ;;  %v13458_v21 = vld [vmem:[#allocation152_spill] sm:$0xff]  ;;  %v13459_v13 = vld [vmem:[#allocation222_spill] sm:$0xff] }
 0x17c   :  { %v919_v37 = vadd.f32 %v13449_v52, %v837_v0  ;;  %v851_v5 = vadd.f32 %v13450_v53, %v769_v32  ;;  %v901_v62 = vmul.f32 %v6314_v17, %v7964_v31  ;;  %v950_v6 = vmax.f32 %v918_v58, 0.0  ;;  %v13456_v17 = vld [vmem:[#allocation283_spill] sm:$0xff]  ;;  %v13462_v40 = vld [vmem:[#allocation366_spill] sm:$0xff] }
 0x17d   :  { %v1005_v26 = vadd.f32 %v961_v20, %v960_v49  ;;  %v758_v8 = vadd.f32 %v13451_v35, %v8113_v18  ;;  %v759_v33 = vadd.f32 %v13452_v38, %v8113_v18  ;;  %v932_v55 = vadd.f32 %v900_v2, %v850_v22  ;;  %v13460_v48 = vld [vmem:[#allocation223_spill] sm:$0xff]  ;;  %v13463_v22 = vld [vmem:[#allocation156_spill] sm:$0xff] }
 0x17e   :  { %985 = vadd.xlane.f32.xlu0 %v984_v51  ;;  %v951_v45 = vmax.f32 %v919_v37, 0.0  ;;  %v933_v4 = vadd.f32 %v901_v62, %v851_v5  ;;  %v1085_v50 = vadd.f32 %v13453_v11, %v8012_v1  ;;  %v1086_v10 = vadd.f32 %v13456_v17, %v8012_v1  ;;  %v13461_v51 = vld [vmem:[#allocation153_spill] sm:$0xff]  ;;  %v13464_v37 = vld [vmem:[#allocation256_spill] sm:$0xff]  ;;  %v13465_v5 = vld [vmem:[#allocation31_spill] sm:$0xff] }
 0x17f   :  { %v840_v16 = vadd.f32 %v13454_v61, %v758_v8  ;;  %v841_v3 = vadd.f32 %v13455_v23, %v759_v33  ;;  %v762_v12 = vadd.f32 %v13457_v15, %v8131_v56  ;;  %1006 = vadd.xlane.f32.xlu1 %v1005_v26  ;;  %v964_v27 = vmax.f32 %v932_v55, 0.0  ;;  %v13467_v8 = vld [vmem:[#allocation257_spill] sm:$0xff] }
 0x180   :  { %v990_v42 = vadd.f32 %v951_v45, %v950_v6  ;;  %v965_v59 = vmax.f32 %v933_v4, 0.0  ;;  %v1167_v49 = vadd.f32 %v13458_v21, %v1085_v50  ;;  %v1168_v20 = vadd.f32 %v13461_v51, %v1086_v10  ;;  %v13466_v6 = vld [vmem:[#allocation157_spill] sm:$0xff]  ;;  %v13468_v45 = vld [vmem:[#allocation240_spill] sm:$0xff]  ;;  %v13470_v50 = vld [vmem:[#allocation35_spill] sm:$0xff] }
 0x181   :  { %v922_v0 = vadd.f32 %v13459_v13, %v840_v16  ;;  %v923_v32 = vadd.f32 %v13460_v48, %v841_v3  ;;  %v763_v58 = vadd.f32 %v13462_v40, %v8131_v56  ;;  %v844_v53 = vadd.f32 %v13464_v37, %v762_v12  ;;  %v13469_v4 = vld [vmem:[#allocation32_spill] sm:$0xff]  ;;  %v13471_v3 = vld [vmem:[#allocation241_spill] sm:$0xff] }
 0x182   :  { %991 = vadd.xlane.f32.xlu0 %v990_v42  ;;  %v1011_v9 = vadd.f32 %v965_v59, %v964_v27  ;;  %v1249_v52 = vadd.f32 %v13463_v22, %v1167_v49  ;;  %v1089_v2 = vadd.f32 %v13465_v5, %v7966_v41  ;;  %v1250_v35 = vadd.f32 %v13466_v6, %v1168_v20  ;;  %v13472_v12 = vld [vmem:[#allocation36_spill] sm:$0xff]  ;;  %v13474_v21 = vld [vmem:[#allocation377_spill] sm:$0xff]  ;;  %v13480_v5 = vld [vmem:[#allocation258_spill] sm:$0xff] }
 0x183   :  { %v954_v62 = vmax.f32 %v922_v0, 0.0  ;;  %v955_v26 = vmax.f32 %v923_v32, 0.0  ;;  %v845_v38 = vadd.f32 %v13467_v8, %v763_v58  ;;  %v926_v55 = vadd.f32 %v13468_v45, %v844_v53  ;;  %v13473_v27 = vld [vmem:[#allocation316_spill] sm:$0xff]  ;;  %v13476_v51 = vld [vmem:[#allocation45_spill] sm:$0xff]  ;;  %v13484_v45 = vld [vmem:[#allocation50_spill] sm:$0xff] }
 0x184   :  { %1012 = vadd.xlane.f32.xlu1 %v1011_v9  ;;  %v1281_v33 = vmax.f32 %v1249_v52, 0.0  ;;  %v1090_v11 = vadd.f32 %v13469_v4, %v7966_v41  ;;  %v1171_v61 = vadd.f32 %v13470_v50, %v1089_v2  ;;  %v1282_v23 = vmax.f32 %v1250_v35, 0.0  ;;  %v13475_v48 = vld [vmem:[#allocation272_spill] sm:$0xff]  ;;  %v13477_v40 = vld [vmem:[#allocation317_spill] sm:$0xff]  ;;  %v13479_v52 = vld [vmem:[#allocation46_spill] sm:$0xff] }
 0x185   :  { %v996_v16 = vadd.f32 %v955_v26, %v954_v62  ;;  %v927_v17 = vadd.f32 %v13471_v3, %v845_v38  ;;  %v766_v10 = vadd.f32 %v7888_v24, %v8146_v43  ;;  %v958_v15 = vmax.f32 %v926_v55, 0.0  ;;  %v13478_v24 = vld [vmem:[#allocation273_spill] sm:$0xff]  ;;  %v13483_v38 = vld [vmem:[#allocation259_spill] sm:$0xff]  ;;  %v13485_v4 = vld [vmem:[#allocation22_spill] sm:$0xff] }
 0x186   :  { %v1172_v42 = vadd.f32 %v13472_v12, %v1090_v11  ;;  %v1253_v59 = vadd.f32 %v13473_v27, %v1171_v61  ;;  %v767_v49 = vadd.f32 %v13474_v21, %v8146_v43  ;;  %v1314_v13 = vadd.f32 %v1282_v23, %v1281_v33  ;;  %v13481_v62 = vld [vmem:[#allocation49_spill] sm:$0xff]  ;;  %v13486_v61 = vld [vmem:[#allocation334_spill] sm:$0xff]  ;;  %v13487_v23 = vld [vmem:[#allocation284_spill] sm:$0xff] }
 0x187   :  { %997 = vadd.xlane.f32.xlu0 %v996_v16  ;;  %v959_v0 = vmax.f32 %v927_v17, 0.0  ;;  %v848_v32 = vadd.f32 %v13475_v48, %v766_v10  ;;  %v1093_v20 = vadd.f32 %v13476_v51, %v7998_v54  ;;  %v1094_v37 = vadd.f32 %v13479_v52, %v7998_v54  ;;  %v13482_v6 = vld [vmem:[#allocation21_spill] sm:$0xff] }
 0x188   :  { %v1254_v58 = vadd.f32 %v13477_v40, %v1172_v42  ;;  %v1285_v9 = vmax.f32 %v1253_v59, 0.0  ;;  %v849_v22 = vadd.f32 %v13478_v24, %v767_v49  ;;  %1315 = vadd.xlane.f32.xlu1 %v1314_v13  ;;  %v1165_v35 = vadd.f32 %v13482_v6, %v7958_v14  ;;  %v13488_v17 = vld [vmem:[#allocation61_spill] sm:$0xff]  ;;  %v13489_v14 = vld [vmem:[#allocation335_spill] sm:$0xff]  ;;  %v13491_v13 = vld [vmem:[#allocation62_spill] sm:$0xff] }
 0x189   :  { %v1002_v53 = vadd.f32 %v959_v0, %v958_v15  ;;  %v930_v2 = vadd.f32 %v13480_v5, %v848_v32  ;;  %v1175_v26 = vadd.f32 %v13481_v62, %v1093_v20  ;;  %v1176_v55 = vadd.f32 %v13484_v45, %v1094_v37  ;;  %v13490_v27 = vld [vmem:[#allocation285_spill] sm:$0xff]  ;;  %v13496_v37 = vld [vmem:[#allocation26_spill] sm:$0xff]  ;;  %v13497_v5 = vld [vmem:[#allocation79_spill] sm:$0xff] }
 0x18a   :  { %v1286_v8 = vmax.f32 %v1254_v58, 0.0  ;;  %v931_v33 = vadd.f32 %v13483_v38, %v849_v22  ;;  %v1166_v11 = vadd.f32 %v13485_v4, %v7962_v44  ;;  %v1247_v3 = vadd.f32 %v13487_v23, %v1165_v35  ;;  %v13492_v0 = vld [vmem:[#allocation65_spill] sm:$0xff]  ;;  %v13495_v22 = vld [vmem:[#allocation350_spill] sm:$0xff]  ;;  %v13501_v4 = vld [vmem:[#allocation171_spill] sm:$0xff] }
 0x18b   :  { %1003 = vadd.xlane.f32.xlu0 %v1002_v53  ;;  %v962_v50 = vmax.f32 %v930_v2, 0.0  ;;  %v1257_v16 = vadd.f32 %v13486_v61, %v1175_v26  ;;  %v1097_v10 = vadd.f32 %v13488_v17, %v8031_v28  ;;  %v1258_v42 = vadd.f32 %v13489_v14, %v1176_v55  ;;  %v13493_v40 = vld [vmem:[#allocation25_spill] sm:$0xff]  ;;  %v13498_v6 = vld [vmem:[#allocation170_spill] sm:$0xff] }
 0x18c   :  { %v1320_v15 = vadd.f32 %v1286_v8, %v1285_v9  ;;  %v963_v12 = vmax.f32 %v931_v33, 0.0  ;;  %v1248_v59 = vadd.f32 %v13490_v27, %v1166_v11  ;;  %v1279_v49 = vmax.f32 %v1247_v3, 0.0  ;;  %v13494_v9 = vld [vmem:[#allocation66_spill] sm:$0xff]  ;;  %v13499_v8 = vld [vmem:[#allocation80_spill] sm:$0xff]  ;;  %v13500_v33 = vld [vmem:[#allocation351_spill] sm:$0xff] }
 0x18d   :  { %v1289_v21 = vmax.f32 %v1257_v16, 0.0  ;;  %v1098_v44 = vadd.f32 %v13491_v13, %v8031_v28  ;;  %v1179_v48 = vadd.f32 %v13492_v0, %v1097_v10  ;;  %v1290_v51 = vmax.f32 %v1258_v42, 0.0  ;;  %v13503_v16 = vld [vmem:[#allocation300_spill] sm:$0xff]  ;;  %v13505_v10 = vld [vmem:[#allocation302_spill] sm:$0xff]  ;;  %v13507_v27 = vld [vmem:[#allocation301_spill] sm:$0xff] }
 0x18e   :  { %1321 = vadd.xlane.f32.xlu1 %v1320_v15  ;;  %v1008_v32 = vadd.f32 %v963_v12, %v962_v50  ;;  %v1280_v20 = vmax.f32 %v1248_v59, 0.0  ;;  %v1087_v58 = vadd.f32 %v13493_v40, %v8039_v47  ;;  %v1088_v53 = vadd.f32 %v13496_v37, %v8039_v47  ;;  %v13502_v50 = vld [vmem:[#allocation83_spill] sm:$0xff]  ;;  %v13504_v3 = vld [vmem:[#allocation84_spill] sm:$0xff]  ;;  %v13509_v13 = vld [vmem:[#allocation97_spill] sm:$0xff] }
 0x18f   :  { %v1180_v24 = vadd.f32 %v13494_v9, %v1098_v44  ;;  %v1261_v52 = vadd.f32 %v13495_v22, %v1179_v48  ;;  %v1101_v2 = vadd.f32 %v13497_v5, %v8055_v57  ;;  %v1326_v62 = vadd.f32 %v1290_v51, %v1289_v21  ;;  %v13506_v12 = vld [vmem:[#allocation303_spill] sm:$0xff]  ;;  %v13510_v48 = vld [vmem:[#allocation368_spill] sm:$0xff]  ;;  %v13512_v40 = vld [vmem:[#allocation189_spill] sm:$0xff] }
 0x190   :  { %1009 = vadd.xlane.f32.xlu0 %v1008_v32  ;;  %v1311_v26 = vadd.f32 %v1280_v20, %v1279_v49  ;;  %v1169_v35 = vadd.f32 %v13498_v6, %v1087_v58  ;;  %v1102_v38 = vadd.f32 %v13499_v8, %v8055_v57  ;;  %v1170_v11 = vadd.f32 %v13501_v4, %v1088_v53  ;;  %v13508_v21 = vld [vmem:[#allocation367_spill] sm:$0xff]  ;;  %v13511_v51 = vld [vmem:[#allocation188_spill] sm:$0xff]  ;;  %v13514_v5 = vld [vmem:[#allocation174_spill] sm:$0xff] }
 0x191   :  { %v1262_v45 = vadd.f32 %v13500_v33, %v1180_v24  ;;  %v1293_v55 = vmax.f32 %v1261_v52, 0.0  ;;  %v1183_v61 = vadd.f32 %v13502_v50, %v1101_v2  ;;  %v1091_v15 = vadd.f32 %v13505_v10, %v8058_v19  ;;  %v13513_v52 = vld [vmem:[#allocation98_spill] sm:$0xff] }
 0x192   :  { %1327 = vadd.xlane.f32.xlu1 %v1326_v62  ;;  %v1251_v23 = vadd.f32 %v13503_v16, %v1169_v35  ;;  %v1184_v17 = vadd.f32 %v13504_v3, %v1102_v38  ;;  %v1092_v14 = vadd.f32 %v13506_v12, %v8058_v19  ;;  %v1252_v59 = vadd.f32 %v13507_v27, %v1170_v11  ;;  %v13515_v62 = vld [vmem:[#allocation175_spill] sm:$0xff]  ;;  %v13516_v35 = vld [vmem:[#allocation101_spill] sm:$0xff]  ;;  %v13517_v38 = vld [vmem:[#allocation102_spill] sm:$0xff] }
 0x193   :  { %v1294_v42 = vmax.f32 %v1262_v45, 0.0  ;;  %v1265_v49 = vadd.f32 %v13508_v21, %v1183_v61  ;;  %v1105_v44 = vadd.f32 %v13509_v13, %v8070_v39  ;;  %v1173_v20 = vadd.f32 %v13511_v51, %v1091_v15  ;;  %v13518_v45 = vld [vmem:[#allocation318_spill] sm:$0xff]  ;;  %v13522_v12 = vld [vmem:[#allocation207_spill] sm:$0xff] }
 0x194   :  { %1312 = vadd.xlane.f32.xlu0 %v1311_v26  ;;  %v1283_v0 = vmax.f32 %v1251_v23, 0.0  ;;  %v1266_v32 = vadd.f32 %v13510_v48, %v1184_v17  ;;  %v1174_v58 = vadd.f32 %v13512_v40, %v1092_v14  ;;  %v1284_v24 = vmax.f32 %v1252_v59, 0.0  ;;  %v13520_v23 = vld [vmem:[#allocation378_spill] sm:$0xff]  ;;  %v13528_v40 = vld [vmem:[#allocation119_spill] sm:$0xff] }
 0x195   :  { %v1332_v9 = vadd.f32 %v1294_v42, %v1293_v55  ;;  %v1297_v22 = vmax.f32 %v1265_v49, 0.0  ;;  %v1106_v37 = vadd.f32 %v13513_v52, %v8070_v39  ;;  %v1255_v2 = vadd.f32 %v13514_v5, %v1173_v20  ;;  %v13519_v55 = vld [vmem:[#allocation319_spill] sm:$0xff]  ;;  %v13521_v10 = vld [vmem:[#allocation206_spill] sm:$0xff]  ;;  %v13524_v49 = vld [vmem:[#allocation116_spill] sm:$0xff] }
 0x196   :  { %v1298_v53 = vmax.f32 %v1266_v32, 0.0  ;;  %v1256_v6 = vadd.f32 %v13515_v62, %v1174_v58  ;;  %v1187_v26 = vadd.f32 %v13516_v35, %v1105_v44  ;;  %v1317_v8 = vadd.f32 %v1284_v24, %v1283_v0  ;;  %v13523_v42 = vld [vmem:[#allocation115_spill] sm:$0xff]  ;;  %v13525_v44 = vld [vmem:[#allocation336_spill] sm:$0xff]  ;;  %v13532_v5 = vld [vmem:[#allocation134_spill] sm:$0xff] }
 0x197   :  { %1333 = vadd.xlane.f32.xlu1 %v1332_v9  ;;  %v1188_v33 = vadd.f32 %v13517_v38, %v1106_v37  ;;  %v1095_v4 = vadd.f32 %v13518_v45, %v8077_v63  ;;  %v1096_v11 = vadd.f32 %v13519_v55, %v8077_v63  ;;  %v1287_v61 = vmax.f32 %v1255_v2, 0.0  ;;  %v13526_v32 = vld [vmem:[#allocation192_spill] sm:$0xff]  ;;  %v13533_v38 = vld [vmem:[#allocation225_spill] sm:$0xff]  ;;  %v13534_v45 = vld [vmem:[#allocation210_spill] sm:$0xff] }
 0x198   :  { %v1338_v50 = vadd.f32 %v1298_v53, %v1297_v22  ;;  %v1288_v16 = vmax.f32 %v1256_v6, 0.0  ;;  %v1269_v3 = vadd.f32 %v13520_v23, %v1187_v26  ;;  %1318 = vadd.xlane.f32.xlu0 %v1317_v8  ;;  %v1109_v27 = vadd.f32 %v13523_v42, %v8090_v25  ;;  %v13529_v9 = vld [vmem:[#allocation120_spill] sm:$0xff]  ;;  %v13530_v22 = vld [vmem:[#allocation337_spill] sm:$0xff]  ;;  %v13535_v55 = vld [vmem:[#allocation135_spill] sm:$0xff] }
 0x199   :  { %v1270_v17 = vadd.f32 %v7900_v60, %v1188_v33  ;;  %v1177_v15 = vadd.f32 %v13521_v10, %v1095_v4  ;;  %v1178_v14 = vadd.f32 %v13522_v12, %v1096_v11  ;;  %v1110_v13 = vadd.f32 %v13524_v49, %v8090_v25  ;;  %v13527_v60 = vld [vmem:[#allocation193_spill] sm:$0xff]  ;;  %v13531_v37 = vld [vmem:[#allocation224_spill] sm:$0xff]  ;;  %v13537_v10 = vld [vmem:[#allocation211_spill] sm:$0xff] }
 0x19a   :  { %v1323_v59 = vadd.f32 %v1288_v16, %v1287_v61  ;;  %v1301_v21 = vmax.f32 %v1269_v3, 0.0  ;;  %v1099_v0 = vadd.f32 %v13525_v44, %v8095_v36  ;;  %v1191_v58 = vadd.f32 %v13528_v40, %v1109_v27  ;;  %v13536_v16 = vld [vmem:[#allocation136_spill] sm:$0xff] }
 0x19b   :  { %1339 = vadd.xlane.f32.xlu1 %v1338_v50  ;;  %v1302_v48 = vmax.f32 %v1270_v17, 0.0  ;;  %v1259_v51 = vadd.f32 %v13526_v32, %v1177_v15  ;;  %v1260_v20 = vadd.f32 %v13527_v60, %v1178_v14  ;;  %v1192_v24 = vadd.f32 %v13529_v9, %v1110_v13  ;;  %v13539_v27 = vld [vmem:[#allocation352_spill] sm:$0xff] }
 0x19c   :  { %v1100_v52 = vadd.f32 %v13530_v22, %v8095_v36  ;;  %v1181_v53 = vadd.f32 %v13531_v37, %v1099_v0  ;;  %v1113_v2 = vadd.f32 %v13532_v5, %v8108_v7  ;;  %1324 = vadd.xlane.f32.xlu0 %v1323_v59  ;;  %v1273_v26 = vadd.f32 %v7972_v46, %v1191_v58 }
 0x19d   :  { %v1344_v62 = vadd.f32 %v1302_v48, %v1301_v21  ;;  %v1291_v6 = vmax.f32 %v1259_v51, 0.0  ;;  %v1292_v35 = vmax.f32 %v1260_v20, 0.0  ;;  %v1274_v8 = vadd.f32 %v7976_v30, %v1192_v24  ;;  %v13538_v30 = vld [vmem:[#allocation137_spill] sm:$0xff]  ;;  %v13543_v20 = vld [vmem:[#allocation242_spill] sm:$0xff] }
 0x19e   :  { %v1182_v33 = vadd.f32 %v13533_v38, %v1100_v52  ;;  %v1263_v4 = vadd.f32 %v13534_v45, %v1181_v53  ;;  %v1114_v11 = vadd.f32 %v13535_v55, %v8108_v7  ;;  %v1305_v61 = vmax.f32 %v1273_v26, 0.0  ;;  %v13540_v21 = vld [vmem:[#allocation353_spill] sm:$0xff]  ;;  %v13545_v24 = vld [vmem:[#allocation158_spill] sm:$0xff]  ;;  %v13546_v52 = vld [vmem:[#allocation159_spill] sm:$0xff] }
 0x19f   :  { %1345 = vadd.xlane.f32.xlu1 %v1344_v62  ;;  %v1329_v50 = vadd.f32 %v1292_v35, %v1291_v6  ;;  %v1195_v23 = vadd.f32 %v13536_v16, %v1113_v2  ;;  %v1245_v3 = vmul.f32 %v6350_v29, %v7964_v31  ;;  %v1306_v17 = vmax.f32 %v1274_v8, 0.0  ;;  %v13541_v29 = vld [vmem:[#allocation288_spill] sm:$0xff]  ;;  %v13542_v48 = vld [vmem:[#allocation289_spill] sm:$0xff]  ;;  %v13550_v8 = vld [vmem:[#allocation370_spill] sm:$0xff] }
 0x1a0   :  { %v1264_v46 = vadd.f32 %v13537_v10, %v1182_v33  ;;  %v1295_v15 = vmax.f32 %v1263_v4, 0.0  ;;  %v1196_v12 = vadd.f32 %v13538_v30, %v1114_v11  ;;  %v1246_v14 = vmul.f32 %v6353_v34, %v7964_v31  ;;  %v13544_v34 = vld [vmem:[#allocation243_spill] sm:$0xff]  ;;  %v13547_v53 = vld [vmem:[#allocation369_spill] sm:$0xff]  ;;  %v13548_v62 = vld [vmem:[#allocation228_spill] sm:$0xff] }
 0x1a1   :  { %1330 = vadd.xlane.f32.xlu0 %v1329_v50  ;;  %v1277_v42 = vadd.f32 %v1245_v3, %v1195_v23  ;;  %v1103_v59 = vadd.f32 %v13539_v27, %v8113_v18  ;;  %v1104_v49 = vadd.f32 %v13540_v21, %v8113_v18  ;;  %v1350_v13 = vadd.f32 %v1306_v17, %v1305_v61  ;;  %v13549_v35 = vld [vmem:[#allocation229_spill] sm:$0xff]  ;;  %v13551_v33 = vld [vmem:[#allocation162_spill] sm:$0xff]  ;;  %v13552_v4 = vld [vmem:[#allocation163_spill] sm:$0xff] }
 0x1a2   :  { %v1296_v44 = vmax.f32 %v1264_v46, 0.0  ;;  %v1430_v0 = vadd.f32 %v13541_v29, %v8012_v1  ;;  %v1431_v32 = vadd.f32 %v13542_v48, %v8012_v1  ;;  %v1278_v51 = vadd.f32 %v1246_v14, %v1196_v12  ;;  %v13553_v11 = vld [vmem:[#allocation260_spill] sm:$0xff]  ;;  %v13554_v61 = vld [vmem:[#allocation37_spill] sm:$0xff]  ;;  %v13556_v12 = vld [vmem:[#allocation246_spill] sm:$0xff] }
 0x1a3   :  { %v1309_v60 = vmax.f32 %v1277_v42, 0.0  ;;  %v1185_v40 = vadd.f32 %v13543_v20, %v1103_v59  ;;  %v1186_v58 = vadd.f32 %v13544_v34, %v1104_v49  ;;  %1351 = vadd.xlane.f32.xlu1 %v1350_v13  ;;  %v1107_v5 = vadd.f32 %v13547_v53, %v8131_v56  ;;  %v13555_v10 = vld [vmem:[#allocation261_spill] sm:$0xff]  ;;  %v13557_v42 = vld [vmem:[#allocation38_spill] sm:$0xff]  ;;  %v13558_v21 = vld [vmem:[#allocation247_spill] sm:$0xff] }
 0x1a4   :  { %v1335_v9 = vadd.f32 %v1296_v44, %v1295_v15  ;;  %v1512_v22 = vadd.f32 %v13545_v24, %v1430_v0  ;;  %v1513_v37 = vadd.f32 %v13546_v52, %v1431_v32  ;;  %v1310_v2 = vmax.f32 %v1278_v51, 0.0  ;;  %v13559_v13 = vld [vmem:[#allocation39_spill] sm:$0xff]  ;;  %v13561_v51 = vld [vmem:[#allocation40_spill] sm:$0xff]  ;;  %v13564_v24 = vld [vmem:[#allocation274_spill] sm:$0xff] }
 0x1a5   :  { %v1267_v6 = vadd.f32 %v13548_v62, %v1185_v40  ;;  %v1268_v26 = vadd.f32 %v13549_v35, %v1186_v58  ;;  %v1108_v38 = vadd.f32 %v13550_v8, %v8131_v56  ;;  %v1189_v50 = vadd.f32 %v13553_v11, %v1107_v5  ;;  %v13560_v29 = vld [vmem:[#allocation379_spill] sm:$0xff]  ;;  %v13562_v20 = vld [vmem:[#allocation380_spill] sm:$0xff]  ;;  %v13563_v58 = vld [vmem:[#allocation322_spill] sm:$0xff] }
 0x1a6   :  { %1336 = vadd.xlane.f32.xlu0 %v1335_v9  ;;  %v1594_v45 = vadd.f32 %v13551_v33, %v1512_v22  ;;  %v1595_v55 = vadd.f32 %v13552_v4, %v1513_v37  ;;  %v1434_v16 = vadd.f32 %v13554_v61, %v7966_v41  ;;  %v1356_v23 = vadd.f32 %v1310_v2, %v1309_v60  ;;  %v13565_v52 = vld [vmem:[#allocation53_spill] sm:$0xff]  ;;  %v13566_v53 = vld [vmem:[#allocation323_spill] sm:$0xff]  ;;  %v13570_v8 = vld [vmem:[#allocation276_spill] sm:$0xff] }
 0x1a7   :  { %v1299_v3 = vmax.f32 %v1267_v6, 0.0  ;;  %v1300_v17 = vmax.f32 %v1268_v26, 0.0  ;;  %v1190_v46 = vadd.f32 %v13555_v10, %v1108_v38  ;;  %v1271_v14 = vadd.f32 %v13556_v12, %v1189_v50  ;;  %v13567_v2 = vld [vmem:[#allocation275_spill] sm:$0xff]  ;;  %v13568_v6 = vld [vmem:[#allocation54_spill] sm:$0xff]  ;;  %v13575_v10 = vld [vmem:[#allocation277_spill] sm:$0xff] }
 0x1a8   :  { %v1626_v15 = vmax.f32 %v1594_v45, 0.0  ;;  %v1627_v30 = vmax.f32 %v1595_v55, 0.0  ;;  %v1435_v27 = vadd.f32 %v13557_v42, %v7966_v41  ;;  %1357 = vadd.xlane.f32.xlu1 %v1356_v23  ;;  %v1516_v44 = vadd.f32 %v13559_v13, %v1434_v16  ;;  %v13569_v26 = vld [vmem:[#allocation382_spill] sm:$0xff]  ;;  %v13571_v4 = vld [vmem:[#allocation263_spill] sm:$0xff]  ;;  %v13573_v16 = vld [vmem:[#allocation264_spill] sm:$0xff] }
 0x1a9   :  { %v1341_v59 = vadd.f32 %v1300_v17, %v1299_v3  ;;  %v1272_v49 = vadd.f32 %v13558_v21, %v1190_v46  ;;  %v1111_v0 = vadd.f32 %v13560_v29, %v8146_v43  ;;  %v1303_v32 = vmax.f32 %v1271_v14, 0.0  ;;  %v13572_v11 = vld [vmem:[#allocation71_spill] sm:$0xff]  ;;  %v13574_v3 = vld [vmem:[#allocation72_spill] sm:$0xff]  ;;  %v13579_v13 = vld [vmem:[#allocation341_spill] sm:$0xff] }
 0x1aa   :  { %v1659_v48 = vadd.f32 %v1627_v30, %v1626_v15  ;;  %v1517_v60 = vadd.f32 %v13561_v51, %v1435_v27  ;;  %v1112_v40 = vadd.f32 %v13562_v20, %v8146_v43  ;;  %v1598_v9 = vadd.f32 %v13563_v58, %v1516_v44  ;;  %v13576_v30 = vld [vmem:[#allocation340_spill] sm:$0xff]  ;;  %v13577_v14 = vld [vmem:[#allocation27_spill] sm:$0xff]  ;;  %v13578_v27 = vld [vmem:[#allocation85_spill] sm:$0xff] }
 0x1ab   :  { %1342 = vadd.xlane.f32.xlu0 %v1341_v59  ;;  %v1304_v34 = vmax.f32 %v1272_v49, 0.0  ;;  %v1193_v22 = vadd.f32 %v13564_v24, %v1111_v0  ;;  %v1438_v37 = vadd.f32 %v13565_v52, %v7998_v54  ;;  %v1439_v35 = vadd.f32 %v13568_v6, %v7998_v54  ;;  %v13580_v29 = vld [vmem:[#allocation28_spill] sm:$0xff]  ;;  %v13584_v24 = vld [vmem:[#allocation291_spill] sm:$0xff]  ;;  %v13585_v52 = vld [vmem:[#allocation29_spill] sm:$0xff] }
 0x1ac   :  { %v1599_v5 = vadd.f32 %v13566_v53, %v1517_v60  ;;  %v1194_v62 = vadd.f32 %v13567_v2, %v1112_v40  ;;  %v1428_v38 = vadd.f32 %v13570_v8, %v13569_v26  ;;  %1660 = vadd.xlane.f32.xlu1 %v1659_v48  ;;  %v1630_v45 = vmax.f32 %v1598_v9, 0.0  ;;  %v13582_v60 = vld [vmem:[#allocation86_spill] sm:$0xff]  ;;  %v13583_v40 = vld [vmem:[#allocation89_spill] sm:$0xff] }
 0x1ad   :  { %v1347_v33 = vadd.f32 %v1304_v34, %v1303_v32  ;;  %v1275_v55 = vadd.f32 %v13571_v4, %v1193_v22  ;;  %v1520_v50 = vadd.f32 %v13572_v11, %v1438_v37  ;;  %v1521_v17 = vadd.f32 %v13574_v3, %v1439_v35  ;;  %v13581_v32 = vld [vmem:[#allocation290_spill] sm:$0xff] }
 0x1ae   :  { %v1631_v61 = vmax.f32 %v1599_v5, 0.0  ;;  %v1276_v23 = vadd.f32 %v13573_v16, %v1194_v62  ;;  %v1429_v46 = vadd.f32 %v13575_v10, %v13569_v26  ;;  %v1510_v42 = vadd.f32 %v13577_v14, %v1428_v38  ;;  %v13586_v5 = vld [vmem:[#allocation90_spill] sm:$0xff]  ;;  %v13587_v62 = vld [vmem:[#allocation356_spill] sm:$0xff] }
 0x1af   :  { %1348 = vadd.xlane.f32.xlu0 %v1347_v33  ;;  %v1307_v15 = vmax.f32 %v1275_v55, 0.0  ;;  %v1602_v12 = vadd.f32 %v13576_v30, %v1520_v50  ;;  %v1442_v59 = vadd.f32 %v13578_v27, %v8031_v28  ;;  %v1603_v44 = vadd.f32 %v13579_v13, %v1521_v17  ;;  %v13588_v35 = vld [vmem:[#allocation30_spill] sm:$0xff]  ;;  %v13590_v55 = vld [vmem:[#allocation103_spill] sm:$0xff]  ;;  %v13591_v50 = vld [vmem:[#allocation357_spill] sm:$0xff] }
 0x1b0   :  { %v1665_v21 = vadd.f32 %v1631_v61, %v1630_v45  ;;  %v1308_v49 = vmax.f32 %v1276_v23, 0.0  ;;  %v1511_v0 = vadd.f32 %v13580_v29, %v1429_v46  ;;  %v1592_v51 = vadd.f32 %v13581_v32, %v1510_v42  ;;  %v13589_v45 = vld [vmem:[#allocation176_spill] sm:$0xff]  ;;  %v13592_v23 = vld [vmem:[#allocation177_spill] sm:$0xff] }
 0x1b1   :  { %v1634_v48 = vmax.f32 %v1602_v12, 0.0  ;;  %v1443_v20 = vadd.f32 %v13582_v60, %v8031_v28  ;;  %v1524_v34 = vadd.f32 %v13583_v40, %v1442_v59  ;;  %v1635_v9 = vmax.f32 %v1603_v44, 0.0  ;;  %v13593_v17 = vld [vmem:[#allocation104_spill] sm:$0xff]  ;;  %v13595_v12 = vld [vmem:[#allocation107_spill] sm:$0xff]  ;;  %v13599_v29 = vld [vmem:[#allocation309_spill] sm:$0xff] }
 0x1b2   :  { %1666 = vadd.xlane.f32.xlu1 %v1665_v21  ;;  %v1353_v58 = vadd.f32 %v1308_v49, %v1307_v15  ;;  %v1593_v22 = vadd.f32 %v13584_v24, %v1511_v0  ;;  %v1432_v37 = vadd.f32 %v13585_v52, %v8039_v47  ;;  %v1624_v53 = vmax.f32 %v1592_v51, 0.0  ;;  %v13594_v15 = vld [vmem:[#allocation306_spill] sm:$0xff]  ;;  %v13596_v42 = vld [vmem:[#allocation308_spill] sm:$0xff]  ;;  %v13597_v21 = vld [vmem:[#allocation307_spill] sm:$0xff] }
 0x1b3   :  { %v1525_v2 = vadd.f32 %v13586_v5, %v1443_v20  ;;  %v1606_v6 = vadd.f32 %v13587_v62, %v1524_v34  ;;  %v1433_v8 = vadd.f32 %v13588_v35, %v8039_v47  ;;  %v1671_v38 = vadd.f32 %v1635_v9, %v1634_v48  ;;  %v13598_v13 = vld [vmem:[#allocation108_spill] sm:$0xff]  ;;  %v13600_v32 = vld [vmem:[#allocation373_spill] sm:$0xff]  ;;  %v13601_v60 = vld [vmem:[#allocation194_spill] sm:$0xff] }
 0x1b4   :  { %1354 = vadd.xlane.f32.xlu0 %v1353_v58  ;;  %v1625_v33 = vmax.f32 %v1593_v22, 0.0  ;;  %v1514_v4 = vadd.f32 %v13589_v45, %v1432_v37  ;;  %v1446_v11 = vadd.f32 %v13590_v55, %v8055_v57  ;;  %v1447_v10 = vadd.f32 %v13593_v17, %v8055_v57  ;;  %v13602_v40 = vld [vmem:[#allocation121_spill] sm:$0xff]  ;;  %v13603_v24 = vld [vmem:[#allocation374_spill] sm:$0xff]  ;;  %v13604_v52 = vld [vmem:[#allocation195_spill] sm:$0xff] }
 0x1b5   :  { %v1607_v61 = vadd.f32 %v13591_v50, %v1525_v2  ;;  %v1638_v16 = vmax.f32 %v1606_v6, 0.0  ;;  %v1515_v3 = vadd.f32 %v13592_v23, %v1433_v8  ;;  %v1436_v27 = vadd.f32 %v13596_v42, %v8058_v19  ;;  %v13605_v5 = vld [vmem:[#allocation180_spill] sm:$0xff]  ;;  %v13606_v62 = vld [vmem:[#allocation122_spill] sm:$0xff]  ;;  %v13607_v35 = vld [vmem:[#allocation125_spill] sm:$0xff] }
 0x1b6   :  { %1672 = vadd.xlane.f32.xlu1 %v1671_v38  ;;  %v1656_v46 = vadd.f32 %v1625_v33, %v1624_v53  ;;  %v1596_v30 = vadd.f32 %v13594_v15, %v1514_v4  ;;  %v1528_v14 = vadd.f32 %v13595_v12, %v1446_v11  ;;  %v1529_v44 = vadd.f32 %v13598_v13, %v1447_v10  ;;  %v13608_v45 = vld [vmem:[#allocation181_spill] sm:$0xff]  ;;  %v13609_v55 = vld [vmem:[#allocation324_spill] sm:$0xff]  ;;  %v13611_v23 = vld [vmem:[#allocation383_spill] sm:$0xff] }
 0x1b7   :  { %v1639_v59 = vmax.f32 %v1607_v61, 0.0  ;;  %v1597_v49 = vadd.f32 %v13597_v21, %v1515_v3  ;;  %v1437_v0 = vadd.f32 %v13599_v29, %v8058_v19  ;;  %v1518_v20 = vadd.f32 %v13601_v60, %v1436_v27  ;;  %v13610_v61 = vld [vmem:[#allocation126_spill] sm:$0xff]  ;;  %v13612_v17 = vld [vmem:[#allocation325_spill] sm:$0xff]  ;;  %v13615_v27 = vld [vmem:[#allocation384_spill] sm:$0xff] }
 0x1b8   :  { %1657 = vadd.xlane.f32.xlu0 %v1656_v46  ;;  %v1628_v48 = vmax.f32 %v1596_v30, 0.0  ;;  %v1610_v51 = vadd.f32 %v13600_v32, %v1528_v14  ;;  %v1450_v34 = vadd.f32 %v13602_v40, %v8070_v39  ;;  %v1611_v22 = vadd.f32 %v13603_v24, %v1529_v44  ;;  %v13613_v30 = vld [vmem:[#allocation212_spill] sm:$0xff]  ;;  %v13614_v14 = vld [vmem:[#allocation138_spill] sm:$0xff]  ;;  %v13617_v44 = vld [vmem:[#allocation139_spill] sm:$0xff] }
 0x1b9   :  { %v1677_v58 = vadd.f32 %v1639_v59, %v1638_v16  ;;  %v1629_v9 = vmax.f32 %v1597_v49, 0.0  ;;  %v1519_v37 = vadd.f32 %v13604_v52, %v1437_v0  ;;  %v1600_v2 = vadd.f32 %v13605_v5, %v1518_v20  ;;  %v13616_v49 = vld [vmem:[#allocation213_spill] sm:$0xff]  ;;  %v13621_v40 = vld [vmem:[#allocation67_spill] sm:$0xff] }
 0x1ba   :  { %v1642_v53 = vmax.f32 %v1610_v51, 0.0  ;;  %v1451_v6 = vadd.f32 %v13606_v62, %v8070_v39  ;;  %v1532_v8 = vadd.f32 %v13607_v35, %v1450_v34  ;;  %v1643_v33 = vmax.f32 %v1611_v22, 0.0  ;;  %v13619_v51 = vld [vmem:[#allocation142_spill] sm:$0xff]  ;;  %v13620_v20 = vld [vmem:[#allocation381_spill] sm:$0xff]  ;;  %v13623_v22 = vld [vmem:[#allocation143_spill] sm:$0xff] }
 0x1bb   :  { %1678 = vadd.xlane.f32.xlu1 %v1677_v58  ;;  %v1662_v38 = vadd.f32 %v1629_v9, %v1628_v48  ;;  %v1601_v4 = vadd.f32 %v13608_v45, %v1519_v37  ;;  %v1440_v11 = vadd.f32 %v13609_v55, %v8077_v63  ;;  %v1632_v50 = vmax.f32 %v1600_v2, 0.0  ;;  %v13618_v48 = vld [vmem:[#allocation198_spill] sm:$0xff]  ;;  %v13622_v9 = vld [vmem:[#allocation199_spill] sm:$0xff]  ;;  %v13624_v37 = vld [vmem:[#allocation68_spill] sm:$0xff] }
 0x1bc   :  { %v1533_v16 = vadd.f32 %v13610_v61, %v1451_v6  ;;  %v1614_v3 = vadd.f32 %v13611_v23, %v1532_v8  ;;  %v1441_v10 = vadd.f32 %v13612_v17, %v8077_v63  ;;  %v1683_v46 = vadd.f32 %v1643_v33, %v1642_v53  ;;  %v13625_v62 = vld [vmem:[#allocation358_spill] sm:$0xff]  ;;  %v13626_v35 = vld [vmem:[#allocation359_spill] sm:$0xff] }
 0x1bd   :  { %1663 = vadd.xlane.f32.xlu0 %v1662_v38  ;;  %v1633_v15 = vmax.f32 %v1601_v4, 0.0  ;;  %v1522_v12 = vadd.f32 %v13613_v30, %v1440_v11  ;;  %v1454_v42 = vadd.f32 %v13614_v14, %v8090_v25  ;;  %v1455_v29 = vadd.f32 %v13617_v44, %v8090_v25  ;;  %v13627_v4 = vld [vmem:[#allocation216_spill] sm:$0xff]  ;;  %v13632_v14 = vld [vmem:[#allocation230_spill] sm:$0xff] }
 0x1be   :  { %v1615_v59 = vadd.f32 %v13615_v27, %v1533_v16  ;;  %v1646_v21 = vmax.f32 %v1614_v3, 0.0  ;;  %v1523_v13 = vadd.f32 %v13616_v49, %v1441_v10  ;;  %v1586_v34 = vmul.f32 %v13621_v40, %v13620_v20  ;;  %v13629_v16 = vld [vmem:[#allocation249_spill] sm:$0xff]  ;;  %v13633_v27 = vld [vmem:[#allocation231_spill] sm:$0xff] }
 0x1bf   :  { %1684 = vadd.xlane.f32.xlu1 %v1683_v46  ;;  %v1668_v0 = vadd.f32 %v1633_v15, %v1632_v50  ;;  %v1604_v32 = vadd.f32 %v13618_v48, %v1522_v12  ;;  %v1536_v60 = vadd.f32 %v13619_v51, %v1454_v42  ;;  %v1537_v52 = vadd.f32 %v13623_v22, %v1455_v29  ;;  %v13628_v50 = vld [vmem:[#allocation248_spill] sm:$0xff]  ;;  %v13630_v3 = vld [vmem:[#allocation217_spill] sm:$0xff]  ;;  %v13631_v15 = vld [vmem:[#allocation234_spill] sm:$0xff] }
 0x1c0   :  { %v1647_v58 = vmax.f32 %v1615_v59, 0.0  ;;  %v1605_v24 = vadd.f32 %v13622_v9, %v1523_v13  ;;  %v1587_v53 = vmul.f32 %v13624_v37, %v13620_v20  ;;  %v1444_v6 = vadd.f32 %v13625_v62, %v8095_v36  ;;  %v13637_v9 = vld [vmem:[#allocation342_spill] sm:$0xff]  ;;  %v13640_v62 = vld [vmem:[#allocation343_spill] sm:$0xff] }
 0x1c1   :  { %1669 = vadd.xlane.f32.xlu0 %v1668_v0  ;;  %v1636_v5 = vmax.f32 %v1604_v32, 0.0  ;;  %v1618_v2 = vadd.f32 %v1586_v34, %v1536_v60  ;;  %v1445_v8 = vadd.f32 %v13626_v35, %v8095_v36  ;;  %v1458_v55 = vadd.f32 %v13627_v4, %v8108_v7  ;;  %v13635_v0 = vld [vmem:[#allocation375_spill] sm:$0xff]  ;;  %v13636_v32 = vld [vmem:[#allocation376_spill] sm:$0xff] }
 0x1c2   :  { %v1689_v38 = vadd.f32 %v1647_v58, %v1646_v21  ;;  %v1637_v33 = vmax.f32 %v1605_v24, 0.0  ;;  %v1619_v45 = vadd.f32 %v1587_v53, %v1537_v52  ;;  %v1526_v61 = vadd.f32 %v13628_v50, %v1444_v6  ;;  %v13634_v21 = vld [vmem:[#allocation235_spill] sm:$0xff]  ;;  %v13638_v52 = vld [vmem:[#allocation265_spill] sm:$0xff]  ;;  %v13645_v50 = vld [vmem:[#allocation252_spill] sm:$0xff] }
 0x1c3   :  { %v1650_v11 = vmax.f32 %v1618_v2, 0.0  ;;  %v1527_v23 = vadd.f32 %v13629_v16, %v1445_v8  ;;  %v1459_v17 = vadd.f32 %v13630_v3, %v8108_v7  ;;  %v1540_v30 = vadd.f32 %v13631_v15, %v1458_v55  ;;  %v13643_v4 = vld [vmem:[#allocation131_spill] sm:$0xff]  ;;  %v13646_v16 = vld [vmem:[#allocation253_spill] sm:$0xff]  ;;  %v13647_v3 = vld [vmem:[#allocation386_spill] sm:$0xff] }
 0x1c4   :  { %1690 = vadd.xlane.f32.xlu1 %v1689_v38  ;;  %v1674_v10 = vadd.f32 %v1637_v33, %v1636_v5  ;;  %v1651_v46 = vmax.f32 %v1619_v45, 0.0  ;;  %v1590_v12 = vmul.f32 %v13621_v40, %v7964_v31  ;;  %v1608_v42 = vadd.f32 %v13632_v14, %v1526_v61  ;;  %v13639_v5 = vld [vmem:[#allocation266_spill] sm:$0xff]  ;;  %v13641_v38 = vld [vmem:[#allocation385_spill] sm:$0xff] }
 0x1c5   :  { %v1609_v59 = vadd.f32 %v13633_v27, %v1527_v23  ;;  %v1541_v49 = vadd.f32 %v13634_v21, %v1459_v17  ;;  %v1591_v13 = vmul.f32 %v13624_v37, %v7964_v31  ;;  %v1448_v48 = vadd.f32 %v13635_v0, %v8113_v18  ;;  %v13642_v45 = vld [vmem:[#allocation9_spill] sm:$0xff]  ;;  %v13653_v21 = vld [vmem:[#allocation14_spill] sm:$0xff]  ;;  %v13654_v0 = vld [vmem:[#allocation244_spill] sm:$0xff] }
 0x1c6   :  { %1675 = vadd.xlane.f32.xlu0 %v1674_v10  ;;  %v1695_v44 = vadd.f32 %v1651_v46, %v1650_v11  ;;  %v1622_v29 = vadd.f32 %v1590_v12, %v1540_v30  ;;  %v1449_v51 = vadd.f32 %v13636_v32, %v8113_v18  ;;  %v1640_v60 = vmax.f32 %v1608_v42, 0.0  ;;  %v13648_v10 = vld [vmem:[#allocation10_spill] sm:$0xff]  ;;  %v13650_v12 = vld [vmem:[#allocation141_spill] sm:$0xff]  ;;  %v13651_v42 = vld [vmem:[#allocation355_spill] sm:$0xff] }
 0x1c7   :  { %v1641_v34 = vmax.f32 %v1609_v59, 0.0  ;;  %v1623_v58 = vadd.f32 %v1591_v13, %v1541_v49  ;;  %v1775_v24 = vadd.f32 %v13637_v9, %v8012_v1  ;;  %v1530_v53 = vadd.f32 %v13638_v52, %v1448_v48  ;;  %v13652_v27 = vld [vmem:[#allocation13_spill] sm:$0xff]  ;;  %v13655_v48 = vld [vmem:[#allocation15_spill] sm:$0xff] }
 0x1c8   :  { %1696 = vadd.xlane.f32.xlu1 %v1695_v44  ;;  %v1654_v22 = vmax.f32 %v1622_v29, 0.0  ;;  %v1531_v2 = vadd.f32 %v13639_v5, %v1449_v51  ;;  %v1776_v6 = vadd.f32 %v13640_v62, %v8012_v1  ;;  %v13644_v55 = vrot.slane %v13643_v4, %v13642_v45  ;;  %v13657_v52 = vld [vmem:[#allocation227_spill] sm:$0xff] }
 0x1c9   :  { %v1680_v35 = vadd.f32 %v1641_v34, %v1640_v60  ;;  %v1655_v8 = vmax.f32 %v1623_v58, 0.0  ;;  %v1857_v33 = vadd.f32 %v13641_v38, %v1775_v24  ;;  %v1612_v61 = vadd.f32 %v13645_v50, %v1530_v53  ;;  %v13656_v58 = vld [vmem:[#allocation16_spill] sm:$0xff] }
 0x1ca   :  { %v8529_v11 = vrot.slane %v13644_v55, %v13642_v45  ;;  %v1613_v23 = vadd.f32 %v13646_v16, %v1531_v2  ;;  %v1858_v17 = vadd.f32 %v13647_v3, %v1776_v6  ;;  %v13649_v46 = vrot.slane %v13643_v4, %v13648_v10  ;;  %v13660_v4 = vld [vmem:[#allocation271_spill] sm:$0xff]  ;;  %v13661_v50 = vld [vmem:[#allocation24_spill] sm:$0xff] }
 0x1cb   :  { %1681 = vadd.xlane.f32.xlu0 %v1680_v35  ;;  %v1701_v30 = vadd.f32 %v1655_v8, %v1654_v22  ;;  %v1420_v59 = vmul.f32 %v13652_v27, %v13651_v42  ;;  %v1421_v49 = vmul.f32 %v13653_v21, %v13651_v42  ;;  %v1644_v13 = vmax.f32 %v1612_v61, 0.0  ;;  %v13658_v35 = vld [vmem:[#allocation23_spill] sm:$0xff]  ;;  %v13659_v8 = vld [vmem:[#allocation270_spill] sm:$0xff]  ;;  %v13662_v61 = vld [vmem:[#allocation280_spill] sm:$0xff] }
 0x1cc   :  { %v8538_v15 = vrot.slane %v13649_v46, %v13642_v45  ;;  %v1907_v14 = vmul.f32 %v8529_v11, %v13650_v12  ;;  %v1645_v44 = vmax.f32 %v1613_v23, 0.0  ;;  %v1502_v32 = vmul.f32 %v13655_v48, %v13654_v0  ;;  %v13663_v23 = vld [vmem:[#allocation281_spill] sm:$0xff] }
 0x1cd   :  { %1702 = vadd.xlane.f32.xlu1 %v1701_v30  ;;  %v1452_v60 = vadd.f32 %v1420_v59, %v8131_v56  ;;  %v1453_v34 = vadd.f32 %v1421_v49, %v8131_v56  ;;  %v1503_v9 = vmul.f32 %v13656_v58, %v13654_v0  ;;  %v1584_v53 = vmul.f32 %v13621_v40, %v13657_v52 }
 0x1ce   :  { %v1908_v29 = vmul.f32 %v8538_v15, %v13650_v12  ;;  %v1939_v51 = vadd.f32 %v1907_v14, %v1857_v33  ;;  %v1686_v24 = vadd.f32 %v1645_v44, %v1644_v13  ;;  %v1585_v5 = vmul.f32 %v13624_v37, %v13657_v52  ;;  %v13664_v14 = vld [vmem:[#allocation304_spill] sm:$0xff] }
 0x1cf   :  { %v1534_v62 = vadd.f32 %v1502_v32, %v1452_v60  ;;  %v1535_v6 = vadd.f32 %v1503_v9, %v1453_v34  ;;  %v1747_v38 = vmul.f32 %v13659_v8, %v13658_v35  ;;  %v1748_v55 = vmul.f32 %v13660_v4, %v13658_v35 }
 0x1d0   :  { %v1940_v22 = vadd.f32 %v1908_v29, %v1858_v17  ;;  %v1971_v2 = vmax.f32 %v1939_v51, 0.0  ;;  %1687 = vadd.xlane.f32.xlu0 %v1686_v24  ;;  %v1829_v16 = vmul.f32 %v13662_v61, %v13661_v50  ;;  %v1830_v3 = vmul.f32 %v13663_v23, %v13661_v50  ;;  %v13665_v29 = vld [vmem:[#allocation372_spill] sm:$0xff] }
 0x1d1   :  { %v1616_v17 = vadd.f32 %v1584_v53, %v1534_v62  ;;  %v1617_v46 = vadd.f32 %v1585_v5, %v1535_v6  ;;  %v1779_v30 = vadd.f32 %v1747_v38, %v7966_v41  ;;  %v1911_v59 = vmul.f32 %v8529_v11, %v13664_v14  ;;  %v13666_v53 = vld [vmem:[#allocation262_spill] sm:$0xff]  ;;  %v13667_v38 = vld [vmem:[#allocation245_spill] sm:$0xff] }
 0x1d2   :  { %v1972_v33 = vmax.f32 %v1940_v22, 0.0  ;;  %v1780_v13 = vadd.f32 %v1748_v55, %v7966_v41  ;;  %v1912_v44 = vmul.f32 %v8538_v15, %v13664_v14  ;;  %v1424_v32 = vmul.f32 %v13652_v27, %v13665_v29 }
 0x1d3   :  { %v1648_v51 = vmax.f32 %v1616_v17, 0.0  ;;  %v1649_v60 = vmax.f32 %v1617_v46, 0.0  ;;  %v1861_v34 = vadd.f32 %v1829_v16, %v1779_v30  ;;  %v1425_v9 = vmul.f32 %v13653_v21, %v13665_v29  ;;  %v13669_v30 = vld [vmem:[#allocation34_spill] sm:$0xff] }
 0x1d4   :  { %v2004_v49 = vadd.f32 %v1972_v33, %v1971_v2  ;;  %v1862_v24 = vadd.f32 %v1830_v3, %v1780_v13  ;;  %v1456_v22 = vadd.f32 %v1424_v32, %v8146_v43  ;;  %v1506_v5 = vmul.f32 %v13655_v48, %v13666_v53  ;;  %v13668_v3 = vld [vmem:[#allocation33_spill] sm:$0xff] }
 0x1d5   :  { %v1507_v2 = vmul.f32 %v13656_v58, %v13666_v53  ;;  %v1692_v62 = vadd.f32 %v1649_v60, %v1648_v51  ;;  %v1943_v6 = vadd.f32 %v1911_v59, %v1861_v34  ;;  %v1457_v27 = vadd.f32 %v1425_v9, %v8146_v43  ;;  %v13670_v51 = vld [vmem:[#allocation320_spill] sm:$0xff] }
 0x1d6   :  { %2005 = vadd.xlane.f32.xlu1 %v2004_v49  ;;  %v1588_v33 = vmul.f32 %v13621_v40, %v13667_v38  ;;  %v1944_v55 = vadd.f32 %v1912_v44, %v1862_v24  ;;  %v1538_v16 = vadd.f32 %v1506_v5, %v1456_v22  ;;  %v1589_v21 = vmul.f32 %v13624_v37, %v13667_v38  ;;  %v13671_v5 = vld [vmem:[#allocation267_spill] sm:$0xff] }
 0x1d7   :  { %v1751_v17 = vmul.f32 %v13659_v8, %v13668_v3  ;;  %1693 = vadd.xlane.f32.xlu0 %v1692_v62  ;;  %v1975_v48 = vmax.f32 %v1943_v6, 0.0  ;;  %v1539_v46 = vadd.f32 %v1507_v2, %v1457_v27  ;;  %v1752_v58 = vmul.f32 %v13660_v4, %v13668_v3 }
 0x1d8   :  { %v1833_v59 = vmul.f32 %v13662_v61, %v13669_v30  ;;  %v1976_v49 = vmax.f32 %v1944_v55, 0.0  ;;  %v1620_v13 = vadd.f32 %v1588_v33, %v1538_v16  ;;  %v1834_v44 = vmul.f32 %v13663_v23, %v13669_v30  ;;  %v13672_v33 = vld [vmem:[#allocation12_spill] sm:$0xff] }
 0x1d9   :  { %v1783_v40 = vadd.f32 %v1751_v17, %v7998_v54  ;;  %v1621_v37 = vadd.f32 %v1589_v21, %v1539_v46  ;;  %v1784_v32 = vadd.f32 %v1752_v58, %v7998_v54  ;;  %v1915_v60 = vmul.f32 %v8529_v11, %v13670_v51 }
 0x1da   :  { %v1916_v34 = vmul.f32 %v8538_v15, %v13670_v51  ;;  %v2010_v9 = vadd.f32 %v1976_v49, %v1975_v48  ;;  %v1652_v24 = vmax.f32 %v1620_v13, 0.0  ;;  %v1741_v2 = vmul.f32 %v13659_v8, %v13671_v5  ;;  %v13673_v48 = vld [vmem:[#allocation278_spill] sm:$0xff] }
 0x1db   :  { %v1865_v22 = vadd.f32 %v1833_v59, %v1783_v40  ;;  %v1653_v62 = vmax.f32 %v1621_v37, 0.0  ;;  %v1866_v6 = vadd.f32 %v1834_v44, %v1784_v32  ;;  %v1742_v27 = vmul.f32 %v13660_v4, %v13671_v5  ;;  %v13674_v37 = vld [vmem:[#allocation47_spill] sm:$0xff] }
 0x1dc   :  { %v1823_v55 = vmul.f32 %v13662_v61, %v13672_v33  ;;  %2011 = vadd.xlane.f32.xlu1 %v2010_v9  ;;  %v1773_v21 = vadd.f32 %v1741_v2, %v13569_v26  ;;  %v1824_v17 = vmul.f32 %v13663_v23, %v13672_v33  ;;  %v1905_v46 = vmul.f32 %v8529_v11, %v13673_v48  ;;  %v13675_v2 = vld [vmem:[#allocation48_spill] sm:$0xff] }
 0x1dd   :  { %v1947_v16 = vadd.f32 %v1915_v60, %v1865_v22  ;;  %v1698_v58 = vadd.f32 %v1653_v62, %v1652_v24  ;;  %v1948_v59 = vadd.f32 %v1916_v34, %v1866_v6  ;;  %v1774_v49 = vadd.f32 %v1742_v27, %v13569_v26 }
 0x1de   :  { %v1906_v13 = vmul.f32 %v8538_v15, %v13673_v48  ;;  %v1855_v44 = vadd.f32 %v1823_v55, %v1773_v21  ;;  %v1755_v32 = vmul.f32 %v13659_v8, %v13674_v37  ;;  %v1756_v60 = vmul.f32 %v13660_v4, %v13674_v37  ;;  %v13676_v55 = vld [vmem:[#allocation338_spill] sm:$0xff] }
 0x1df   :  { %v1979_v40 = vmax.f32 %v1947_v16, 0.0  ;;  %1699 = vadd.xlane.f32.xlu0 %v1698_v58  ;;  %v1980_v9 = vmax.f32 %v1948_v59, 0.0  ;;  %v1856_v22 = vadd.f32 %v1824_v17, %v1774_v49  ;;  %v1837_v24 = vmul.f32 %v13662_v61, %v13675_v2  ;;  %v13677_v17 = vld [vmem:[#allocation11_spill] sm:$0xff] }
 0x1e0   :  { %v1838_v34 = vmul.f32 %v13663_v23, %v13675_v2  ;;  %v1937_v62 = vadd.f32 %v1905_v46, %v1855_v44  ;;  %v1787_v6 = vadd.f32 %v1755_v32, %v8031_v28  ;;  %v1788_v27 = vadd.f32 %v1756_v60, %v8031_v28  ;;  %v13678_v60 = vld [vmem:[#allocation154_spill] sm:$0xff] }
 0x1e1   :  { %v1919_v16 = vmul.f32 %v8529_v11, %v13676_v55  ;;  %v2016_v21 = vadd.f32 %v1980_v9, %v1979_v40  ;;  %v1938_v48 = vadd.f32 %v1906_v13, %v1856_v22  ;;  %v1920_v58 = vmul.f32 %v8538_v15, %v13676_v55 }
 0x1e2   :  { %v1745_v59 = vmul.f32 %v13659_v8, %v13677_v17  ;;  %v1969_v49 = vmax.f32 %v1937_v62, 0.0  ;;  %v1869_v37 = vadd.f32 %v1837_v24, %v1787_v6  ;;  %v1870_v26 = vadd.f32 %v1838_v34, %v1788_v27  ;;  %v13679_v62 = vld [vmem:[#allocation286_spill] sm:$0xff]  ;;  %v13680_v27 = vld [vmem:[#allocation63_spill] sm:$0xff] }
 0x1e3   :  { %v1746_v46 = vmul.f32 %v13660_v4, %v13677_v17  ;;  %2017 = vadd.xlane.f32.xlu1 %v2016_v21  ;;  %v1970_v44 = vmax.f32 %v1938_v48, 0.0  ;;  %v1827_v40 = vmul.f32 %v13662_v61, %v13678_v60  ;;  %v1828_v13 = vmul.f32 %v13663_v23, %v13678_v60 }
 0x1e4   :  { %v1777_v32 = vadd.f32 %v1745_v59, %v8039_v47  ;;  %v1951_v9 = vadd.f32 %v1919_v16, %v1869_v37  ;;  %v1952_v22 = vadd.f32 %v1920_v58, %v1870_v26  ;;  %v1909_v24 = vmul.f32 %v8529_v11, %v13679_v62  ;;  %v13681_v58 = vld [vmem:[#allocation64_spill] sm:$0xff] }
 0x1e5   :  { %v1778_v55 = vadd.f32 %v1746_v46, %v8039_v47  ;;  %v2001_v34 = vadd.f32 %v1970_v44, %v1969_v49  ;;  %v1910_v48 = vmul.f32 %v8538_v15, %v13679_v62  ;;  %v1759_v21 = vmul.f32 %v13659_v8, %v13680_v27 }
 0x1e6   :  { %v1859_v6 = vadd.f32 %v1827_v40, %v1777_v32  ;;  %v1983_v59 = vmax.f32 %v1951_v9, 0.0  ;;  %v1984_v17 = vmax.f32 %v1952_v22, 0.0  ;;  %v1760_v37 = vmul.f32 %v13660_v4, %v13680_v27  ;;  %v13682_v9 = vld [vmem:[#allocation354_spill] sm:$0xff] }
 0x1e7   :  { %v1860_v28 = vadd.f32 %v1828_v13, %v1778_v55  ;;  %2002 = vadd.xlane.f32.xlu0 %v2001_v34  ;;  %v1791_v16 = vadd.f32 %v1759_v21, %v8055_v57  ;;  %v1841_v49 = vmul.f32 %v13662_v61, %v13681_v58  ;;  %v1842_v46 = vmul.f32 %v13663_v23, %v13681_v58  ;;  %v13683_v34 = vld [vmem:[#allocation287_spill] sm:$0xff] }
 0x1e8   :  { %v1941_v26 = vadd.f32 %v1909_v24, %v1859_v6  ;;  %v2022_v44 = vadd.f32 %v1984_v17, %v1983_v59  ;;  %v1792_v40 = vadd.f32 %v1760_v37, %v8055_v57  ;;  %v1923_v55 = vmul.f32 %v8529_v11, %v13682_v9  ;;  %v13687_v57 = vld [vmem:[#allocation82_spill] sm:$0xff] }
 0x1e9   :  { %v1942_v32 = vadd.f32 %v1910_v48, %v1860_v28  ;;  %v1873_v22 = vadd.f32 %v1841_v49, %v1791_v16  ;;  %v1924_v24 = vmul.f32 %v8538_v15, %v13682_v9  ;;  %v1749_v6 = vmul.f32 %v13659_v8, %v13683_v34  ;;  %v13684_v28 = vld [vmem:[#allocation172_spill] sm:$0xff]  ;;  %v13685_v16 = vld [vmem:[#allocation155_spill] sm:$0xff] }
 0x1ea   :  { %v1973_v13 = vmax.f32 %v1941_v26, 0.0  ;;  %2023 = vadd.xlane.f32.xlu1 %v2022_v44  ;;  %v1874_v27 = vadd.f32 %v1842_v46, %v1792_v40  ;;  %v1750_v17 = vmul.f32 %v13660_v4, %v13683_v34  ;;  %v1831_v48 = vmul.f32 %v13662_v61, %v13684_v28  ;;  %v13686_v34 = vld [vmem:[#allocation81_spill] sm:$0xff] }
 0x1eb   :  { %v1974_v21 = vmax.f32 %v1942_v32, 0.0  ;;  %v1955_v59 = vadd.f32 %v1923_v55, %v1873_v22  ;;  %v1781_v37 = vadd.f32 %v1749_v6, %v8058_v19  ;;  %v1832_v26 = vmul.f32 %v13663_v23, %v13684_v28 }
 0x1ec   :  { %v1913_v49 = vmul.f32 %v8529_v11, %v13685_v16  ;;  %v1956_v58 = vadd.f32 %v1924_v24, %v1874_v27  ;;  %v1782_v44 = vadd.f32 %v1750_v17, %v8058_v19  ;;  %v1914_v46 = vmul.f32 %v8538_v15, %v13685_v16 }
 0x1ed   :  { %v2007_v9 = vadd.f32 %v1974_v21, %v1973_v13  ;;  %v1987_v32 = vmax.f32 %v1955_v59, 0.0  ;;  %v1863_v40 = vadd.f32 %v1831_v48, %v1781_v37  ;;  %v1763_v55 = vmul.f32 %v13659_v8, %v13686_v34  ;;  %v13688_v48 = vld [vmem:[#allocation371_spill] sm:$0xff] }
 0x1ee   :  { %v1764_v22 = vmul.f32 %v13660_v4, %v13686_v34  ;;  %v1988_v6 = vmax.f32 %v1956_v58, 0.0  ;;  %v1864_v28 = vadd.f32 %v1832_v26, %v1782_v44  ;;  %v1845_v13 = vmul.f32 %v13662_v61, %v13687_v57 }
 0x1ef   :  { %2008 = vadd.xlane.f32.xlu0 %v2007_v9  ;;  %v1846_v27 = vmul.f32 %v13663_v23, %v13687_v57  ;;  %v1945_v24 = vadd.f32 %v1913_v49, %v1863_v40  ;;  %v1795_v21 = vadd.f32 %v1763_v55, %v8070_v39  ;;  %v1927_v59 = vmul.f32 %v8529_v11, %v13688_v48  ;;  %v13689_v9 = vld [vmem:[#allocation305_spill] sm:$0xff] }
 0x1f0   :  { %v1796_v17 = vadd.f32 %v1764_v22, %v8070_v39  ;;  %v2028_v37 = vadd.f32 %v1988_v6, %v1987_v32  ;;  %v1946_v16 = vadd.f32 %v1914_v46, %v1864_v28  ;;  %v1928_v58 = vmul.f32 %v8538_v15, %v13688_v48  ;;  %v13690_v22 = vld [vmem:[#allocation190_spill] sm:$0xff] }
 0x1f1   :  { %v1753_v26 = vmul.f32 %v13659_v8, %v13689_v9  ;;  %v1977_v44 = vmax.f32 %v1945_v24, 0.0  ;;  %v1877_v34 = vadd.f32 %v1845_v13, %v1795_v21  ;;  %v1754_v49 = vmul.f32 %v13660_v4, %v13689_v9  ;;  %v13691_v24 = vld [vmem:[#allocation173_spill] sm:$0xff] }
 0x1f2   :  { %v1878_v19 = vadd.f32 %v1846_v27, %v1796_v17  ;;  %2029 = vadd.xlane.f32.xlu1 %v2028_v37  ;;  %v1978_v40 = vmax.f32 %v1946_v16, 0.0  ;;  %v1835_v32 = vmul.f32 %v13662_v61, %v13690_v22  ;;  %v1836_v28 = vmul.f32 %v13663_v23, %v13690_v22  ;;  %v13692_v17 = vld [vmem:[#allocation99_spill] sm:$0xff] }
 0x1f3   :  { %v1785_v55 = vadd.f32 %v1753_v26, %v8077_v63  ;;  %v1959_v46 = vadd.f32 %v1927_v59, %v1877_v34  ;;  %v1786_v48 = vadd.f32 %v1754_v49, %v8077_v63  ;;  %v1917_v13 = vmul.f32 %v8529_v11, %v13691_v24 }
 0x1f4   :  { %v1960_v6 = vadd.f32 %v1928_v58, %v1878_v19  ;;  %v2013_v27 = vadd.f32 %v1978_v40, %v1977_v44  ;;  %v1918_v16 = vmul.f32 %v8538_v15, %v13691_v24  ;;  %v1767_v37 = vmul.f32 %v13659_v8, %v13692_v17  ;;  %v13693_v58 = vld [vmem:[#allocation100_spill] sm:$0xff] }
 0x1f5   :  { %v1867_v21 = vadd.f32 %v1835_v32, %v1785_v55  ;;  %v1991_v26 = vmax.f32 %v1959_v46, 0.0  ;;  %v1868_v57 = vadd.f32 %v1836_v28, %v1786_v48  ;;  %v1768_v34 = vmul.f32 %v13660_v4, %v13692_v17 }
 0x1f6   :  { %v1992_v9 = vmax.f32 %v1960_v6, 0.0  ;;  %2014 = vadd.xlane.f32.xlu0 %v2013_v27  ;;  %v1799_v59 = vadd.f32 %v1767_v37, %v8090_v25  ;;  %v1849_v44 = vmul.f32 %v13662_v61, %v13693_v58  ;;  %v1850_v49 = vmul.f32 %v13663_v23, %v13693_v58  ;;  %v13698_v58 = vld [vmem:[#allocation118_spill] sm:$0xff] }
 0x1f7   :  { %v1949_v19 = vadd.f32 %v1917_v13, %v1867_v21  ;;  %v1950_v55 = vadd.f32 %v1918_v16, %v1868_v57  ;;  %v1800_v32 = vadd.f32 %v1768_v34, %v8090_v25  ;;  %v1931_v48 = vmul.f32 %v8529_v11, %v13620_v20  ;;  %v13694_v13 = vld [vmem:[#allocation321_spill] sm:$0xff]  ;;  %v13695_v57 = vld [vmem:[#allocation208_spill] sm:$0xff] }
 0x1f8   :  { %v2034_v40 = vadd.f32 %v1992_v9, %v1991_v26  ;;  %v1881_v46 = vadd.f32 %v1849_v44, %v1799_v59  ;;  %v1932_v6 = vmul.f32 %v8538_v15, %v13620_v20  ;;  %v1757_v27 = vmul.f32 %v13659_v8, %v13694_v13  ;;  %v13696_v59 = vld [vmem:[#allocation191_spill] sm:$0xff] }
 0x1f9   :  { %v1981_v28 = vmax.f32 %v1949_v19, 0.0  ;;  %v1982_v21 = vmax.f32 %v1950_v55, 0.0  ;;  %v1882_v37 = vadd.f32 %v1850_v49, %v1800_v32  ;;  %v1758_v9 = vmul.f32 %v13660_v4, %v13694_v13  ;;  %v13697_v13 = vld [vmem:[#allocation117_spill] sm:$0xff] }
 0x1fa   :  { %2035 = vadd.xlane.f32.xlu1 %v2034_v40  ;;  %v1839_v16 = vmul.f32 %v13662_v61, %v13695_v57  ;;  %v1963_v26 = vadd.f32 %v1931_v48, %v1881_v46  ;;  %v1789_v34 = vadd.f32 %v1757_v27, %v8095_v36  ;;  %v1840_v19 = vmul.f32 %v13663_v23, %v13695_v57 }
 0x1fb   :  { %v1921_v44 = vmul.f32 %v8529_v11, %v13696_v59  ;;  %v2019_v20 = vadd.f32 %v1982_v21, %v1981_v28  ;;  %v1964_v25 = vadd.f32 %v1932_v6, %v1882_v37  ;;  %v1790_v40 = vadd.f32 %v1758_v9, %v8095_v36  ;;  %v13703_v36 = vld [vmem:[#allocation6_spill] sm:$0xff] }
 0x1fc   :  { %v1922_v49 = vmul.f32 %v8538_v15, %v13696_v59  ;;  %v1995_v55 = vmax.f32 %v1963_v26, 0.0  ;;  %v1871_v32 = vadd.f32 %v1839_v16, %v1789_v34  ;;  %v1771_v48 = vmul.f32 %v13659_v8, %v13697_v13 }
 0x1fd   :  { %v1772_v46 = vmul.f32 %v13660_v4, %v13697_v13  ;;  %2020 = vadd.xlane.f32.xlu0 %v2019_v20  ;;  %v1996_v27 = vmax.f32 %v1964_v25, 0.0  ;;  %v1872_v57 = vadd.f32 %v1840_v19, %v1790_v40  ;;  %v1853_v28 = vmul.f32 %v13662_v61, %v13698_v58  ;;  %v13699_v20 = vld [vmem:[#allocation339_spill] sm:$0xff] }
 0x1fe   :  { %v1854_v6 = vmul.f32 %v13663_v23, %v13698_v58  ;;  %v1953_v21 = vadd.f32 %v1921_v44, %v1871_v32  ;;  %v1803_v37 = vadd.f32 %v1771_v48, %v8108_v7  ;;  %v1935_v16 = vmul.f32 %v8529_v11, %v7964_v31  ;;  %v6045_v32 = vld [vmem:[%s12439_s0 + $0x28] sm:$0x77] }
 0x1ff   :  { %v1804_v9 = vadd.f32 %v1772_v46, %v8108_v7  ;;  %v2040_v26 = vadd.f32 %v1996_v27, %v1995_v55  ;;  %v1954_v34 = vadd.f32 %v1922_v49, %v1872_v57  ;;  %v1936_v25 = vmul.f32 %v8538_v15, %v7964_v31  ;;  %v13700_v49 = vld [vmem:[#allocation226_spill] sm:$0xff] }
 0x200   :  { %v1761_v19 = vmul.f32 %v13659_v8, %v13699_v20  ;;  %v1985_v40 = vmax.f32 %v1953_v21, 0.0  ;;  %v1885_v13 = vadd.f32 %v1853_v28, %v1803_v37  ;;  %v1762_v44 = vmul.f32 %v13660_v4, %v13699_v20  ;;  %v13701_v21 = vld [vmem:[#allocation209_spill] sm:$0xff] }
 0x201   :  { %v1886_v59 = vadd.f32 %v1854_v6, %v1804_v9  ;;  %2041 = vadd.xlane.f32.xlu1 %v2040_v26  ;;  %v1986_v48 = vmax.f32 %v1954_v34, 0.0  ;;  %v1843_v55 = vmul.f32 %v13662_v61, %v13700_v49  ;;  %v1844_v46 = vmul.f32 %v13663_v23, %v13700_v49  ;;  %v13702_v34 = vld [vmem:[#allocation5_spill] sm:$0xff] }
 0x202   :  { %v1793_v57 = vadd.f32 %v1761_v19, %v8113_v18  ;;  %v1967_v27 = vadd.f32 %v1935_v16, %v1885_v13  ;;  %v1794_v6 = vadd.f32 %v1762_v44, %v8113_v18  ;;  %v1925_v37 = vmul.f32 %v8529_v11, %v13701_v21  ;;  %v13704_v16 = vld [vmem:[#allocation7_spill] sm:$0xff]  ;;  %v13705_v44 = vld [vmem:[#allocation8_spill] sm:$0xff] }
 0x203   :  { %v1968_v28 = vadd.f32 %v1936_v25, %v1886_v59  ;;  %v2025_v9 = vadd.f32 %v1986_v48, %v1985_v40  ;;  %v1926_v26 = vmul.f32 %v8538_v15, %v13701_v21  ;;  %v2071_v19 = vrot.slane %v6045_v32, %v13702_v34 }
 0x204   :  { %v1875_v20 = vadd.f32 %v1843_v55, %v1793_v57  ;;  %v1999_v31 = vmax.f32 %v1967_v27, 0.0  ;;  %v1876_v58 = vadd.f32 %v1844_v46, %v1794_v6  ;;  %v2075_v17 = vrot.slane %v6045_v32, %v13703_v36  ;;  %v13706_v46 = vld [vmem:[#allocation279_spill] sm:$0xff] }
 0x205   :  { %v2000_v7 = vmax.f32 %v1968_v28, 0.0  ;;  %2026 = vadd.xlane.f32.xlu0 %v2025_v9  ;;  %v8760_v59 = vrot.slane %v2071_v19, %v13702_v34  ;;  %v2153_v25 = vrot.slane %v6045_v32, %v13704_v16  ;;  %v2157_v40 = vrot.slane %v6045_v32, %v13705_v44 }
 0x206   :  { %v1957_v13 = vadd.f32 %v1925_v37, %v1875_v20  ;;  %v1958_v57 = vadd.f32 %v1926_v26, %v1876_v58  ;;  %v8765_v55 = vrot.slane %v2075_v17, %v13702_v34  ;;  %v2235_v27 = vrot.slane %v6045_v32, %v13642_v45  ;;  %v13707_v26 = vld [vmem:[#allocation140_spill] sm:$0xff] }
 0x207   :  { %v2046_v48 = vadd.f32 %v2000_v7, %v1999_v31  ;;  %v2088_v6 = vmul.f32 %v8760_v59, %v13706_v46  ;;  %v8771_v20 = vrot.slane %v2153_v25, %v13704_v16  ;;  %v8774_v37 = vrot.slane %v2157_v40, %v13704_v16 }
 0x208   :  { %v1989_v28 = vmax.f32 %v1957_v13, 0.0  ;;  %v1990_v9 = vmax.f32 %v1958_v57, 0.0  ;;  %v2089_v31 = vmul.f32 %v8765_v55, %v13706_v46  ;;  %v2239_v7 = vrot.slane %v6045_v32, %v13648_v10 }
 0x209   :  { %2047 = vadd.xlane.f32.xlu1 %v2046_v48  ;;  %v8780_v17 = vrot.slane %v2235_v27, %v13642_v45  ;;  %v2120_v58 = vadd.f32 %v2088_v6, %v8012_v1  ;;  %v2170_v19 = vmul.f32 %v8771_v20, %v13707_v26  ;;  %v2171_v13 = vmul.f32 %v8774_v37, %v13707_v26 }
 0x20a   :  { %v1765_v25 = vmul.f32 %v13659_v8, %v13651_v42  ;;  %v2031_v40 = vadd.f32 %v1990_v9, %v1989_v28  ;;  %v2121_v48 = vadd.f32 %v2089_v31, %v8012_v1  ;;  %v8791_v57 = vrot.slane %v2239_v7, %v13642_v45 }
 0x20b   :  { %v2252_v32 = vmul.f32 %v8780_v17, %v13650_v12  ;;  %v2202_v27 = vadd.f32 %v2170_v19, %v2120_v58  ;;  %v1766_v6 = vmul.f32 %v13660_v4, %v13651_v42  ;;  %v1847_v26 = vmul.f32 %v13662_v61, %v13654_v0 }
 0x20c   :  { %v1797_v10 = vadd.f32 %v1765_v25, %v8131_v56  ;;  %2032 = vadd.xlane.f32.xlu0 %v2031_v40  ;;  %v2203_v46 = vadd.f32 %v2171_v13, %v2121_v48  ;;  %v2253_v28 = vmul.f32 %v8791_v57, %v13650_v12  ;;  %v1848_v9 = vmul.f32 %v13663_v23, %v13654_v0 }
 0x20d   :  { %v1929_v31 = vmul.f32 %v8529_v11, %v13657_v52  ;;  %v2284_v7 = vadd.f32 %v2252_v32, %v2202_v27  ;;  %v1798_v58 = vadd.f32 %v1766_v6, %v8131_v56  ;;  %v1930_v25 = vmul.f32 %v8538_v15, %v13657_v52 }
 0x20e   :  { %v1879_v19 = vadd.f32 %v1847_v26, %v1797_v10  ;;  %v2285_v42 = vadd.f32 %v2253_v28, %v2203_v46  ;;  %v2092_v13 = vmul.f32 %v8760_v59, %v13658_v35  ;;  %v2093_v40 = vmul.f32 %v8765_v55, %v13658_v35 }
 0x20f   :  { %v2174_v48 = vmul.f32 %v8771_v20, %v13661_v50  ;;  %v2316_v0 = vmax.f32 %v2284_v7, 0.0  ;;  %v1880_v12 = vadd.f32 %v1848_v9, %v1798_v58  ;;  %v2175_v32 = vmul.f32 %v8774_v37, %v13661_v50 }
 0x210   :  { %v1961_v1 = vadd.f32 %v1929_v31, %v1879_v19  ;;  %v2317_v10 = vmax.f32 %v2285_v42, 0.0  ;;  %v2124_v26 = vadd.f32 %v2092_v13, %v7966_v41  ;;  %v2125_v46 = vadd.f32 %v2093_v40, %v7966_v41 }
 0x211   :  { %v2256_v27 = vmul.f32 %v8780_v17, %v13664_v14  ;;  %v1962_v6 = vadd.f32 %v1930_v25, %v1880_v12  ;;  %v2257_v35 = vmul.f32 %v8791_v57, %v13664_v14  ;;  %v1769_v9 = vmul.f32 %v13659_v8, %v13665_v29 }
 0x212   :  { %v1993_v28 = vmax.f32 %v1961_v1, 0.0  ;;  %v2349_v31 = vadd.f32 %v2317_v10, %v2316_v0  ;;  %v2206_v7 = vadd.f32 %v2174_v48, %v2124_v26  ;;  %v2207_v58 = vadd.f32 %v2175_v32, %v2125_v46 }
 0x213   :  { %v1770_v42 = vmul.f32 %v13660_v4, %v13665_v29  ;;  %v1994_v19 = vmax.f32 %v1962_v6, 0.0  ;;  %v1801_v13 = vadd.f32 %v1769_v9, %v8146_v43  ;;  %v1851_v40 = vmul.f32 %v13662_v61, %v13666_v53 }
 0x214   :  { %v1852_v1 = vmul.f32 %v13663_v23, %v13666_v53  ;;  %2350 = vadd.xlane.f32.xlu1 %v2349_v31  ;;  %v2288_v12 = vadd.f32 %v2256_v27, %v2206_v7  ;;  %v2289_v25 = vadd.f32 %v2257_v35, %v2207_v58  ;;  %v1933_v0 = vmul.f32 %v8529_v11, %v13667_v38 }
 0x215   :  { %v1802_v8 = vadd.f32 %v1770_v42, %v8146_v43  ;;  %v2037_v48 = vadd.f32 %v1994_v19, %v1993_v28  ;;  %v1883_v32 = vadd.f32 %v1851_v40, %v1801_v13  ;;  %v1934_v4 = vmul.f32 %v8538_v15, %v13667_v38 }
 0x216   :  { %v2096_v10 = vmul.f32 %v8760_v59, %v13668_v3  ;;  %v2320_v61 = vmax.f32 %v2288_v12, 0.0  ;;  %v2321_v26 = vmax.f32 %v2289_v25, 0.0  ;;  %v2097_v23 = vmul.f32 %v8765_v55, %v13668_v3 }
 0x217   :  { %v1884_v46 = vadd.f32 %v1852_v1, %v1802_v8  ;;  %2038 = vadd.xlane.f32.xlu0 %v2037_v48  ;;  %v1965_v35 = vadd.f32 %v1933_v0, %v1883_v32  ;;  %v2178_v11 = vmul.f32 %v8771_v20, %v13669_v30  ;;  %v2179_v6 = vmul.f32 %v8774_v37, %v13669_v30  ;;  %v13708_v8 = vld [vmem:[#allocation382_spill] sm:$0xff] }
 0x218   :  { %v2128_v27 = vadd.f32 %v2096_v10, %v7998_v54  ;;  %v2355_v15 = vadd.f32 %v2321_v26, %v2320_v61  ;;  %v2129_v9 = vadd.f32 %v2097_v23, %v7998_v54  ;;  %v2260_v31 = vmul.f32 %v8780_v17, %v13670_v51  ;;  %v13709_v32 = vld [vmem:[#allocation278_spill] sm:$0xff] }
 0x219   :  { %v1966_v28 = vadd.f32 %v1934_v4, %v1884_v46  ;;  %v1997_v7 = vmax.f32 %v1965_v35, 0.0  ;;  %v2261_v42 = vmul.f32 %v8791_v57, %v13670_v51  ;;  %v2086_v19 = vmul.f32 %v8760_v59, %v13671_v5 }
 0x21a   :  { %v2210_v58 = vadd.f32 %v2178_v11, %v2128_v27  ;;  %2356 = vadd.xlane.f32.xlu1 %v2355_v15  ;;  %v2211_v40 = vadd.f32 %v2179_v6, %v2129_v9  ;;  %v2087_v1 = vmul.f32 %v8765_v55, %v13671_v5  ;;  %v2168_v12 = vmul.f32 %v8771_v20, %v13672_v33  ;;  %v13710_v27 = vld [vmem:[#allocation47_spill] sm:$0xff] }
 0x21b   :  { %v1998_v13 = vmax.f32 %v1966_v28, 0.0  ;;  %v2118_v0 = vadd.f32 %v2086_v19, %v13708_v8  ;;  %v2169_v48 = vmul.f32 %v8774_v37, %v13672_v33  ;;  %v2250_v4 = vmul.f32 %v8780_v17, %v13709_v32 }
 0x21c   :  { %v2292_v25 = vadd.f32 %v2260_v31, %v2210_v58  ;;  %v2293_v61 = vadd.f32 %v2261_v42, %v2211_v40  ;;  %v2119_v26 = vadd.f32 %v2087_v1, %v13708_v8  ;;  %v2251_v46 = vmul.f32 %v8791_v57, %v13709_v32  ;;  %v13711_v58 = vld [vmem:[#allocation389_spill] sm:$0xff] }
 0x21d   :  { %v2043_v10 = vadd.f32 %v1998_v13, %v1997_v7  ;;  %v2200_v35 = vadd.f32 %v2168_v12, %v2118_v0  ;;  %v2100_v11 = vmul.f32 %v8760_v59, %v13710_v27  ;;  %v2101_v6 = vmul.f32 %v8765_v55, %v13710_v27  ;;  %v13712_v13 = vld [vmem:[#allocation338_spill] sm:$0xff]  ;;  %v13713_v0 = vld [vmem:[#allocation11_spill] sm:$0xff] }
 0x21e   :  { %v2324_v23 = vmax.f32 %v2292_v25, 0.0  ;;  %v2325_v15 = vmax.f32 %v2293_v61, 0.0  ;;  %v2201_v28 = vadd.f32 %v2169_v48, %v2119_v26  ;;  %v2182_v9 = vmul.f32 %v8771_v20, %v13675_v2 }
 0x21f   :  { %2044 = vadd.xlane.f32.xlu0 %v2043_v10  ;;  %v2183_v31 = vmul.f32 %v8774_v37, %v13675_v2  ;;  %v2282_v7 = vadd.f32 %v2250_v4, %v2200_v35  ;;  %v2132_v42 = vadd.f32 %v2100_v11, %v13711_v58  ;;  %v2133_v19 = vadd.f32 %v2101_v6, %v13711_v58 }
 0x220   :  { %v2264_v40 = vmul.f32 %v8780_v17, %v13712_v13  ;;  %v2361_v1 = vadd.f32 %v2325_v15, %v2324_v23  ;;  %v2283_v12 = vadd.f32 %v2251_v46, %v2201_v28  ;;  %v2265_v25 = vmul.f32 %v8791_v57, %v13712_v13 }
 0x221   :  { %v2090_v48 = vmul.f32 %v8760_v59, %v13713_v0  ;;  %v2314_v10 = vmax.f32 %v2282_v7, 0.0  ;;  %v2214_v61 = vadd.f32 %v2182_v9, %v2132_v42  ;;  %v2215_v26 = vadd.f32 %v2183_v31, %v2133_v19 }
 0x222   :  { %v2091_v4 = vmul.f32 %v8765_v55, %v13713_v0  ;;  %2362 = vadd.xlane.f32.xlu1 %v2361_v1  ;;  %v2315_v35 = vmax.f32 %v2283_v12, 0.0  ;;  %v2172_v23 = vmul.f32 %v8771_v20, %v13678_v60  ;;  %v2173_v28 = vmul.f32 %v8774_v37, %v13678_v60 }
 0x223   :  { %v2122_v11 = vadd.f32 %v2090_v48, %v8039_v47  ;;  %v2296_v46 = vadd.f32 %v2264_v40, %v2214_v61  ;;  %v2297_v6 = vadd.f32 %v2265_v25, %v2215_v26  ;;  %v2254_v31 = vmul.f32 %v8780_v17, %v13679_v62  ;;  %v13714_v48 = vld [vmem:[#allocation63_spill] sm:$0xff] }
 0x224   :  { %v2123_v15 = vadd.f32 %v2091_v4, %v8039_v47  ;;  %v2346_v7 = vadd.f32 %v2315_v35, %v2314_v10  ;;  %v2255_v42 = vmul.f32 %v8791_v57, %v13679_v62  ;;  %v2104_v40 = vmul.f32 %v8760_v59, %v13714_v48  ;;  %v13715_v4 = vld [vmem:[#allocation145_spill] sm:$0xff]  ;;  %v13721_v62 = vld [vmem:[#allocation155_spill] sm:$0xff] }
 0x225   :  { %v2204_v9 = vadd.f32 %v2172_v23, %v2122_v11  ;;  %v2328_v19 = vmax.f32 %v2296_v46, 0.0  ;;  %v2329_v1 = vmax.f32 %v2297_v6, 0.0  ;;  %v2105_v61 = vmul.f32 %v8765_v55, %v13714_v48  ;;  %v13716_v11 = vld [vmem:[#allocation64_spill] sm:$0xff] }
 0x226   :  { %v2205_v12 = vadd.f32 %v2173_v28, %v2123_v15  ;;  %2347 = vadd.xlane.f32.xlu0 %v2346_v7  ;;  %v2136_v35 = vadd.f32 %v2104_v40, %v13715_v4  ;;  %v2186_v23 = vmul.f32 %v8771_v20, %v13716_v11  ;;  %v2187_v6 = vmul.f32 %v8774_v37, %v13716_v11  ;;  %v13717_v15 = vld [vmem:[#allocation287_spill] sm:$0xff]  ;;  %v13719_v40 = vld [vmem:[#allocation148_spill] sm:$0xff] }
 0x227   :  { %v2286_v25 = vadd.f32 %v2254_v31, %v2204_v9  ;;  %v2367_v26 = vadd.f32 %v2329_v1, %v2328_v19  ;;  %v2137_v46 = vadd.f32 %v2105_v61, %v13715_v4  ;;  %v2094_v28 = vmul.f32 %v8760_v59, %v13717_v15  ;;  %v13718_v31 = vld [vmem:[#allocation354_spill] sm:$0xff]  ;;  %v13720_v61 = vld [vmem:[#allocation172_spill] sm:$0xff] }
 0x228   :  { %v2287_v10 = vadd.f32 %v2255_v42, %v2205_v12  ;;  %v2218_v9 = vadd.f32 %v2186_v23, %v2136_v35  ;;  %v2268_v42 = vmul.f32 %v8780_v17, %v13718_v31  ;;  %v2095_v19 = vmul.f32 %v8765_v55, %v13717_v15 }
 0x229   :  { %v2318_v47 = vmax.f32 %v2286_v25, 0.0  ;;  %2368 = vadd.xlane.f32.xlu1 %v2367_v26  ;;  %v2219_v1 = vadd.f32 %v2187_v6, %v2137_v46  ;;  %v2269_v12 = vmul.f32 %v8791_v57, %v13718_v31  ;;  %v2126_v25 = vadd.f32 %v2094_v28, %v13719_v40  ;;  %v13722_v6 = vld [vmem:[#allocation81_spill] sm:$0xff] }
 0x22a   :  { %v2319_v7 = vmax.f32 %v2287_v10, 0.0  ;;  %v2176_v11 = vmul.f32 %v8771_v20, %v13720_v61  ;;  %v2300_v48 = vadd.f32 %v2268_v42, %v2218_v9  ;;  %v2127_v26 = vadd.f32 %v2095_v19, %v13719_v40 }
 0x22b   :  { %v2177_v10 = vmul.f32 %v8774_v37, %v13720_v61  ;;  %v2301_v35 = vadd.f32 %v2269_v12, %v2219_v1  ;;  %v2258_v46 = vmul.f32 %v8780_v17, %v13721_v62  ;;  %v2108_v15 = vmul.f32 %v8760_v59, %v13722_v6 }
 0x22c   :  { %v2352_v4 = vadd.f32 %v2319_v7, %v2318_v47  ;;  %v2208_v23 = vadd.f32 %v2176_v11, %v2126_v25  ;;  %v2332_v28 = vmax.f32 %v2300_v48, 0.0  ;;  %v2259_v47 = vmul.f32 %v8791_v57, %v13721_v62  ;;  %v13723_v11 = vld [vmem:[#allocation82_spill] sm:$0xff] }
 0x22d   :  { %v2209_v31 = vadd.f32 %v2177_v10, %v2127_v26  ;;  %v2109_v7 = vmul.f32 %v8765_v55, %v13722_v6  ;;  %v2333_v9 = vmax.f32 %v2301_v35, 0.0  ;;  %v2140_v19 = vadd.f32 %v2108_v15, %v8070_v39  ;;  %v13725_v6 = vld [vmem:[#allocation305_spill] sm:$0xff] }
 0x22e   :  { %2353 = vadd.xlane.f32.xlu0 %v2352_v4  ;;  %v2290_v42 = vadd.f32 %v2258_v46, %v2208_v23  ;;  %v2190_v1 = vmul.f32 %v8771_v20, %v13723_v11  ;;  %v2191_v48 = vmul.f32 %v8774_v37, %v13723_v11  ;;  %v13724_v4 = vld [vmem:[#allocation371_spill] sm:$0xff]  ;;  %v2098_v35 = vmul.f32 %v8760_v59, %v13725_v6 }
 0x22f   :  { %v2291_v12 = vadd.f32 %v2259_v47, %v2209_v31  ;;  %v2141_v25 = vadd.f32 %v2109_v7, %v8070_v39  ;;  %v2272_v26 = vmul.f32 %v8780_v17, %v13724_v4  ;;  %v2373_v10 = vadd.f32 %v2333_v9, %v2332_v28 }
 0x230   :  { %v2322_v62 = vmax.f32 %v2290_v42, 0.0  ;;  %v2222_v61 = vadd.f32 %v2190_v1, %v2140_v19  ;;  %v2273_v46 = vmul.f32 %v8791_v57, %v13724_v4  ;;  %v2099_v31 = vmul.f32 %v8765_v55, %v13725_v6 }
 0x231   :  { %v2323_v23 = vmax.f32 %v2291_v12, 0.0  ;;  %v2223_v15 = vadd.f32 %v2191_v48, %v2141_v25  ;;  %2374 = vadd.xlane.f32.xlu1 %v2373_v10  ;;  %v2130_v7 = vadd.f32 %v2098_v35, %v8077_v63  ;;  %v2180_v28 = vmul.f32 %v8771_v20, %v13690_v22  ;;  %v13726_v35 = vld [vmem:[#allocation99_spill] sm:$0xff] }
 0x232   :  { %v2304_v47 = vadd.f32 %v2272_v26, %v2222_v61  ;;  %v2131_v19 = vadd.f32 %v2099_v31, %v8077_v63  ;;  %v2181_v1 = vmul.f32 %v8774_v37, %v13690_v22  ;;  %v2262_v48 = vmul.f32 %v8780_v17, %v13691_v24  ;;  %v13728_v22 = vld [vmem:[#allocation52_spill] sm:$0xff]  ;;  %v13730_v63 = vld [vmem:[#allocation321_spill] sm:$0xff] }
 0x233   :  { %v2358_v9 = vadd.f32 %v2323_v23, %v2322_v62  ;;  %v2305_v42 = vadd.f32 %v2273_v46, %v2223_v15  ;;  %v2212_v25 = vadd.f32 %v2180_v28, %v2130_v7  ;;  %v2263_v61 = vmul.f32 %v8791_v57, %v13691_v24  ;;  %v13727_v46 = vld [vmem:[#allocation100_spill] sm:$0xff] }
 0x234   :  { %v2336_v12 = vmax.f32 %v2304_v47, 0.0  ;;  %v2213_v10 = vadd.f32 %v2181_v1, %v2131_v19  ;;  %v2112_v62 = vmul.f32 %v8760_v59, %v13726_v35  ;;  %v2113_v23 = vmul.f32 %v8765_v55, %v13726_v35  ;;  %v13729_v19 = vld [vmem:[#allocation381_spill] sm:$0xff] }
 0x235   :  { %2359 = vadd.xlane.f32.xlu0 %v2358_v9  ;;  %v2337_v26 = vmax.f32 %v2305_v42, 0.0  ;;  %v2294_v15 = vadd.f32 %v2262_v48, %v2212_v25  ;;  %v2194_v31 = vmul.f32 %v8771_v20, %v13727_v46  ;;  %v2195_v47 = vmul.f32 %v8774_v37, %v13727_v46 }
 0x236   :  { %v2295_v28 = vadd.f32 %v2263_v61, %v2213_v10  ;;  %v2144_v24 = vadd.f32 %v2112_v62, %v13728_v22  ;;  %v2145_v9 = vadd.f32 %v2113_v23, %v13728_v22  ;;  %v2276_v1 = vmul.f32 %v8780_v17, %v13729_v19  ;;  %v13731_v61 = vld [vmem:[#allocation327_spill] sm:$0xff]  ;;  %v13732_v62 = vld [vmem:[#allocation208_spill] sm:$0xff] }
 0x237   :  { %v2379_v7 = vadd.f32 %v2337_v26, %v2336_v12  ;;  %v2326_v42 = vmax.f32 %v2294_v15, 0.0  ;;  %v2102_v35 = vmul.f32 %v8760_v59, %v13730_v63  ;;  %v2103_v25 = vmul.f32 %v8765_v55, %v13730_v63 }
 0x238   :  { %v2327_v48 = vmax.f32 %v2295_v28, 0.0  ;;  %v2226_v6 = vadd.f32 %v2194_v31, %v2144_v24  ;;  %v2227_v46 = vadd.f32 %v2195_v47, %v2145_v9  ;;  %v2277_v12 = vmul.f32 %v8791_v57, %v13729_v19  ;;  %v13733_v24 = vld [vmem:[#allocation191_spill] sm:$0xff] }
 0x239   :  { %2380 = vadd.xlane.f32.xlu1 %v2379_v7  ;;  %v2134_v26 = vadd.f32 %v2102_v35, %v13731_v61  ;;  %v2135_v10 = vadd.f32 %v2103_v25, %v13731_v61  ;;  %v2184_v23 = vmul.f32 %v8771_v20, %v13732_v62  ;;  %v2185_v15 = vmul.f32 %v8774_v37, %v13732_v62  ;;  %v13734_v25 = vld [vmem:[#allocation117_spill] sm:$0xff] }
 0x23a   :  { %v2364_v22 = vadd.f32 %v2327_v48, %v2326_v42  ;;  %v2308_v4 = vadd.f32 %v2276_v1, %v2226_v6  ;;  %v2309_v63 = vadd.f32 %v2277_v12, %v2227_v46  ;;  %v2266_v31 = vmul.f32 %v8780_v17, %v13733_v24  ;;  %v13735_v46 = vld [vmem:[#allocation118_spill] sm:$0xff] }
 0x23b   :  { %v2216_v7 = vadd.f32 %v2184_v23, %v2134_v26  ;;  %v2217_v28 = vadd.f32 %v2185_v15, %v2135_v10  ;;  %v2267_v47 = vmul.f32 %v8791_v57, %v13733_v24  ;;  %v2116_v61 = vmul.f32 %v8760_v59, %v13734_v25  ;;  %v13736_v12 = vld [vmem:[#allocation146_spill] sm:$0xff]  ;;  %v13737_v23 = vld [vmem:[#allocation387_spill] sm:$0xff] }
 0x23c   :  { %2365 = vadd.xlane.f32.xlu0 %v2364_v22  ;;  %v2340_v35 = vmax.f32 %v2308_v4, 0.0  ;;  %v2341_v9 = vmax.f32 %v2309_v63, 0.0  ;;  %v2117_v62 = vmul.f32 %v8765_v55, %v13734_v25  ;;  %v2198_v1 = vmul.f32 %v8771_v20, %v13735_v46  ;;  %v13738_v24 = vld [vmem:[#allocation339_spill] sm:$0xff] }
 0x23d   :  { %v2298_v42 = vadd.f32 %v2266_v31, %v2216_v7  ;;  %v2299_v6 = vadd.f32 %v2267_v47, %v2217_v28  ;;  %v2148_v26 = vadd.f32 %v2116_v61, %v13736_v12  ;;  %v2199_v22 = vmul.f32 %v8774_v37, %v13735_v46 }
 0x23e   :  { %v2385_v48 = vadd.f32 %v2341_v9, %v2340_v35  ;;  %v2149_v10 = vadd.f32 %v2117_v62, %v13736_v12  ;;  %v2280_v15 = vmul.f32 %v8780_v17, %v13737_v23  ;;  %v2106_v7 = vmul.f32 %v8760_v59, %v13738_v24  ;;  %v6046_v62 = vld [vmem:[%s12439_s0 + $0x30] sm:$0x77] }
 0x23f   :  { %v2330_v63 = vmax.f32 %v2298_v42, 0.0  ;;  %v2331_v4 = vmax.f32 %v2299_v6, 0.0  ;;  %v2230_v28 = vadd.f32 %v2198_v1, %v2148_v26  ;;  %v2281_v47 = vmul.f32 %v8791_v57, %v13737_v23 }
 0x240   :  { %2386 = vadd.xlane.f32.xlu1 %v2385_v48  ;;  %v2231_v31 = vadd.f32 %v2199_v22, %v2149_v10  ;;  %v2107_v61 = vmul.f32 %v8765_v55, %v13738_v24  ;;  %v2138_v9 = vadd.f32 %v2106_v7, %v8113_v18  ;;  %v2188_v42 = vmul.f32 %v8771_v20, %v13700_v49 }
 0x241   :  { %v2370_v35 = vadd.f32 %v2331_v4, %v2330_v63  ;;  %v2312_v6 = vadd.f32 %v2280_v15, %v2230_v28  ;;  %v2189_v26 = vmul.f32 %v8774_v37, %v13700_v49  ;;  %v2270_v22 = vmul.f32 %v8780_v17, %v13701_v21 }
 0x242   :  { %v2313_v48 = vadd.f32 %v2281_v47, %v2231_v31  ;;  %v2139_v1 = vadd.f32 %v2107_v61, %v8113_v18  ;;  %v2220_v10 = vadd.f32 %v2188_v42, %v2138_v9  ;;  %v2271_v63 = vmul.f32 %v8791_v57, %v13701_v21 }
 0x243   :  { %2371 = vadd.xlane.f32.xlu0 %v2370_v35  ;;  %v2416_v4 = vrot.slane %v6046_v62, %v13702_v34  ;;  %v2344_v7 = vmax.f32 %v2312_v6, 0.0  ;;  %v2420_v15 = vrot.slane %v6046_v62, %v13703_v36  ;;  %v2498_v47 = vrot.slane %v6046_v62, %v13704_v16 }
 0x244   :  { %v2345_v24 = vmax.f32 %v2313_v48, 0.0  ;;  %v2221_v23 = vadd.f32 %v2189_v26, %v2139_v1  ;;  %v2302_v28 = vadd.f32 %v2270_v22, %v2220_v10  ;;  %v2502_v61 = vrot.slane %v6046_v62, %v13705_v44  ;;  %v13739_v48 = vld [vmem:[#allocation279_spill] sm:$0xff] }
 0x245   :  { %v9011_v31 = vrot.slane %v2416_v4, %v13702_v34  ;;  %v9016_v42 = vrot.slane %v2420_v15, %v13702_v34  ;;  %v2580_v21 = vrot.slane %v6046_v62, %v13642_v45  ;;  %v9022_v26 = vrot.slane %v2498_v47, %v13704_v16  ;;  %v13745_v34 = vld [vmem:[#allocation244_spill] sm:$0xff] }
 0x246   :  { %v2391_v35 = vadd.f32 %v2345_v24, %v2344_v7  ;;  %v2303_v9 = vadd.f32 %v2271_v63, %v2221_v23  ;;  %v2334_v6 = vmax.f32 %v2302_v28, 0.0  ;;  %v9025_v10 = vrot.slane %v2502_v61, %v13704_v16  ;;  %v13740_v23 = vld [vmem:[#allocation10_spill] sm:$0xff]  ;;  %v13741_v7 = vld [vmem:[#allocation388_spill] sm:$0xff]  ;;  %v13743_v61 = vld [vmem:[#allocation355_spill] sm:$0xff] }
 0x247   :  { %v2433_v1 = vmul.f32 %v9011_v31, %v13739_v48  ;;  %v2434_v24 = vmul.f32 %v9016_v42, %v13739_v48  ;;  %v2584_v63 = vrot.slane %v6046_v62, %v13740_v23  ;;  %v9031_v4 = vrot.slane %v2580_v21, %v13642_v45  ;;  %v13742_v28 = vld [vmem:[#allocation140_spill] sm:$0xff]  ;;  %v13744_v62 = vld [vmem:[#allocation141_spill] sm:$0xff] }
 0x248   :  { %2392 = vadd.xlane.f32.xlu1 %v2391_v35  ;;  %v2335_v22 = vmax.f32 %v2303_v9, 0.0  ;;  %v2515_v44 = vmul.f32 %v9022_v26, %v13742_v28  ;;  %v2516_v47 = vmul.f32 %v9025_v10, %v13742_v28  ;;  %v2110_v35 = vmul.f32 %v8760_v59, %v13743_v61 }
 0x249   :  { %v2465_v15 = vadd.f32 %v2433_v1, %v13741_v7  ;;  %v2466_v16 = vadd.f32 %v2434_v24, %v13741_v7  ;;  %v9042_v48 = vrot.slane %v2584_v63, %v13642_v45  ;;  %v2597_v21 = vmul.f32 %v9031_v4, %v13744_v62  ;;  %v13746_v7 = vld [vmem:[#allocation23_spill] sm:$0xff] }
 0x24a   :  { %v2376_v9 = vadd.f32 %v2335_v22, %v2334_v6  ;;  %v2111_v1 = vmul.f32 %v8765_v55, %v13743_v61  ;;  %v2142_v36 = vadd.f32 %v2110_v35, %v8131_v56  ;;  %v2192_v28 = vmul.f32 %v8771_v20, %v13745_v34 }
 0x24b   :  { %v2547_v23 = vadd.f32 %v2515_v44, %v2465_v15  ;;  %v2548_v49 = vadd.f32 %v2516_v47, %v2466_v16  ;;  %v2598_v6 = vmul.f32 %v9042_v48, %v13744_v62  ;;  %v2193_v22 = vmul.f32 %v8774_v37, %v13745_v34 }
 0x24c   :  { %2377 = vadd.xlane.f32.xlu0 %v2376_v9  ;;  %v2143_v63 = vadd.f32 %v2111_v1, %v8131_v56  ;;  %v2224_v44 = vadd.f32 %v2192_v28, %v2142_v36  ;;  %v2274_v15 = vmul.f32 %v8780_v17, %v13657_v52  ;;  %v2275_v35 = vmul.f32 %v8791_v57, %v13657_v52 }
 0x24d   :  { %v2629_v24 = vadd.f32 %v2597_v21, %v2547_v23  ;;  %v2630_v61 = vadd.f32 %v2598_v6, %v2548_v49  ;;  %v2437_v16 = vmul.f32 %v9011_v31, %v13746_v7  ;;  %v2438_v34 = vmul.f32 %v9016_v42, %v13746_v7 }
 0x24e   :  { %v2225_v9 = vadd.f32 %v2193_v22, %v2143_v63  ;;  %v2306_v62 = vadd.f32 %v2274_v15, %v2224_v44  ;;  %v2519_v36 = vmul.f32 %v9022_v26, %v13661_v50  ;;  %v2520_v6 = vmul.f32 %v9025_v10, %v13661_v50 }
 0x24f   :  { %v2661_v47 = vmax.f32 %v2629_v24, 0.0  ;;  %v2662_v23 = vmax.f32 %v2630_v61, 0.0  ;;  %v2469_v21 = vadd.f32 %v2437_v16, %v7966_v41  ;;  %v2470_v1 = vadd.f32 %v2438_v34, %v7966_v41 }
 0x250   :  { %v2307_v28 = vadd.f32 %v2275_v35, %v2225_v9  ;;  %v2338_v49 = vmax.f32 %v2306_v62, 0.0  ;;  %v2601_v22 = vmul.f32 %v9031_v4, %v13664_v14  ;;  %v2114_v61 = vmul.f32 %v8760_v59, %v13665_v29 }
 0x251   :  { %v2694_v52 = vadd.f32 %v2662_v23, %v2661_v47  ;;  %v2551_v24 = vadd.f32 %v2519_v36, %v2469_v21  ;;  %v2552_v44 = vadd.f32 %v2520_v6, %v2470_v1  ;;  %v2602_v15 = vmul.f32 %v9042_v48, %v13664_v14 }
 0x252   :  { %v2339_v63 = vmax.f32 %v2307_v28, 0.0  ;;  %v2115_v62 = vmul.f32 %v8765_v55, %v13665_v29  ;;  %v2146_v35 = vadd.f32 %v2114_v61, %v8146_v43  ;;  %v2196_v16 = vmul.f32 %v8771_v20, %v13666_v53 }
 0x253   :  { %2695 = vadd.xlane.f32.xlu1 %v2694_v52  ;;  %v2633_v34 = vadd.f32 %v2601_v22, %v2551_v24  ;;  %v2634_v9 = vadd.f32 %v2602_v15, %v2552_v44  ;;  %v2197_v59 = vmul.f32 %v8774_v37, %v13666_v53  ;;  %v2278_v28 = vmul.f32 %v8780_v17, %v13667_v38 }
 0x254   :  { %v2382_v47 = vadd.f32 %v2339_v63, %v2338_v49  ;;  %v2147_v23 = vadd.f32 %v2115_v62, %v8146_v43  ;;  %v2228_v36 = vadd.f32 %v2196_v16, %v2146_v35  ;;  %v2279_v52 = vmul.f32 %v8791_v57, %v13667_v38 }
 0x255   :  { %v2665_v21 = vmax.f32 %v2633_v34, 0.0  ;;  %v2666_v55 = vmax.f32 %v2634_v9, 0.0  ;;  %v2441_v20 = vmul.f32 %v9011_v31, %v13668_v3  ;;  %v2442_v49 = vmul.f32 %v9016_v42, %v13668_v3  ;;  %v9104_v34 = vpop.xlane.xlu1 %622 }
 0x256   :  { %2383 = vadd.xlane.f32.xlu0 %v2382_v47  ;;  %v2229_v1 = vadd.f32 %v2197_v59, %v2147_v23  ;;  %v2310_v6 = vadd.f32 %v2278_v28, %v2228_v36  ;;  %v2523_v37 = vmul.f32 %v9022_v26, %v13669_v30  ;;  %v2524_v24 = vmul.f32 %v9025_v10, %v13669_v30 }
 0x257   :  { %v2700_v17 = vadd.f32 %v2666_v55, %v2665_v21  ;;  %v2473_v57 = vadd.f32 %v2441_v20, %v7998_v54  ;;  %v2474_v61 = vadd.f32 %v2442_v49, %v7998_v54  ;;  %v2605_v44 = vmul.f32 %v9031_v4, %v13670_v51  ;;  %13747 = vst [vmem:[#allocation56_spill] sm:$0xff] %v9104_v34 }
 0x258   :  { %v2311_v22 = vadd.f32 %v2279_v52, %v2229_v1  ;;  %v2342_v63 = vmax.f32 %v2310_v6, 0.0  ;;  %v2606_v15 = vmul.f32 %v9042_v48, %v13670_v51  ;;  %v2431_v62 = vmul.f32 %v9011_v31, %v13671_v5 }
 0x259   :  { %2701 = vadd.xlane.f32.xlu1 %v2700_v17  ;;  %v2555_v16 = vadd.f32 %v2523_v37, %v2473_v57  ;;  %v2556_v47 = vadd.f32 %v2524_v24, %v2474_v61  ;;  %v2432_v9 = vmul.f32 %v9016_v42, %v13671_v5  ;;  %v2513_v59 = vmul.f32 %v9022_v26, %v13672_v33 }
 0x25a   :  { %v2343_v35 = vmax.f32 %v2311_v22, 0.0  ;;  %v2463_v23 = vadd.f32 %v2431_v62, %v13708_v8  ;;  %v2514_v21 = vmul.f32 %v9025_v10, %v13672_v33  ;;  %v2595_v20 = vmul.f32 %v9031_v4, %v13709_v32 }
 0x25b   :  { %v2637_v28 = vadd.f32 %v2605_v44, %v2555_v16  ;;  %v2638_v52 = vadd.f32 %v2606_v15, %v2556_v47  ;;  %v2464_v55 = vadd.f32 %v2432_v9, %v13708_v8  ;;  %v2596_v49 = vmul.f32 %v9042_v48, %v13709_v32 }
 0x25c   :  { %v2388_v36 = vadd.f32 %v2343_v35, %v2342_v63  ;;  %v2545_v1 = vadd.f32 %v2513_v59, %v2463_v23  ;;  %v2445_v6 = vmul.f32 %v9011_v31, %v13710_v27  ;;  %v2446_v22 = vmul.f32 %v9016_v42, %v13710_v27  ;;  %v9132_v59 = vpop.xlane.xlu1 %631 }
 0x25d   :  { %v2669_v37 = vmax.f32 %v2637_v28, 0.0  ;;  %v2670_v24 = vmax.f32 %v2638_v52, 0.0  ;;  %v2546_v17 = vadd.f32 %v2514_v21, %v2464_v55  ;;  %v2527_v63 = vmul.f32 %v9022_v26, %v13675_v2  ;;  %13748 = vst [vmem:[#allocation18_spill] sm:$0xff] %v9132_v59 }
 0x25e   :  { %2389 = vadd.xlane.f32.xlu0 %v2388_v36  ;;  %v2627_v57 = vadd.f32 %v2595_v20, %v2545_v1  ;;  %v2477_v61 = vadd.f32 %v2445_v6, %v13711_v58  ;;  %v2478_v62 = vadd.f32 %v2446_v22, %v13711_v58  ;;  %v2528_v35 = vmul.f32 %v9025_v10, %v13675_v2 }
 0x25f   :  { %v2706_v44 = vadd.f32 %v2670_v24, %v2669_v37  ;;  %v2628_v15 = vadd.f32 %v2596_v49, %v2546_v17  ;;  %v2609_v9 = vmul.f32 %v9031_v4, %v13712_v13  ;;  %v2610_v23 = vmul.f32 %v9042_v48, %v13712_v13  ;;  %v13749_v37 = vld [vmem:[#allocation144_spill] sm:$0xff] }
 0x260   :  { %v2659_v16 = vmax.f32 %v2627_v57, 0.0  ;;  %v2559_v47 = vadd.f32 %v2527_v63, %v2477_v61  ;;  %v2560_v36 = vadd.f32 %v2528_v35, %v2478_v62  ;;  %v2435_v28 = vmul.f32 %v9011_v31, %v13713_v0  ;;  %v13750_v57 = vld [vmem:[#allocation286_spill] sm:$0xff] }
 0x261   :  { %2707 = vadd.xlane.f32.xlu1 %v2706_v44  ;;  %v2660_v21 = vmax.f32 %v2628_v15, 0.0  ;;  %v2436_v52 = vmul.f32 %v9016_v42, %v13713_v0  ;;  %v2517_v1 = vmul.f32 %v9022_v26, %v13678_v60  ;;  %v2518_v20 = vmul.f32 %v9025_v10, %v13678_v60  ;;  %v13751_v44 = vld [vmem:[#allocation63_spill] sm:$0xff] }
 0x262   :  { %v2641_v55 = vadd.f32 %v2609_v9, %v2559_v47  ;;  %v2642_v6 = vadd.f32 %v2610_v23, %v2560_v36  ;;  %v2467_v24 = vadd.f32 %v2435_v28, %v13749_v37  ;;  %v2599_v61 = vmul.f32 %v9031_v4, %v13750_v57  ;;  %v13752_v9 = vld [vmem:[#allocation145_spill] sm:$0xff] }
 0x263   :  { %v2691_v49 = vadd.f32 %v2660_v21, %v2659_v16  ;;  %v2468_v17 = vadd.f32 %v2436_v52, %v13749_v37  ;;  %v2600_v63 = vmul.f32 %v9042_v48, %v13750_v57  ;;  %v2449_v15 = vmul.f32 %v9011_v31, %v13751_v44  ;;  %v13753_v21 = vld [vmem:[#allocation64_spill] sm:$0xff] }
 0x264   :  { %v2673_v22 = vmax.f32 %v2641_v55, 0.0  ;;  %v2674_v62 = vmax.f32 %v2642_v6, 0.0  ;;  %v2549_v35 = vadd.f32 %v2517_v1, %v2467_v24  ;;  %v2450_v16 = vmul.f32 %v9016_v42, %v13751_v44  ;;  %v13754_v6 = vld [vmem:[#allocation354_spill] sm:$0xff]  ;;  %v13755_v24 = vld [vmem:[#allocation287_spill] sm:$0xff] }
 0x265   :  { %2692 = vadd.xlane.f32.xlu0 %v2691_v49  ;;  %v2550_v47 = vadd.f32 %v2518_v20, %v2468_v17  ;;  %v2481_v23 = vadd.f32 %v2449_v15, %v13752_v9  ;;  %v2531_v36 = vmul.f32 %v9022_v26, %v13753_v21  ;;  %v2532_v28 = vmul.f32 %v9025_v10, %v13753_v21  ;;  %v9164_v15 = vpop.xlane.xlu1 %637 }
 0x266   :  { %v2712_v52 = vadd.f32 %v2674_v62, %v2673_v22  ;;  %v2631_v55 = vadd.f32 %v2599_v61, %v2549_v35  ;;  %v2482_v34 = vadd.f32 %v2450_v16, %v13752_v9  ;;  %v2613_v1 = vmul.f32 %v9031_v4, %v13754_v6  ;;  %13756 = vst [vmem:[#allocation160_spill] sm:$0xff] %v9164_v15  ;;  %v13757_v35 = vld [vmem:[#allocation172_spill] sm:$0xff]  ;;  %v9171_v16 = vpop.xlane.xlu0 %625  ;;  %v13760_v15 = vld [vmem:[#allocation81_spill] sm:$0xff] }
 0x267   :  { %v2632_v59 = vadd.f32 %v2600_v63, %v2550_v47  ;;  %v2563_v49 = vadd.f32 %v2531_v36, %v2481_v23  ;;  %v2614_v20 = vmul.f32 %v9042_v48, %v13754_v6  ;;  %v2439_v17 = vmul.f32 %v9011_v31, %v13755_v24  ;;  %13758 = vst [vmem:[#allocation161_spill] sm:$0xff] %v9171_v16 }
 0x268   :  { %2713 = vadd.xlane.f32.xlu1 %v2712_v52  ;;  %v2663_v44 = vmax.f32 %v2631_v55, 0.0  ;;  %v2564_v22 = vadd.f32 %v2532_v28, %v2482_v34  ;;  %v2440_v61 = vmul.f32 %v9016_v42, %v13755_v24  ;;  %v2521_v47 = vmul.f32 %v9022_v26, %v13757_v35  ;;  %v13759_v28 = vld [vmem:[#allocation155_spill] sm:$0xff] }
 0x269   :  { %v2664_v21 = vmax.f32 %v2632_v59, 0.0  ;;  %v2645_v63 = vadd.f32 %v2613_v1, %v2563_v49  ;;  %v2471_v62 = vadd.f32 %v2439_v17, %v13719_v40  ;;  %v2522_v52 = vmul.f32 %v9025_v10, %v13757_v35 }
 0x26a   :  { %v2646_v36 = vadd.f32 %v2614_v20, %v2564_v22  ;;  %v2472_v6 = vadd.f32 %v2440_v61, %v13719_v40  ;;  %v2603_v55 = vmul.f32 %v9031_v4, %v13759_v28  ;;  %v2604_v49 = vmul.f32 %v9042_v48, %v13759_v28  ;;  %v9198_v28 = vpop.xlane.xlu0 %628 }
 0x26b   :  { %v2697_v23 = vadd.f32 %v2664_v21, %v2663_v44  ;;  %v2677_v59 = vmax.f32 %v2645_v63, 0.0  ;;  %v2553_v34 = vadd.f32 %v2521_v47, %v2471_v62  ;;  %v2453_v44 = vmul.f32 %v9011_v31, %v13760_v15  ;;  %13764 = vst [vmem:[#allocation292_spill] sm:$0xff] %v9198_v28 }
 0x26c   :  { %v2678_v1 = vmax.f32 %v2646_v36, 0.0  ;;  %v2554_v17 = vadd.f32 %v2522_v52, %v2472_v6  ;;  %v2454_v21 = vmul.f32 %v9016_v42, %v13760_v15  ;;  %v2535_v22 = vmul.f32 %v9022_v26, %v13723_v11  ;;  %v13761_v36 = vld [vmem:[#allocation371_spill] sm:$0xff]  ;;  %v9196_v15 = vpop.xlane.xlu1 %643 }
 0x26d   :  { %2698 = vadd.xlane.f32.xlu0 %v2697_v23  ;;  %v2635_v20 = vadd.f32 %v2603_v55, %v2553_v34  ;;  %v2536_v61 = vmul.f32 %v9025_v10, %v13723_v11  ;;  %v2485_v47 = vadd.f32 %v2453_v44, %v8070_v39  ;;  %v2617_v52 = vmul.f32 %v9031_v4, %v13761_v36  ;;  %v13762_v34 = vld [vmem:[#allocation305_spill] sm:$0xff]  ;;  %v13765_v44 = vld [vmem:[#allocation51_spill] sm:$0xff] }
 0x26e   :  { %v2718_v63 = vadd.f32 %v2678_v1, %v2677_v59  ;;  %v2636_v62 = vadd.f32 %v2604_v49, %v2554_v17  ;;  %v2486_v23 = vadd.f32 %v2454_v21, %v8070_v39  ;;  %v2618_v16 = vmul.f32 %v9042_v48, %v13761_v36  ;;  %13763 = vst [vmem:[#allocation69_spill] sm:$0xff] %v9196_v15 }
 0x26f   :  { %v2667_v6 = vmax.f32 %v2635_v20, 0.0  ;;  %v2443_v55 = vmul.f32 %v9011_v31, %v13762_v34  ;;  %v2567_v49 = vadd.f32 %v2535_v22, %v2485_v47  ;;  %v2444_v17 = vmul.f32 %v9016_v42, %v13762_v34  ;;  %v13766_v20 = vld [vmem:[#allocation190_spill] sm:$0xff]  ;;  %v13768_v47 = vld [vmem:[#allocation99_spill] sm:$0xff] }
 0x270   :  { %2719 = vadd.xlane.f32.xlu1 %v2718_v63  ;;  %v2668_v59 = vmax.f32 %v2636_v62, 0.0  ;;  %v2568_v1 = vadd.f32 %v2536_v61, %v2486_v23  ;;  %v2525_v39 = vmul.f32 %v9022_v26, %v13766_v20  ;;  %v2526_v36 = vmul.f32 %v9025_v10, %v13766_v20  ;;  %v13767_v62 = vld [vmem:[#allocation173_spill] sm:$0xff] }
 0x271   :  { %v2475_v21 = vadd.f32 %v2443_v55, %v13765_v44  ;;  %v2649_v40 = vadd.f32 %v2617_v52, %v2567_v49  ;;  %v2476_v28 = vadd.f32 %v2444_v17, %v13765_v44  ;;  %v2607_v22 = vmul.f32 %v9031_v4, %v13767_v62  ;;  %v13769_v52 = vld [vmem:[#allocation52_spill] sm:$0xff] }
 0x272   :  { %v2703_v11 = vadd.f32 %v2668_v59, %v2667_v6  ;;  %v2650_v15 = vadd.f32 %v2618_v16, %v2568_v1  ;;  %v2608_v61 = vmul.f32 %v9042_v48, %v13767_v62  ;;  %v2457_v23 = vmul.f32 %v9011_v31, %v13768_v47  ;;  %v9219_v1 = vpop.xlane.xlu0 %634 }
 0x273   :  { %v2557_v63 = vadd.f32 %v2525_v39, %v2475_v21  ;;  %v2681_v55 = vmax.f32 %v2649_v40, 0.0  ;;  %v2558_v35 = vadd.f32 %v2526_v36, %v2476_v28  ;;  %v2458_v6 = vmul.f32 %v9016_v42, %v13768_v47  ;;  %v13770_v39 = vld [vmem:[#allocation100_spill] sm:$0xff]  ;;  %13771 = vst [vmem:[#allocation70_spill] sm:$0xff] %v9219_v1 }
 0x274   :  { %2704 = vadd.xlane.f32.xlu0 %v2703_v11  ;;  %v2682_v34 = vmax.f32 %v2650_v15, 0.0  ;;  %v2489_v59 = vadd.f32 %v2457_v23, %v13769_v52  ;;  %v2539_v49 = vmul.f32 %v9022_v26, %v13770_v39  ;;  %v2540_v40 = vmul.f32 %v9025_v10, %v13770_v39 }
 0x275   :  { %v2639_v16 = vadd.f32 %v2607_v22, %v2557_v63  ;;  %v2640_v21 = vadd.f32 %v2608_v61, %v2558_v35  ;;  %v2490_v62 = vadd.f32 %v2458_v6, %v13769_v52  ;;  %v2621_v28 = vmul.f32 %v9031_v4, %v13729_v19  ;;  %v9228_v63 = vpop.xlane.xlu1 %649  ;;  %v13774_v6 = vld [vmem:[#allocation208_spill] sm:$0xff] }
 0x276   :  { %v2724_v17 = vadd.f32 %v2682_v34, %v2681_v55  ;;  %v2571_v15 = vadd.f32 %v2539_v49, %v2489_v59  ;;  %v2622_v36 = vmul.f32 %v9042_v48, %v13729_v19  ;;  %13772 = vst [vmem:[#allocation293_spill] sm:$0xff] %v9228_v63  ;;  %v13773_v34 = vld [vmem:[#allocation321_spill] sm:$0xff]  ;;  %v2530_v59 = vmul.f32 %v9025_v10, %v13774_v6  ;;  %v13775_v19 = vld [vmem:[#allocation327_spill] sm:$0xff] }
 0x277   :  { %v2671_v11 = vmax.f32 %v2639_v16, 0.0  ;;  %v2672_v22 = vmax.f32 %v2640_v21, 0.0  ;;  %v2572_v23 = vadd.f32 %v2540_v40, %v2490_v62  ;;  %v2447_v35 = vmul.f32 %v9011_v31, %v13773_v34  ;;  %v13776_v21 = vld [vmem:[#allocation191_spill] sm:$0xff] }
 0x278   :  { %2725 = vadd.xlane.f32.xlu1 %v2724_v17  ;;  %v2448_v61 = vmul.f32 %v9016_v42, %v13773_v34  ;;  %v2653_v55 = vadd.f32 %v2621_v28, %v2571_v15  ;;  %v2529_v16 = vmul.f32 %v9022_v26, %v13774_v6  ;;  %v2611_v40 = vmul.f32 %v9031_v4, %v13776_v21  ;;  %v9246_v28 = vpop.xlane.xlu0 %640 }
 0x279   :  { %v2709_v49 = vadd.f32 %v2672_v22, %v2671_v11  ;;  %v2654_v1 = vadd.f32 %v2622_v36, %v2572_v23  ;;  %v2479_v63 = vadd.f32 %v2447_v35, %v13775_v19  ;;  %v2612_v34 = vmul.f32 %v9042_v48, %v13776_v21  ;;  %13777 = vst [vmem:[#allocation73_spill] sm:$0xff] %v9246_v28 }
 0x27a   :  { %v2480_v17 = vadd.f32 %v2448_v61, %v13775_v19  ;;  %v2685_v62 = vmax.f32 %v2653_v55, 0.0  ;;  %v2461_v15 = vmul.f32 %v9011_v31, %v13734_v25  ;;  %v2462_v22 = vmul.f32 %v9016_v42, %v13734_v25 }
 0x27b   :  { %2710 = vadd.xlane.f32.xlu0 %v2709_v49  ;;  %v2686_v6 = vmax.f32 %v2654_v1, 0.0  ;;  %v2561_v11 = vadd.f32 %v2529_v16, %v2479_v63  ;;  %v2543_v35 = vmul.f32 %v9022_v26, %v13735_v46  ;;  %v2544_v61 = vmul.f32 %v9025_v10, %v13735_v46  ;;  %v13778_v1 = vld [vmem:[#allocation387_spill] sm:$0xff] }
 0x27c   :  { %v2562_v36 = vadd.f32 %v2530_v59, %v2480_v17  ;;  %v2493_v23 = vadd.f32 %v2461_v15, %v13736_v12  ;;  %v2494_v28 = vadd.f32 %v2462_v22, %v13736_v12  ;;  %v2625_v63 = vmul.f32 %v9031_v4, %v13778_v1  ;;  %v13779_v59 = vld [vmem:[#allocation339_spill] sm:$0xff]  ;;  %v9262_v15 = vpop.xlane.xlu1 %655 }
 0x27d   :  { %v2730_v55 = vadd.f32 %v2686_v6, %v2685_v62  ;;  %v2643_v21 = vadd.f32 %v2611_v40, %v2561_v11  ;;  %v2626_v16 = vmul.f32 %v9042_v48, %v13778_v1  ;;  %v2451_v17 = vmul.f32 %v9011_v31, %v13779_v59  ;;  %13780 = vst [vmem:[#allocation74_spill] sm:$0xff] %v9262_v15  ;;  %v13781_v11 = vld [vmem:[#allocation226_spill] sm:$0xff]  ;;  %v6047_v22 = vld [vmem:[%s12439_s0 + $0x38] sm:$0x77]  ;;  %v13784_v1 = vld [vmem:[#allocation5_spill] sm:$0xff] }
 0x27e   :  { %v2644_v19 = vadd.f32 %v2612_v34, %v2562_v36  ;;  %v2575_v49 = vadd.f32 %v2543_v35, %v2493_v23  ;;  %v2576_v6 = vadd.f32 %v2544_v61, %v2494_v28  ;;  %v2452_v34 = vmul.f32 %v9016_v42, %v13779_v59  ;;  %v9272_v23 = vpop.xlane.xlu0 %646 }
 0x27f   :  { %2731 = vadd.xlane.f32.xlu1 %v2730_v55  ;;  %v2675_v25 = vmax.f32 %v2643_v21, 0.0  ;;  %v2483_v40 = vadd.f32 %v2451_v17, %v8113_v18  ;;  %v2533_v36 = vmul.f32 %v9022_v26, %v13781_v11  ;;  %13782 = vst [vmem:[#allocation294_spill] sm:$0xff] %v9272_v23  ;;  %v2534_v21 = vmul.f32 %v9025_v10, %v13781_v11 }
 0x280   :  { %v2676_v46 = vmax.f32 %v2644_v19, 0.0  ;;  %v2657_v62 = vadd.f32 %v2625_v63, %v2575_v49  ;;  %v2658_v55 = vadd.f32 %v2626_v16, %v2576_v6  ;;  %v2484_v19 = vadd.f32 %v2452_v34, %v8113_v18  ;;  %v13783_v49 = vld [vmem:[#allocation209_spill] sm:$0xff]  ;;  %v13786_v6 = vld [vmem:[#allocation7_spill] sm:$0xff]  ;;  %v13787_v18 = vld [vmem:[#allocation8_spill] sm:$0xff] }
 0x281   :  { %v2565_v61 = vadd.f32 %v2533_v36, %v2483_v40  ;;  %v2615_v63 = vmul.f32 %v9031_v4, %v13783_v49  ;;  %v2616_v17 = vmul.f32 %v9042_v48, %v13783_v49  ;;  %v2761_v23 = vrot.slane %v6047_v22, %v13784_v1 }
 0x282   :  { %v2715_v35 = vadd.f32 %v2676_v46, %v2675_v25  ;;  %v2689_v28 = vmax.f32 %v2657_v62, 0.0  ;;  %v2690_v15 = vmax.f32 %v2658_v55, 0.0  ;;  %v2566_v59 = vadd.f32 %v2534_v21, %v2484_v19  ;;  %v13785_v25 = vld [vmem:[#allocation6_spill] sm:$0xff] }
 0x283   :  { %v2765_v46 = vrot.slane %v6047_v22, %v13785_v25  ;;  %v2647_v16 = vadd.f32 %v2615_v63, %v2565_v61  ;;  %v2843_v34 = vrot.slane %v6047_v22, %v13786_v6  ;;  %v2847_v11 = vrot.slane %v6047_v22, %v13787_v18  ;;  %v13788_v61 = vld [vmem:[#allocation10_spill] sm:$0xff]  ;;  %v9299_v18 = vpop.xlane.xlu1 %661  ;;  %v9301_v25 = vpop.xlane.xlu0 %652 }
 0x284   :  { %2716 = vadd.xlane.f32.xlu0 %v2715_v35  ;;  %v2925_v62 = vrot.slane %v6047_v22, %v13642_v45  ;;  %v2736_v40 = vadd.f32 %v2690_v15, %v2689_v28  ;;  %v2648_v36 = vadd.f32 %v2616_v17, %v2566_v59  ;;  %v9287_v12 = vrot.slane %v2761_v23, %v13784_v1  ;;  %v13791_v15 = vld [vmem:[#allocation279_spill] sm:$0xff] }
 0x285   :  { %v9290_v35 = vrot.slane %v2765_v46, %v13784_v1  ;;  %v2679_v55 = vmax.f32 %v2647_v16, 0.0  ;;  %v9293_v19 = vrot.slane %v2843_v34, %v13786_v6  ;;  %v9296_v21 = vrot.slane %v2847_v11, %v13786_v6  ;;  %13789 = vst [vmem:[#allocation295_spill] sm:$0xff] %v9299_v18  ;;  %13790 = vst [vmem:[#allocation87_spill] sm:$0xff] %v9301_v25  ;;  %v13792_v46 = vld [vmem:[#allocation140_spill] sm:$0xff]  ;;  %v13794_v25 = vld [vmem:[#allocation141_spill] sm:$0xff] }
 0x286   :  { %v2929_v63 = vrot.slane %v6047_v22, %v13788_v61  ;;  %2737 = vadd.xlane.f32.xlu1 %v2736_v40  ;;  %v2680_v59 = vmax.f32 %v2648_v36, 0.0  ;;  %v2778_v23 = vmul.f32 %v9287_v12, %v13791_v15  ;;  %v9308_v17 = vrot.slane %v2925_v62, %v13642_v45  ;;  %v13793_v34 = vld [vmem:[#allocation388_spill] sm:$0xff]  ;;  %v13795_v61 = vld [vmem:[#allocation355_spill] sm:$0xff] }
 0x287   :  { %v2779_v28 = vmul.f32 %v9290_v35, %v13791_v15  ;;  %v2860_v11 = vmul.f32 %v9293_v19, %v13792_v46  ;;  %v2861_v36 = vmul.f32 %v9296_v21, %v13792_v46  ;;  %v2455_v6 = vmul.f32 %v9011_v31, %v13795_v61 }
 0x288   :  { %v9313_v22 = vrot.slane %v2929_v63, %v13642_v45  ;;  %v2721_v16 = vadd.f32 %v2680_v59, %v2679_v55  ;;  %v2810_v18 = vadd.f32 %v2778_v23, %v13793_v34  ;;  %v2942_v15 = vmul.f32 %v9308_v17, %v13794_v25  ;;  %v13796_v23 = vld [vmem:[#allocation244_spill] sm:$0xff] }
 0x289   :  { %v2811_v40 = vadd.f32 %v2779_v28, %v13793_v34  ;;  %v2456_v63 = vmul.f32 %v9016_v42, %v13795_v61  ;;  %v2537_v28 = vmul.f32 %v9022_v26, %v13796_v23  ;;  %v2538_v34 = vmul.f32 %v9025_v10, %v13796_v23  ;;  %v9337_v61 = vpop.xlane.xlu0 %658 }
 0x28a   :  { %v2943_v62 = vmul.f32 %v9313_v22, %v13794_v25  ;;  %2722 = vadd.xlane.f32.xlu0 %v2721_v16  ;;  %v2892_v55 = vadd.f32 %v2860_v11, %v2810_v18  ;;  %v2487_v46 = vadd.f32 %v2455_v6, %v8131_v56  ;;  %v13797_v25 = vld [vmem:[#allocation227_spill] sm:$0xff]  ;;  %13798 = vst [vmem:[#allocation360_spill] sm:$0xff] %v9337_v61 }
 0x28b   :  { %v2893_v59 = vadd.f32 %v2861_v36, %v2811_v40  ;;  %v2488_v45 = vadd.f32 %v2456_v63, %v8131_v56  ;;  %v2619_v1 = vmul.f32 %v9031_v4, %v13797_v25  ;;  %v2620_v49 = vmul.f32 %v9042_v48, %v13797_v25 }
 0x28c   :  { %v2974_v18 = vadd.f32 %v2942_v15, %v2892_v55  ;;  %v2782_v16 = vmul.f32 %v9287_v12, %v13746_v7  ;;  %v2783_v40 = vmul.f32 %v9290_v35, %v13746_v7  ;;  %v2569_v36 = vadd.f32 %v2537_v28, %v2487_v46 }
 0x28d   :  { %v2975_v11 = vadd.f32 %v2943_v62, %v2893_v59  ;;  %v2570_v6 = vadd.f32 %v2538_v34, %v2488_v45  ;;  %v2864_v63 = vmul.f32 %v9293_v19, %v13661_v50  ;;  %v2865_v56 = vmul.f32 %v9296_v21, %v13661_v50 }
 0x28e   :  { %v3006_v23 = vmax.f32 %v2974_v18, 0.0  ;;  %v2814_v61 = vadd.f32 %v2782_v16, %v7966_v41  ;;  %v2815_v15 = vadd.f32 %v2783_v40, %v7966_v41  ;;  %v2651_v62 = vadd.f32 %v2619_v1, %v2569_v36  ;;  %v9357_v16 = vpop.xlane.xlu1 %667  ;;  %v9359_v1 = vpop.xlane.xlu0 %664 }
 0x28f   :  { %v3007_v25 = vmax.f32 %v2975_v11, 0.0  ;;  %v2652_v55 = vadd.f32 %v2620_v49, %v2570_v6  ;;  %v2946_v59 = vmul.f32 %v9308_v17, %v13664_v14  ;;  %v2947_v34 = vmul.f32 %v9313_v22, %v13664_v14  ;;  %13799 = vst [vmem:[#allocation178_spill] sm:$0xff] %v9357_v16  ;;  %13800 = vst [vmem:[#allocation179_spill] sm:$0xff] %v9359_v1 }
 0x290   :  { %v2896_v46 = vadd.f32 %v2864_v63, %v2814_v61  ;;  %v2897_v45 = vadd.f32 %v2865_v56, %v2815_v15  ;;  %v2683_v28 = vmax.f32 %v2651_v62, 0.0  ;;  %v2459_v18 = vmul.f32 %v9011_v31, %v13665_v29 }
 0x291   :  { %v3039_v7 = vadd.f32 %v3007_v25, %v3006_v23  ;;  %v2684_v52 = vmax.f32 %v2652_v55, 0.0  ;;  %v2460_v11 = vmul.f32 %v9016_v42, %v13665_v29  ;;  %v2541_v56 = vmul.f32 %v9022_v26, %v13666_v53 }
 0x292   :  { %v2978_v49 = vadd.f32 %v2946_v59, %v2896_v46  ;;  %v2979_v25 = vadd.f32 %v2947_v34, %v2897_v45  ;;  %v2491_v23 = vadd.f32 %v2459_v18, %v8146_v43  ;;  %v2542_v31 = vmul.f32 %v9025_v10, %v13666_v53  ;;  %v9381_v45 = vpop.xlane.xlu1 %970  ;;  %v9383_v34 = vpop.xlane.xlu0 %967 }
 0x293   :  { %3040 = vadd.xlane.f32.xlu1 %v3039_v7  ;;  %v2727_v61 = vadd.f32 %v2684_v52, %v2683_v28  ;;  %v2492_v40 = vadd.f32 %v2460_v11, %v8146_v43  ;;  %v2623_v6 = vmul.f32 %v9031_v4, %v13667_v38  ;;  %v2624_v7 = vmul.f32 %v9042_v48, %v13667_v38 }
 0x294   :  { %v3010_v36 = vmax.f32 %v2978_v49, 0.0  ;;  %v3011_v42 = vmax.f32 %v2979_v25, 0.0  ;;  %v2573_v63 = vadd.f32 %v2541_v56, %v2491_v23  ;;  %v2786_v26 = vmul.f32 %v9287_v12, %v13668_v3  ;;  %13801 = vst [vmem:[#allocation88_spill] sm:$0xff] %v9381_v45  ;;  %13802 = vst [vmem:[#allocation91_spill] sm:$0xff] %v9383_v34 }
 0x295   :  { %2728 = vadd.xlane.f32.xlu0 %v2727_v61  ;;  %v2574_v15 = vadd.f32 %v2542_v31, %v2492_v40  ;;  %v2787_v52 = vmul.f32 %v9290_v35, %v13668_v3  ;;  %v2868_v10 = vmul.f32 %v9293_v19, %v13669_v30  ;;  %v2869_v55 = vmul.f32 %v9296_v21, %v13669_v30 }
 0x296   :  { %v3045_v62 = vadd.f32 %v3011_v42, %v3010_v36  ;;  %v2655_v4 = vadd.f32 %v2623_v6, %v2573_v63  ;;  %v2818_v48 = vadd.f32 %v2786_v26, %v7998_v54  ;;  %v2950_v28 = vmul.f32 %v9308_v17, %v13670_v51 }
 0x297   :  { %v2656_v59 = vadd.f32 %v2624_v7, %v2574_v15  ;;  %v2819_v46 = vadd.f32 %v2787_v52, %v7998_v54  ;;  %v2951_v18 = vmul.f32 %v9313_v22, %v13670_v51  ;;  %v2776_v11 = vmul.f32 %v9287_v12, %v13671_v5 }
 0x298   :  { %3046 = vadd.xlane.f32.xlu1 %v3045_v62  ;;  %v2777_v49 = vmul.f32 %v9290_v35, %v13671_v5  ;;  %v2687_v25 = vmax.f32 %v2655_v4, 0.0  ;;  %v2900_v61 = vadd.f32 %v2868_v10, %v2818_v48  ;;  %v2858_v36 = vmul.f32 %v9293_v19, %v13672_v33  ;;  %v9407_v48 = vpop.xlane.xlu0 %973 }
 0x299   :  { %v2688_v56 = vmax.f32 %v2656_v59, 0.0  ;;  %v2901_v23 = vadd.f32 %v2869_v55, %v2819_v46  ;;  %v2808_v40 = vadd.f32 %v2776_v11, %v13708_v8  ;;  %v2859_v42 = vmul.f32 %v9296_v21, %v13672_v33  ;;  %13803 = vst [vmem:[#allocation310_spill] sm:$0xff] %v9407_v48  ;;  %v13816_v48 = vld [vmem:[#allocation326_spill] sm:$0xff] }
 0x29a   :  { %v2809_v31 = vadd.f32 %v2777_v49, %v13708_v8  ;;  %v2982_v7 = vadd.f32 %v2950_v28, %v2900_v61  ;;  %v2940_v52 = vmul.f32 %v9308_v17, %v13709_v32  ;;  %v2941_v62 = vmul.f32 %v9313_v22, %v13709_v32 }
 0x29b   :  { %v2733_v6 = vadd.f32 %v2688_v56, %v2687_v25  ;;  %v2983_v63 = vadd.f32 %v2951_v18, %v2901_v23  ;;  %v2890_v15 = vadd.f32 %v2858_v36, %v2808_v40  ;;  %v2790_v4 = vmul.f32 %v9287_v12, %v13710_v27  ;;  %v9419_v36 = vpop.xlane.xlu1 %976 }
 0x29c   :  { %v2891_v26 = vadd.f32 %v2859_v42, %v2809_v31  ;;  %v3014_v10 = vmax.f32 %v2982_v7, 0.0  ;;  %v2791_v59 = vmul.f32 %v9290_v35, %v13710_v27  ;;  %v2872_v18 = vmul.f32 %v9293_v19, %v13675_v2  ;;  %13804 = vst [vmem:[#allocation164_spill] sm:$0xff] %v9419_v36  ;;  %v13808_v36 = vld [vmem:[#allocation354_spill] sm:$0xff] }
 0x29d   :  { %2734 = vadd.xlane.f32.xlu0 %v2733_v6  ;;  %v3015_v55 = vmax.f32 %v2983_v63, 0.0  ;;  %v2972_v46 = vadd.f32 %v2940_v52, %v2890_v15  ;;  %v2822_v49 = vadd.f32 %v2790_v4, %v13711_v58  ;;  %v2873_v56 = vmul.f32 %v9296_v21, %v13675_v2 }
 0x29e   :  { %v2973_v28 = vadd.f32 %v2941_v62, %v2891_v26  ;;  %v2823_v25 = vadd.f32 %v2791_v59, %v13711_v58  ;;  %v2954_v40 = vmul.f32 %v9308_v17, %v13712_v13  ;;  %v2955_v31 = vmul.f32 %v9313_v22, %v13712_v13  ;;  %v9431_v59 = vpop.xlane.xlu0 %979 }
 0x29f   :  { %v3051_v11 = vadd.f32 %v3015_v55, %v3014_v10  ;;  %v3004_v61 = vmax.f32 %v2972_v46, 0.0  ;;  %v2904_v42 = vadd.f32 %v2872_v18, %v2822_v49  ;;  %v2780_v7 = vmul.f32 %v9287_v12, %v13713_v0  ;;  %13805 = vst [vmem:[#allocation165_spill] sm:$0xff] %v9431_v59  ;;  %v13806_v18 = vld [vmem:[#allocation63_spill] sm:$0xff] }
 0x2a0   :  { %v3005_v23 = vmax.f32 %v2973_v28, 0.0  ;;  %v2905_v6 = vadd.f32 %v2873_v56, %v2823_v25  ;;  %v2781_v63 = vmul.f32 %v9290_v35, %v13713_v0  ;;  %v2862_v26 = vmul.f32 %v9293_v19, %v13678_v60 }
 0x2a1   :  { %3052 = vadd.xlane.f32.xlu1 %v3051_v11  ;;  %v2863_v52 = vmul.f32 %v9296_v21, %v13678_v60  ;;  %v2986_v62 = vadd.f32 %v2954_v40, %v2904_v42  ;;  %v2812_v55 = vadd.f32 %v2780_v7, %v13749_v37  ;;  %v2944_v46 = vmul.f32 %v9308_v17, %v13750_v57  ;;  %v13807_v42 = vld [vmem:[#allocation64_spill] sm:$0xff] }
 0x2a2   :  { %v3036_v15 = vadd.f32 %v3005_v23, %v3004_v61  ;;  %v2987_v10 = vadd.f32 %v2955_v31, %v2905_v6  ;;  %v2813_v4 = vadd.f32 %v2781_v63, %v13749_v37  ;;  %v2945_v28 = vmul.f32 %v9313_v22, %v13750_v57 }
 0x2a3   :  { %v2794_v11 = vmul.f32 %v9287_v12, %v13806_v18  ;;  %v2795_v49 = vmul.f32 %v9290_v35, %v13806_v18  ;;  %v3018_v25 = vmax.f32 %v2986_v62, 0.0  ;;  %v2894_v61 = vadd.f32 %v2862_v26, %v2812_v55 }
 0x2a4   :  { %3037 = vadd.xlane.f32.xlu0 %v3036_v15  ;;  %v3019_v56 = vmax.f32 %v2987_v10, 0.0  ;;  %v2895_v23 = vadd.f32 %v2863_v52, %v2813_v4  ;;  %v2876_v6 = vmul.f32 %v9293_v19, %v13807_v42  ;;  %v2877_v7 = vmul.f32 %v9296_v21, %v13807_v42  ;;  %v9451_v52 = vpop.xlane.xlu1 %982 }
 0x2a5   :  { %v2826_v40 = vadd.f32 %v2794_v11, %v13752_v9  ;;  %v2827_v31 = vadd.f32 %v2795_v49, %v13752_v9  ;;  %v2976_v15 = vadd.f32 %v2944_v46, %v2894_v61  ;;  %v2958_v62 = vmul.f32 %v9308_v17, %v13808_v36  ;;  %13809 = vst [vmem:[#allocation92_spill] sm:$0xff] %v9451_v52 }
 0x2a6   :  { %v3057_v63 = vadd.f32 %v3019_v56, %v3018_v25  ;;  %v2977_v1 = vadd.f32 %v2945_v28, %v2895_v23  ;;  %v2959_v26 = vmul.f32 %v9313_v22, %v13808_v36  ;;  %v2784_v4 = vmul.f32 %v9287_v12, %v13755_v24  ;;  %v9457_v28 = vpop.xlane.xlu0 %985  ;;  %v13811_v25 = vld [vmem:[#allocation172_spill] sm:$0xff] }
 0x2a7   :  { %v2908_v16 = vadd.f32 %v2876_v6, %v2826_v40  ;;  %v2909_v59 = vadd.f32 %v2877_v7, %v2827_v31  ;;  %v3008_v10 = vmax.f32 %v2976_v15, 0.0  ;;  %v2785_v46 = vmul.f32 %v9290_v35, %v13755_v24  ;;  %13810 = vst [vmem:[#allocation311_spill] sm:$0xff] %v9457_v28  ;;  %v13812_v23 = vld [vmem:[#allocation148_spill] sm:$0xff] }
 0x2a8   :  { %3058 = vadd.xlane.f32.xlu1 %v3057_v63  ;;  %v3009_v55 = vmax.f32 %v2977_v1, 0.0  ;;  %v2866_v56 = vmul.f32 %v9293_v19, %v13811_v25  ;;  %v2816_v40 = vadd.f32 %v2784_v4, %v13812_v23  ;;  %v2867_v1 = vmul.f32 %v9296_v21, %v13811_v25  ;;  %v13813_v63 = vld [vmem:[#allocation155_spill] sm:$0xff] }
 0x2a9   :  { %v2990_v11 = vadd.f32 %v2958_v62, %v2908_v16  ;;  %v2991_v49 = vadd.f32 %v2959_v26, %v2909_v59  ;;  %v2817_v31 = vadd.f32 %v2785_v46, %v13812_v23  ;;  %v2948_v15 = vmul.f32 %v9308_v17, %v13813_v63  ;;  %v13814_v26 = vld [vmem:[#allocation81_spill] sm:$0xff]  ;;  %v13815_v46 = vld [vmem:[#allocation82_spill] sm:$0xff] }
 0x2aa   :  { %v3042_v61 = vadd.f32 %v3009_v55, %v3008_v10  ;;  %v2949_v16 = vmul.f32 %v9313_v22, %v13813_v63  ;;  %v2898_v59 = vadd.f32 %v2866_v56, %v2816_v40  ;;  %v2798_v10 = vmul.f32 %v9287_v12, %v13814_v26  ;;  %v9481_v40 = vpop.xlane.xlu0 %991 }
 0x2ab   :  { %v3022_v6 = vmax.f32 %v2990_v11, 0.0  ;;  %v3023_v7 = vmax.f32 %v2991_v49, 0.0  ;;  %v2899_v62 = vadd.f32 %v2867_v1, %v2817_v31  ;;  %v2799_v55 = vmul.f32 %v9290_v35, %v13814_v26  ;;  %13818 = vst [vmem:[#allocation105_spill] sm:$0xff] %v9481_v40  ;;  %v13819_v31 = vld [vmem:[#allocation371_spill] sm:$0xff] }
 0x2ac   :  { %3043 = vadd.xlane.f32.xlu0 %v3042_v61  ;;  %v2880_v11 = vmul.f32 %v9293_v19, %v13815_v46  ;;  %v2881_v49 = vmul.f32 %v9296_v21, %v13815_v46  ;;  %v2980_v28 = vadd.f32 %v2948_v15, %v2898_v59  ;;  %v2830_v45 = vadd.f32 %v2798_v10, %v13816_v48  ;;  %v9479_v61 = vpop.xlane.xlu1 %988 }
 0x2ad   :  { %v3063_v4 = vadd.f32 %v3023_v7, %v3022_v6  ;;  %v2981_v52 = vadd.f32 %v2949_v16, %v2899_v62  ;;  %v2831_v56 = vadd.f32 %v2799_v55, %v13816_v48  ;;  %13817 = vst [vmem:[#allocation196_spill] sm:$0xff] %v9479_v61  ;;  %v2962_v1 = vmul.f32 %v9308_v17, %v13819_v31  ;;  %v13820_v7 = vld [vmem:[#allocation305_spill] sm:$0xff] }
 0x2ae   :  { %v2963_v6 = vmul.f32 %v9313_v22, %v13819_v31  ;;  %v2788_v34 = vmul.f32 %v9287_v12, %v13820_v7  ;;  %v2789_v15 = vmul.f32 %v9290_v35, %v13820_v7  ;;  %v3012_v16 = vmax.f32 %v2980_v28, 0.0  ;;  %v13821_v7 = vld [vmem:[#allocation173_spill] sm:$0xff] }
 0x2af   :  { %3064 = vadd.xlane.f32.xlu1 %v3063_v4  ;;  %v3013_v59 = vmax.f32 %v2981_v52, 0.0  ;;  %v2912_v62 = vadd.f32 %v2880_v11, %v2830_v45  ;;  %v2913_v10 = vadd.f32 %v2881_v49, %v2831_v56  ;;  %v2870_v40 = vmul.f32 %v9293_v19, %v13766_v20  ;;  %v9505_v56 = vpop.xlane.xlu0 %997 }
 0x2b0   :  { %v2820_v55 = vadd.f32 %v2788_v34, %v13765_v44  ;;  %v2821_v4 = vadd.f32 %v2789_v15, %v13765_v44  ;;  %v2871_v61 = vmul.f32 %v9296_v21, %v13766_v20  ;;  %v2952_v52 = vmul.f32 %v9308_v17, %v13821_v7  ;;  %13822 = vst [vmem:[#allocation197_spill] sm:$0xff] %v9505_v56  ;;  %v13823_v15 = vld [vmem:[#allocation52_spill] sm:$0xff] }
 0x2b1   :  { %v3048_v31 = vadd.f32 %v3013_v59, %v3012_v16  ;;  %v2994_v48 = vadd.f32 %v2962_v1, %v2912_v62  ;;  %v2995_v46 = vadd.f32 %v2963_v6, %v2913_v10  ;;  %v2953_v45 = vmul.f32 %v9313_v22, %v13821_v7  ;;  %v13824_v62 = vld [vmem:[#allocation381_spill] sm:$0xff] }
 0x2b2   :  { %v2902_v26 = vadd.f32 %v2870_v40, %v2820_v55  ;;  %v2903_v63 = vadd.f32 %v2871_v61, %v2821_v4  ;;  %v2802_v11 = vmul.f32 %v9287_v12, %v13768_v47  ;;  %v2803_v49 = vmul.f32 %v9290_v35, %v13768_v47 }
 0x2b3   :  { %3049 = vadd.xlane.f32.xlu0 %v3048_v31  ;;  %v3026_v34 = vmax.f32 %v2994_v48, 0.0  ;;  %v3027_v28 = vmax.f32 %v2995_v46, 0.0  ;;  %v2884_v61 = vmul.f32 %v9293_v19, %v13770_v39  ;;  %v2885_v48 = vmul.f32 %v9296_v21, %v13770_v39 }
 0x2b4   :  { %v2984_v1 = vadd.f32 %v2952_v52, %v2902_v26  ;;  %v2985_v40 = vadd.f32 %v2953_v45, %v2903_v63  ;;  %v2834_v16 = vadd.f32 %v2802_v11, %v13823_v15  ;;  %v2835_v31 = vadd.f32 %v2803_v49, %v13823_v15  ;;  %v9517_v63 = vpop.xlane.xlu1 %994  ;;  %v13826_v52 = vld [vmem:[#allocation321_spill] sm:$0xff]  ;;  %v13827_v11 = vld [vmem:[#allocation208_spill] sm:$0xff] }
 0x2b5   :  { %v3069_v6 = vadd.f32 %v3027_v28, %v3026_v34  ;;  %v2966_v10 = vmul.f32 %v9308_v17, %v13824_v62  ;;  %v2967_v26 = vmul.f32 %v9313_v22, %v13824_v62  ;;  %13825 = vst [vmem:[#allocation182_spill] sm:$0xff] %v9517_v63  ;;  %v2792_v45 = vmul.f32 %v9287_v12, %v13826_v52  ;;  %v13828_v62 = vld [vmem:[#allocation327_spill] sm:$0xff] }
 0x2b6   :  { %v3016_v46 = vmax.f32 %v2984_v1, 0.0  ;;  %v3017_v59 = vmax.f32 %v2985_v40, 0.0  ;;  %v2916_v55 = vadd.f32 %v2884_v61, %v2834_v16  ;;  %v2917_v4 = vadd.f32 %v2885_v48, %v2835_v31  ;;  %v13830_v16 = vld [vmem:[#allocation191_spill] sm:$0xff] }
 0x2b7   :  { %3070 = vadd.xlane.f32.xlu1 %v3069_v6  ;;  %v2793_v34 = vmul.f32 %v9290_v35, %v13826_v52  ;;  %v2874_v49 = vmul.f32 %v9293_v19, %v13827_v11  ;;  %v2875_v1 = vmul.f32 %v9296_v21, %v13827_v11  ;;  %v2824_v63 = vadd.f32 %v2792_v45, %v13828_v62  ;;  %v9529_v6 = vpop.xlane.xlu0 %1003 }
 0x2b8   :  { %v3054_v28 = vadd.f32 %v3017_v59, %v3016_v46  ;;  %v2998_v40 = vadd.f32 %v2966_v10, %v2916_v55  ;;  %v2999_v56 = vadd.f32 %v2967_v26, %v2917_v4  ;;  %13829 = vst [vmem:[#allocation106_spill] sm:$0xff] %v9529_v6  ;;  %v2956_v31 = vmul.f32 %v9308_v17, %v13830_v16  ;;  %v13831_v46 = vld [vmem:[#allocation117_spill] sm:$0xff]  ;;  %v13833_v6 = vld [vmem:[#allocation118_spill] sm:$0xff] }
 0x2b9   :  { %v2825_v61 = vadd.f32 %v2793_v34, %v13828_v62  ;;  %v2957_v48 = vmul.f32 %v9313_v22, %v13830_v16  ;;  %v2806_v59 = vmul.f32 %v9287_v12, %v13831_v46  ;;  %v2807_v10 = vmul.f32 %v9290_v35, %v13831_v46  ;;  %v13832_v34 = vld [vmem:[#allocation146_spill] sm:$0xff]  ;;  %v13834_v46 = vld [vmem:[#allocation387_spill] sm:$0xff] }
 0x2ba   :  { %3055 = vadd.xlane.f32.xlu0 %v3054_v28  ;;  %v3030_v26 = vmax.f32 %v2998_v40, 0.0  ;;  %v3031_v55 = vmax.f32 %v2999_v56, 0.0  ;;  %v2906_v4 = vadd.f32 %v2874_v49, %v2824_v63  ;;  %v2888_v11 = vmul.f32 %v9293_v19, %v13833_v6  ;;  %v9549_v49 = vpop.xlane.xlu1 %1000 }
 0x2bb   :  { %v2907_v45 = vadd.f32 %v2875_v1, %v2825_v61  ;;  %v2838_v62 = vadd.f32 %v2806_v59, %v13832_v34  ;;  %v2839_v28 = vadd.f32 %v2807_v10, %v13832_v34  ;;  %v2889_v16 = vmul.f32 %v9296_v21, %v13833_v6  ;;  %13835 = vst [vmem:[#allocation109_spill] sm:$0xff] %v9549_v49  ;;  %v13836_v61 = vld [vmem:[#allocation339_spill] sm:$0xff]  ;;  %v13841_v49 = vld [vmem:[#allocation5_spill] sm:$0xff] }
 0x2bc   :  { %v3075_v52 = vadd.f32 %v3031_v55, %v3030_v26  ;;  %v2988_v15 = vadd.f32 %v2956_v31, %v2906_v4  ;;  %v2970_v56 = vmul.f32 %v9308_v17, %v13834_v46  ;;  %v2971_v63 = vmul.f32 %v9313_v22, %v13834_v46  ;;  %v6048_v26 = vld [vmem:[%s12439_s0 + $0x40] sm:$0x77] }
 0x2bd   :  { %v2989_v39 = vadd.f32 %v2957_v48, %v2907_v45  ;;  %v2920_v47 = vadd.f32 %v2888_v11, %v2838_v62  ;;  %v2921_v7 = vadd.f32 %v2889_v16, %v2839_v28  ;;  %v2796_v59 = vmul.f32 %v9287_v12, %v13836_v61  ;;  %v9555_v48 = vpop.xlane.xlu0 %1009  ;;  %v13838_v16 = vld [vmem:[#allocation226_spill] sm:$0xff]  ;;  %v13844_v46 = vld [vmem:[#allocation8_spill] sm:$0xff] }
 0x2be   :  { %3076 = vadd.xlane.f32.xlu1 %v3075_v52  ;;  %v3020_v1 = vmax.f32 %v2988_v15, 0.0  ;;  %v2797_v31 = vmul.f32 %v9290_v35, %v13836_v61  ;;  %13837 = vst [vmem:[#allocation328_spill] sm:$0xff] %v9555_v48  ;;  %v2878_v10 = vmul.f32 %v9293_v19, %v13838_v16  ;;  %v13839_v15 = vld [vmem:[#allocation147_spill] sm:$0xff]  ;;  %v2879_v4 = vmul.f32 %v9296_v21, %v13838_v16  ;;  %v13840_v48 = vld [vmem:[#allocation209_spill] sm:$0xff] }
 0x2bf   :  { %v3021_v40 = vmax.f32 %v2989_v39, 0.0  ;;  %v3002_v62 = vadd.f32 %v2970_v56, %v2920_v47  ;;  %v3003_v11 = vadd.f32 %v2971_v63, %v2921_v7  ;;  %v2828_v39 = vadd.f32 %v2796_v59, %v13839_v15 }
 0x2c0   :  { %v2829_v55 = vadd.f32 %v2797_v31, %v13839_v15  ;;  %v2960_v47 = vmul.f32 %v9308_v17, %v13840_v48  ;;  %v2961_v7 = vmul.f32 %v9313_v22, %v13840_v48  ;;  %v13843_v31 = vld [vmem:[#allocation7_spill] sm:$0xff]  ;;  %v3278_v16 = vrot.slane %v6048_v26, %v13844_v46 }
 0x2c1   :  { %v3060_v52 = vadd.f32 %v3021_v40, %v3020_v1  ;;  %v3034_v45 = vmax.f32 %v3002_v62, 0.0  ;;  %v3035_v28 = vmax.f32 %v3003_v11, 0.0  ;;  %v2910_v56 = vadd.f32 %v2878_v10, %v2828_v39  ;;  %v13842_v40 = vld [vmem:[#allocation6_spill] sm:$0xff]  ;;  %v13845_v62 = vld [vmem:[#allocation9_spill] sm:$0xff]  ;;  %v9581_v10 = vpop.xlane.xlu1 %1006  ;;  %v9583_v39 = vpop.xlane.xlu0 %1312  ;;  %v13853_v46 = vld [vmem:[#allocation355_spill] sm:$0xff] }
 0x2c2   :  { %v2911_v63 = vadd.f32 %v2879_v4, %v2829_v55  ;;  %v3192_v1 = vrot.slane %v6048_v26, %v13841_v49  ;;  %v3196_v59 = vrot.slane %v6048_v26, %v13842_v40  ;;  %v3274_v15 = vrot.slane %v6048_v26, %v13843_v31  ;;  %13846 = vst [vmem:[#allocation183_spill] sm:$0xff] %v9581_v10 }
 0x2c3   :  { %3061 = vadd.xlane.f32.xlu0 %v3060_v52  ;;  %v3081_v61 = vadd.f32 %v3035_v28, %v3034_v45  ;;  %v3356_v11 = vrot.slane %v6048_v26, %v13845_v62  ;;  %v2992_v6 = vadd.f32 %v2960_v47, %v2910_v56  ;;  %13847 = vst [vmem:[#allocation110_spill] sm:$0xff] %v9583_v39  ;;  %v13848_v45 = vld [vmem:[#allocation10_spill] sm:$0xff]  ;;  %v13851_v39 = vld [vmem:[#allocation388_spill] sm:$0xff] }
 0x2c4   :  { %v2993_v34 = vadd.f32 %v2961_v7, %v2911_v63  ;;  %v9576_v20 = vrot.slane %v3192_v1, %v13841_v49  ;;  %v9579_v52 = vrot.slane %v3196_v59, %v13841_v49  ;;  %v9586_v55 = vrot.slane %v3274_v15, %v13843_v31  ;;  %v13849_v63 = vld [vmem:[#allocation279_spill] sm:$0xff] }
 0x2c5   :  { %3082 = vadd.xlane.f32.xlu1 %v3081_v61  ;;  %v9589_v4 = vrot.slane %v3278_v16, %v13843_v31  ;;  %v3360_v28 = vrot.slane %v6048_v26, %v13848_v45  ;;  %v9593_v47 = vrot.slane %v3356_v11, %v13845_v62  ;;  %v3024_v7 = vmax.f32 %v2992_v6, 0.0  ;;  %v13850_v61 = vld [vmem:[#allocation140_spill] sm:$0xff]  ;;  %v13857_v49 = vld [vmem:[#allocation227_spill] sm:$0xff] }
 0x2c6   :  { %v3025_v56 = vmax.f32 %v2993_v34, 0.0  ;;  %v3209_v1 = vmul.f32 %v9576_v20, %v13849_v63  ;;  %v3210_v59 = vmul.f32 %v9579_v52, %v13849_v63  ;;  %v3291_v15 = vmul.f32 %v9586_v55, %v13850_v61  ;;  %v13852_v34 = vld [vmem:[#allocation141_spill] sm:$0xff] }
 0x2c7   :  { %v9602_v10 = vrot.slane %v3360_v28, %v13845_v62  ;;  %v3292_v6 = vmul.f32 %v9589_v4, %v13850_v61  ;;  %v3373_v45 = vmul.f32 %v9593_v47, %v13852_v34  ;;  %v2800_v31 = vmul.f32 %v9287_v12, %v13853_v46  ;;  %v9620_v61 = vpop.xlane.xlu0 %1318  ;;  %v13856_v62 = vld [vmem:[#allocation17_spill] sm:$0xff] }
 0x2c8   :  { %v3066_v16 = vadd.f32 %v3025_v56, %v3024_v7  ;;  %v3241_v26 = vadd.f32 %v3209_v1, %v13851_v39  ;;  %v3242_v11 = vadd.f32 %v3210_v59, %v13851_v39  ;;  %v2801_v28 = vmul.f32 %v9290_v35, %v13853_v46  ;;  %v13854_v1 = vld [vmem:[#allocation244_spill] sm:$0xff]  ;;  %13855 = vst [vmem:[#allocation329_spill] sm:$0xff] %v9620_v61 }
 0x2c9   :  { %v3374_v63 = vmul.f32 %v9602_v10, %v13852_v34  ;;  %v2882_v59 = vmul.f32 %v9293_v19, %v13854_v1  ;;  %v2883_v39 = vmul.f32 %v9296_v21, %v13854_v1  ;;  %v2832_v40 = vadd.f32 %v2800_v31, %v13856_v62 }
 0x2ca   :  { %3067 = vadd.xlane.f32.xlu0 %v3066_v16  ;;  %v3323_v7 = vadd.f32 %v3291_v15, %v3241_v26  ;;  %v3324_v56 = vadd.f32 %v3292_v6, %v3242_v11  ;;  %v2833_v34 = vadd.f32 %v2801_v28, %v13856_v62  ;;  %v2964_v48 = vmul.f32 %v9308_v17, %v13857_v49  ;;  %v13858_v11 = vld [vmem:[#allocation23_spill] sm:$0xff] }
 0x2cb   :  { %v2965_v16 = vmul.f32 %v9313_v22, %v13857_v49  ;;  %v3213_v6 = vmul.f32 %v9576_v20, %v13858_v11  ;;  %v3214_v1 = vmul.f32 %v9579_v52, %v13858_v11  ;;  %v2914_v46 = vadd.f32 %v2882_v59, %v2832_v40 }
 0x2cc   :  { %v3405_v15 = vadd.f32 %v3373_v45, %v3323_v7  ;;  %v3406_v26 = vadd.f32 %v3374_v63, %v3324_v56  ;;  %v2915_v61 = vadd.f32 %v2883_v39, %v2833_v34  ;;  %v3295_v31 = vmul.f32 %v9586_v55, %v13661_v50  ;;  %v9638_v63 = vpop.xlane.xlu1 %1012 }
 0x2cd   :  { %v3296_v28 = vmul.f32 %v9589_v4, %v13661_v50  ;;  %v3245_v49 = vadd.f32 %v3213_v6, %v7966_v41  ;;  %v3246_v45 = vadd.f32 %v3214_v1, %v7966_v41  ;;  %13859 = vst [vmem:[#allocation214_spill] sm:$0xff] %v9638_v63  ;;  %v2996_v7 = vadd.f32 %v2964_v48, %v2914_v46  ;;  %v9644_v50 = vpop.xlane.xlu0 %1324 }
 0x2ce   :  { %v3437_v62 = vmax.f32 %v3405_v15, 0.0  ;;  %v3438_v44 = vmax.f32 %v3406_v26, 0.0  ;;  %v2997_v56 = vadd.f32 %v2965_v16, %v2915_v61  ;;  %v3377_v40 = vmul.f32 %v9593_v47, %v13664_v14  ;;  %13860 = vst [vmem:[#allocation123_spill] sm:$0xff] %v9644_v50 }
 0x2cf   :  { %v3327_v34 = vadd.f32 %v3295_v31, %v3245_v49  ;;  %v3328_v59 = vadd.f32 %v3296_v28, %v3246_v45  ;;  %v3378_v11 = vmul.f32 %v9602_v10, %v13664_v14  ;;  %v3028_v15 = vmax.f32 %v2996_v7, 0.0 }
 0x2d0   :  { %v3470_v39 = vadd.f32 %v3438_v44, %v3437_v62  ;;  %v3029_v26 = vmax.f32 %v2997_v56, 0.0  ;;  %v2804_v1 = vmul.f32 %v9287_v12, %v13665_v29  ;;  %v2805_v46 = vmul.f32 %v9290_v35, %v13665_v29 }
 0x2d1   :  { %v3409_v48 = vadd.f32 %v3377_v40, %v3327_v34  ;;  %v3410_v61 = vadd.f32 %v3378_v11, %v3328_v59  ;;  %v2886_v44 = vmul.f32 %v9293_v19, %v13666_v53  ;;  %v2887_v6 = vmul.f32 %v9296_v21, %v13666_v53  ;;  %v9660_v11 = vpop.xlane.xlu1 %1315 }
 0x2d2   :  { %3471 = vadd.xlane.f32.xlu1 %v3470_v39  ;;  %v3072_v49 = vadd.f32 %v3029_v26, %v3028_v15  ;;  %v2836_v62 = vadd.f32 %v2804_v1, %v8146_v43  ;;  %v2837_v16 = vadd.f32 %v2805_v46, %v8146_v43  ;;  %v2968_v12 = vmul.f32 %v9308_v17, %v13667_v38  ;;  %v9670_v39 = vpop.xlane.xlu0 %1330 }
 0x2d3   :  { %v3441_v31 = vmax.f32 %v3409_v48, 0.0  ;;  %v3442_v28 = vmax.f32 %v3410_v61, 0.0  ;;  %v2969_v35 = vmul.f32 %v9313_v22, %v13667_v38  ;;  %13861 = vst [vmem:[#allocation215_spill] sm:$0xff] %v9660_v11  ;;  %v3217_v7 = vmul.f32 %v9576_v20, %v13668_v3  ;;  %13862 = vst [vmem:[#allocation124_spill] sm:$0xff] %v9670_v39 }
 0x2d4   :  { %3073 = vadd.xlane.f32.xlu0 %v3072_v49  ;;  %v2918_v19 = vadd.f32 %v2886_v44, %v2836_v62  ;;  %v2919_v45 = vadd.f32 %v2887_v6, %v2837_v16  ;;  %v3218_v56 = vmul.f32 %v9579_v52, %v13668_v3  ;;  %v3299_v40 = vmul.f32 %v9586_v55, %v13669_v30 }
 0x2d5   :  { %v3476_v21 = vadd.f32 %v3442_v28, %v3441_v31  ;;  %v3300_v17 = vmul.f32 %v9589_v4, %v13669_v30  ;;  %v3249_v59 = vadd.f32 %v3217_v7, %v7998_v54  ;;  %v3381_v26 = vmul.f32 %v9593_v47, %v13670_v51 }
 0x2d6   :  { %v3000_v22 = vadd.f32 %v2968_v12, %v2918_v19  ;;  %v3001_v34 = vadd.f32 %v2969_v35, %v2919_v45  ;;  %v3250_v15 = vadd.f32 %v3218_v56, %v7998_v54  ;;  %v3382_v1 = vmul.f32 %v9602_v10, %v13670_v51  ;;  %v9688_v12 = vpop.xlane.xlu1 %1321 }
 0x2d7   :  { %3477 = vadd.xlane.f32.xlu1 %v3476_v21  ;;  %v3207_v46 = vmul.f32 %v9576_v20, %v13671_v5  ;;  %v3208_v48 = vmul.f32 %v9579_v52, %v13671_v5  ;;  %v3331_v49 = vadd.f32 %v3299_v40, %v3249_v59  ;;  %v3289_v31 = vmul.f32 %v9586_v55, %v13672_v33 }
 0x2d8   :  { %v3032_v61 = vmax.f32 %v3000_v22, 0.0  ;;  %v3033_v44 = vmax.f32 %v3001_v34, 0.0  ;;  %v3332_v62 = vadd.f32 %v3300_v17, %v3250_v15  ;;  %v3290_v28 = vmul.f32 %v9589_v4, %v13672_v33  ;;  %13863 = vst [vmem:[#allocation200_spill] sm:$0xff] %v9688_v12  ;;  %v9694_v17 = vpop.xlane.xlu0 %1336 }
 0x2d9   :  { %v3239_v16 = vadd.f32 %v3207_v46, %v13708_v8  ;;  %v3240_v6 = vadd.f32 %v3208_v48, %v13708_v8  ;;  %v3413_v19 = vadd.f32 %v3381_v26, %v3331_v49  ;;  %v3371_v21 = vmul.f32 %v9593_v47, %v13709_v32  ;;  %13864 = vst [vmem:[#allocation127_spill] sm:$0xff] %v9694_v17 }
 0x2da   :  { %v3078_v35 = vadd.f32 %v3033_v44, %v3032_v61  ;;  %v3414_v45 = vadd.f32 %v3382_v1, %v3332_v62  ;;  %v3372_v40 = vmul.f32 %v9602_v10, %v13709_v32  ;;  %v3221_v59 = vmul.f32 %v9576_v20, %v13710_v27 }
 0x2db   :  { %v3321_v7 = vadd.f32 %v3289_v31, %v3239_v16  ;;  %v3322_v56 = vadd.f32 %v3290_v28, %v3240_v6  ;;  %v3445_v22 = vmax.f32 %v3413_v19, 0.0  ;;  %v3222_v15 = vmul.f32 %v9579_v52, %v13710_v27  ;;  %v9710_v28 = vpop.xlane.xlu1 %1327 }
 0x2dc   :  { %3079 = vadd.xlane.f32.xlu0 %v3078_v35  ;;  %v3446_v34 = vmax.f32 %v3414_v45, 0.0  ;;  %v3303_v46 = vmul.f32 %v9586_v55, %v13675_v2  ;;  %v3253_v61 = vadd.f32 %v3221_v59, %v13711_v58  ;;  %v3304_v49 = vmul.f32 %v9589_v4, %v13675_v2  ;;  %13865 = vst [vmem:[#allocation344_spill] sm:$0xff] %v9710_v28 }
 0x2dd   :  { %v3403_v26 = vadd.f32 %v3371_v21, %v3321_v7  ;;  %v3404_v1 = vadd.f32 %v3372_v40, %v3322_v56  ;;  %v3254_v44 = vadd.f32 %v3222_v15, %v13711_v58  ;;  %v3385_v6 = vmul.f32 %v9593_v47, %v13712_v13 }
 0x2de   :  { %v3482_v48 = vadd.f32 %v3446_v34, %v3445_v22  ;;  %v3386_v31 = vmul.f32 %v9602_v10, %v13712_v13  ;;  %v3335_v35 = vadd.f32 %v3303_v46, %v3253_v61  ;;  %v3211_v45 = vmul.f32 %v9576_v20, %v13713_v0  ;;  %v9720_v22 = vpop.xlane.xlu0 %1342 }
 0x2df   :  { %v3435_v62 = vmax.f32 %v3403_v26, 0.0  ;;  %v3436_v16 = vmax.f32 %v3404_v1, 0.0  ;;  %v3336_v19 = vadd.f32 %v3304_v49, %v3254_v44  ;;  %v3212_v7 = vmul.f32 %v9579_v52, %v13713_v0  ;;  %13866 = vst [vmem:[#allocation201_spill] sm:$0xff] %v9720_v22 }
 0x2e0   :  { %3483 = vadd.xlane.f32.xlu1 %v3482_v48  ;;  %v3293_v21 = vmul.f32 %v9586_v55, %v13678_v60  ;;  %v3294_v40 = vmul.f32 %v9589_v4, %v13678_v60  ;;  %v3417_v34 = vadd.f32 %v3385_v6, %v3335_v35  ;;  %v3243_v15 = vadd.f32 %v3211_v45, %v13749_v37  ;;  %v9738_v45 = vpop.xlane.xlu1 %1333 }
 0x2e1   :  { %v3467_v56 = vadd.f32 %v3436_v16, %v3435_v62  ;;  %v3418_v59 = vadd.f32 %v3386_v31, %v3336_v19  ;;  %v3244_v26 = vadd.f32 %v3212_v7, %v13749_v37  ;;  %v3375_v1 = vmul.f32 %v9593_v47, %v13750_v57  ;;  %13867 = vst [vmem:[#allocation128_spill] sm:$0xff] %v9738_v45 }
 0x2e2   :  { %v3376_v46 = vmul.f32 %v9602_v10, %v13750_v57  ;;  %v3225_v48 = vmul.f32 %v9576_v20, %v13806_v18  ;;  %v3226_v61 = vmul.f32 %v9579_v52, %v13806_v18  ;;  %v3449_v44 = vmax.f32 %v3417_v34, 0.0 }
 0x2e3   :  { %3468 = vadd.xlane.f32.xlu0 %v3467_v56  ;;  %v3450_v49 = vmax.f32 %v3418_v59, 0.0  ;;  %v3325_v62 = vadd.f32 %v3293_v21, %v3243_v15  ;;  %v3326_v16 = vadd.f32 %v3294_v40, %v3244_v26  ;;  %v3307_v35 = vmul.f32 %v9586_v55, %v13807_v42  ;;  %v9744_v59 = vpop.xlane.xlu0 %1348 }
 0x2e4   :  { %v3257_v6 = vadd.f32 %v3225_v48, %v13752_v9  ;;  %v3258_v31 = vadd.f32 %v3226_v61, %v13752_v9  ;;  %v3308_v19 = vmul.f32 %v9589_v4, %v13807_v42  ;;  %v3389_v21 = vmul.f32 %v9593_v47, %v13808_v36  ;;  %13868 = vst [vmem:[#allocation345_spill] sm:$0xff] %v9744_v59 }
 0x2e5   :  { %v3488_v7 = vadd.f32 %v3450_v49, %v3449_v44  ;;  %v3407_v56 = vadd.f32 %v3375_v1, %v3325_v62  ;;  %v3408_v63 = vadd.f32 %v3376_v46, %v3326_v16  ;;  %v3390_v40 = vmul.f32 %v9602_v10, %v13808_v36 }
 0x2e6   :  { %v3339_v22 = vadd.f32 %v3307_v35, %v3257_v6  ;;  %v3340_v34 = vadd.f32 %v3308_v19, %v3258_v31  ;;  %v3215_v48 = vmul.f32 %v9576_v20, %v13755_v24  ;;  %v3216_v1 = vmul.f32 %v9579_v52, %v13755_v24  ;;  %v13869_v35 = vld [vmem:[#allocation155_spill] sm:$0xff] }
 0x2e7   :  { %3489 = vadd.xlane.f32.xlu1 %v3488_v7  ;;  %v3439_v15 = vmax.f32 %v3407_v56, 0.0  ;;  %v3440_v26 = vmax.f32 %v3408_v63, 0.0  ;;  %v3297_v44 = vmul.f32 %v9586_v55, %v13811_v25  ;;  %v3298_v6 = vmul.f32 %v9589_v4, %v13811_v25  ;;  %v9760_v7 = vpop.xlane.xlu1 %1339 }
 0x2e8   :  { %v3421_v46 = vadd.f32 %v3389_v21, %v3339_v22  ;;  %v3422_v61 = vadd.f32 %v3390_v40, %v3340_v34  ;;  %v3247_v62 = vadd.f32 %v3215_v48, %v13812_v23  ;;  %v3248_v16 = vadd.f32 %v3216_v1, %v13812_v23  ;;  %13870 = vst [vmem:[#allocation232_spill] sm:$0xff] %v9760_v7  ;;  %v13871_v21 = vld [vmem:[#allocation81_spill] sm:$0xff]  ;;  %v13872_v48 = vld [vmem:[#allocation82_spill] sm:$0xff] }
 0x2e9   :  { %v3473_v49 = vadd.f32 %v3440_v26, %v3439_v15  ;;  %v3379_v19 = vmul.f32 %v9593_v47, %v13869_v35  ;;  %v3380_v22 = vmul.f32 %v9602_v10, %v13869_v35  ;;  %v3229_v40 = vmul.f32 %v9576_v20, %v13871_v21 }
 0x2ea   :  { %v3453_v63 = vmax.f32 %v3421_v46, 0.0  ;;  %v3454_v31 = vmax.f32 %v3422_v61, 0.0  ;;  %v3329_v56 = vadd.f32 %v3297_v44, %v3247_v62  ;;  %v3330_v34 = vadd.f32 %v3298_v6, %v3248_v16  ;;  %v9770_v61 = vpop.xlane.xlu0 %1354  ;;  %v13875_v16 = vld [vmem:[#allocation371_spill] sm:$0xff] }
 0x2eb   :  { %3474 = vadd.xlane.f32.xlu0 %v3473_v49  ;;  %v3230_v15 = vmul.f32 %v9579_v52, %v13871_v21  ;;  %v3311_v1 = vmul.f32 %v9586_v55, %v13872_v48  ;;  %v3312_v46 = vmul.f32 %v9589_v4, %v13872_v48  ;;  %13873 = vst [vmem:[#allocation149_spill] sm:$0xff] %v9770_v61  ;;  %v13874_v49 = vld [vmem:[#allocation326_spill] sm:$0xff]  ;;  %v9788_v50 = vpop.xlane.xlu1 %1345  ;;  %v13921_v21 = vld [vmem:[#allocation24_spill] sm:$0xff] }
 0x2ec   :  { %v3494_v26 = vadd.f32 %v3454_v31, %v3453_v63  ;;  %v3411_v59 = vadd.f32 %v3379_v19, %v3329_v56  ;;  %v3412_v7 = vadd.f32 %v3380_v22, %v3330_v34  ;;  %v3261_v44 = vadd.f32 %v3229_v40, %v13874_v49  ;;  %v13876_v31 = vld [vmem:[#allocation305_spill] sm:$0xff]  ;;  %v13877_v34 = vld [vmem:[#allocation51_spill] sm:$0xff]  ;;  %13879 = vst [vmem:[#allocation233_spill] sm:$0xff] %v9788_v50 }
 0x2ed   :  { %v3262_v62 = vadd.f32 %v3230_v15, %v13874_v49  ;;  %v3393_v6 = vmul.f32 %v9593_v47, %v13875_v16  ;;  %v3394_v63 = vmul.f32 %v9602_v10, %v13875_v16  ;;  %v3219_v17 = vmul.f32 %v9576_v20, %v13876_v31 }
 0x2ee   :  { %3495 = vadd.xlane.f32.xlu1 %v3494_v26  ;;  %v3220_v45 = vmul.f32 %v9579_v52, %v13876_v31  ;;  %v3443_v61 = vmax.f32 %v3411_v59, 0.0  ;;  %v3444_v19 = vmax.f32 %v3412_v7, 0.0  ;;  %v3343_v22 = vadd.f32 %v3311_v1, %v3261_v44  ;;  %v13878_v26 = vld [vmem:[#allocation190_spill] sm:$0xff]  ;;  %v13880_v7 = vld [vmem:[#allocation173_spill] sm:$0xff] }
 0x2ef   :  { %v3344_v56 = vadd.f32 %v3312_v46, %v3262_v62  ;;  %v3251_v40 = vadd.f32 %v3219_v17, %v13877_v34  ;;  %v3301_v39 = vmul.f32 %v9586_v55, %v13878_v26  ;;  %v3302_v28 = vmul.f32 %v9589_v4, %v13878_v26  ;;  %v13882_v62 = vld [vmem:[#allocation99_spill] sm:$0xff] }
 0x2f0   :  { %v3252_v15 = vadd.f32 %v3220_v45, %v13877_v34  ;;  %v3479_v12 = vadd.f32 %v3444_v19, %v3443_v61  ;;  %v3425_v11 = vadd.f32 %v3393_v6, %v3343_v22  ;;  %v3383_v1 = vmul.f32 %v9593_v47, %v13880_v7  ;;  %v9794_v45 = vpop.xlane.xlu0 %1657  ;;  %v13884_v22 = vld [vmem:[#allocation52_spill] sm:$0xff] }
 0x2f1   :  { %v3426_v16 = vadd.f32 %v3394_v63, %v3344_v56  ;;  %v3333_v31 = vadd.f32 %v3301_v39, %v3251_v40  ;;  %v3384_v17 = vmul.f32 %v9602_v10, %v13880_v7  ;;  %13881 = vst [vmem:[#allocation218_spill] sm:$0xff] %v9794_v45  ;;  %v3233_v26 = vmul.f32 %v9576_v20, %v13882_v62 }
 0x2f2   :  { %v3334_v59 = vadd.f32 %v3302_v28, %v3252_v15  ;;  %3480 = vadd.xlane.f32.xlu0 %v3479_v12  ;;  %v3457_v46 = vmax.f32 %v3425_v11, 0.0  ;;  %v3234_v61 = vmul.f32 %v9579_v52, %v13882_v62  ;;  %v13883_v28 = vld [vmem:[#allocation100_spill] sm:$0xff]  ;;  %v13885_v15 = vld [vmem:[#allocation381_spill] sm:$0xff] }
 0x2f3   :  { %v3458_v44 = vmax.f32 %v3426_v16, 0.0  ;;  %v3415_v6 = vadd.f32 %v3383_v1, %v3333_v31  ;;  %v3315_v63 = vmul.f32 %v9586_v55, %v13883_v28  ;;  %v3265_v56 = vadd.f32 %v3233_v26, %v13884_v22 }
 0x2f4   :  { %v3416_v39 = vadd.f32 %v3384_v17, %v3334_v59  ;;  %v3266_v40 = vadd.f32 %v3234_v61, %v13884_v22  ;;  %v3316_v11 = vmul.f32 %v9589_v4, %v13883_v28  ;;  %v3397_v50 = vmul.f32 %v9593_v47, %v13885_v15  ;;  %v9810_v59 = vpop.xlane.xlu1 %1351  ;;  %v9820_v22 = vpop.xlane.xlu0 %1663 }
 0x2f5   :  { %v3500_v19 = vadd.f32 %v3458_v44, %v3457_v46  ;;  %v3447_v12 = vmax.f32 %v3415_v6, 0.0  ;;  %v3398_v31 = vmul.f32 %v9602_v10, %v13885_v15  ;;  %13886 = vst [vmem:[#allocation150_spill] sm:$0xff] %v9810_v59  ;;  %v3347_v1 = vadd.f32 %v3315_v63, %v3265_v56  ;;  %v13887_v46 = vld [vmem:[#allocation321_spill] sm:$0xff]  ;;  %v13888_v6 = vld [vmem:[#allocation208_spill] sm:$0xff]  ;;  %13889 = vst [vmem:[#allocation151_spill] sm:$0xff] %v9820_v22 }
 0x2f6   :  { %v3448_v16 = vmax.f32 %v3416_v39, 0.0  ;;  %v3348_v17 = vadd.f32 %v3316_v11, %v3266_v40  ;;  %v3223_v26 = vmul.f32 %v9576_v20, %v13887_v46  ;;  %v3224_v44 = vmul.f32 %v9579_v52, %v13887_v46  ;;  %v13891_v40 = vld [vmem:[#allocation191_spill] sm:$0xff] }
 0x2f7   :  { %3501 = vadd.xlane.f32.xlu1 %v3500_v19  ;;  %v3305_v39 = vmul.f32 %v9586_v55, %v13888_v6  ;;  %v3306_v45 = vmul.f32 %v9589_v4, %v13888_v6  ;;  %v3429_v15 = vadd.f32 %v3397_v50, %v3347_v1  ;;  %v13890_v19 = vld [vmem:[#allocation327_spill] sm:$0xff]  ;;  %v3387_v11 = vmul.f32 %v9593_v47, %v13891_v40 }
 0x2f8   :  { %v3485_v61 = vadd.f32 %v3448_v16, %v3447_v12  ;;  %v3430_v59 = vadd.f32 %v3398_v31, %v3348_v17  ;;  %v3255_v63 = vadd.f32 %v3223_v26, %v13890_v19  ;;  %v3256_v56 = vadd.f32 %v3224_v44, %v13890_v19  ;;  %v13892_v16 = vld [vmem:[#allocation117_spill] sm:$0xff]  ;;  %v13893_v17 = vld [vmem:[#allocation146_spill] sm:$0xff]  ;;  %v9838_v28 = vpop.xlane.xlu1 %1357 }
 0x2f9   :  { %v3388_v12 = vmul.f32 %v9602_v10, %v13891_v40  ;;  %v3237_v46 = vmul.f32 %v9576_v20, %v13892_v16  ;;  %v3238_v6 = vmul.f32 %v9579_v52, %v13892_v16  ;;  %v3461_v22 = vmax.f32 %v3429_v15, 0.0  ;;  %13895 = vst [vmem:[#allocation361_spill] sm:$0xff] %v9838_v28  ;;  %v13901_v28 = vld [vmem:[#allocation209_spill] sm:$0xff] }
 0x2fa   :  { %3486 = vadd.xlane.f32.xlu0 %v3485_v61  ;;  %v3462_v50 = vmax.f32 %v3430_v59, 0.0  ;;  %v3337_v31 = vadd.f32 %v3305_v39, %v3255_v63  ;;  %v3338_v1 = vadd.f32 %v3306_v45, %v3256_v56  ;;  %v13894_v61 = vld [vmem:[#allocation118_spill] sm:$0xff]  ;;  %v13896_v59 = vld [vmem:[#allocation387_spill] sm:$0xff] }
 0x2fb   :  { %v3269_v26 = vadd.f32 %v3237_v46, %v13893_v17  ;;  %v3270_v44 = vadd.f32 %v3238_v6, %v13893_v17  ;;  %v3319_v19 = vmul.f32 %v9586_v55, %v13894_v61  ;;  %v3320_v40 = vmul.f32 %v9589_v4, %v13894_v61  ;;  %v9844_v6 = vpop.xlane.xlu0 %1669  ;;  %v13898_v56 = vld [vmem:[#allocation339_spill] sm:$0xff] }
 0x2fc   :  { %v3506_v62 = vadd.f32 %v3462_v50, %v3461_v22  ;;  %v3419_v7 = vadd.f32 %v3387_v11, %v3337_v31  ;;  %v3420_v34 = vadd.f32 %v3388_v12, %v3338_v1  ;;  %v3401_v45 = vmul.f32 %v9593_v47, %v13896_v59  ;;  %13897 = vst [vmem:[#allocation219_spill] sm:$0xff] %v9844_v6  ;;  %v6049_v50 = vld [vmem:[%s12439_s0 + $0x48] sm:$0x77]  ;;  %v13900_v1 = vld [vmem:[#allocation147_spill] sm:$0xff] }
 0x2fd   :  { %v3351_v16 = vadd.f32 %v3319_v19, %v3269_v26  ;;  %v3352_v15 = vadd.f32 %v3320_v40, %v3270_v44  ;;  %v3402_v46 = vmul.f32 %v9602_v10, %v13896_v59  ;;  %v3227_v61 = vmul.f32 %v9576_v20, %v13898_v56  ;;  %v13899_v40 = vld [vmem:[#allocation226_spill] sm:$0xff]  ;;  %v13907_v59 = vld [vmem:[#allocation9_spill] sm:$0xff] }
 0x2fe   :  { %3507 = vadd.xlane.f32.xlu1 %v3506_v62  ;;  %v3451_v39 = vmax.f32 %v3419_v7, 0.0  ;;  %v3452_v63 = vmax.f32 %v3420_v34, 0.0  ;;  %v3228_v22 = vmul.f32 %v9579_v52, %v13898_v56  ;;  %v3309_v12 = vmul.f32 %v9586_v55, %v13899_v40  ;;  %v13904_v6 = vld [vmem:[#allocation6_spill] sm:$0xff]  ;;  %v13905_v56 = vld [vmem:[#allocation7_spill] sm:$0xff] }
 0x2ff   :  { %v3433_v11 = vadd.f32 %v3401_v45, %v3351_v16  ;;  %v3434_v19 = vadd.f32 %v3402_v46, %v3352_v15  ;;  %v3259_v62 = vadd.f32 %v3227_v61, %v13900_v1  ;;  %v3310_v7 = vmul.f32 %v9589_v4, %v13899_v40  ;;  %v9863_v45 = vpop.xlane.xlu1 %1660  ;;  %v9870_v49 = vpop.xlane.xlu0 %1675 }
 0x300   :  { %v3491_v31 = vadd.f32 %v3452_v63, %v3451_v39  ;;  %v3260_v34 = vadd.f32 %v3228_v22, %v13900_v1  ;;  %v3391_v16 = vmul.f32 %v9593_v47, %v13901_v28  ;;  %v3392_v15 = vmul.f32 %v9602_v10, %v13901_v28  ;;  %13902 = vst [vmem:[#allocation362_spill] sm:$0xff] %v9863_v45  ;;  %v13903_v63 = vld [vmem:[#allocation5_spill] sm:$0xff] }
 0x301   :  { %v3465_v26 = vmax.f32 %v3433_v11, 0.0  ;;  %v3466_v44 = vmax.f32 %v3434_v19, 0.0  ;;  %v3341_v46 = vadd.f32 %v3309_v12, %v3259_v62  ;;  %v3537_v61 = vrot.slane %v6049_v50, %v13903_v63  ;;  %v13906_v11 = vld [vmem:[#allocation8_spill] sm:$0xff]  ;;  %13908 = vst [vmem:[#allocation250_spill] sm:$0xff] %v9870_v49  ;;  %v13914_v49 = vld [vmem:[#allocation141_spill] sm:$0xff] }
 0x302   :  { %3492 = vadd.xlane.f32.xlu0 %v3491_v31  ;;  %v3342_v39 = vadd.f32 %v3310_v7, %v3260_v34  ;;  %v3541_v22 = vrot.slane %v6049_v50, %v13904_v6  ;;  %v3619_v40 = vrot.slane %v6049_v50, %v13905_v56  ;;  %v3623_v19 = vrot.slane %v6049_v50, %v13906_v11  ;;  %v13909_v34 = vld [vmem:[#allocation10_spill] sm:$0xff]  ;;  %v13915_v11 = vld [vmem:[#allocation355_spill] sm:$0xff] }
 0x303   :  { %v3512_v1 = vadd.f32 %v3466_v44, %v3465_v26  ;;  %v3701_v17 = vrot.slane %v6049_v50, %v13907_v59  ;;  %v3423_v48 = vadd.f32 %v3391_v16, %v3341_v46  ;;  %v9873_v45 = vrot.slane %v3537_v61, %v13903_v63  ;;  %v13919_v6 = vld [vmem:[#allocation227_spill] sm:$0xff] }
 0x304   :  { %v3424_v28 = vadd.f32 %v3392_v15, %v3342_v39  ;;  %v9876_v12 = vrot.slane %v3541_v22, %v13903_v63  ;;  %v9879_v31 = vrot.slane %v3619_v40, %v13905_v56  ;;  %v9882_v62 = vrot.slane %v3623_v19, %v13905_v56  ;;  %v13910_v15 = vld [vmem:[#allocation279_spill] sm:$0xff]  ;;  %v9897_v22 = vpop.xlane.xlu1 %1666  ;;  %v13913_v19 = vld [vmem:[#allocation388_spill] sm:$0xff] }
 0x305   :  { %3513 = vadd.xlane.f32.xlu1 %v3512_v1  ;;  %v3705_v7 = vrot.slane %v6049_v50, %v13909_v34  ;;  %v9886_v26 = vrot.slane %v3701_v17, %v13907_v59  ;;  %v3455_v44 = vmax.f32 %v3423_v48, 0.0  ;;  %v3554_v46 = vmul.f32 %v9873_v45, %v13910_v15  ;;  %v13911_v1 = vld [vmem:[#allocation140_spill] sm:$0xff]  ;;  %13912 = vst [vmem:[#allocation312_spill] sm:$0xff] %v9897_v22 }
 0x306   :  { %v3456_v16 = vmax.f32 %v3424_v28, 0.0  ;;  %v3555_v39 = vmul.f32 %v9876_v12, %v13910_v15  ;;  %v3636_v40 = vmul.f32 %v9879_v31, %v13911_v1  ;;  %v3637_v28 = vmul.f32 %v9882_v62, %v13911_v1 }
 0x307   :  { %v9895_v61 = vrot.slane %v3705_v7, %v13907_v59  ;;  %v3586_v17 = vadd.f32 %v3554_v46, %v13913_v19  ;;  %v3718_v34 = vmul.f32 %v9886_v26, %v13914_v49  ;;  %v3231_v7 = vmul.f32 %v9576_v20, %v13915_v11  ;;  %v13918_v59 = vld [vmem:[#allocation17_spill] sm:$0xff] }
 0x308   :  { %v3497_v50 = vadd.f32 %v3456_v16, %v3455_v44  ;;  %v3587_v48 = vadd.f32 %v3555_v39, %v13913_v19  ;;  %v3232_v22 = vmul.f32 %v9579_v52, %v13915_v11  ;;  %v9911_v44 = vpop.xlane.xlu0 %1681  ;;  %v13917_v39 = vld [vmem:[#allocation244_spill] sm:$0xff]  ;;  %v3395_v63 = vmul.f32 %v9593_v47, %v13919_v6 }
 0x309   :  { %v3719_v15 = vmul.f32 %v9895_v61, %v13914_v49  ;;  %13916 = vst [vmem:[#allocation251_spill] sm:$0xff] %v9911_v44  ;;  %v3668_v16 = vadd.f32 %v3636_v40, %v3586_v17  ;;  %v3313_v19 = vmul.f32 %v9586_v55, %v13917_v39  ;;  %v3314_v1 = vmul.f32 %v9589_v4, %v13917_v39  ;;  %v13920_v40 = vld [vmem:[#allocation23_spill] sm:$0xff] }
 0x30a   :  { %3498 = vadd.xlane.f32.xlu0 %v3497_v50  ;;  %v3669_v46 = vadd.f32 %v3637_v28, %v3587_v48  ;;  %v3263_v56 = vadd.f32 %v3231_v7, %v13918_v59  ;;  %v3264_v49 = vadd.f32 %v3232_v22, %v13918_v59  ;;  %v3396_v11 = vmul.f32 %v9602_v10, %v13919_v6  ;;  %v9931_v59 = vpop.xlane.xlu1 %1672 }
 0x30b   :  { %v3750_v44 = vadd.f32 %v3718_v34, %v3668_v16  ;;  %v3558_v17 = vmul.f32 %v9873_v45, %v13920_v40  ;;  %v3559_v48 = vmul.f32 %v9876_v12, %v13920_v40  ;;  %v3640_v7 = vmul.f32 %v9879_v31, %v13921_v21  ;;  %13922 = vst [vmem:[#allocation313_spill] sm:$0xff] %v9931_v59 }
 0x30c   :  { %v3751_v50 = vadd.f32 %v3719_v15, %v3669_v46  ;;  %v3345_v28 = vadd.f32 %v3313_v19, %v3263_v56  ;;  %v3346_v39 = vadd.f32 %v3314_v1, %v3264_v49  ;;  %v3641_v22 = vmul.f32 %v9882_v62, %v13921_v21  ;;  %v9937_v49 = vpop.xlane.xlu0 %1687 }
 0x30d   :  { %v3782_v35 = vmax.f32 %v3750_v44, 0.0  ;;  %v3590_v34 = vadd.f32 %v3558_v17, %v7966_v41  ;;  %v3591_v15 = vadd.f32 %v3559_v48, %v7966_v41  ;;  %v3722_v56 = vmul.f32 %v9886_v26, %v13664_v14  ;;  %13923 = vst [vmem:[#allocation236_spill] sm:$0xff] %v9937_v49 }
 0x30e   :  { %v3783_v6 = vmax.f32 %v3751_v50, 0.0  ;;  %v3427_v16 = vadd.f32 %v3395_v63, %v3345_v28  ;;  %v3428_v46 = vadd.f32 %v3396_v11, %v3346_v39  ;;  %v3723_v21 = vmul.f32 %v9895_v61, %v13664_v14 }
 0x30f   :  { %v3672_v19 = vadd.f32 %v3640_v7, %v3590_v34  ;;  %v3673_v40 = vadd.f32 %v3641_v22, %v3591_v15  ;;  %v3235_v50 = vmul.f32 %v9576_v20, %v13665_v29  ;;  %v3236_v63 = vmul.f32 %v9579_v52, %v13665_v29  ;;  %v9951_v7 = vpop.xlane.xlu1 %1678 }
 0x310   :  { %v3815_v1 = vadd.f32 %v3783_v6, %v3782_v35  ;;  %v3459_v59 = vmax.f32 %v3427_v16, 0.0  ;;  %v3460_v44 = vmax.f32 %v3428_v46, 0.0  ;;  %v3317_v17 = vmul.f32 %v9586_v55, %v13666_v53  ;;  %13924 = vst [vmem:[#allocation237_spill] sm:$0xff] %v9951_v7 }
 0x311   :  { %v3754_v11 = vadd.f32 %v3722_v56, %v3672_v19  ;;  %v3755_v39 = vadd.f32 %v3723_v21, %v3673_v40  ;;  %v3267_v6 = vadd.f32 %v3235_v50, %v8146_v43  ;;  %v3268_v48 = vadd.f32 %v3236_v63, %v8146_v43 }
 0x312   :  { %3816 = vadd.xlane.f32.xlu1 %v3815_v1  ;;  %v3503_v35 = vadd.f32 %v3460_v44, %v3459_v59  ;;  %v3318_v28 = vmul.f32 %v9589_v4, %v13666_v53  ;;  %v3399_v52 = vmul.f32 %v9593_v47, %v13667_v38  ;;  %v3400_v21 = vmul.f32 %v9602_v10, %v13667_v38  ;;  %v9961_v4 = vpop.xlane.xlu0 %1693 }
 0x313   :  { %v3786_v20 = vmax.f32 %v3754_v11, 0.0  ;;  %v3787_v22 = vmax.f32 %v3755_v39, 0.0  ;;  %v3349_v55 = vadd.f32 %v3317_v17, %v3267_v6  ;;  %v3562_v40 = vmul.f32 %v9873_v45, %v13668_v3  ;;  %13925 = vst [vmem:[#allocation268_spill] sm:$0xff] %v9961_v4  ;;  %v9977_v6 = vpop.xlane.xlu1 %1684 }
 0x314   :  { %3504 = vadd.xlane.f32.xlu0 %v3503_v35  ;;  %v3350_v59 = vadd.f32 %v3318_v28, %v3268_v48  ;;  %v3563_v34 = vmul.f32 %v9876_v12, %v13668_v3  ;;  %v3644_v16 = vmul.f32 %v9879_v31, %v13669_v30  ;;  %v3645_v47 = vmul.f32 %v9882_v62, %v13669_v30 }
 0x315   :  { %v3821_v15 = vadd.f32 %v3787_v22, %v3786_v20  ;;  %v3431_v46 = vadd.f32 %v3399_v52, %v3349_v55  ;;  %v3594_v56 = vadd.f32 %v3562_v40, %v7998_v54  ;;  %v3726_v19 = vmul.f32 %v9886_v26, %v13670_v51  ;;  %13926 = vst [vmem:[#allocation269_spill] sm:$0xff] %v9977_v6  ;;  %v13942_v6 = vld [vmem:[#allocation190_spill] sm:$0xff] }
 0x316   :  { %v3432_v10 = vadd.f32 %v3400_v21, %v3350_v59  ;;  %v3595_v1 = vadd.f32 %v3563_v34, %v7998_v54  ;;  %v3727_v44 = vmul.f32 %v9895_v61, %v13670_v51  ;;  %v3552_v50 = vmul.f32 %v9873_v45, %v13671_v5  ;;  %v9985_v59 = vpop.xlane.xlu0 %1699 }
 0x317   :  { %3822 = vadd.xlane.f32.xlu1 %v3821_v15  ;;  %v3553_v63 = vmul.f32 %v9876_v12, %v13671_v5  ;;  %v3463_v11 = vmax.f32 %v3431_v46, 0.0  ;;  %v3676_v17 = vadd.f32 %v3644_v16, %v3594_v56  ;;  %v3634_v20 = vmul.f32 %v9879_v31, %v13672_v33  ;;  %13927 = vst [vmem:[#allocation41_spill] sm:$0xff] %v9985_v59 }
 0x318   :  { %v3464_v39 = vmax.f32 %v3432_v10, 0.0  ;;  %v3677_v35 = vadd.f32 %v3645_v47, %v3595_v1  ;;  %v3584_v48 = vadd.f32 %v3552_v50, %v13708_v8  ;;  %v3635_v22 = vmul.f32 %v9882_v62, %v13672_v33 }
 0x319   :  { %v3585_v28 = vadd.f32 %v3553_v63, %v13708_v8  ;;  %v3758_v21 = vadd.f32 %v3726_v19, %v3676_v17  ;;  %v3716_v15 = vmul.f32 %v9886_v26, %v13709_v32  ;;  %v3717_v16 = vmul.f32 %v9895_v61, %v13709_v32  ;;  %v10001_v17 = vpop.xlane.xlu1 %1690 }
 0x31a   :  { %v3509_v52 = vadd.f32 %v3464_v39, %v3463_v11  ;;  %v3759_v55 = vadd.f32 %v3727_v44, %v3677_v35  ;;  %v3666_v40 = vadd.f32 %v3634_v20, %v3584_v48  ;;  %v3566_v10 = vmul.f32 %v9873_v45, %v13710_v27  ;;  %13928 = vst [vmem:[#allocation42_spill] sm:$0xff] %v10001_v17 }
 0x31b   :  { %v3667_v34 = vadd.f32 %v3635_v22, %v3585_v28  ;;  %v3790_v47 = vmax.f32 %v3758_v21, 0.0  ;;  %v3567_v56 = vmul.f32 %v9876_v12, %v13710_v27  ;;  %v3648_v44 = vmul.f32 %v9879_v31, %v13675_v2 }
 0x31c   :  { %3510 = vadd.xlane.f32.xlu0 %v3509_v52  ;;  %v3791_v46 = vmax.f32 %v3759_v55, 0.0  ;;  %v3748_v1 = vadd.f32 %v3716_v15, %v3666_v40  ;;  %v3598_v63 = vadd.f32 %v3566_v10, %v13711_v58  ;;  %v3649_v39 = vmul.f32 %v9882_v62, %v13675_v2  ;;  %v10011_v40 = vpop.xlane.xlu0 %2002 }
 0x31d   :  { %v3749_v19 = vadd.f32 %v3717_v16, %v3667_v34  ;;  %v3599_v11 = vadd.f32 %v3567_v56, %v13711_v58  ;;  %v3730_v28 = vmul.f32 %v9886_v26, %v13712_v13  ;;  %v3731_v20 = vmul.f32 %v9895_v61, %v13712_v13  ;;  %13929 = vst [vmem:[#allocation254_spill] sm:$0xff] %v10011_v40 }
 0x31e   :  { %v3827_v50 = vadd.f32 %v3791_v46, %v3790_v47  ;;  %v3780_v35 = vmax.f32 %v3748_v1, 0.0  ;;  %v3680_v22 = vadd.f32 %v3648_v44, %v3598_v63  ;;  %v3556_v21 = vmul.f32 %v9873_v45, %v13713_v0 }
 0x31f   :  { %v3781_v48 = vmax.f32 %v3749_v19, 0.0  ;;  %v3681_v52 = vadd.f32 %v3649_v39, %v3599_v11  ;;  %v3557_v55 = vmul.f32 %v9876_v12, %v13713_v0  ;;  %v3638_v15 = vmul.f32 %v9879_v31, %v13678_v60 }
 0x320   :  { %3828 = vadd.xlane.f32.xlu1 %v3827_v50  ;;  %v3639_v16 = vmul.f32 %v9882_v62, %v13678_v60  ;;  %v3762_v47 = vadd.f32 %v3730_v28, %v3680_v22  ;;  %v3588_v10 = vadd.f32 %v3556_v21, %v13749_v37  ;;  %v3720_v1 = vmul.f32 %v9886_v26, %v13750_v57  ;;  %v10035_v59 = vpop.xlane.xlu0 %2008 }
 0x321   :  { %v3812_v34 = vadd.f32 %v3781_v48, %v3780_v35  ;;  %v3763_v46 = vadd.f32 %v3731_v20, %v3681_v52  ;;  %v3589_v56 = vadd.f32 %v3557_v55, %v13749_v37  ;;  %v3721_v19 = vmul.f32 %v9895_v61, %v13750_v57  ;;  %v10027_v48 = vpop.xlane.xlu1 %1696  ;;  %13931 = vst [vmem:[#allocation43_spill] sm:$0xff] %v10035_v59 }
 0x322   :  { %v3570_v44 = vmul.f32 %v9873_v45, %v13806_v18  ;;  %v3571_v50 = vmul.f32 %v9876_v12, %v13806_v18  ;;  %v3794_v63 = vmax.f32 %v3762_v47, 0.0  ;;  %v3670_v39 = vadd.f32 %v3638_v15, %v3588_v10  ;;  %13930 = vst [vmem:[#allocation255_spill] sm:$0xff] %v10027_v48 }
 0x323   :  { %3813 = vadd.xlane.f32.xlu0 %v3812_v34  ;;  %v3795_v11 = vmax.f32 %v3763_v46, 0.0  ;;  %v3671_v35 = vadd.f32 %v3639_v16, %v3589_v56  ;;  %v3652_v22 = vmul.f32 %v9879_v31, %v13807_v42  ;;  %v3653_v52 = vmul.f32 %v9882_v62, %v13807_v42 }
 0x324   :  { %v3602_v28 = vadd.f32 %v3570_v44, %v13752_v9  ;;  %v3603_v20 = vadd.f32 %v3571_v50, %v13752_v9  ;;  %v3752_v55 = vadd.f32 %v3720_v1, %v3670_v39  ;;  %v3734_v16 = vmul.f32 %v9886_v26, %v13808_v36 }
 0x325   :  { %v3833_v21 = vadd.f32 %v3795_v11, %v3794_v63  ;;  %v3753_v34 = vadd.f32 %v3721_v19, %v3671_v35  ;;  %v3735_v46 = vmul.f32 %v9895_v61, %v13808_v36  ;;  %v3560_v44 = vmul.f32 %v9873_v45, %v13755_v24 }
 0x326   :  { %v3684_v47 = vadd.f32 %v3652_v22, %v3602_v28  ;;  %v3685_v15 = vadd.f32 %v3653_v52, %v3603_v20  ;;  %v3784_v10 = vmax.f32 %v3752_v55, 0.0  ;;  %v3561_v1 = vmul.f32 %v9876_v12, %v13755_v24  ;;  %v10051_v20 = vpop.xlane.xlu1 %1702 }
 0x327   :  { %3834 = vadd.xlane.f32.xlu1 %v3833_v21  ;;  %v3785_v56 = vmax.f32 %v3753_v34, 0.0  ;;  %v3642_v63 = vmul.f32 %v9879_v31, %v13811_v25  ;;  %v3592_v39 = vadd.f32 %v3560_v44, %v13812_v23  ;;  %v3643_v28 = vmul.f32 %v9882_v62, %v13811_v25  ;;  %13932 = vst [vmem:[#allocation44_spill] sm:$0xff] %v10051_v20  ;;  %v13933_v21 = vld [vmem:[#allocation155_spill] sm:$0xff] }
 0x328   :  { %v3766_v19 = vadd.f32 %v3734_v16, %v3684_v47  ;;  %v3767_v50 = vadd.f32 %v3735_v46, %v3685_v15  ;;  %v3593_v35 = vadd.f32 %v3561_v1, %v13812_v23  ;;  %v3724_v55 = vmul.f32 %v9886_v26, %v13933_v21  ;;  %v13934_v16 = vld [vmem:[#allocation81_spill] sm:$0xff]  ;;  %v13936_v1 = vld [vmem:[#allocation82_spill] sm:$0xff] }
 0x329   :  { %v3818_v11 = vadd.f32 %v3785_v56, %v3784_v10  ;;  %v3725_v34 = vmul.f32 %v9895_v61, %v13933_v21  ;;  %v3674_v47 = vadd.f32 %v3642_v63, %v3592_v39  ;;  %v3574_v46 = vmul.f32 %v9873_v45, %v13934_v16  ;;  %v10061_v56 = vpop.xlane.xlu0 %2014 }
 0x32a   :  { %v3798_v22 = vmax.f32 %v3766_v19, 0.0  ;;  %v3799_v52 = vmax.f32 %v3767_v50, 0.0  ;;  %v3675_v15 = vadd.f32 %v3643_v28, %v3593_v35  ;;  %v3575_v10 = vmul.f32 %v9876_v12, %v13934_v16  ;;  %13935 = vst [vmem:[#allocation57_spill] sm:$0xff] %v10061_v56  ;;  %v13938_v35 = vld [vmem:[#allocation371_spill] sm:$0xff]  ;;  %v13985_v16 = vld [vmem:[#allocation24_spill] sm:$0xff] }
 0x32b   :  { %3819 = vadd.xlane.f32.xlu0 %v3818_v11  ;;  %v3656_v19 = vmul.f32 %v9879_v31, %v13936_v1  ;;  %v3657_v50 = vmul.f32 %v9882_v62, %v13936_v1  ;;  %v3756_v4 = vadd.f32 %v3724_v55, %v3674_v47  ;;  %v13937_v11 = vld [vmem:[#allocation326_spill] sm:$0xff]  ;;  %v3738_v28 = vmul.f32 %v9886_v26, %v13938_v35 }
 0x32c   :  { %v3839_v44 = vadd.f32 %v3799_v52, %v3798_v22  ;;  %v3757_v20 = vadd.f32 %v3725_v34, %v3675_v15  ;;  %v3606_v63 = vadd.f32 %v3574_v46, %v13937_v11  ;;  %v3607_v39 = vadd.f32 %v3575_v10, %v13937_v11  ;;  %v13939_v22 = vld [vmem:[#allocation305_spill] sm:$0xff]  ;;  %v10077_v15 = vpop.xlane.xlu1 %2005  ;;  %v13941_v46 = vld [vmem:[#allocation51_spill] sm:$0xff] }
 0x32d   :  { %v3739_v48 = vmul.f32 %v9895_v61, %v13938_v35  ;;  %v3564_v52 = vmul.f32 %v9873_v45, %v13939_v22  ;;  %v3565_v17 = vmul.f32 %v9876_v12, %v13939_v22  ;;  %v3788_v49 = vmax.f32 %v3756_v4, 0.0  ;;  %13940 = vst [vmem:[#allocation58_spill] sm:$0xff] %v10077_v15  ;;  %v10085_v22 = vpop.xlane.xlu0 %2020 }
 0x32e   :  { %3840 = vadd.xlane.f32.xlu1 %v3839_v44  ;;  %v3789_v55 = vmax.f32 %v3757_v20, 0.0  ;;  %v3688_v34 = vadd.f32 %v3656_v19, %v3606_v63  ;;  %v3689_v47 = vadd.f32 %v3657_v50, %v3607_v39  ;;  %v3646_v7 = vmul.f32 %v9879_v31, %v13942_v6  ;;  %13943 = vst [vmem:[#allocation330_spill] sm:$0xff] %v10085_v22  ;;  %v13944_v19 = vld [vmem:[#allocation173_spill] sm:$0xff] }
 0x32f   :  { %v3596_v10 = vadd.f32 %v3564_v52, %v13941_v46  ;;  %v3597_v44 = vadd.f32 %v3565_v17, %v13941_v46  ;;  %v3647_v56 = vmul.f32 %v9882_v62, %v13942_v6  ;;  %v3728_v50 = vmul.f32 %v9886_v26, %v13944_v19  ;;  %v13945_v52 = vld [vmem:[#allocation99_spill] sm:$0xff]  ;;  %v13949_v22 = vld [vmem:[#allocation381_spill] sm:$0xff] }
 0x330   :  { %v3824_v59 = vadd.f32 %v3789_v55, %v3788_v49  ;;  %v3770_v40 = vadd.f32 %v3738_v28, %v3688_v34  ;;  %v3771_v35 = vadd.f32 %v3739_v48, %v3689_v47  ;;  %v3729_v63 = vmul.f32 %v9895_v61, %v13944_v19  ;;  %v13946_v55 = vld [vmem:[#allocation100_spill] sm:$0xff] }
 0x331   :  { %v3678_v4 = vadd.f32 %v3646_v7, %v3596_v10  ;;  %v3679_v20 = vadd.f32 %v3647_v56, %v3597_v44  ;;  %v3578_v15 = vmul.f32 %v9873_v45, %v13945_v52  ;;  %v3579_v49 = vmul.f32 %v9876_v12, %v13945_v52  ;;  %v13947_v34 = vld [vmem:[#allocation52_spill] sm:$0xff] }
 0x332   :  { %3825 = vadd.xlane.f32.xlu0 %v3824_v59  ;;  %v3802_v17 = vmax.f32 %v3770_v40, 0.0  ;;  %v3803_v39 = vmax.f32 %v3771_v35, 0.0  ;;  %v3660_v7 = vmul.f32 %v9879_v31, %v13946_v55  ;;  %v3661_v59 = vmul.f32 %v9882_v62, %v13946_v55  ;;  %v10101_v40 = vpop.xlane.xlu1 %2011 }
 0x333   :  { %v3760_v48 = vadd.f32 %v3728_v50, %v3678_v4  ;;  %v3761_v28 = vadd.f32 %v3729_v63, %v3679_v20  ;;  %v3610_v47 = vadd.f32 %v3578_v15, %v13947_v34  ;;  %v3611_v10 = vadd.f32 %v3579_v49, %v13947_v34  ;;  %13948 = vst [vmem:[#allocation331_spill] sm:$0xff] %v10101_v40  ;;  %v13950_v63 = vld [vmem:[#allocation321_spill] sm:$0xff] }
 0x334   :  { %v3845_v56 = vadd.f32 %v3803_v39, %v3802_v17  ;;  %v3742_v52 = vmul.f32 %v9886_v26, %v13949_v22  ;;  %v3743_v4 = vmul.f32 %v9895_v61, %v13949_v22  ;;  %v3568_v15 = vmul.f32 %v9873_v45, %v13950_v63  ;;  %v10111_v39 = vpop.xlane.xlu0 %2026 }
 0x335   :  { %v3792_v35 = vmax.f32 %v3760_v48, 0.0  ;;  %v3793_v44 = vmax.f32 %v3761_v28, 0.0  ;;  %v3692_v20 = vadd.f32 %v3660_v7, %v3610_v47  ;;  %v3693_v50 = vadd.f32 %v3661_v59, %v3611_v10  ;;  %13951 = vst [vmem:[#allocation59_spill] sm:$0xff] %v10111_v39  ;;  %v13952_v48 = vld [vmem:[#allocation208_spill] sm:$0xff]  ;;  %v13954_v10 = vld [vmem:[#allocation191_spill] sm:$0xff] }
 0x336   :  { %3846 = vadd.xlane.f32.xlu1 %v3845_v56  ;;  %v3569_v17 = vmul.f32 %v9876_v12, %v13950_v63  ;;  %v3650_v28 = vmul.f32 %v9879_v31, %v13952_v48  ;;  %v3651_v40 = vmul.f32 %v9882_v62, %v13952_v48  ;;  %v13953_v56 = vld [vmem:[#allocation327_spill] sm:$0xff]  ;;  %v3732_v59 = vmul.f32 %v9886_v26, %v13954_v10 }
 0x337   :  { %v3830_v49 = vadd.f32 %v3793_v44, %v3792_v35  ;;  %v3774_v34 = vadd.f32 %v3742_v52, %v3692_v20  ;;  %v3775_v22 = vadd.f32 %v3743_v4, %v3693_v50  ;;  %v3600_v7 = vadd.f32 %v3568_v15, %v13953_v56  ;;  %v13955_v35 = vld [vmem:[#allocation117_spill] sm:$0xff]  ;;  %v10127_v50 = vpop.xlane.xlu1 %2017  ;;  %v13957_v15 = vld [vmem:[#allocation146_spill] sm:$0xff] }
 0x338   :  { %v3601_v47 = vadd.f32 %v3569_v17, %v13953_v56  ;;  %v3733_v39 = vmul.f32 %v9895_v61, %v13954_v10  ;;  %v3582_v44 = vmul.f32 %v9873_v45, %v13955_v35  ;;  %v3583_v63 = vmul.f32 %v9876_v12, %v13955_v35  ;;  %13956 = vst [vmem:[#allocation60_spill] sm:$0xff] %v10127_v50  ;;  %v13958_v56 = vld [vmem:[#allocation118_spill] sm:$0xff]  ;;  %v10135_v35 = vpop.xlane.xlu0 %2032 }
 0x339   :  { %3831 = vadd.xlane.f32.xlu0 %v3830_v49  ;;  %v3806_v48 = vmax.f32 %v3774_v34, 0.0  ;;  %v3807_v52 = vmax.f32 %v3775_v22, 0.0  ;;  %v3682_v4 = vadd.f32 %v3650_v28, %v3600_v7  ;;  %v3664_v55 = vmul.f32 %v9879_v31, %v13958_v56  ;;  %13959 = vst [vmem:[#allocation19_spill] sm:$0xff] %v10135_v35 }
 0x33a   :  { %v3683_v20 = vadd.f32 %v3651_v40, %v3601_v47  ;;  %v3614_v17 = vadd.f32 %v3582_v44, %v13957_v15  ;;  %v3615_v49 = vadd.f32 %v3583_v63, %v13957_v15  ;;  %v3665_v10 = vmul.f32 %v9882_v62, %v13958_v56  ;;  %v13960_v40 = vld [vmem:[#allocation387_spill] sm:$0xff]  ;;  %v13971_v56 = vld [vmem:[#allocation9_spill] sm:$0xff] }
 0x33b   :  { %v3851_v19 = vadd.f32 %v3807_v52, %v3806_v48  ;;  %v3764_v6 = vadd.f32 %v3732_v59, %v3682_v4  ;;  %v3746_v28 = vmul.f32 %v9886_v26, %v13960_v40  ;;  %v3747_v7 = vmul.f32 %v9895_v61, %v13960_v40  ;;  %v13961_v44 = vld [vmem:[#allocation339_spill] sm:$0xff]  ;;  %v13962_v52 = vld [vmem:[#allocation226_spill] sm:$0xff] }
 0x33c   :  { %v3765_v46 = vadd.f32 %v3733_v39, %v3683_v20  ;;  %v3696_v22 = vadd.f32 %v3664_v55, %v3614_v17  ;;  %v3697_v34 = vadd.f32 %v3665_v10, %v3615_v49  ;;  %v3572_v50 = vmul.f32 %v9873_v45, %v13961_v44  ;;  %v6050_v10 = vld [vmem:[%s12439_s0 + $0x50] sm:$0x77]  ;;  %v10154_v17 = vpop.xlane.xlu1 %2023 }
 0x33d   :  { %3852 = vadd.xlane.f32.xlu1 %v3851_v19  ;;  %v3796_v63 = vmax.f32 %v3764_v6, 0.0  ;;  %v3573_v48 = vmul.f32 %v9876_v12, %v13961_v44  ;;  %v3654_v55 = vmul.f32 %v9879_v31, %v13962_v52  ;;  %v13963_v20 = vld [vmem:[#allocation147_spill] sm:$0xff]  ;;  %13964 = vst [vmem:[#allocation20_spill] sm:$0xff] %v10154_v17  ;;  %v13967_v44 = vld [vmem:[#allocation6_spill] sm:$0xff]  ;;  %v4046_v15 = vrot.slane %v6050_v10, %v13971_v56 }
 0x33e   :  { %v3797_v47 = vmax.f32 %v3765_v46, 0.0  ;;  %v3778_v39 = vadd.f32 %v3746_v28, %v3696_v22  ;;  %v3779_v59 = vadd.f32 %v3747_v7, %v3697_v34  ;;  %v3604_v19 = vadd.f32 %v3572_v50, %v13963_v20  ;;  %v13965_v34 = vld [vmem:[#allocation209_spill] sm:$0xff]  ;;  %v13969_v40 = vld [vmem:[#allocation7_spill] sm:$0xff] }
 0x33f   :  { %v3605_v6 = vadd.f32 %v3573_v48, %v13963_v20  ;;  %v3655_v46 = vmul.f32 %v9882_v62, %v13962_v52  ;;  %v3736_v28 = vmul.f32 %v9886_v26, %v13965_v34  ;;  %v3737_v7 = vmul.f32 %v9895_v61, %v13965_v34  ;;  %v10162_v20 = vpop.xlane.xlu0 %2038 }
 0x340   :  { %v3836_v4 = vadd.f32 %v3797_v47, %v3796_v63  ;;  %v3810_v49 = vmax.f32 %v3778_v39, 0.0  ;;  %v3811_v22 = vmax.f32 %v3779_v59, 0.0  ;;  %v3686_v35 = vadd.f32 %v3654_v55, %v3604_v19  ;;  %v13966_v47 = vld [vmem:[#allocation5_spill] sm:$0xff]  ;;  %13968 = vst [vmem:[#allocation75_spill] sm:$0xff] %v10162_v20  ;;  %v13970_v39 = vld [vmem:[#allocation8_spill] sm:$0xff] }
 0x341   :  { %v3687_v63 = vadd.f32 %v3655_v46, %v3605_v6  ;;  %v3882_v50 = vrot.slane %v6050_v10, %v13966_v47  ;;  %v3886_v48 = vrot.slane %v6050_v10, %v13967_v44  ;;  %v3964_v17 = vrot.slane %v6050_v10, %v13969_v40  ;;  %v13972_v6 = vld [vmem:[#allocation10_spill] sm:$0xff] }
 0x342   :  { %3837 = vadd.xlane.f32.xlu0 %v3836_v4  ;;  %v3857_v52 = vadd.f32 %v3811_v22, %v3810_v49  ;;  %v3968_v59 = vrot.slane %v6050_v10, %v13970_v39  ;;  %v3768_v11 = vadd.f32 %v3736_v28, %v3686_v35  ;;  %v4050_v46 = vrot.slane %v6050_v10, %v13972_v6  ;;  %v13973_v28 = vld [vmem:[#allocation279_spill] sm:$0xff]  ;;  %v13978_v6 = vld [vmem:[#allocation141_spill] sm:$0xff] }
 0x343   :  { %v3769_v1 = vadd.f32 %v3737_v7, %v3687_v63  ;;  %v10168_v34 = vrot.slane %v3882_v50, %v13966_v47  ;;  %v10171_v55 = vrot.slane %v3886_v48, %v13966_v47  ;;  %v10174_v4 = vrot.slane %v3964_v17, %v13969_v40  ;;  %v13975_v17 = vld [vmem:[#allocation140_spill] sm:$0xff]  ;;  %v10198_v20 = vpop.xlane.xlu0 %2044  ;;  %v13979_v39 = vld [vmem:[#allocation355_spill] sm:$0xff] }
 0x344   :  { %3858 = vadd.xlane.f32.xlu1 %v3857_v52  ;;  %v10177_v19 = vrot.slane %v3968_v59, %v13969_v40  ;;  %v10181_v49 = vrot.slane %v4046_v15, %v13971_v56  ;;  %v3800_v35 = vmax.f32 %v3768_v11, 0.0  ;;  %v10187_v52 = vpop.xlane.xlu1 %2029  ;;  %v10192_v48 = vrot.slane %v4050_v46, %v13971_v56  ;;  %v13976_v59 = vld [vmem:[#allocation388_spill] sm:$0xff]  ;;  %13977 = vst [vmem:[#allocation347_spill] sm:$0xff] %v10198_v20 }
 0x345   :  { %v3801_v22 = vmax.f32 %v3769_v1, 0.0  ;;  %v3899_v7 = vmul.f32 %v10168_v34, %v13973_v28  ;;  %v3900_v63 = vmul.f32 %v10171_v55, %v13973_v28  ;;  %13974 = vst [vmem:[#allocation346_spill] sm:$0xff] %v10187_v52  ;;  %v3981_v50 = vmul.f32 %v10174_v4, %v13975_v17 }
 0x346   :  { %v3982_v1 = vmul.f32 %v10177_v19, %v13975_v17  ;;  %v4063_v28 = vmul.f32 %v10181_v49, %v13978_v6  ;;  %v4064_v52 = vmul.f32 %v10192_v48, %v13978_v6  ;;  %v3576_v46 = vmul.f32 %v9873_v45, %v13979_v39  ;;  %v13981_v17 = vld [vmem:[#allocation17_spill] sm:$0xff]  ;;  %v13982_v6 = vld [vmem:[#allocation227_spill] sm:$0xff] }
 0x347   :  { %v3842_v10 = vadd.f32 %v3801_v22, %v3800_v35  ;;  %v3931_v15 = vadd.f32 %v3899_v7, %v13976_v59  ;;  %v3932_v11 = vadd.f32 %v3900_v63, %v13976_v59  ;;  %v3577_v35 = vmul.f32 %v9876_v12, %v13979_v39  ;;  %v13980_v63 = vld [vmem:[#allocation244_spill] sm:$0xff] }
 0x348   :  { %v3658_v59 = vmul.f32 %v9879_v31, %v13980_v63  ;;  %v3659_v20 = vmul.f32 %v9882_v62, %v13980_v63  ;;  %v3608_v56 = vadd.f32 %v3576_v46, %v13981_v17  ;;  %v3740_v44 = vmul.f32 %v9886_v26, %v13982_v6 }
 0x349   :  { %3843 = vadd.xlane.f32.xlu0 %v3842_v10  ;;  %v4013_v22 = vadd.f32 %v3981_v50, %v3931_v15  ;;  %v4014_v7 = vadd.f32 %v3982_v1, %v3932_v11  ;;  %v3609_v40 = vadd.f32 %v3577_v35, %v13981_v17  ;;  %v3741_v47 = vmul.f32 %v9895_v61, %v13982_v6  ;;  %v13983_v50 = vld [vmem:[#allocation23_spill] sm:$0xff]  ;;  %v10222_v1 = vpop.xlane.xlu1 %2035 }
 0x34a   :  { %v3903_v15 = vmul.f32 %v10168_v34, %v13983_v50  ;;  %v3904_v11 = vmul.f32 %v10171_v55, %v13983_v50  ;;  %13984 = vst [vmem:[#allocation166_spill] sm:$0xff] %v10222_v1  ;;  %v3690_v63 = vadd.f32 %v3658_v59, %v3608_v56  ;;  %v3985_v35 = vmul.f32 %v10174_v4, %v13985_v16 }
 0x34b   :  { %v4095_v39 = vadd.f32 %v4063_v28, %v4013_v22  ;;  %v4096_v10 = vadd.f32 %v4064_v52, %v4014_v7  ;;  %v3691_v46 = vadd.f32 %v3659_v20, %v3609_v40  ;;  %v3986_v17 = vmul.f32 %v10177_v19, %v13985_v16  ;;  %v10230_v22 = vpop.xlane.xlu0 %2347 }
 0x34c   :  { %v3935_v28 = vadd.f32 %v3903_v15, %v7966_v41  ;;  %v3936_v52 = vadd.f32 %v3904_v11, %v7966_v41  ;;  %13986 = vst [vmem:[#allocation167_spill] sm:$0xff] %v10230_v22  ;;  %v3772_v7 = vadd.f32 %v3740_v44, %v3690_v63  ;;  %v4067_v56 = vmul.f32 %v10181_v49, %v13664_v14 }
 0x34d   :  { %v4127_v21 = vmax.f32 %v4095_v39, 0.0  ;;  %v4128_v6 = vmax.f32 %v4096_v10, 0.0  ;;  %v3773_v50 = vadd.f32 %v3741_v47, %v3691_v46  ;;  %v4068_v1 = vmul.f32 %v10192_v48, %v13664_v14 }
 0x34e   :  { %v4017_v20 = vadd.f32 %v3985_v35, %v3935_v28  ;;  %v4018_v59 = vadd.f32 %v3986_v17, %v3936_v52  ;;  %v3804_v16 = vmax.f32 %v3772_v7, 0.0  ;;  %v3580_v10 = vmul.f32 %v9873_v45, %v13665_v29 }
 0x34f   :  { %v4160_v40 = vadd.f32 %v4128_v6, %v4127_v21  ;;  %v3805_v39 = vmax.f32 %v3773_v50, 0.0  ;;  %v3581_v15 = vmul.f32 %v9876_v12, %v13665_v29  ;;  %v3662_v63 = vmul.f32 %v9879_v31, %v13666_v53  ;;  %v10242_v21 = vpop.xlane.xlu1 %2041  ;;  %v10252_v35 = vpop.xlane.xlu0 %2353 }
 0x350   :  { %v4099_v44 = vadd.f32 %v4067_v56, %v4017_v20  ;;  %v4100_v47 = vadd.f32 %v4068_v1, %v4018_v59  ;;  %13987 = vst [vmem:[#allocation76_spill] sm:$0xff] %v10242_v21  ;;  %v3612_v17 = vadd.f32 %v3580_v10, %v8146_v43  ;;  %v3663_v50 = vmul.f32 %v9882_v62, %v13666_v53 }
 0x351   :  { %4161 = vadd.xlane.f32.xlu1 %v4160_v40  ;;  %v3848_v6 = vadd.f32 %v3805_v39, %v3804_v16  ;;  %v3613_v11 = vadd.f32 %v3581_v15, %v8146_v43  ;;  %v3744_v12 = vmul.f32 %v9886_v26, %v13667_v38  ;;  %v3745_v1 = vmul.f32 %v9895_v61, %v13667_v38 }
 0x352   :  { %v4131_v45 = vmax.f32 %v4099_v44, 0.0  ;;  %v4132_v46 = vmax.f32 %v4100_v47, 0.0  ;;  %13988 = vst [vmem:[#allocation77_spill] sm:$0xff] %v10252_v35  ;;  %v3694_v31 = vadd.f32 %v3662_v63, %v3612_v17  ;;  %v3907_v28 = vmul.f32 %v10168_v34, %v13668_v3 }
 0x353   :  { %3849 = vadd.xlane.f32.xlu0 %v3848_v6  ;;  %v3695_v16 = vadd.f32 %v3663_v50, %v3613_v11  ;;  %v3908_v52 = vmul.f32 %v10171_v55, %v13668_v3  ;;  %v3989_v7 = vmul.f32 %v10174_v4, %v13669_v30  ;;  %v3990_v26 = vmul.f32 %v10177_v19, %v13669_v30  ;;  %v10272_v44 = vpop.xlane.xlu1 %2047 }
 0x354   :  { %v4166_v62 = vadd.f32 %v4132_v46, %v4131_v45  ;;  %v3776_v56 = vadd.f32 %v3744_v12, %v3694_v31  ;;  %v3939_v40 = vadd.f32 %v3907_v28, %v7998_v54  ;;  %v4071_v59 = vmul.f32 %v10181_v49, %v13670_v51  ;;  %13989 = vst [vmem:[#allocation298_spill] sm:$0xff] %v10272_v44  ;;  %v10280_v12 = vpop.xlane.xlu0 %2359 }
 0x355   :  { %v3777_v61 = vadd.f32 %v3745_v1, %v3695_v16  ;;  %v3940_v20 = vadd.f32 %v3908_v52, %v7998_v54  ;;  %v4072_v39 = vmul.f32 %v10192_v48, %v13670_v51  ;;  %v3897_v10 = vmul.f32 %v10168_v34, %v13671_v5  ;;  %13990 = vst [vmem:[#allocation296_spill] sm:$0xff] %v10280_v12  ;;  %v14005_v12 = vld [vmem:[#allocation190_spill] sm:$0xff] }
 0x356   :  { %4167 = vadd.xlane.f32.xlu1 %v4166_v62  ;;  %v3898_v15 = vmul.f32 %v10171_v55, %v13671_v5  ;;  %v3808_v47 = vmax.f32 %v3776_v56, 0.0  ;;  %v4021_v6 = vadd.f32 %v3989_v7, %v3939_v40  ;;  %v3979_v45 = vmul.f32 %v10174_v4, %v13672_v33 }
 0x357   :  { %v3809_v63 = vmax.f32 %v3777_v61, 0.0  ;;  %v4022_v17 = vadd.f32 %v3990_v26, %v3940_v20  ;;  %v3929_v11 = vadd.f32 %v3897_v10, %v13708_v8  ;;  %v3980_v46 = vmul.f32 %v10177_v19, %v13672_v33  ;;  %v10292_v10 = vpop.xlane.xlu1 %2350 }
 0x358   :  { %v3930_v50 = vadd.f32 %v3898_v15, %v13708_v8  ;;  %v4103_v31 = vadd.f32 %v4071_v59, %v4021_v6  ;;  %v4061_v62 = vmul.f32 %v10181_v49, %v13709_v32  ;;  %v4062_v7 = vmul.f32 %v10192_v48, %v13709_v32  ;;  %13991 = vst [vmem:[#allocation297_spill] sm:$0xff] %v10292_v10 }
 0x359   :  { %v3854_v1 = vadd.f32 %v3809_v63, %v3808_v47  ;;  %v4104_v16 = vadd.f32 %v4072_v39, %v4022_v17  ;;  %v4011_v28 = vadd.f32 %v3979_v45, %v3929_v11  ;;  %v3911_v61 = vmul.f32 %v10168_v34, %v13710_v27 }
 0x35a   :  { %v4012_v52 = vadd.f32 %v3980_v46, %v3930_v50  ;;  %v4135_v26 = vmax.f32 %v4103_v31, 0.0  ;;  %v3912_v40 = vmul.f32 %v10171_v55, %v13710_v27  ;;  %v3993_v39 = vmul.f32 %v10174_v4, %v13675_v2  ;;  %v10302_v46 = vpop.xlane.xlu0 %2365 }
 0x35b   :  { %3855 = vadd.xlane.f32.xlu0 %v3854_v1  ;;  %v4136_v56 = vmax.f32 %v4104_v16, 0.0  ;;  %v4093_v20 = vadd.f32 %v4061_v62, %v4011_v28  ;;  %v3943_v47 = vadd.f32 %v3911_v61, %v13711_v58  ;;  %v3994_v6 = vmul.f32 %v10177_v19, %v13675_v2  ;;  %13992 = vst [vmem:[#allocation78_spill] sm:$0xff] %v10302_v46  ;;  %v14000_v46 = vld [vmem:[#allocation326_spill] sm:$0xff] }
 0x35c   :  { %v4094_v59 = vadd.f32 %v4062_v7, %v4012_v52  ;;  %v3944_v63 = vadd.f32 %v3912_v40, %v13711_v58  ;;  %v4075_v50 = vmul.f32 %v10181_v49, %v13712_v13  ;;  %v4076_v45 = vmul.f32 %v10192_v48, %v13712_v13 }
 0x35d   :  { %v4172_v15 = vadd.f32 %v4136_v56, %v4135_v26  ;;  %v4125_v17 = vmax.f32 %v4093_v20, 0.0  ;;  %v4025_v1 = vadd.f32 %v3993_v39, %v3943_v47  ;;  %v3901_v16 = vmul.f32 %v10168_v34, %v13713_v0  ;;  %v10322_v47 = vpop.xlane.xlu1 %2356 }
 0x35e   :  { %v4126_v11 = vmax.f32 %v4094_v59, 0.0  ;;  %v4026_v31 = vadd.f32 %v3994_v6, %v3944_v63  ;;  %v3902_v28 = vmul.f32 %v10171_v55, %v13713_v0  ;;  %v3983_v62 = vmul.f32 %v10174_v4, %v13678_v60  ;;  %13993 = vst [vmem:[#allocation363_spill] sm:$0xff] %v10322_v47 }
 0x35f   :  { %4173 = vadd.xlane.f32.xlu1 %v4172_v15  ;;  %v3984_v7 = vmul.f32 %v10177_v19, %v13678_v60  ;;  %v4107_v26 = vadd.f32 %v4075_v50, %v4025_v1  ;;  %v3933_v61 = vadd.f32 %v3901_v16, %v13749_v37  ;;  %v4065_v20 = vmul.f32 %v10181_v49, %v13750_v57  ;;  %v10330_v16 = vpop.xlane.xlu0 %2371 }
 0x360   :  { %v4157_v52 = vadd.f32 %v4126_v11, %v4125_v17  ;;  %v4108_v56 = vadd.f32 %v4076_v45, %v4026_v31  ;;  %v3934_v40 = vadd.f32 %v3902_v28, %v13749_v37  ;;  %v4066_v59 = vmul.f32 %v10192_v48, %v13750_v57  ;;  %13994 = vst [vmem:[#allocation299_spill] sm:$0xff] %v10330_v16 }
 0x361   :  { %v3915_v39 = vmul.f32 %v10168_v34, %v13806_v18  ;;  %v3916_v15 = vmul.f32 %v10171_v55, %v13806_v18  ;;  %v4139_v63 = vmax.f32 %v4107_v26, 0.0  ;;  %v4015_v17 = vadd.f32 %v3983_v62, %v3933_v61 }
 0x362   :  { %4158 = vadd.xlane.f32.xlu0 %v4157_v52  ;;  %v4140_v6 = vmax.f32 %v4108_v56, 0.0  ;;  %v4016_v11 = vadd.f32 %v3984_v7, %v3934_v40  ;;  %v3997_v1 = vmul.f32 %v10174_v4, %v13807_v42  ;;  %v3998_v31 = vmul.f32 %v10177_v19, %v13807_v42 }
 0x363   :  { %v3947_v50 = vadd.f32 %v3915_v39, %v13752_v9  ;;  %v3948_v45 = vadd.f32 %v3916_v15, %v13752_v9  ;;  %v4097_v52 = vadd.f32 %v4065_v20, %v4015_v17  ;;  %v4079_v62 = vmul.f32 %v10181_v49, %v13808_v36 }
 0x364   :  { %v4178_v28 = vadd.f32 %v4140_v6, %v4139_v63  ;;  %v4098_v44 = vadd.f32 %v4066_v59, %v4016_v11  ;;  %v4080_v7 = vmul.f32 %v10192_v48, %v13808_v36  ;;  %v3905_v40 = vmul.f32 %v10168_v34, %v13755_v24  ;;  %v10342_v63 = vpop.xlane.xlu1 %2362 }
 0x365   :  { %v4029_v21 = vadd.f32 %v3997_v1, %v3947_v50  ;;  %v4030_v26 = vadd.f32 %v3998_v31, %v3948_v45  ;;  %v4129_v56 = vmax.f32 %v4097_v52, 0.0  ;;  %v3906_v39 = vmul.f32 %v10171_v55, %v13755_v24  ;;  %13995 = vst [vmem:[#allocation184_spill] sm:$0xff] %v10342_v63  ;;  %v13996_v1 = vld [vmem:[#allocation155_spill] sm:$0xff] }
 0x366   :  { %4179 = vadd.xlane.f32.xlu1 %v4178_v28  ;;  %v4130_v61 = vmax.f32 %v4098_v44, 0.0  ;;  %v3987_v59 = vmul.f32 %v10174_v4, %v13811_v25  ;;  %v3937_v17 = vadd.f32 %v3905_v40, %v13812_v23  ;;  %v3988_v44 = vmul.f32 %v10177_v19, %v13811_v25  ;;  %v10352_v28 = vpop.xlane.xlu0 %2377  ;;  %v13999_v40 = vld [vmem:[#allocation82_spill] sm:$0xff] }
 0x367   :  { %v4111_v15 = vadd.f32 %v4079_v62, %v4029_v21  ;;  %v4112_v20 = vadd.f32 %v4080_v7, %v4030_v26  ;;  %v3938_v11 = vadd.f32 %v3906_v39, %v13812_v23  ;;  %v4069_v31 = vmul.f32 %v10181_v49, %v13996_v1  ;;  %13997 = vst [vmem:[#allocation93_spill] sm:$0xff] %v10352_v28  ;;  %v13998_v62 = vld [vmem:[#allocation81_spill] sm:$0xff] }
 0x368   :  { %v4163_v6 = vadd.f32 %v4130_v61, %v4129_v56  ;;  %v4070_v21 = vmul.f32 %v10192_v48, %v13996_v1  ;;  %v4019_v52 = vadd.f32 %v3987_v59, %v3937_v17  ;;  %v3919_v7 = vmul.f32 %v10168_v34, %v13998_v62  ;;  %v10372_v63 = vpop.xlane.xlu1 %2368 }
 0x369   :  { %v4143_v50 = vmax.f32 %v4111_v15, 0.0  ;;  %v4144_v45 = vmax.f32 %v4112_v20, 0.0  ;;  %v4020_v26 = vadd.f32 %v3988_v44, %v3938_v11  ;;  %v3920_v56 = vmul.f32 %v10171_v55, %v13998_v62  ;;  %v14002_v44 = vld [vmem:[#allocation305_spill] sm:$0xff]  ;;  %14003 = vst [vmem:[#allocation364_spill] sm:$0xff] %v10372_v63  ;;  %v14054_v62 = vld [vmem:[#allocation24_spill] sm:$0xff] }
 0x36a   :  { %4164 = vadd.xlane.f32.xlu0 %v4163_v6  ;;  %v4001_v39 = vmul.f32 %v10174_v4, %v13999_v40  ;;  %v4002_v15 = vmul.f32 %v10177_v19, %v13999_v40  ;;  %v4101_v20 = vadd.f32 %v4069_v31, %v4019_v52  ;;  %v3951_v28 = vadd.f32 %v3919_v7, %v14000_v46  ;;  %v14001_v6 = vld [vmem:[#allocation371_spill] sm:$0xff]  ;;  %v10380_v10 = vpop.xlane.xlu0 %2383 }
 0x36b   :  { %v4184_v61 = vadd.f32 %v4144_v45, %v4143_v50  ;;  %v4102_v16 = vadd.f32 %v4070_v21, %v4020_v26  ;;  %v3952_v59 = vadd.f32 %v3920_v56, %v14000_v46  ;;  %v4083_v17 = vmul.f32 %v10181_v49, %v14001_v6  ;;  %v14004_v7 = vld [vmem:[#allocation51_spill] sm:$0xff]  ;;  %14006 = vst [vmem:[#allocation185_spill] sm:$0xff] %v10380_v10 }
 0x36c   :  { %v4084_v11 = vmul.f32 %v10192_v48, %v14001_v6  ;;  %v3909_v50 = vmul.f32 %v10168_v34, %v14002_v44  ;;  %v3910_v45 = vmul.f32 %v10171_v55, %v14002_v44  ;;  %v4133_v31 = vmax.f32 %v4101_v20, 0.0 }
 0x36d   :  { %4185 = vadd.xlane.f32.xlu1 %v4184_v61  ;;  %v4134_v21 = vmax.f32 %v4102_v16, 0.0  ;;  %v4033_v52 = vadd.f32 %v4001_v39, %v3951_v28  ;;  %v4034_v26 = vadd.f32 %v4002_v15, %v3952_v59  ;;  %v3991_v47 = vmul.f32 %v10174_v4, %v14005_v12  ;;  %v14007_v16 = vld [vmem:[#allocation173_spill] sm:$0xff] }
 0x36e   :  { %v3941_v56 = vadd.f32 %v3909_v50, %v14004_v7  ;;  %v3942_v61 = vadd.f32 %v3910_v45, %v14004_v7  ;;  %v3992_v35 = vmul.f32 %v10177_v19, %v14005_v12  ;;  %v4073_v28 = vmul.f32 %v10181_v49, %v14007_v16  ;;  %v14008_v50 = vld [vmem:[#allocation99_spill] sm:$0xff] }
 0x36f   :  { %v4169_v22 = vadd.f32 %v4134_v21, %v4133_v31  ;;  %v4115_v44 = vadd.f32 %v4083_v17, %v4033_v52  ;;  %v4116_v6 = vadd.f32 %v4084_v11, %v4034_v26  ;;  %v4074_v39 = vmul.f32 %v10192_v48, %v14007_v16  ;;  %v14009_v11 = vld [vmem:[#allocation100_spill] sm:$0xff] }
 0x370   :  { %v4023_v63 = vadd.f32 %v3991_v47, %v3941_v56  ;;  %v4024_v20 = vadd.f32 %v3992_v35, %v3942_v61  ;;  %v3923_v45 = vmul.f32 %v10168_v34, %v14008_v50  ;;  %v3924_v10 = vmul.f32 %v10171_v55, %v14008_v50  ;;  %v10392_v47 = vpop.xlane.xlu1 %2374  ;;  %v14011_v52 = vld [vmem:[#allocation52_spill] sm:$0xff]  ;;  %v14012_v61 = vld [vmem:[#allocation381_spill] sm:$0xff] }
 0x371   :  { %4170 = vadd.xlane.f32.xlu0 %v4169_v22  ;;  %v4147_v15 = vmax.f32 %v4115_v44, 0.0  ;;  %v4148_v59 = vmax.f32 %v4116_v6, 0.0  ;;  %v4005_v35 = vmul.f32 %v10174_v4, %v14009_v11  ;;  %14010 = vst [vmem:[#allocation168_spill] sm:$0xff] %v10392_v47  ;;  %v4006_v6 = vmul.f32 %v10177_v19, %v14009_v11  ;;  %v14016_v11 = vld [vmem:[#allocation327_spill] sm:$0xff] }
 0x372   :  { %v4105_v31 = vadd.f32 %v4073_v28, %v4023_v63  ;;  %v4106_v17 = vadd.f32 %v4074_v39, %v4024_v20  ;;  %v3955_v26 = vadd.f32 %v3923_v45, %v14011_v52  ;;  %v3956_v22 = vadd.f32 %v3924_v10, %v14011_v52  ;;  %v10402_v20 = vpop.xlane.xlu0 %2389 }
 0x373   :  { %v4190_v21 = vadd.f32 %v4148_v59, %v4147_v15  ;;  %v4087_v50 = vmul.f32 %v10181_v49, %v14012_v61  ;;  %v4088_v63 = vmul.f32 %v10192_v48, %v14012_v61  ;;  %14013 = vst [vmem:[#allocation94_spill] sm:$0xff] %v10402_v20  ;;  %v14014_v15 = vld [vmem:[#allocation321_spill] sm:$0xff] }
 0x374   :  { %v4137_v44 = vmax.f32 %v4105_v31, 0.0  ;;  %v4138_v56 = vmax.f32 %v4106_v17, 0.0  ;;  %v4037_v28 = vadd.f32 %v4005_v35, %v3955_v26  ;;  %v4038_v39 = vadd.f32 %v4006_v6, %v3956_v22  ;;  %v14015_v31 = vld [vmem:[#allocation208_spill] sm:$0xff]  ;;  %v14018_v6 = vld [vmem:[#allocation117_spill] sm:$0xff] }
 0x375   :  { %4191 = vadd.xlane.f32.xlu1 %v4190_v21  ;;  %v3913_v59 = vmul.f32 %v10168_v34, %v14014_v15  ;;  %v3914_v10 = vmul.f32 %v10171_v55, %v14014_v15  ;;  %v3995_v17 = vmul.f32 %v10174_v4, %v14015_v31  ;;  %v3996_v47 = vmul.f32 %v10177_v19, %v14015_v31  ;;  %v14017_v21 = vld [vmem:[#allocation191_spill] sm:$0xff]  ;;  %v10422_v31 = vpop.xlane.xlu1 %2380 }
 0x376   :  { %v4175_v45 = vadd.f32 %v4138_v56, %v4137_v44  ;;  %v4119_v52 = vadd.f32 %v4087_v50, %v4037_v28  ;;  %v4120_v61 = vadd.f32 %v4088_v63, %v4038_v39  ;;  %v4077_v26 = vmul.f32 %v10181_v49, %v14017_v21  ;;  %14019 = vst [vmem:[#allocation95_spill] sm:$0xff] %v10422_v31  ;;  %v10430_v16 = vpop.xlane.xlu0 %2692 }
 0x377   :  { %v3945_v20 = vadd.f32 %v3913_v59, %v14016_v11  ;;  %v3946_v35 = vadd.f32 %v3914_v10, %v14016_v11  ;;  %v4078_v22 = vmul.f32 %v10192_v48, %v14017_v21  ;;  %v3927_v44 = vmul.f32 %v10168_v34, %v14018_v6  ;;  %v14020_v59 = vld [vmem:[#allocation146_spill] sm:$0xff]  ;;  %14022 = vst [vmem:[#allocation314_spill] sm:$0xff] %v10430_v16 }
 0x378   :  { %4176 = vadd.xlane.f32.xlu0 %v4175_v45  ;;  %v3928_v56 = vmul.f32 %v10171_v55, %v14018_v6  ;;  %v4151_v50 = vmax.f32 %v4119_v52, 0.0  ;;  %v4152_v63 = vmax.f32 %v4120_v61, 0.0  ;;  %v14021_v11 = vld [vmem:[#allocation118_spill] sm:$0xff]  ;;  %v14023_v61 = vld [vmem:[#allocation387_spill] sm:$0xff] }
 0x379   :  { %v4027_v28 = vadd.f32 %v3995_v17, %v3945_v20  ;;  %v4028_v39 = vadd.f32 %v3996_v47, %v3946_v35  ;;  %v3959_v10 = vadd.f32 %v3927_v44, %v14020_v59  ;;  %v4009_v15 = vmul.f32 %v10174_v4, %v14021_v11  ;;  %v14024_v44 = vld [vmem:[#allocation339_spill] sm:$0xff] }
 0x37a   :  { %v3960_v45 = vadd.f32 %v3928_v56, %v14020_v59  ;;  %v4010_v21 = vmul.f32 %v10177_v19, %v14021_v11  ;;  %v4196_v12 = vadd.f32 %v4152_v63, %v4151_v50  ;;  %v4091_v47 = vmul.f32 %v10181_v49, %v14023_v61  ;;  %v10445_v63 = vpop.xlane.xlu1 %2386  ;;  %v14032_v59 = vld [vmem:[#allocation7_spill] sm:$0xff] }
 0x37b   :  { %v4109_v6 = vadd.f32 %v4077_v26, %v4027_v28  ;;  %v4110_v7 = vadd.f32 %v4078_v22, %v4028_v39  ;;  %v4041_v31 = vadd.f32 %v4009_v15, %v3959_v10  ;;  %v4092_v20 = vmul.f32 %v10192_v48, %v14023_v61  ;;  %v14025_v22 = vld [vmem:[#allocation226_spill] sm:$0xff]  ;;  %14026 = vst [vmem:[#allocation169_spill] sm:$0xff] %v10445_v63 }
 0x37c   :  { %v4042_v52 = vadd.f32 %v4010_v21, %v3960_v45  ;;  %4197 = vadd.xlane.f32.xlu1 %v4196_v12  ;;  %v3917_v56 = vmul.f32 %v10168_v34, %v14024_v44  ;;  %v3918_v16 = vmul.f32 %v10171_v55, %v14024_v44  ;;  %v3999_v15 = vmul.f32 %v10174_v4, %v14025_v22  ;;  %v6051_v21 = vld [vmem:[%s12439_s0 + $0x58] sm:$0x77]  ;;  %v14028_v45 = vld [vmem:[#allocation209_spill] sm:$0xff]  ;;  %v14031_v61 = vld [vmem:[#allocation6_spill] sm:$0xff] }
 0x37d   :  { %v4141_v17 = vmax.f32 %v4109_v6, 0.0  ;;  %v4142_v35 = vmax.f32 %v4110_v7, 0.0  ;;  %v4123_v50 = vadd.f32 %v4091_v47, %v4041_v31  ;;  %v14027_v6 = vld [vmem:[#allocation147_spill] sm:$0xff]  ;;  %v4000_v39 = vmul.f32 %v10177_v19, %v14025_v22 }
 0x37e   :  { %v4124_v26 = vadd.f32 %v4092_v20, %v4042_v52  ;;  %v3949_v7 = vadd.f32 %v3917_v56, %v14027_v6  ;;  %v3950_v28 = vadd.f32 %v3918_v16, %v14027_v6  ;;  %v4081_v52 = vmul.f32 %v10181_v49, %v14028_v45  ;;  %v10455_v20 = vpop.xlane.xlu0 %2698  ;;  %v14034_v6 = vld [vmem:[#allocation9_spill] sm:$0xff] }
 0x37f   :  { %v4181_v12 = vadd.f32 %v4142_v35, %v4141_v17  ;;  %v4155_v10 = vmax.f32 %v4123_v50, 0.0  ;;  %v4082_v47 = vmul.f32 %v10192_v48, %v14028_v45  ;;  %14029 = vst [vmem:[#allocation315_spill] sm:$0xff] %v10455_v20  ;;  %v14030_v35 = vld [vmem:[#allocation5_spill] sm:$0xff]  ;;  %v4231_v16 = vrot.slane %v6051_v21, %v14031_v61  ;;  %v14033_v50 = vld [vmem:[#allocation8_spill] sm:$0xff] }
 0x380   :  { %v4156_v31 = vmax.f32 %v4124_v26, 0.0  ;;  %v4031_v63 = vadd.f32 %v3999_v15, %v3949_v7  ;;  %v4032_v17 = vadd.f32 %v4000_v39, %v3950_v28  ;;  %v4227_v56 = vrot.slane %v6051_v21, %v14030_v35  ;;  %v14039_v28 = vld [vmem:[#allocation10_spill] sm:$0xff] }
 0x381   :  { %4182 = vadd.xlane.f32.xlu0 %v4181_v12  ;;  %v4309_v22 = vrot.slane %v6051_v21, %v14032_v59  ;;  %v4313_v26 = vrot.slane %v6051_v21, %v14033_v50  ;;  %v4391_v44 = vrot.slane %v6051_v21, %v14034_v6  ;;  %v10466_v12 = vrot.slane %v4231_v16, %v14030_v35  ;;  %v14048_v50 = vld [vmem:[#allocation355_spill] sm:$0xff] }
 0x382   :  { %v4202_v11 = vadd.f32 %v4156_v31, %v4155_v10  ;;  %v4113_v40 = vadd.f32 %v4081_v52, %v4031_v63  ;;  %v4114_v46 = vadd.f32 %v4082_v47, %v4032_v17  ;;  %v10463_v45 = vrot.slane %v4227_v56, %v14030_v35  ;;  %v10478_v63 = vpop.xlane.xlu1 %2392  ;;  %v14042_v47 = vld [vmem:[#allocation279_spill] sm:$0xff] }
 0x383   :  { %14036 = vst [vmem:[#allocation202_spill] sm:$0xff] %v10466_v12  ;;  %v10469_v15 = vrot.slane %v4309_v22, %v14032_v59  ;;  %v10472_v7 = vrot.slane %v4313_v26, %v14032_v59  ;;  %v4395_v39 = vrot.slane %v6051_v21, %v14039_v28  ;;  %v10476_v10 = vrot.slane %v4391_v44, %v14034_v6  ;;  %v14043_v22 = vld [vmem:[#allocation140_spill] sm:$0xff]  ;;  %v10489_v26 = vpop.xlane.xlu0 %2704 }
 0x384   :  { %14035 = vst [vmem:[#allocation96_spill] sm:$0xff] %v10463_v45  ;;  %4203 = vadd.xlane.f32.xlu1 %v4202_v11  ;;  %14041 = vst [vmem:[#allocation186_spill] sm:$0xff] %v10478_v63  ;;  %v4145_v31 = vmax.f32 %v4113_v40, 0.0  ;;  %v4146_v52 = vmax.f32 %v4114_v46, 0.0  ;;  %v4244_v17 = vmul.f32 %v10463_v45, %v14042_v47  ;;  %v4245_v11 = vmul.f32 %v10466_v12, %v14042_v47  ;;  %v14046_v44 = vld [vmem:[#allocation388_spill] sm:$0xff]  ;;  %v14047_v63 = vld [vmem:[#allocation141_spill] sm:$0xff] }
 0x385   :  { %14037 = vst [vmem:[#allocation111_spill] sm:$0xff] %v10469_v15  ;;  %14038 = vst [vmem:[#allocation203_spill] sm:$0xff] %v10472_v7  ;;  %v4326_v56 = vmul.f32 %v10469_v15, %v14043_v22  ;;  %v10487_v16 = vrot.slane %v4395_v39, %v14034_v6  ;;  %v4327_v46 = vmul.f32 %v10472_v7, %v14043_v22 }
 0x386   :  { %14040 = vst [vmem:[#allocation112_spill] sm:$0xff] %v10476_v10  ;;  %v4187_v21 = vadd.f32 %v4146_v52, %v4145_v31  ;;  %14045 = vst [vmem:[#allocation187_spill] sm:$0xff] %v10489_v26  ;;  %v4276_v20 = vadd.f32 %v4244_v17, %v14046_v44  ;;  %v4277_v40 = vadd.f32 %v4245_v11, %v14046_v44  ;;  %v14049_v26 = vld [vmem:[#allocation244_spill] sm:$0xff]  ;;  %v14050_v44 = vld [vmem:[#allocation17_spill] sm:$0xff] }
 0x387   :  { %14044 = vst [vmem:[#allocation113_spill] sm:$0xff] %v10487_v16  ;;  %v4408_v28 = vmul.f32 %v10476_v10, %v14047_v63  ;;  %v4409_v47 = vmul.f32 %v10487_v16, %v14047_v63  ;;  %v3921_v39 = vmul.f32 %v10168_v34, %v14048_v50  ;;  %v3922_v31 = vmul.f32 %v10171_v55, %v14048_v50  ;;  %v14051_v63 = vld [vmem:[#allocation227_spill] sm:$0xff]  ;;  %v10513_v50 = vpop.xlane.xlu1 %2695  ;;  %v10523_v23 = vpop.xlane.xlu0 %2710 }
 0x388   :  { %4188 = vadd.xlane.f32.xlu0 %v4187_v21  ;;  %v4358_v52 = vadd.f32 %v4326_v56, %v4276_v20  ;;  %v4359_v17 = vadd.f32 %v4327_v46, %v4277_v40  ;;  %v4003_v11 = vmul.f32 %v10174_v4, %v14049_v26  ;;  %v4004_v22 = vmul.f32 %v10177_v19, %v14049_v26  ;;  %v14053_v21 = vld [vmem:[#allocation23_spill] sm:$0xff] }
 0x389   :  { %v3953_v6 = vadd.f32 %v3921_v39, %v14050_v44  ;;  %v3954_v59 = vadd.f32 %v3922_v31, %v14050_v44  ;;  %v4085_v61 = vmul.f32 %v10181_v49, %v14051_v63  ;;  %v4086_v35 = vmul.f32 %v10192_v48, %v14051_v63  ;;  %14052 = vst [vmem:[#allocation114_spill] sm:$0xff] %v10513_v50 }
 0x38a   :  { %v4440_v20 = vadd.f32 %v4408_v28, %v4358_v52  ;;  %v4441_v56 = vadd.f32 %v4409_v47, %v4359_v17  ;;  %v4248_v40 = vmul.f32 %v10463_v45, %v14053_v21  ;;  %v4249_v46 = vmul.f32 %v10466_v12, %v14053_v21  ;;  %14055 = vst [vmem:[#allocation332_spill] sm:$0xff] %v10523_v23  ;;  %v14075_v23 = vld [vmem:[#allocation51_spill] sm:$0xff] }
 0x38b   :  { %v4035_v26 = vadd.f32 %v4003_v11, %v3953_v6  ;;  %v4036_v39 = vadd.f32 %v4004_v22, %v3954_v59  ;;  %v4330_v31 = vmul.f32 %v10469_v15, %v14054_v62  ;;  %v4331_v44 = vmul.f32 %v10472_v7, %v14054_v62 }
 0x38c   :  { %v4472_v1 = vmax.f32 %v4440_v20, 0.0  ;;  %v4473_v63 = vmax.f32 %v4441_v56, 0.0  ;;  %v4280_v28 = vadd.f32 %v4248_v40, %v7966_v41  ;;  %v4281_v47 = vadd.f32 %v4249_v46, %v7966_v41  ;;  %v10535_v46 = vpop.xlane.xlu1 %2701 }
 0x38d   :  { %v4117_v52 = vadd.f32 %v4085_v61, %v4035_v26  ;;  %v4118_v17 = vadd.f32 %v4086_v35, %v4036_v39  ;;  %v4412_v6 = vmul.f32 %v10476_v10, %v13664_v14  ;;  %v4413_v50 = vmul.f32 %v10487_v16, %v13664_v14  ;;  %14056 = vst [vmem:[#allocation333_spill] sm:$0xff] %v10535_v46  ;;  %v14077_v46 = vld [vmem:[#allocation173_spill] sm:$0xff] }
 0x38e   :  { %v4505_v59 = vadd.f32 %v4473_v63, %v4472_v1  ;;  %v4362_v22 = vadd.f32 %v4330_v31, %v4280_v28  ;;  %v4363_v11 = vadd.f32 %v4331_v44, %v4281_v47  ;;  %v3925_v56 = vmul.f32 %v10168_v34, %v13665_v29 }
 0x38f   :  { %v4149_v62 = vmax.f32 %v4117_v52, 0.0  ;;  %v4150_v20 = vmax.f32 %v4118_v17, 0.0  ;;  %v3926_v40 = vmul.f32 %v10171_v55, %v13665_v29  ;;  %v4007_v1 = vmul.f32 %v10174_v4, %v13666_v53 }
 0x390   :  { %4506 = vadd.xlane.f32.xlu1 %v4505_v59  ;;  %v4444_v61 = vadd.f32 %v4412_v6, %v4362_v22  ;;  %v4445_v35 = vadd.f32 %v4413_v50, %v4363_v11  ;;  %v3957_v26 = vadd.f32 %v3925_v56, %v8146_v43  ;;  %v4008_v39 = vmul.f32 %v10177_v19, %v13666_v53  ;;  %v10547_v50 = vpop.xlane.xlu0 %2716  ;;  %v10559_v11 = vpop.xlane.xlu1 %2707 }
 0x391   :  { %v4193_v63 = vadd.f32 %v4150_v20, %v4149_v62  ;;  %v3958_v44 = vadd.f32 %v3926_v40, %v8146_v43  ;;  %v4089_v55 = vmul.f32 %v10181_v49, %v13667_v38  ;;  %v4090_v28 = vmul.f32 %v10192_v48, %v13667_v38  ;;  %14057 = vst [vmem:[#allocation220_spill] sm:$0xff] %v10547_v50 }
 0x392   :  { %v4476_v34 = vmax.f32 %v4444_v61, 0.0  ;;  %v4477_v31 = vmax.f32 %v4445_v35, 0.0  ;;  %v4039_v4 = vadd.f32 %v4007_v1, %v3957_v26  ;;  %v4252_v47 = vmul.f32 %v10463_v45, %v13668_v3  ;;  %14058 = vst [vmem:[#allocation129_spill] sm:$0xff] %v10559_v11 }
 0x393   :  { %4194 = vadd.xlane.f32.xlu0 %v4193_v63  ;;  %v4040_v62 = vadd.f32 %v4008_v39, %v3958_v44  ;;  %v4253_v52 = vmul.f32 %v10466_v12, %v13668_v3  ;;  %v4334_v17 = vmul.f32 %v10469_v15, %v13669_v30  ;;  %v4335_v49 = vmul.f32 %v10472_v7, %v13669_v30 }
 0x394   :  { %v4511_v19 = vadd.f32 %v4477_v31, %v4476_v34  ;;  %v4121_v6 = vadd.f32 %v4089_v55, %v4039_v4  ;;  %v4284_v59 = vadd.f32 %v4252_v47, %v7998_v54  ;;  %v4416_v20 = vmul.f32 %v10476_v10, %v13670_v51  ;;  %v10575_v55 = vpop.xlane.xlu0 %2722 }
 0x395   :  { %v4122_v48 = vadd.f32 %v4090_v28, %v4040_v62  ;;  %v4285_v22 = vadd.f32 %v4253_v52, %v7998_v54  ;;  %v4417_v56 = vmul.f32 %v10487_v16, %v13670_v51  ;;  %v4242_v40 = vmul.f32 %v10463_v45, %v13671_v5  ;;  %14059 = vst [vmem:[#allocation221_spill] sm:$0xff] %v10575_v55  ;;  %v14070_v55 = vld [vmem:[#allocation82_spill] sm:$0xff] }
 0x396   :  { %4512 = vadd.xlane.f32.xlu1 %v4511_v19  ;;  %v4243_v61 = vmul.f32 %v10466_v12, %v13671_v5  ;;  %v4153_v35 = vmax.f32 %v4121_v6, 0.0  ;;  %v4366_v63 = vadd.f32 %v4334_v17, %v4284_v59  ;;  %v4324_v34 = vmul.f32 %v10469_v15, %v13672_v33 }
 0x397   :  { %v4154_v1 = vmax.f32 %v4122_v48, 0.0  ;;  %v4367_v26 = vadd.f32 %v4335_v49, %v4285_v22  ;;  %v4274_v44 = vadd.f32 %v4242_v40, %v13708_v8  ;;  %v4325_v31 = vmul.f32 %v10472_v7, %v13672_v33  ;;  %v10585_v22 = vpop.xlane.xlu1 %2713 }
 0x398   :  { %v4275_v39 = vadd.f32 %v4243_v61, %v13708_v8  ;;  %v4448_v4 = vadd.f32 %v4416_v20, %v4366_v63  ;;  %v4406_v19 = vmul.f32 %v10476_v10, %v13709_v32  ;;  %v4407_v17 = vmul.f32 %v10487_v16, %v13709_v32  ;;  %14060 = vst [vmem:[#allocation130_spill] sm:$0xff] %v10585_v22 }
 0x399   :  { %v4199_v28 = vadd.f32 %v4154_v1, %v4153_v35  ;;  %v4449_v62 = vadd.f32 %v4417_v56, %v4367_v26  ;;  %v4356_v47 = vadd.f32 %v4324_v34, %v4274_v44  ;;  %v4256_v48 = vmul.f32 %v10463_v45, %v13710_v27 }
 0x39a   :  { %v4357_v52 = vadd.f32 %v4325_v31, %v4275_v39  ;;  %v4480_v49 = vmax.f32 %v4448_v4, 0.0  ;;  %v4257_v59 = vmul.f32 %v10466_v12, %v13710_v27  ;;  %v4338_v40 = vmul.f32 %v10469_v15, %v13675_v2  ;;  %v10597_v31 = vpop.xlane.xlu0 %2728 }
 0x39b   :  { %4200 = vadd.xlane.f32.xlu0 %v4199_v28  ;;  %v4481_v6 = vmax.f32 %v4449_v62, 0.0  ;;  %v4438_v20 = vadd.f32 %v4406_v19, %v4356_v47  ;;  %v4288_v35 = vadd.f32 %v4256_v48, %v13711_v58  ;;  %v4339_v63 = vmul.f32 %v10472_v7, %v13675_v2  ;;  %14061 = vst [vmem:[#allocation204_spill] sm:$0xff] %v10597_v31 }
 0x39c   :  { %v4439_v56 = vadd.f32 %v4407_v17, %v4357_v52  ;;  %v4289_v1 = vadd.f32 %v4257_v59, %v13711_v58  ;;  %v4420_v39 = vmul.f32 %v10476_v10, %v13712_v13  ;;  %v4421_v34 = vmul.f32 %v10487_v16, %v13712_v13  ;;  %v14102_v58 = vld [vmem:[#allocation226_spill] sm:$0xff] }
 0x39d   :  { %v4517_v61 = vadd.f32 %v4481_v6, %v4480_v49  ;;  %v4470_v26 = vmax.f32 %v4438_v20, 0.0  ;;  %v4370_v28 = vadd.f32 %v4338_v40, %v4288_v35  ;;  %v4246_v62 = vmul.f32 %v10463_v45, %v13713_v0  ;;  %v10609_v20 = vpop.xlane.xlu1 %2719 }
 0x39e   :  { %v4471_v44 = vmax.f32 %v4439_v56, 0.0  ;;  %v4371_v4 = vadd.f32 %v4339_v63, %v4289_v1  ;;  %v4247_v47 = vmul.f32 %v10466_v12, %v13713_v0  ;;  %v4328_v19 = vmul.f32 %v10469_v15, %v13678_v60  ;;  %14062 = vst [vmem:[#allocation132_spill] sm:$0xff] %v10609_v20 }
 0x39f   :  { %4518 = vadd.xlane.f32.xlu1 %v4517_v61  ;;  %v4329_v17 = vmul.f32 %v10472_v7, %v13678_v60  ;;  %v4452_v49 = vadd.f32 %v4420_v39, %v4370_v28  ;;  %v4278_v48 = vadd.f32 %v4246_v62, %v13749_v37  ;;  %v4410_v56 = vmul.f32 %v10476_v10, %v13750_v57  ;;  %v10622_v28 = vpop.xlane.xlu0 %2734 }
 0x3a0   :  { %v4502_v52 = vadd.f32 %v4471_v44, %v4470_v26  ;;  %v4453_v6 = vadd.f32 %v4421_v34, %v4371_v4  ;;  %v4279_v59 = vadd.f32 %v4247_v47, %v13749_v37  ;;  %v4411_v40 = vmul.f32 %v10487_v16, %v13750_v57  ;;  %14063 = vst [vmem:[#allocation205_spill] sm:$0xff] %v10622_v28  ;;  %v14066_v28 = vld [vmem:[#allocation155_spill] sm:$0xff] }
 0x3a1   :  { %v4260_v61 = vmul.f32 %v10463_v45, %v13806_v18  ;;  %v4484_v35 = vmax.f32 %v4452_v49, 0.0  ;;  %v4360_v63 = vadd.f32 %v4328_v19, %v4278_v48  ;;  %v4261_v44 = vmul.f32 %v10466_v12, %v13806_v18 }
 0x3a2   :  { %4503 = vadd.xlane.f32.xlu0 %v4502_v52  ;;  %v4485_v1 = vmax.f32 %v4453_v6, 0.0  ;;  %v4361_v26 = vadd.f32 %v4329_v17, %v4279_v59  ;;  %v4342_v34 = vmul.f32 %v10469_v15, %v13807_v42  ;;  %v4343_v49 = vmul.f32 %v10472_v7, %v13807_v42  ;;  %v14092_v42 = vld [vmem:[#allocation7_spill] sm:$0xff] }
 0x3a3   :  { %v4292_v39 = vadd.f32 %v4260_v61, %v13752_v9  ;;  %v4442_v62 = vadd.f32 %v4410_v56, %v4360_v63  ;;  %v4293_v52 = vadd.f32 %v4261_v44, %v13752_v9  ;;  %v4424_v17 = vmul.f32 %v10476_v10, %v13808_v36  ;;  %v10633_v56 = vpop.xlane.xlu1 %2725  ;;  %v14065_v44 = vld [vmem:[#allocation148_spill] sm:$0xff] }
 0x3a4   :  { %v4523_v4 = vadd.f32 %v4485_v1, %v4484_v35  ;;  %v4443_v47 = vadd.f32 %v4411_v40, %v4361_v26  ;;  %v4250_v59 = vmul.f32 %v10463_v45, %v13755_v24  ;;  %v4251_v61 = vmul.f32 %v10466_v12, %v13755_v24  ;;  %14064 = vst [vmem:[#allocation133_spill] sm:$0xff] %v10633_v56 }
 0x3a5   :  { %v4374_v19 = vadd.f32 %v4342_v34, %v4292_v39  ;;  %v4474_v6 = vmax.f32 %v4442_v62, 0.0  ;;  %v4375_v40 = vadd.f32 %v4343_v49, %v4293_v52  ;;  %v4425_v35 = vmul.f32 %v10487_v16, %v13808_v36  ;;  %v10645_v49 = vpop.xlane.xlu0 %3037 }
 0x3a6   :  { %4524 = vadd.xlane.f32.xlu1 %v4523_v4  ;;  %v4475_v48 = vmax.f32 %v4443_v47, 0.0  ;;  %v4332_v63 = vmul.f32 %v10469_v15, %v13811_v25  ;;  %v4282_v39 = vadd.f32 %v4250_v59, %v14065_v44  ;;  %v4283_v34 = vadd.f32 %v4251_v61, %v14065_v44  ;;  %14067 = vst [vmem:[#allocation348_spill] sm:$0xff] %v10645_v49 }
 0x3a7   :  { %v4456_v1 = vadd.f32 %v4424_v17, %v4374_v19  ;;  %v4333_v4 = vmul.f32 %v10472_v7, %v13811_v25  ;;  %v4457_v62 = vadd.f32 %v4425_v35, %v4375_v40  ;;  %v4414_v52 = vmul.f32 %v10476_v10, %v14066_v28 }
 0x3a8   :  { %v4508_v26 = vadd.f32 %v4475_v48, %v4474_v6  ;;  %v4364_v19 = vadd.f32 %v4332_v63, %v4282_v39  ;;  %v4415_v6 = vmul.f32 %v10487_v16, %v14066_v28  ;;  %v14068_v48 = vld [vmem:[#allocation81_spill] sm:$0xff]  ;;  %v4346_v20 = vmul.f32 %v10469_v15, %v14070_v55 }
 0x3a9   :  { %v4488_v47 = vmax.f32 %v4456_v1, 0.0  ;;  %v4365_v17 = vadd.f32 %v4333_v4, %v4283_v34  ;;  %v4264_v59 = vmul.f32 %v10463_v45, %v14068_v48  ;;  %v4489_v61 = vmax.f32 %v4457_v62, 0.0  ;;  %v14069_v1 = vld [vmem:[#allocation326_spill] sm:$0xff]  ;;  %v14072_v4 = vld [vmem:[#allocation371_spill] sm:$0xff] }
 0x3aa   :  { %4509 = vadd.xlane.f32.xlu0 %v4508_v26  ;;  %v4265_v31 = vmul.f32 %v10466_v12, %v14068_v48  ;;  %v4446_v40 = vadd.f32 %v4414_v52, %v4364_v19  ;;  %v10656_v26 = vpop.xlane.xlu1 %2731  ;;  %v4347_v34 = vmul.f32 %v10472_v7, %v14070_v55  ;;  %v4428_v62 = vmul.f32 %v10476_v10, %v14072_v4  ;;  %v14073_v19 = vld [vmem:[#allocation305_spill] sm:$0xff] }
 0x3ab   :  { %v4447_v35 = vadd.f32 %v4415_v6, %v4365_v17  ;;  %v4296_v56 = vadd.f32 %v4264_v59, %v14069_v1  ;;  %14071 = vst [vmem:[#allocation349_spill] sm:$0xff] %v10656_v26  ;;  %v4529_v63 = vadd.f32 %v4489_v61, %v4488_v47  ;;  %v4254_v17 = vmul.f32 %v10463_v45, %v14073_v19  ;;  %v10669_v47 = vpop.xlane.xlu0 %3043 }
 0x3ac   :  { %v4297_v39 = vadd.f32 %v4265_v31, %v14069_v1  ;;  %v4478_v50 = vmax.f32 %v4446_v40, 0.0  ;;  %v4429_v59 = vmul.f32 %v10487_v16, %v14072_v4  ;;  %v4255_v31 = vmul.f32 %v10466_v12, %v14073_v19  ;;  %14074 = vst [vmem:[#allocation282_spill] sm:$0xff] %v10669_v47  ;;  %v14076_v40 = vld [vmem:[#allocation190_spill] sm:$0xff]  ;;  %v14081_v4 = vld [vmem:[#allocation52_spill] sm:$0xff] }
 0x3ad   :  { %v4479_v22 = vmax.f32 %v4447_v35, 0.0  ;;  %v4378_v52 = vadd.f32 %v4346_v20, %v4296_v56  ;;  %4530 = vadd.xlane.f32.xlu1 %v4529_v63  ;;  %v4286_v11 = vadd.f32 %v4254_v17, %v14075_v23  ;;  %v4336_v20 = vmul.f32 %v10469_v15, %v14076_v40  ;;  %v14079_v17 = vld [vmem:[#allocation99_spill] sm:$0xff] }
 0x3ae   :  { %v4379_v6 = vadd.f32 %v4347_v34, %v4297_v39  ;;  %v4287_v35 = vadd.f32 %v4255_v31, %v14075_v23  ;;  %v4337_v63 = vmul.f32 %v10472_v7, %v14076_v40  ;;  %v4418_v49 = vmul.f32 %v10476_v10, %v14077_v46 }
 0x3af   :  { %v4514_v61 = vadd.f32 %v4479_v22, %v4478_v50  ;;  %v4460_v26 = vadd.f32 %v4428_v62, %v4378_v52  ;;  %v4368_v34 = vadd.f32 %v4336_v20, %v4286_v11  ;;  %v4419_v50 = vmul.f32 %v10487_v16, %v14077_v46  ;;  %v10681_v22 = vpop.xlane.xlu1 %2737 }
 0x3b0   :  { %v4461_v56 = vadd.f32 %v4429_v59, %v4379_v6  ;;  %14078 = vst [vmem:[#allocation238_spill] sm:$0xff] %v10681_v22  ;;  %v4369_v52 = vadd.f32 %v4337_v63, %v4287_v35  ;;  %v4268_v6 = vmul.f32 %v10463_v45, %v14079_v17  ;;  %v4269_v59 = vmul.f32 %v10466_v12, %v14079_v17  ;;  %v10693_v35 = vpop.xlane.xlu0 %3049  ;;  %v14083_v22 = vld [vmem:[#allocation381_spill] sm:$0xff] }
 0x3b1   :  { %4515 = vadd.xlane.f32.xlu0 %v4514_v61  ;;  %v4492_v39 = vmax.f32 %v4460_v26, 0.0  ;;  %v4450_v31 = vadd.f32 %v4418_v49, %v4368_v34  ;;  %v14080_v61 = vld [vmem:[#allocation100_spill] sm:$0xff]  ;;  %14082 = vst [vmem:[#allocation239_spill] sm:$0xff] %v10693_v35  ;;  %v4432_v1 = vmul.f32 %v10476_v10, %v14083_v22  ;;  %v4433_v48 = vmul.f32 %v10487_v16, %v14083_v22  ;;  %v14091_v22 = vld [vmem:[#allocation6_spill] sm:$0xff] }
 0x3b2   :  { %v4493_v62 = vmax.f32 %v4461_v56, 0.0  ;;  %v4350_v11 = vmul.f32 %v10469_v15, %v14080_v61  ;;  %v4351_v26 = vmul.f32 %v10472_v7, %v14080_v61  ;;  %v4451_v47 = vadd.f32 %v4419_v50, %v4369_v52  ;;  %v14084_v61 = vld [vmem:[#allocation321_spill] sm:$0xff] }
 0x3b3   :  { %v4300_v55 = vadd.f32 %v4268_v6, %v14081_v4  ;;  %v4301_v56 = vadd.f32 %v4269_v59, %v14081_v4  ;;  %v4482_v63 = vmax.f32 %v4450_v31, 0.0  ;;  %v4259_v50 = vmul.f32 %v10466_v12, %v14084_v61 }
 0x3b4   :  { %v4535_v20 = vadd.f32 %v4493_v62, %v4492_v39  ;;  %v4483_v49 = vmax.f32 %v4451_v47, 0.0  ;;  %v4258_v39 = vmul.f32 %v10463_v45, %v14084_v61  ;;  %v10703_v62 = vpop.xlane.xlu1 %3040  ;;  %v6052_v47 = vld [vmem:[%s12439_s0 + $0x60] sm:$0x77]  ;;  %v4344_v2 = vmul.f32 %v10469_v15, %v14102_v58 }
 0x3b5   :  { %v4382_v34 = vadd.f32 %v4350_v11, %v4300_v55  ;;  %v4383_v17 = vadd.f32 %v4351_v26, %v4301_v56  ;;  %14085 = vst [vmem:[#allocation283_spill] sm:$0xff] %v10703_v62  ;;  %v14086_v55 = vld [vmem:[#allocation327_spill] sm:$0xff]  ;;  %v14087_v26 = vld [vmem:[#allocation208_spill] sm:$0xff]  ;;  %v4576_v4 = vrot.slane %v6052_v47, %v14091_v22  ;;  %v4654_v9 = vrot.slane %v6052_v47, %v14092_v42 }
 0x3b6   :  { %4536 = vadd.xlane.f32.xlu1 %v4535_v20  ;;  %v4520_v52 = vadd.f32 %v4483_v49, %v4482_v63  ;;  %v4290_v31 = vadd.f32 %v4258_v39, %v14086_v55  ;;  %v4291_v11 = vadd.f32 %v4259_v50, %v14086_v55  ;;  %v4340_v20 = vmul.f32 %v10469_v15, %v14087_v26  ;;  %v14088_v63 = vld [vmem:[#allocation191_spill] sm:$0xff]  ;;  %v14090_v39 = vld [vmem:[#allocation5_spill] sm:$0xff] }
 0x3b7   :  { %v4464_v6 = vadd.f32 %v4432_v1, %v4382_v34  ;;  %v4465_v59 = vadd.f32 %v4433_v48, %v4383_v17  ;;  %v4341_v56 = vmul.f32 %v10472_v7, %v14087_v26  ;;  %v4422_v48 = vmul.f32 %v10476_v10, %v14088_v63  ;;  %v10718_v17 = vpop.xlane.xlu0 %3055 }
 0x3b8   :  { %4521 = vadd.xlane.f32.xlu0 %v4520_v52  ;;  %v4423_v1 = vmul.f32 %v10487_v16, %v14088_v63  ;;  %14089 = vst [vmem:[#allocation365_spill] sm:$0xff] %v10718_v17  ;;  %v4372_v49 = vadd.f32 %v4340_v20, %v4290_v31  ;;  %v4572_v50 = vrot.slane %v6052_v47, %v14090_v39  ;;  %v14093_v52 = vld [vmem:[#allocation8_spill] sm:$0xff]  ;;  %v10730_v17 = vpop.xlane.xlu1 %3046  ;;  %v14097_v20 = vld [vmem:[#allocation10_spill] sm:$0xff] }
 0x3b9   :  { %v4496_v35 = vmax.f32 %v4464_v6, 0.0  ;;  %v4497_v62 = vmax.f32 %v4465_v59, 0.0  ;;  %v4373_v34 = vadd.f32 %v4341_v56, %v4291_v11  ;;  %v4658_v6 = vrot.slane %v6052_v47, %v14093_v52  ;;  %14095 = vst [vmem:[#allocation222_spill] sm:$0xff] %v10730_v17  ;;  %v14099_v17 = vld [vmem:[#allocation339_spill] sm:$0xff] }
 0x3ba   :  { %v4454_v59 = vadd.f32 %v4422_v48, %v4372_v49  ;;  %v10725_v26 = vrot.slane %v4572_v50, %v14090_v39  ;;  %v10728_v63 = vrot.slane %v4576_v4, %v14090_v39  ;;  %v10733_v31 = vrot.slane %v4654_v9, %v14092_v42 }
 0x3bb   :  { %v4541_v36 = vadd.f32 %v4497_v62, %v4496_v35  ;;  %v4455_v18 = vadd.f32 %v4423_v1, %v4373_v34  ;;  %v10736_v35 = vrot.slane %v4658_v6, %v14092_v42  ;;  %v14096_v62 = vld [vmem:[#allocation9_spill] sm:$0xff]  ;;  %v4740_v56 = vrot.slane %v6052_v47, %v14097_v20  ;;  %v10751_v50 = vpop.xlane.xlu0 %3061 }
 0x3bc   :  { %14094 = vst [vmem:[#allocation152_spill] sm:$0xff] %v10728_v63  ;;  %v4736_v11 = vrot.slane %v6052_v47, %v14096_v62  ;;  %v4486_v48 = vmax.f32 %v4454_v59, 0.0  ;;  %v4587_v49 = vmul.f32 %v10725_v26, %v13671_v5  ;;  %v4588_v4 = vmul.f32 %v10728_v63, %v13671_v5  ;;  %14098 = vst [vmem:[#allocation223_spill] sm:$0xff] %v10751_v50 }
 0x3bd   :  { %4542 = vadd.xlane.f32.xlu1 %v4541_v36  ;;  %v4487_v1 = vmax.f32 %v4455_v18, 0.0  ;;  %v4669_v36 = vmul.f32 %v10733_v31, %v13672_v33  ;;  %v4670_v9 = vmul.f32 %v10736_v35, %v13672_v33  ;;  %v10756_v59 = vrot.slane %v4740_v56, %v14096_v62 }
 0x3be   :  { %v10749_v34 = vrot.slane %v4736_v11, %v14096_v62  ;;  %v4619_v18 = vadd.f32 %v4587_v49, %v13708_v8  ;;  %v4620_v6 = vadd.f32 %v4588_v4, %v13708_v8  ;;  %v4262_v55 = vmul.f32 %v10463_v45, %v14099_v17  ;;  %v14101_v49 = vld [vmem:[#allocation147_spill] sm:$0xff] }
 0x3bf   :  { %v4526_v47 = vadd.f32 %v4487_v1, %v4486_v48  ;;  %v4263_v61 = vmul.f32 %v10466_v12, %v14099_v17  ;;  %v4752_v48 = vmul.f32 %v10756_v59, %v13709_v32  ;;  %v10766_v1 = vpop.xlane.xlu1 %3052  ;;  %v4270_v28 = vmul.f32 %v10463_v45, %v13665_v29 }
 0x3c0   :  { %v4701_v13 = vadd.f32 %v4669_v36, %v4619_v18  ;;  %v4702_v11 = vadd.f32 %v4670_v9, %v4620_v6  ;;  %v4751_v50 = vmul.f32 %v10749_v34, %v13709_v32  ;;  %14100 = vst [vmem:[#allocation153_spill] sm:$0xff] %v10766_v1  ;;  %v4294_v56 = vadd.f32 %v4262_v55, %v14101_v49  ;;  %v14103_v18 = vld [vmem:[#allocation209_spill] sm:$0xff] }
 0x3c1   :  { %4527 = vadd.xlane.f32.xlu0 %v4526_v47  ;;  %v4295_v4 = vadd.f32 %v4263_v61, %v14101_v49  ;;  %v4345_v47 = vmul.f32 %v10472_v7, %v14102_v58  ;;  %v4426_v6 = vmul.f32 %v10476_v10, %v14103_v18  ;;  %v4427_v17 = vmul.f32 %v10487_v16, %v14103_v18  ;;  %v10782_v49 = vpop.xlane.xlu0 %3067 }
 0x3c2   :  { %v4783_v36 = vadd.f32 %v4751_v50, %v4701_v13  ;;  %v4784_v9 = vadd.f32 %v4752_v48, %v4702_v11  ;;  %v4376_v27 = vadd.f32 %v4344_v2, %v4294_v56  ;;  %v4591_v55 = vmul.f32 %v10725_v26, %v13713_v0  ;;  %14104 = vst [vmem:[#allocation366_spill] sm:$0xff] %v10782_v49 }
 0x3c3   :  { %v4377_v1 = vadd.f32 %v4345_v47, %v4295_v4  ;;  %v4592_v61 = vmul.f32 %v10728_v63, %v13713_v0  ;;  %v4673_v13 = vmul.f32 %v10733_v31, %v13678_v60  ;;  %v4674_v4 = vmul.f32 %v10736_v35, %v13678_v60  ;;  %v10790_v47 = vpop.xlane.xlu1 %3058 }
 0x3c4   :  { %v4815_v46 = vmax.f32 %v4783_v36, 0.0  ;;  %v4816_v58 = vmax.f32 %v4784_v9, 0.0  ;;  %v4458_v50 = vadd.f32 %v4426_v6, %v4376_v27  ;;  %v4623_v48 = vadd.f32 %v4591_v55, %v13749_v37  ;;  %14105 = vst [vmem:[#allocation156_spill] sm:$0xff] %v10790_v47 }
 0x3c5   :  { %v4459_v11 = vadd.f32 %v4427_v17, %v4377_v1  ;;  %v4624_v2 = vadd.f32 %v4592_v61, %v13749_v37  ;;  %v4755_v36 = vmul.f32 %v10749_v34, %v13750_v57  ;;  %v4756_v27 = vmul.f32 %v10756_v59, %v13750_v57  ;;  %v14106_v17 = vld [vmem:[#allocation355_spill] sm:$0xff]  ;;  %v14107_v61 = vld [vmem:[#allocation244_spill] sm:$0xff] }
 0x3c6   :  { %v4847_v56 = vadd.f32 %v4816_v58, %v4815_v46  ;;  %v4490_v18 = vmax.f32 %v4458_v50, 0.0  ;;  %v4705_v49 = vadd.f32 %v4673_v13, %v4623_v48  ;;  %v4266_v1 = vmul.f32 %v10463_v45, %v14106_v17  ;;  %v6053_v46 = vld [vmem:[%s12439_s0 + $0x68] sm:$0x77]  ;;  %v10805_v50 = vpop.xlane.xlu0 %3073 }
 0x3c7   :  { %v4491_v23 = vmax.f32 %v4459_v11, 0.0  ;;  %v4706_v9 = vadd.f32 %v4674_v4, %v4624_v2  ;;  %v4267_v58 = vmul.f32 %v10466_v12, %v14106_v17  ;;  %v4348_v13 = vmul.f32 %v10469_v15, %v14107_v61  ;;  %14108 = vst [vmem:[#allocation256_spill] sm:$0xff] %v10805_v50  ;;  %v14109_v48 = vld [vmem:[#allocation17_spill] sm:$0xff]  ;;  %v14110_v17 = vld [vmem:[#allocation227_spill] sm:$0xff] }
 0x3c8   :  { %4848 = vadd.xlane.f32.xlu1 %v4847_v56  ;;  %v4787_v55 = vadd.f32 %v4755_v36, %v4705_v49  ;;  %v4298_v2 = vadd.f32 %v4266_v1, %v14109_v48  ;;  %v4349_v4 = vmul.f32 %v10472_v7, %v14107_v61  ;;  %v4430_v40 = vmul.f32 %v10476_v10, %v14110_v17  ;;  %v10817_v1 = vpop.xlane.xlu1 %3064 }
 0x3c9   :  { %v4532_v6 = vadd.f32 %v4491_v23, %v4490_v18  ;;  %v4788_v11 = vadd.f32 %v4756_v27, %v4706_v9  ;;  %v4299_v56 = vadd.f32 %v4267_v58, %v14109_v48  ;;  %v4431_v23 = vmul.f32 %v10487_v16, %v14110_v17  ;;  %14111 = vst [vmem:[#allocation31_spill] sm:$0xff] %v10817_v1 }
 0x3ca   :  { %v4819_v47 = vmax.f32 %v4787_v55, 0.0  ;;  %v4917_v49 = vrot.slane %v6053_v46, %v14090_v39  ;;  %v4380_v36 = vadd.f32 %v4348_v13, %v4298_v2  ;;  %v4921_v27 = vrot.slane %v6053_v46, %v14091_v22 }
 0x3cb   :  { %4533 = vadd.xlane.f32.xlu0 %v4532_v6  ;;  %v4820_v18 = vmax.f32 %v4788_v11, 0.0  ;;  %v4381_v9 = vadd.f32 %v4349_v4, %v4299_v56  ;;  %v4999_v6 = vrot.slane %v6053_v46, %v14092_v42  ;;  %v5003_v55 = vrot.slane %v6053_v46, %v14093_v52  ;;  %v14114_v11 = vld [vmem:[#allocation279_spill] sm:$0xff] }
 0x3cc   :  { %v10820_v58 = vrot.slane %v4917_v49, %v14090_v39  ;;  %v4462_v61 = vadd.f32 %v4430_v40, %v4380_v36  ;;  %v10825_v17 = vrot.slane %v4921_v27, %v14090_v39  ;;  %v5081_v4 = vrot.slane %v6053_v46, %v14096_v62  ;;  %v10836_v49 = vpop.xlane.xlu0 %3079  ;;  %v14116_v36 = vld [vmem:[#allocation388_spill] sm:$0xff] }
 0x3cd   :  { %v4853_v50 = vadd.f32 %v4820_v18, %v4819_v47  ;;  %v4463_v48 = vadd.f32 %v4431_v23, %v4381_v9  ;;  %v10830_v2 = vrot.slane %v4999_v6, %v14092_v42  ;;  %v10833_v56 = vrot.slane %v5003_v55, %v14092_v42  ;;  %14115 = vst [vmem:[#allocation240_spill] sm:$0xff] %v10836_v49  ;;  %v14117_v27 = vld [vmem:[#allocation140_spill] sm:$0xff]  ;;  %v14120_v49 = vld [vmem:[#allocation141_spill] sm:$0xff] }
 0x3ce   :  { %14112 = vst [vmem:[#allocation157_spill] sm:$0xff] %v10820_v58  ;;  %14113 = vst [vmem:[#allocation257_spill] sm:$0xff] %v10825_v17  ;;  %v4934_v13 = vmul.f32 %v10820_v58, %v14114_v11  ;;  %v4494_v47 = vmax.f32 %v4462_v61, 0.0  ;;  %v4935_v23 = vmul.f32 %v10825_v17, %v14114_v11  ;;  %v5085_v18 = vrot.slane %v6053_v46, %v14097_v20 }
 0x3cf   :  { %4854 = vadd.xlane.f32.xlu1 %v4853_v50  ;;  %v4495_v40 = vmax.f32 %v4463_v48, 0.0  ;;  %v5016_v6 = vmul.f32 %v10830_v2, %v14117_v27  ;;  %v10845_v55 = vrot.slane %v5081_v4, %v14096_v62  ;;  %v5017_v61 = vmul.f32 %v10833_v56, %v14117_v27  ;;  %v10853_v48 = vpop.xlane.xlu1 %3070 }
 0x3d0   :  { %v4966_v9 = vadd.f32 %v4934_v13, %v14116_v36  ;;  %v4967_v19 = vadd.f32 %v4935_v23, %v14116_v36  ;;  %v10851_v50 = vrot.slane %v5085_v18, %v14096_v62  ;;  %14119 = vst [vmem:[#allocation35_spill] sm:$0xff] %v10853_v48  ;;  %v4271_v4 = vmul.f32 %v10466_v12, %v13665_v29  ;;  %v10869_v45 = vpop.xlane.xlu0 %3468 }
 0x3d1   :  { %v4538_v1 = vadd.f32 %v4495_v40, %v4494_v47  ;;  %v5098_v13 = vmul.f32 %v10845_v55, %v14120_v49  ;;  %v4352_v23 = vmul.f32 %v10469_v15, %v13666_v53  ;;  %v4353_v48 = vmul.f32 %v10472_v7, %v13666_v53  ;;  %14121 = vst [vmem:[#allocation241_spill] sm:$0xff] %v10869_v45 }
 0x3d2   :  { %14118 = vst [vmem:[#allocation32_spill] sm:$0xff] %v10851_v50  ;;  %v5048_v46 = vadd.f32 %v5016_v6, %v4966_v9  ;;  %v5049_v47 = vadd.f32 %v5017_v61, %v4967_v19  ;;  %v5099_v40 = vmul.f32 %v10851_v50, %v14120_v49  ;;  %v4302_v9 = vadd.f32 %v4270_v28, %v8146_v43 }
 0x3d3   :  { %4539 = vadd.xlane.f32.xlu0 %v4538_v1  ;;  %v4303_v6 = vadd.f32 %v4271_v4, %v8146_v43  ;;  %v4434_v19 = vmul.f32 %v10476_v10, %v13667_v38  ;;  %v4435_v1 = vmul.f32 %v10487_v16, %v13667_v38  ;;  %v4936_v28 = vmul.f32 %v10820_v58, %v13713_v0  ;;  %v10879_v4 = vpop.xlane.xlu1 %3076 }
 0x3d4   :  { %v5130_v18 = vadd.f32 %v5098_v13, %v5048_v46  ;;  %v5131_v25 = vadd.f32 %v5099_v40, %v5049_v47  ;;  %v4384_v29 = vadd.f32 %v4352_v23, %v4302_v9  ;;  %v4937_v13 = vmul.f32 %v10825_v17, %v13713_v0  ;;  %14122 = vst [vmem:[#allocation36_spill] sm:$0xff] %v10879_v4  ;;  %v10889_v4 = vpop.xlane.xlu0 %3474 }
 0x3d5   :  { %v4385_v15 = vadd.f32 %v4353_v48, %v4303_v6  ;;  %v4968_v40 = vadd.f32 %v4936_v28, %v13749_v37  ;;  %v5018_v53 = vmul.f32 %v10830_v2, %v13678_v60  ;;  %v5019_v48 = vmul.f32 %v10833_v56, %v13678_v60  ;;  %14123 = vst [vmem:[#allocation316_spill] sm:$0xff] %v10889_v4  ;;  %v6054_v28 = vld [vmem:[%s12439_s0 + $0x70] sm:$0x77] }
 0x3d6   :  { %v5162_v61 = vmax.f32 %v5130_v18, 0.0  ;;  %v5163_v46 = vmax.f32 %v5131_v25, 0.0  ;;  %v4466_v45 = vadd.f32 %v4434_v19, %v4384_v29  ;;  %v4969_v23 = vadd.f32 %v4937_v13, %v13749_v37 }
 0x3d7   :  { %v4467_v47 = vadd.f32 %v4435_v1, %v4385_v15  ;;  %v5050_v9 = vadd.f32 %v5018_v53, %v4968_v40  ;;  %v5100_v6 = vmul.f32 %v10845_v55, %v13750_v57  ;;  %v5101_v15 = vmul.f32 %v10851_v50, %v13750_v57 }
 0x3d8   :  { %v5195_v38 = vadd.f32 %v5163_v46, %v5162_v61  ;;  %v4498_v18 = vmax.f32 %v4466_v45, 0.0  ;;  %v5051_v29 = vadd.f32 %v5019_v48, %v4969_v23  ;;  %v4589_v19 = vmul.f32 %v10725_v26, %v14114_v11  ;;  %v10906_v23 = vpop.xlane.xlu1 %3082 }
 0x3d9   :  { %v4499_v25 = vmax.f32 %v4467_v47, 0.0  ;;  %v4590_v1 = vmul.f32 %v10728_v63, %v14114_v11  ;;  %v5132_v45 = vadd.f32 %v5100_v6, %v5050_v9  ;;  %v4671_v53 = vmul.f32 %v10733_v31, %v14117_v27  ;;  %14124 = vst [vmem:[#allocation377_spill] sm:$0xff] %v10906_v23 }
 0x3da   :  { %5196 = vadd.xlane.f32.xlu1 %v5195_v38  ;;  %v5133_v38 = vadd.f32 %v5101_v15, %v5051_v29  ;;  %v4621_v46 = vadd.f32 %v4589_v19, %v14116_v36  ;;  %v4672_v47 = vmul.f32 %v10736_v35, %v14117_v27  ;;  %v4753_v48 = vmul.f32 %v10749_v34, %v14120_v49 }
 0x3db   :  { %v4544_v61 = vadd.f32 %v4499_v25, %v4498_v18  ;;  %v4622_v13 = vadd.f32 %v4590_v1, %v14116_v36  ;;  %v5164_v40 = vmax.f32 %v5132_v45, 0.0  ;;  %v4754_v18 = vmul.f32 %v10756_v59, %v14120_v49  ;;  %v10915_v1 = vpop.xlane.xlu0 %3480 }
 0x3dc   :  { %v5165_v25 = vmax.f32 %v5133_v38, 0.0  ;;  %v4703_v9 = vadd.f32 %v4671_v53, %v4621_v46  ;;  %v5262_v29 = vrot.slane %v6054_v28, %v14090_v39  ;;  %v5266_v15 = vrot.slane %v6054_v28, %v14091_v22  ;;  %14125 = vst [vmem:[#allocation272_spill] sm:$0xff] %v10915_v1 }
 0x3dd   :  { %4545 = vadd.xlane.f32.xlu0 %v4544_v61  ;;  %v4704_v6 = vadd.f32 %v4672_v47, %v4622_v13  ;;  %v5344_v19 = vrot.slane %v6054_v28, %v14092_v42  ;;  %v5348_v53 = vrot.slane %v6054_v28, %v14093_v52  ;;  %v5426_v46 = vrot.slane %v6054_v28, %v14096_v62 }
 0x3de   :  { %v5198_v61 = vadd.f32 %v5165_v25, %v5164_v40  ;;  %v4785_v45 = vadd.f32 %v4753_v48, %v4703_v9  ;;  %v10918_v4 = vrot.slane %v5262_v29, %v14090_v39  ;;  %v10921_v43 = vrot.slane %v5266_v15, %v14090_v39  ;;  %v10941_v29 = vpop.xlane.xlu1 %3471 }
 0x3df   :  { %v4786_v23 = vadd.f32 %v4754_v18, %v4704_v6  ;;  %v10925_v38 = vrot.slane %v5344_v19, %v14092_v42  ;;  %v5430_v48 = vrot.slane %v6054_v28, %v14097_v20  ;;  %v10934_v25 = vrot.slane %v5348_v53, %v14092_v42  ;;  %14128 = vst [vmem:[#allocation273_spill] sm:$0xff] %v10941_v29 }
 0x3e0   :  { %5199 = vadd.xlane.f32.xlu1 %v5198_v61  ;;  %v4817_v13 = vmax.f32 %v4785_v45, 0.0  ;;  %v5279_v40 = vmul.f32 %v10918_v4, %v14114_v11  ;;  %v5280_v18 = vmul.f32 %v10921_v43, %v14114_v11  ;;  %v10939_v6 = vrot.slane %v5426_v46, %v14096_v62  ;;  %v10954_v46 = vpop.xlane.xlu0 %3486 }
 0x3e1   :  { %v4818_v47 = vmax.f32 %v4786_v23, 0.0  ;;  %14126 = vst [vmem:[#allocation45_spill] sm:$0xff] %v10934_v25  ;;  %v5361_v9 = vmul.f32 %v10925_v38, %v14117_v27  ;;  %v10945_v19 = vrot.slane %v5430_v48, %v14096_v62  ;;  %v4932_v28 = vmul.f32 %v10820_v58, %v13671_v5  ;;  %14130 = vst [vmem:[#allocation258_spill] sm:$0xff] %v10954_v46 }
 0x3e2   :  { %14127 = vst [vmem:[#allocation317_spill] sm:$0xff] %v10939_v6  ;;  %v5311_v15 = vadd.f32 %v5279_v40, %v14116_v36  ;;  %v5312_v61 = vadd.f32 %v5280_v18, %v14116_v36  ;;  %v5362_v45 = vmul.f32 %v10934_v25, %v14117_v27  ;;  %v4933_v53 = vmul.f32 %v10825_v17, %v13671_v5 }
 0x3e3   :  { %v4850_v23 = vadd.f32 %v4818_v47, %v4817_v13  ;;  %14129 = vst [vmem:[#allocation46_spill] sm:$0xff] %v10945_v19  ;;  %v5443_v47 = vmul.f32 %v10939_v6, %v14120_v49  ;;  %v4964_v40 = vadd.f32 %v4932_v28, %v13708_v8  ;;  %v5014_v48 = vmul.f32 %v10830_v2, %v13672_v33 }
 0x3e4   :  { %v5393_v13 = vadd.f32 %v5361_v9, %v5311_v15  ;;  %v5394_v1 = vadd.f32 %v5362_v45, %v5312_v61  ;;  %v5444_v18 = vmul.f32 %v10945_v19, %v14120_v49  ;;  %v4965_v29 = vadd.f32 %v4933_v53, %v13708_v8  ;;  %v10974_v53 = vpop.xlane.xlu1 %3477 }
 0x3e5   :  { %4851 = vadd.xlane.f32.xlu0 %v4850_v23  ;;  %v5015_v16 = vmul.f32 %v10833_v56, %v13672_v33  ;;  %v5046_v23 = vadd.f32 %v5014_v48, %v4964_v40  ;;  %v5096_v9 = vmul.f32 %v10845_v55, %v13709_v32  ;;  %v5097_v15 = vmul.f32 %v10851_v50, %v13709_v32 }
 0x3e6   :  { %v5475_v46 = vadd.f32 %v5443_v47, %v5393_v13  ;;  %v5476_v28 = vadd.f32 %v5444_v18, %v5394_v1  ;;  %v4938_v61 = vmul.f32 %v10820_v58, %v14053_v21  ;;  %v4939_v45 = vmul.f32 %v10825_v17, %v14053_v21  ;;  %14131 = vst [vmem:[#allocation49_spill] sm:$0xff] %v10974_v53  ;;  %v14132_v13 = vld [vmem:[#allocation24_spill] sm:$0xff] }
 0x3e7   :  { %v5047_v10 = vadd.f32 %v5015_v16, %v4965_v29  ;;  %v5128_v12 = vadd.f32 %v5096_v9, %v5046_v23  ;;  %v5020_v47 = vmul.f32 %v10830_v2, %v14132_v13  ;;  %v10980_v16 = vpop.xlane.xlu0 %3492  ;;  %v5021_v18 = vmul.f32 %v10833_v56, %v14132_v13 }
 0x3e8   :  { %v5507_v7 = vmax.f32 %v5475_v46, 0.0  ;;  %v5508_v40 = vmax.f32 %v5476_v28, 0.0  ;;  %v4970_v49 = vadd.f32 %v4938_v61, %v7966_v41  ;;  %v4971_v1 = vadd.f32 %v4939_v45, %v7966_v41  ;;  %14133 = vst [vmem:[#allocation21_spill] sm:$0xff] %v10980_v16  ;;  %v10997_v61 = vpop.xlane.xlu1 %3483 }
 0x3e9   :  { %v5129_v48 = vadd.f32 %v5097_v15, %v5047_v10  ;;  %v5160_v29 = vmax.f32 %v5128_v12, 0.0  ;;  %v5102_v46 = vmul.f32 %v10845_v55, %v13664_v14  ;;  %v5103_v10 = vmul.f32 %v10851_v50, %v13664_v14  ;;  %v6055_v12 = vld [vmem:[%s12439_s0 + $0x78] sm:$0x77]  ;;  %14134 = vst [vmem:[#allocation259_spill] sm:$0xff] %v10997_v61 }
 0x3ea   :  { %v5540_v17 = vadd.f32 %v5508_v40, %v5507_v7  ;;  %v5052_v53 = vadd.f32 %v5020_v47, %v4970_v49  ;;  %v5053_v23 = vadd.f32 %v5021_v18, %v4971_v1  ;;  %v4593_v9 = vmul.f32 %v10725_v26, %v14053_v21 }
 0x3eb   :  { %v5161_v58 = vmax.f32 %v5129_v48, 0.0  ;;  %v4594_v15 = vmul.f32 %v10728_v63, %v14053_v21  ;;  %v4675_v28 = vmul.f32 %v10733_v31, %v14132_v13  ;;  %v4676_v48 = vmul.f32 %v10736_v35, %v14132_v13 }
 0x3ec   :  { %5541 = vadd.xlane.f32.xlu1 %v5540_v17  ;;  %v5134_v49 = vadd.f32 %v5102_v46, %v5052_v53  ;;  %v5135_v45 = vadd.f32 %v5103_v10, %v5053_v23  ;;  %v4625_v47 = vadd.f32 %v4593_v9, %v7966_v41  ;;  %v4757_v17 = vmul.f32 %v10749_v34, %v13664_v14 }
 0x3ed   :  { %v5192_v7 = vadd.f32 %v5161_v58, %v5160_v29  ;;  %v4626_v40 = vadd.f32 %v4594_v15, %v7966_v41  ;;  %v4758_v58 = vmul.f32 %v10756_v59, %v13664_v14  ;;  %v5607_v53 = vrot.slane %v6055_v12, %v14090_v39  ;;  %v11008_v29 = vpop.xlane.xlu0 %3498 }
 0x3ee   :  { %v5166_v1 = vmax.f32 %v5134_v49, 0.0  ;;  %14135 = vst [vmem:[#allocation50_spill] sm:$0xff] %v11008_v29  ;;  %v5167_v18 = vmax.f32 %v5135_v45, 0.0  ;;  %v4707_v46 = vadd.f32 %v4675_v28, %v4625_v47  ;;  %v5611_v10 = vrot.slane %v6055_v12, %v14091_v22 }
 0x3ef   :  { %5193 = vadd.xlane.f32.xlu0 %v5192_v7  ;;  %v4708_v23 = vadd.f32 %v4676_v48, %v4626_v40  ;;  %v11012_v9 = vrot.slane %v5607_v53, %v14090_v39  ;;  %v5689_v15 = vrot.slane %v6055_v12, %v14092_v42  ;;  %v5693_v7 = vrot.slane %v6055_v12, %v14093_v52  ;;  %v11028_v40 = vpop.xlane.xlu1 %3489 }
 0x3f0   :  { %v5201_v49 = vadd.f32 %v5167_v18, %v5166_v1  ;;  %v4789_v16 = vadd.f32 %v4757_v17, %v4707_v46  ;;  %v11017_v50 = vrot.slane %v5611_v10, %v14090_v39  ;;  %v5771_v47 = vrot.slane %v6055_v12, %v14096_v62  ;;  %14136 = vst [vmem:[#allocation22_spill] sm:$0xff] %v11028_v40 }
 0x3f1   :  { %v4790_v61 = vadd.f32 %v4758_v58, %v4708_v23  ;;  %v5622_v45 = vmul.f32 %v11012_v9, %v13671_v5  ;;  %v11022_v28 = vrot.slane %v5689_v15, %v14092_v42  ;;  %v11025_v22 = vrot.slane %v5693_v7, %v14092_v42  ;;  %v11041_v18 = vpop.xlane.xlu0 %3504 }
 0x3f2   :  { %5202 = vadd.xlane.f32.xlu1 %v5201_v49  ;;  %v4821_v52 = vmax.f32 %v4789_v16, 0.0  ;;  %v5623_v39 = vmul.f32 %v11017_v50, %v13671_v5  ;;  %v5775_v1 = vrot.slane %v6055_v12, %v14097_v20  ;;  %v11039_v53 = vrot.slane %v5771_v47, %v14096_v62  ;;  %14137 = vst [vmem:[#allocation334_spill] sm:$0xff] %v11041_v18 }
 0x3f3   :  { %v4822_v48 = vmax.f32 %v4790_v61, 0.0  ;;  %v5654_v17 = vadd.f32 %v5622_v45, %v13708_v8  ;;  %v5704_v58 = vmul.f32 %v11022_v28, %v13672_v33  ;;  %v5705_v42 = vmul.f32 %v11025_v22, %v13672_v33 }
 0x3f4   :  { %v5655_v61 = vadd.f32 %v5623_v39, %v13708_v8  ;;  %v11045_v46 = vrot.slane %v5775_v1, %v14096_v62  ;;  %v5277_v20 = vmul.f32 %v10918_v4, %v13671_v5  ;;  %v5786_v23 = vmul.f32 %v11039_v53, %v13709_v32  ;;  %v11065_v39 = vpop.xlane.xlu1 %3495 }
 0x3f5   :  { %v4856_v16 = vadd.f32 %v4822_v48, %v4821_v52  ;;  %v5736_v12 = vadd.f32 %v5704_v58, %v5654_v17  ;;  %v5278_v10 = vmul.f32 %v10921_v43, %v13671_v5  ;;  %v5359_v15 = vmul.f32 %v10925_v38, %v13672_v33  ;;  %14138 = vst [vmem:[#allocation284_spill] sm:$0xff] %v11065_v39 }
 0x3f6   :  { %v5737_v7 = vadd.f32 %v5705_v42, %v5655_v61  ;;  %v5787_v49 = vmul.f32 %v11045_v46, %v13709_v32  ;;  %v5309_v62 = vadd.f32 %v5277_v20, %v13708_v8  ;;  %v5360_v45 = vmul.f32 %v10934_v25, %v13672_v33  ;;  %v11075_v20 = vpop.xlane.xlu0 %3510 }
 0x3f7   :  { %4857 = vadd.xlane.f32.xlu0 %v4856_v16  ;;  %v5818_v47 = vadd.f32 %v5786_v23, %v5736_v12  ;;  %v5310_v52 = vadd.f32 %v5278_v10, %v13708_v8  ;;  %v5441_v48 = vmul.f32 %v10939_v6, %v13709_v32  ;;  %v5442_v5 = vmul.f32 %v10945_v19, %v13709_v32 }
 0x3f8   :  { %v5819_v1 = vadd.f32 %v5787_v49, %v5737_v7  ;;  %v5391_v17 = vadd.f32 %v5359_v15, %v5309_v62  ;;  %v4597_v58 = vmul.f32 %v10725_v26, %v13668_v3  ;;  %v4598_v42 = vmul.f32 %v10728_v63, %v13668_v3  ;;  %14139 = vst [vmem:[#allocation61_spill] sm:$0xff] %v11075_v20 }
 0x3f9   :  { %v5850_v33 = vmax.f32 %v5818_v47, 0.0  ;;  %v5392_v16 = vadd.f32 %v5360_v45, %v5310_v52  ;;  %v4679_v8 = vmul.f32 %v10733_v31, %v13669_v30  ;;  %v4680_v61 = vmul.f32 %v10736_v35, %v13669_v30 }
 0x3fa   :  { %v5851_v32 = vmax.f32 %v5819_v1, 0.0  ;;  %v5473_v12 = vadd.f32 %v5441_v48, %v5391_v17  ;;  %v4629_v23 = vadd.f32 %v4597_v58, %v7998_v54  ;;  %v4630_v10 = vadd.f32 %v4598_v42, %v7998_v54  ;;  %v11090_v42 = vpop.xlane.xlu1 %3501 }
 0x3fb   :  { %v5474_v15 = vadd.f32 %v5442_v5, %v5392_v16  ;;  %v4761_v7 = vmul.f32 %v10749_v34, %v13670_v51  ;;  %v4762_v49 = vmul.f32 %v10756_v59, %v13670_v51  ;;  %v4595_v62 = vmul.f32 %v10725_v26, %v13755_v24  ;;  %v14140_v5 = vld [vmem:[#allocation172_spill] sm:$0xff]  ;;  %14141 = vst [vmem:[#allocation335_spill] sm:$0xff] %v11090_v42 }
 0x3fc   :  { %v5882_v45 = vadd.f32 %v5851_v32, %v5850_v33  ;;  %v5505_v47 = vmax.f32 %v5473_v12, 0.0  ;;  %v4711_v52 = vadd.f32 %v4679_v8, %v4629_v23  ;;  %v4712_v20 = vadd.f32 %v4680_v61, %v4630_v10  ;;  %v14142_v32 = vld [vmem:[#allocation155_spill] sm:$0xff] }
 0x3fd   :  { %v5506_v1 = vmax.f32 %v5474_v15, 0.0  ;;  %v4596_v48 = vmul.f32 %v10728_v63, %v13755_v24  ;;  %v4627_v17 = vadd.f32 %v4595_v62, %v14065_v44  ;;  %v4677_v58 = vmul.f32 %v10733_v31, %v14140_v5  ;;  %v11099_v15 = vpop.xlane.xlu0 %3813 }
 0x3fe   :  { %5883 = vadd.xlane.f32.xlu1 %v5882_v45  ;;  %v4793_v16 = vadd.f32 %v4761_v7, %v4711_v52  ;;  %v4794_v18 = vadd.f32 %v4762_v49, %v4712_v20  ;;  %v4678_v33 = vmul.f32 %v10736_v35, %v14140_v5  ;;  %v4759_v8 = vmul.f32 %v10749_v34, %v14142_v32 }
 0x3ff   :  { %v5537_v61 = vadd.f32 %v5506_v1, %v5505_v47  ;;  %v4628_v12 = vadd.f32 %v4596_v48, %v14065_v44  ;;  %v4709_v23 = vadd.f32 %v4677_v58, %v4627_v17  ;;  %v4760_v10 = vmul.f32 %v10756_v59, %v14142_v32  ;;  %14143 = vst [vmem:[#allocation285_spill] sm:$0xff] %v11099_v15 }
 0x400   :  { %v4825_v62 = vmax.f32 %v4793_v16, 0.0  ;;  %v4826_v42 = vmax.f32 %v4794_v18, 0.0  ;;  %v5283_v20 = vmul.f32 %v10918_v4, %v14053_v21  ;;  %v5284_v7 = vmul.f32 %v10921_v43, %v14053_v21 }
 0x401   :  { %5538 = vadd.xlane.f32.xlu0 %v5537_v61  ;;  %v4710_v49 = vadd.f32 %v4678_v33, %v4628_v12  ;;  %v4791_v45 = vadd.f32 %v4759_v8, %v4709_v23  ;;  %v5365_v47 = vmul.f32 %v10925_v38, %v14132_v13  ;;  %v5366_v52 = vmul.f32 %v10934_v25, %v14132_v13  ;;  %v11117_v61 = vpop.xlane.xlu1 %3507 }
 0x402   :  { %v4862_v1 = vadd.f32 %v4826_v42, %v4825_v62  ;;  %v5315_v48 = vadd.f32 %v5283_v20, %v7966_v41  ;;  %v5316_v18 = vadd.f32 %v5284_v7, %v7966_v41  ;;  %v5447_v17 = vmul.f32 %v10939_v6, %v13664_v14  ;;  %14144 = vst [vmem:[#allocation62_spill] sm:$0xff] %v11117_v61 }
 0x403   :  { %v4792_v58 = vadd.f32 %v4760_v10, %v4710_v49  ;;  %v4823_v16 = vmax.f32 %v4791_v45, 0.0  ;;  %v5448_v33 = vmul.f32 %v10945_v19, %v13664_v14  ;;  %v5281_v8 = vmul.f32 %v10918_v4, %v13713_v0  ;;  %v11128_v45 = vpop.xlane.xlu0 %3819  ;;  %v14147_v14 = vld [vmem:[#allocation190_spill] sm:$0xff] }
 0x404   :  { %4863 = vadd.xlane.f32.xlu1 %v4862_v1  ;;  %v5397_v12 = vadd.f32 %v5365_v47, %v5315_v48  ;;  %v5398_v42 = vadd.f32 %v5366_v52, %v5316_v18  ;;  %v5282_v23 = vmul.f32 %v10921_v43, %v13713_v0  ;;  %v5363_v62 = vmul.f32 %v10925_v38, %v13678_v60 }
 0x405   :  { %v4824_v20 = vmax.f32 %v4792_v58, 0.0  ;;  %v5313_v10 = vadd.f32 %v5281_v8, %v13749_v37  ;;  %v5364_v7 = vmul.f32 %v10934_v25, %v13678_v60  ;;  %v5445_v49 = vmul.f32 %v10939_v6, %v13750_v57  ;;  %14145 = vst [vmem:[#allocation65_spill] sm:$0xff] %v11128_v45  ;;  %v14146_v58 = vld [vmem:[#allocation305_spill] sm:$0xff] }
 0x406   :  { %v5479_v1 = vadd.f32 %v5447_v17, %v5397_v12  ;;  %v5480_v47 = vadd.f32 %v5448_v33, %v5398_v42  ;;  %v5314_v52 = vadd.f32 %v5282_v23, %v13749_v37  ;;  %v5446_v48 = vmul.f32 %v10945_v19, %v13750_v57  ;;  %v14148_v12 = vld [vmem:[#allocation51_spill] sm:$0xff]  ;;  %v14150_v45 = vld [vmem:[#allocation173_spill] sm:$0xff] }
 0x407   :  { %v4859_v18 = vadd.f32 %v4824_v20, %v4823_v16  ;;  %v5395_v61 = vadd.f32 %v5363_v62, %v5313_v10  ;;  %v4599_v8 = vmul.f32 %v10725_v26, %v14146_v58  ;;  %v4600_v29 = vmul.f32 %v10728_v63, %v14146_v58  ;;  %v11143_v62 = vpop.xlane.xlu1 %3513 }
 0x408   :  { %v5511_v39 = vmax.f32 %v5479_v1, 0.0  ;;  %v5512_v40 = vmax.f32 %v5480_v47, 0.0  ;;  %v5396_v15 = vadd.f32 %v5364_v7, %v5314_v52  ;;  %v4681_v17 = vmul.f32 %v10733_v31, %v14147_v14  ;;  %14149 = vst [vmem:[#allocation25_spill] sm:$0xff] %v11143_v62 }
 0x409   :  { %4860 = vadd.xlane.f32.xlu0 %v4859_v18  ;;  %v5477_v33 = vadd.f32 %v5445_v49, %v5395_v61  ;;  %v4631_v42 = vadd.f32 %v4599_v8, %v14148_v12  ;;  %v4632_v23 = vadd.f32 %v4600_v29, %v14148_v12  ;;  %v4682_v16 = vmul.f32 %v10736_v35, %v14147_v14  ;;  %v11151_v29 = vpop.xlane.xlu0 %3825 }
 0x40a   :  { %v5546_v20 = vadd.f32 %v5512_v40, %v5511_v39  ;;  %v5478_v10 = vadd.f32 %v5446_v48, %v5396_v15  ;;  %v4763_v1 = vmul.f32 %v10749_v34, %v14150_v45  ;;  %v4764_v7 = vmul.f32 %v10756_v59, %v14150_v45  ;;  %14151 = vst [vmem:[#allocation66_spill] sm:$0xff] %v11151_v29 }
 0x40b   :  { %v5509_v47 = vmax.f32 %v5477_v33, 0.0  ;;  %v4713_v52 = vadd.f32 %v4681_v17, %v4631_v42  ;;  %v4714_v61 = vadd.f32 %v4682_v16, %v4632_v23  ;;  %v5624_v49 = vmul.f32 %v11012_v9, %v14114_v11  ;;  %v14152_v33 = vld [vmem:[#allocation141_spill] sm:$0xff] }
 0x40c   :  { %5547 = vadd.xlane.f32.xlu1 %v5546_v20  ;;  %v5510_v18 = vmax.f32 %v5478_v10, 0.0  ;;  %v5625_v40 = vmul.f32 %v11017_v50, %v14114_v11  ;;  %v5706_v39 = vmul.f32 %v11022_v28, %v14117_v27  ;;  %v5707_v15 = vmul.f32 %v11025_v22, %v14117_v27 }
 0x40d   :  { %v4795_v48 = vadd.f32 %v4763_v1, %v4713_v52  ;;  %v4796_v8 = vadd.f32 %v4764_v7, %v4714_v61  ;;  %v5656_v17 = vadd.f32 %v5624_v49, %v14116_v36  ;;  %v5788_v42 = vmul.f32 %v11039_v53, %v14152_v33  ;;  %v11169_v1 = vpop.xlane.xlu1 %3816 }
 0x40e   :  { %v5543_v23 = vadd.f32 %v5510_v18, %v5509_v47  ;;  %v5657_v16 = vadd.f32 %v5625_v40, %v14116_v36  ;;  %v5789_v20 = vmul.f32 %v11045_v46, %v14152_v33  ;;  %v5285_v11 = vmul.f32 %v10918_v4, %v13755_v24  ;;  %14153 = vst [vmem:[#allocation350_spill] sm:$0xff] %v11169_v1 }
 0x40f   :  { %v4827_v10 = vmax.f32 %v4795_v48, 0.0  ;;  %v4828_v62 = vmax.f32 %v4796_v8, 0.0  ;;  %v5738_v29 = vadd.f32 %v5706_v39, %v5656_v17  ;;  %v5286_v27 = vmul.f32 %v10921_v43, %v13755_v24  ;;  %v11179_v39 = vpop.xlane.xlu0 %3831  ;;  %v14155_v17 = vld [vmem:[#allocation157_spill] sm:$0xff] }
 0x410   :  { %5544 = vadd.xlane.f32.xlu0 %v5543_v23  ;;  %v5739_v7 = vadd.f32 %v5707_v15, %v5657_v16  ;;  %v5317_v47 = vadd.f32 %v5285_v11, %v14065_v44  ;;  %v5367_v36 = vmul.f32 %v10925_v38, %v14140_v5  ;;  %v5368_v52 = vmul.f32 %v10934_v25, %v14140_v5 }
 0x411   :  { %v4865_v61 = vadd.f32 %v4828_v62, %v4827_v10  ;;  %v5820_v49 = vadd.f32 %v5788_v42, %v5738_v29  ;;  %v5318_v18 = vadd.f32 %v5286_v27, %v14065_v44  ;;  %v5449_v40 = vmul.f32 %v10939_v6, %v14142_v32  ;;  %14154 = vst [vmem:[#allocation26_spill] sm:$0xff] %v11179_v39  ;;  %v14156_v62 = vld [vmem:[#allocation257_spill] sm:$0xff] }
 0x412   :  { %v5821_v48 = vadd.f32 %v5789_v20, %v5739_v7  ;;  %v5399_v8 = vadd.f32 %v5367_v36, %v5317_v47  ;;  %v5450_v15 = vmul.f32 %v10945_v19, %v14142_v32  ;;  %v4940_v33 = vmul.f32 %v14155_v17, %v13755_v24 }
 0x413   :  { %4866 = vadd.xlane.f32.xlu1 %v4865_v61  ;;  %v5852_v23 = vmax.f32 %v5820_v49, 0.0  ;;  %v5400_v16 = vadd.f32 %v5368_v52, %v5318_v18  ;;  %v4941_v29 = vmul.f32 %v14156_v62, %v13755_v24  ;;  %v5022_v42 = vmul.f32 %v10830_v2, %v14140_v5  ;;  %v14157_v52 = vld [vmem:[#allocation32_spill] sm:$0xff]  ;;  %v11197_v49 = vpop.xlane.xlu1 %3822 }
 0x414   :  { %v5853_v11 = vmax.f32 %v5821_v48, 0.0  ;;  %v5481_v10 = vadd.f32 %v5449_v40, %v5399_v8  ;;  %v4972_v20 = vadd.f32 %v4940_v33, %v14065_v44  ;;  %v5023_v27 = vmul.f32 %v10833_v56, %v14140_v5  ;;  %14158 = vst [vmem:[#allocation79_spill] sm:$0xff] %v11197_v49  ;;  %v14159_v40 = vld [vmem:[#allocation47_spill] sm:$0xff]  ;;  %v11205_v5 = vpop.xlane.xlu0 %3837 }
 0x415   :  { %v5482_v7 = vadd.f32 %v5450_v15, %v5400_v16  ;;  %v4973_v47 = vadd.f32 %v4941_v29, %v14065_v44  ;;  %v5104_v36 = vmul.f32 %v10845_v55, %v14142_v32  ;;  %v5105_v61 = vmul.f32 %v14157_v52, %v14142_v32  ;;  %v14160_v16 = vld [vmem:[#allocation48_spill] sm:$0xff]  ;;  %14161 = vst [vmem:[#allocation170_spill] sm:$0xff] %v11205_v5  ;;  %v14162_v44 = vld [vmem:[#allocation389_spill] sm:$0xff] }
 0x416   :  { %v5885_v18 = vadd.f32 %v5853_v11, %v5852_v23  ;;  %v5513_v39 = vmax.f32 %v5481_v10, 0.0  ;;  %v5054_v48 = vadd.f32 %v5022_v42, %v4972_v20  ;;  %v4601_v8 = vmul.f32 %v10725_v26, %v14159_v40  ;;  %v14163_v42 = vld [vmem:[#allocation338_spill] sm:$0xff] }
 0x417   :  { %v5514_v33 = vmax.f32 %v5482_v7, 0.0  ;;  %v5055_v1 = vadd.f32 %v5023_v27, %v4973_v47  ;;  %v4602_v15 = vmul.f32 %v10728_v63, %v14159_v40  ;;  %v4683_v29 = vmul.f32 %v10733_v31, %v14160_v16 }
 0x418   :  { %5886 = vadd.xlane.f32.xlu0 %v5885_v18  ;;  %v5136_v32 = vadd.f32 %v5104_v36, %v5054_v48  ;;  %v4633_v49 = vadd.f32 %v4601_v8, %v14162_v44  ;;  %v4684_v23 = vmul.f32 %v10736_v35, %v14160_v16  ;;  %v4765_v11 = vmul.f32 %v10749_v34, %v14163_v42 }
 0x419   :  { %v5549_v10 = vadd.f32 %v5514_v33, %v5513_v39  ;;  %v5137_v20 = vadd.f32 %v5105_v61, %v5055_v1  ;;  %v4634_v27 = vadd.f32 %v4602_v15, %v14162_v44  ;;  %v4766_v7 = vmul.f32 %v10756_v59, %v14163_v42  ;;  %v11223_v61 = vpop.xlane.xlu1 %3828 }
 0x41a   :  { %v5168_v47 = vmax.f32 %v5136_v32, 0.0  ;;  %v4715_v40 = vadd.f32 %v4683_v29, %v4633_v49  ;;  %v5626_v36 = vmul.f32 %v11012_v9, %v13713_v0  ;;  %v5627_v18 = vmul.f32 %v11017_v50, %v13713_v0  ;;  %14164 = vst [vmem:[#allocation80_spill] sm:$0xff] %v11223_v61 }
 0x41b   :  { %5550 = vadd.xlane.f32.xlu1 %v5549_v10  ;;  %v5169_v48 = vmax.f32 %v5137_v20, 0.0  ;;  %v4716_v8 = vadd.f32 %v4684_v23, %v4634_v27  ;;  %v5708_v39 = vmul.f32 %v11022_v28, %v13678_v60  ;;  %v5709_v1 = vmul.f32 %v11025_v22, %v13678_v60  ;;  %v11233_v20 = vpop.xlane.xlu0 %3843 }
 0x41c   :  { %v4797_v33 = vadd.f32 %v4765_v11, %v4715_v40  ;;  %v5658_v32 = vadd.f32 %v5626_v36, %v13749_v37  ;;  %v5659_v49 = vadd.f32 %v5627_v18, %v13749_v37  ;;  %v5790_v15 = vmul.f32 %v11039_v53, %v13750_v57  ;;  %14165 = vst [vmem:[#allocation351_spill] sm:$0xff] %v11233_v20 }
 0x41d   :  { %v5204_v0 = vadd.f32 %v5169_v48, %v5168_v47  ;;  %v4798_v29 = vadd.f32 %v4766_v7, %v4716_v8  ;;  %v5791_v23 = vmul.f32 %v11045_v46, %v13750_v57  ;;  %v5287_v10 = vmul.f32 %v10918_v4, %v13668_v3 }
 0x41e   :  { %v4829_v60 = vmax.f32 %v4797_v33, 0.0  ;;  %v5740_v27 = vadd.f32 %v5708_v39, %v5658_v32  ;;  %v5741_v40 = vadd.f32 %v5709_v1, %v5659_v49  ;;  %v5288_v11 = vmul.f32 %v10921_v43, %v13668_v3  ;;  %v11247_v32 = vpop.xlane.xlu1 %3834 }
 0x41f   :  { %5205 = vadd.xlane.f32.xlu0 %v5204_v0  ;;  %v4830_v37 = vmax.f32 %v4798_v29, 0.0  ;;  %v5319_v36 = vadd.f32 %v5287_v10, %v7998_v54  ;;  %v5369_v7 = vmul.f32 %v10925_v38, %v13669_v30  ;;  %v5370_v48 = vmul.f32 %v10934_v25, %v13669_v30  ;;  %14166 = vst [vmem:[#allocation171_spill] sm:$0xff] %v11247_v32 }
 0x420   :  { %v5822_v47 = vadd.f32 %v5790_v15, %v5740_v27  ;;  %v5823_v57 = vadd.f32 %v5791_v23, %v5741_v40  ;;  %v5320_v18 = vadd.f32 %v5288_v11, %v7998_v54  ;;  %v5451_v1 = vmul.f32 %v10939_v6, %v13670_v51 }
 0x421   :  { %v4868_v8 = vadd.f32 %v4830_v37, %v4829_v60  ;;  %v5401_v39 = vadd.f32 %v5369_v7, %v5319_v36  ;;  %v5452_v33 = vmul.f32 %v10945_v19, %v13670_v51  ;;  %v4942_v15 = vmul.f32 %v14155_v17, %v13668_v3  ;;  %v11253_v60 = vpop.xlane.xlu0 %3849 }
 0x422   :  { %v5854_v49 = vmax.f32 %v5822_v47, 0.0  ;;  %v5855_v0 = vmax.f32 %v5823_v57, 0.0  ;;  %v5402_v29 = vadd.f32 %v5370_v48, %v5320_v18  ;;  %v4943_v10 = vmul.f32 %v14156_v62, %v13668_v3  ;;  %14167 = vst [vmem:[#allocation83_spill] sm:$0xff] %v11253_v60  ;;  %v14168_v57 = vld [vmem:[#allocation321_spill] sm:$0xff] }
 0x423   :  { %4869 = vadd.xlane.f32.xlu1 %v4868_v8  ;;  %v5483_v23 = vadd.f32 %v5451_v1, %v5401_v39  ;;  %v4974_v11 = vadd.f32 %v4942_v15, %v7998_v54  ;;  %v5024_v37 = vmul.f32 %v10830_v2, %v13669_v30  ;;  %v5025_v47 = vmul.f32 %v10833_v56, %v13669_v30  ;;  %v14170_v15 = vld [vmem:[#allocation208_spill] sm:$0xff] }
 0x424   :  { %v5888_v27 = vadd.f32 %v5855_v0, %v5854_v49  ;;  %v5484_v40 = vadd.f32 %v5452_v33, %v5402_v29  ;;  %v4975_v7 = vadd.f32 %v4943_v10, %v7998_v54  ;;  %v4603_v18 = vmul.f32 %v10725_v26, %v14168_v57  ;;  %v14169_v0 = vld [vmem:[#allocation327_spill] sm:$0xff]  ;;  %v11272_v10 = vpop.xlane.xlu1 %3840 }
 0x425   :  { %v5515_v36 = vmax.f32 %v5483_v23, 0.0  ;;  %v5056_v8 = vadd.f32 %v5024_v37, %v4974_v11  ;;  %v5106_v39 = vmul.f32 %v10845_v55, %v13670_v51  ;;  %v4604_v1 = vmul.f32 %v10728_v63, %v14168_v57  ;;  %14171 = vst [vmem:[#allocation300_spill] sm:$0xff] %v11272_v10  ;;  %v11281_v5 = vpop.xlane.xlu0 %3855 }
 0x426   :  { %5889 = vadd.xlane.f32.xlu0 %v5888_v27  ;;  %v5516_v48 = vmax.f32 %v5484_v40, 0.0  ;;  %v5057_v33 = vadd.f32 %v5025_v47, %v4975_v7  ;;  %v5107_v49 = vmul.f32 %v14157_v52, %v13670_v51  ;;  %v4635_v29 = vadd.f32 %v4603_v18, %v14169_v0  ;;  %v14172_v7 = vld [vmem:[#allocation191_spill] sm:$0xff]  ;;  %14173 = vst [vmem:[#allocation84_spill] sm:$0xff] %v11281_v5 }
 0x427   :  { %v4685_v23 = vmul.f32 %v10733_v31, %v14170_v15  ;;  %v5138_v40 = vadd.f32 %v5106_v39, %v5056_v8  ;;  %v4636_v11 = vadd.f32 %v4604_v1, %v14169_v0  ;;  %v4686_v37 = vmul.f32 %v10736_v35, %v14170_v15 }
 0x428   :  { %v5552_v27 = vadd.f32 %v5516_v48, %v5515_v36  ;;  %v5139_v60 = vadd.f32 %v5107_v49, %v5057_v33  ;;  %v4767_v47 = vmul.f32 %v10749_v34, %v14172_v7  ;;  %v5628_v18 = vmul.f32 %v11012_v9, %v14053_v21 }
 0x429   :  { %v4717_v20 = vadd.f32 %v4685_v23, %v4635_v29  ;;  %v5170_v32 = vmax.f32 %v5138_v40, 0.0  ;;  %v4718_v10 = vadd.f32 %v4686_v37, %v4636_v11  ;;  %v4768_v36 = vmul.f32 %v10756_v59, %v14172_v7 }
 0x42a   :  { %5553 = vadd.xlane.f32.xlu1 %v5552_v27  ;;  %v5629_v48 = vmul.f32 %v11017_v50, %v14053_v21  ;;  %v5171_v8 = vmax.f32 %v5139_v60, 0.0  ;;  %v5660_v1 = vadd.f32 %v5628_v18, %v7966_v41  ;;  %v5710_v33 = vmul.f32 %v11022_v28, %v14132_v13  ;;  %v14174_v27 = vld [vmem:[#allocation304_spill] sm:$0xff] }
 0x42b   :  { %v4799_v39 = vadd.f32 %v4767_v47, %v4717_v20  ;;  %v4800_v49 = vadd.f32 %v4768_v36, %v4718_v10  ;;  %v5711_v23 = vmul.f32 %v11025_v22, %v14132_v13  ;;  %v5792_v40 = vmul.f32 %v11039_v53, %v14174_v27  ;;  %v11297_v20 = vpop.xlane.xlu1 %3846  ;;  %v11306_v36 = vpop.xlane.xlu0 %4158 }
 0x42c   :  { %v5661_v29 = vadd.f32 %v5629_v48, %v7966_v41  ;;  %v5207_v11 = vadd.f32 %v5171_v8, %v5170_v32  ;;  %v5742_v5 = vadd.f32 %v5710_v33, %v5660_v1  ;;  %v5289_v21 = vmul.f32 %v10918_v4, %v14146_v58  ;;  %14175 = vst [vmem:[#allocation302_spill] sm:$0xff] %v11297_v20 }
 0x42d   :  { %v4831_v37 = vmax.f32 %v4799_v39, 0.0  ;;  %v4832_v60 = vmax.f32 %v4800_v49, 0.0  ;;  %v5793_v10 = vmul.f32 %v11045_v46, %v14174_v27  ;;  %v5290_v41 = vmul.f32 %v10921_v43, %v14146_v58  ;;  %14176 = vst [vmem:[#allocation303_spill] sm:$0xff] %v11306_v36 }
 0x42e   :  { %v5743_v47 = vadd.f32 %v5711_v23, %v5661_v29  ;;  %5208 = vadd.xlane.f32.xlu0 %v5207_v11  ;;  %v5824_v13 = vadd.f32 %v5792_v40, %v5742_v5  ;;  %v5321_v18 = vadd.f32 %v5289_v21, %v14148_v12  ;;  %v5371_v32 = vmul.f32 %v10925_v38, %v14147_v14 }
 0x42f   :  { %v4871_v48 = vadd.f32 %v4832_v60, %v4831_v37  ;;  %v5322_v39 = vadd.f32 %v5290_v41, %v14148_v12  ;;  %v5372_v1 = vmul.f32 %v10934_v25, %v14147_v14  ;;  %v5453_v29 = vmul.f32 %v10939_v6, %v14150_v45 }
 0x430   :  { %v5825_v8 = vadd.f32 %v5793_v10, %v5743_v47  ;;  %v5856_v33 = vmax.f32 %v5824_v13, 0.0  ;;  %v5403_v49 = vadd.f32 %v5371_v32, %v5321_v18  ;;  %v4944_v5 = vmul.f32 %v14155_v17, %v14146_v58  ;;  %v11322_v47 = vpop.xlane.xlu1 %3852 }
 0x431   :  { %4872 = vadd.xlane.f32.xlu1 %v4871_v48  ;;  %v5404_v27 = vadd.f32 %v5372_v1, %v5322_v39  ;;  %v5454_v40 = vmul.f32 %v10945_v19, %v14150_v45  ;;  %v4945_v11 = vmul.f32 %v14156_v62, %v14146_v58  ;;  %v5026_v60 = vmul.f32 %v10830_v2, %v14147_v14  ;;  %v14178_v39 = vld [vmem:[#allocation63_spill] sm:$0xff] }
 0x432   :  { %v5857_v23 = vmax.f32 %v5825_v8, 0.0  ;;  %v5485_v37 = vadd.f32 %v5453_v29, %v5403_v49  ;;  %v4976_v21 = vadd.f32 %v4944_v5, %v14148_v12  ;;  %14177 = vst [vmem:[#allocation301_spill] sm:$0xff] %v11322_v47  ;;  %v5027_v18 = vmul.f32 %v10833_v56, %v14147_v14  ;;  %v11331_v49 = vpop.xlane.xlu0 %4164 }
 0x433   :  { %v5486_v41 = vadd.f32 %v5454_v40, %v5404_v27  ;;  %v4977_v13 = vadd.f32 %v4945_v11, %v14148_v12  ;;  %v5108_v8 = vmul.f32 %v10845_v55, %v14150_v45  ;;  %v4605_v1 = vmul.f32 %v10725_v26, %v14178_v39  ;;  %14179 = vst [vmem:[#allocation367_spill] sm:$0xff] %v11331_v49  ;;  %v14180_v40 = vld [vmem:[#allocation145_spill] sm:$0xff] }
 0x434   :  { %v5891_v10 = vadd.f32 %v5857_v23, %v5856_v33  ;;  %v5517_v32 = vmax.f32 %v5485_v37, 0.0  ;;  %v5058_v48 = vadd.f32 %v5026_v60, %v4976_v21  ;;  %v5109_v33 = vmul.f32 %v14157_v52, %v14150_v45  ;;  %v14181_v37 = vld [vmem:[#allocation64_spill] sm:$0xff] }
 0x435   :  { %v5518_v29 = vmax.f32 %v5486_v41, 0.0  ;;  %v5059_v5 = vadd.f32 %v5027_v18, %v4977_v13  ;;  %v4606_v23 = vmul.f32 %v10728_v63, %v14178_v39  ;;  %v4637_v11 = vadd.f32 %v4605_v1, %v14180_v40  ;;  %v14182_v18 = vld [vmem:[#allocation354_spill] sm:$0xff] }
 0x436   :  { %5892 = vadd.xlane.f32.xlu0 %v5891_v10  ;;  %v5140_v27 = vadd.f32 %v5108_v8, %v5058_v48  ;;  %v4687_v21 = vmul.f32 %v10733_v31, %v14181_v37  ;;  %v4688_v10 = vmul.f32 %v10736_v35, %v14181_v37  ;;  %v4769_v49 = vmul.f32 %v10749_v34, %v14182_v18  ;;  %v11347_v8 = vpop.xlane.xlu1 %3858 }
 0x437   :  { %v5555_v60 = vadd.f32 %v5518_v29, %v5517_v32  ;;  %v5141_v47 = vadd.f32 %v5109_v33, %v5059_v5  ;;  %v4638_v20 = vadd.f32 %v4606_v23, %v14180_v40  ;;  %v5630_v48 = vmul.f32 %v11012_v9, %v13755_v24  ;;  %14183 = vst [vmem:[#allocation97_spill] sm:$0xff] %v11347_v8  ;;  %v14184_v33 = vld [vmem:[#allocation148_spill] sm:$0xff]  ;;  %v14187_v8 = vld [vmem:[#allocation155_spill] sm:$0xff] }
 0x438   :  { %v5172_v41 = vmax.f32 %v5140_v27, 0.0  ;;  %v4719_v13 = vadd.f32 %v4687_v21, %v4637_v11  ;;  %v4770_v32 = vmul.f32 %v10756_v59, %v14182_v18  ;;  %v5631_v29 = vmul.f32 %v11017_v50, %v13755_v24  ;;  %v14185_v27 = vld [vmem:[#allocation172_spill] sm:$0xff]  ;;  %v11356_v21 = vpop.xlane.xlu0 %4170 }
 0x439   :  { %5556 = vadd.xlane.f32.xlu1 %v5555_v60  ;;  %v5173_v1 = vmax.f32 %v5141_v47, 0.0  ;;  %v4720_v36 = vadd.f32 %v4688_v10, %v4638_v20  ;;  %v5662_v23 = vadd.f32 %v5630_v48, %v14184_v33  ;;  %v5712_v11 = vmul.f32 %v11022_v28, %v14185_v27  ;;  %14186 = vst [vmem:[#allocation368_spill] sm:$0xff] %v11356_v21 }
 0x43a   :  { %v4801_v5 = vadd.f32 %v4769_v49, %v4719_v13  ;;  %v5663_v60 = vadd.f32 %v5631_v29, %v14184_v33  ;;  %v5713_v20 = vmul.f32 %v11025_v22, %v14185_v27  ;;  %v5794_v24 = vmul.f32 %v11039_v53, %v14187_v8  ;;  %v14188_v49 = vld [vmem:[#allocation47_spill] sm:$0xff] }
 0x43b   :  { %v5210_v61 = vadd.f32 %v5173_v1, %v5172_v41  ;;  %v4802_v37 = vadd.f32 %v4770_v32, %v4720_v36  ;;  %v5744_v10 = vadd.f32 %v5712_v11, %v5662_v23  ;;  %v5291_v13 = vmul.f32 %v10918_v4, %v14188_v49 }
 0x43c   :  { %v4833_v47 = vmax.f32 %v4801_v5, 0.0  ;;  %v5745_v18 = vadd.f32 %v5713_v20, %v5663_v60  ;;  %v5795_v41 = vmul.f32 %v11045_v46, %v14187_v8  ;;  %v5292_v36 = vmul.f32 %v10921_v43, %v14188_v49  ;;  %v11372_v5 = vpop.xlane.xlu1 %4161  ;;  %v11381_v20 = vpop.xlane.xlu0 %4176 }
 0x43d   :  { %5211 = vadd.xlane.f32.xlu0 %v5210_v61  ;;  %v4834_v48 = vmax.f32 %v4802_v37, 0.0  ;;  %v5826_v1 = vadd.f32 %v5794_v24, %v5744_v10  ;;  %v5323_v32 = vadd.f32 %v5291_v13, %v14162_v44  ;;  %v5373_v29 = vmul.f32 %v10925_v38, %v14160_v16  ;;  %14189 = vst [vmem:[#allocation188_spill] sm:$0xff] %v11372_v5 }
 0x43e   :  { %v5827_v23 = vadd.f32 %v5795_v41, %v5745_v18  ;;  %v5324_v61 = vadd.f32 %v5292_v36, %v14162_v44  ;;  %v5374_v37 = vmul.f32 %v10934_v25, %v14160_v16  ;;  %v5455_v11 = vmul.f32 %v10939_v6, %v14163_v42  ;;  %14190 = vst [vmem:[#allocation189_spill] sm:$0xff] %v11381_v20 }
 0x43f   :  { %v4874_v33 = vadd.f32 %v4834_v48, %v4833_v47  ;;  %v5858_v27 = vmax.f32 %v5826_v1, 0.0  ;;  %v5405_v8 = vadd.f32 %v5373_v29, %v5323_v32  ;;  %v4946_v60 = vmul.f32 %v14155_v17, %v14188_v49 }
 0x440   :  { %v5859_v10 = vmax.f32 %v5827_v23, 0.0  ;;  %v5406_v24 = vadd.f32 %v5374_v37, %v5324_v61  ;;  %v5456_v18 = vmul.f32 %v10945_v19, %v14163_v42  ;;  %v4947_v47 = vmul.f32 %v14156_v62, %v14188_v49  ;;  %v14191_v37 = vld [vmem:[#allocation339_spill] sm:$0xff] }
 0x441   :  { %4875 = vadd.xlane.f32.xlu1 %v4874_v33  ;;  %v5487_v13 = vadd.f32 %v5455_v11, %v5405_v8  ;;  %v4978_v48 = vadd.f32 %v4946_v60, %v14162_v44  ;;  %v5028_v41 = vmul.f32 %v10830_v2, %v14160_v16  ;;  %v5029_v29 = vmul.f32 %v10833_v56, %v14160_v16  ;;  %v11397_v11 = vpop.xlane.xlu1 %4167 }
 0x442   :  { %v5894_v36 = vadd.f32 %v5859_v10, %v5858_v27  ;;  %v5488_v1 = vadd.f32 %v5456_v18, %v5406_v24  ;;  %v4979_v32 = vadd.f32 %v4947_v47, %v14162_v44  ;;  %v5110_v61 = vmul.f32 %v10845_v55, %v14163_v42  ;;  %14192 = vst [vmem:[#allocation98_spill] sm:$0xff] %v11397_v11  ;;  %v14193_v18 = vld [vmem:[#allocation147_spill] sm:$0xff]  ;;  %v14196_v11 = vld [vmem:[#allocation209_spill] sm:$0xff] }
 0x443   :  { %v5519_v33 = vmax.f32 %v5487_v13, 0.0  ;;  %v5060_v23 = vadd.f32 %v5028_v41, %v4978_v48  ;;  %v4607_v8 = vmul.f32 %v10725_v26, %v14191_v37  ;;  %v5111_v27 = vmul.f32 %v14157_v52, %v14163_v42  ;;  %v14194_v13 = vld [vmem:[#allocation226_spill] sm:$0xff]  ;;  %v11406_v41 = vpop.xlane.xlu0 %4182 }
 0x444   :  { %5895 = vadd.xlane.f32.xlu0 %v5894_v36  ;;  %v5520_v60 = vmax.f32 %v5488_v1, 0.0  ;;  %v5061_v20 = vadd.f32 %v5029_v29, %v4979_v32  ;;  %v4608_v10 = vmul.f32 %v10728_v63, %v14191_v37  ;;  %v4689_v48 = vmul.f32 %v10733_v31, %v14194_v13  ;;  %14195 = vst [vmem:[#allocation174_spill] sm:$0xff] %v11406_v41 }
 0x445   :  { %v5142_v24 = vadd.f32 %v5110_v61, %v5060_v23  ;;  %v4639_v47 = vadd.f32 %v4607_v8, %v14193_v18  ;;  %v4690_v1 = vmul.f32 %v10736_v35, %v14194_v13  ;;  %v4771_v37 = vmul.f32 %v10749_v34, %v14196_v11 }
 0x446   :  { %v5558_v21 = vadd.f32 %v5520_v60, %v5519_v33  ;;  %v5143_v5 = vadd.f32 %v5111_v27, %v5061_v20  ;;  %v4640_v36 = vadd.f32 %v4608_v10, %v14193_v18  ;;  %v5632_v23 = vmul.f32 %v11012_v9, %v13668_v3 }
 0x447   :  { %v5174_v32 = vmax.f32 %v5142_v24, 0.0  ;;  %v4721_v29 = vadd.f32 %v4689_v48, %v4639_v47  ;;  %v4772_v33 = vmul.f32 %v10756_v59, %v14196_v11  ;;  %v5633_v20 = vmul.f32 %v11017_v50, %v13668_v3  ;;  %v11422_v24 = vpop.xlane.xlu1 %4173 }
 0x448   :  { %5559 = vadd.xlane.f32.xlu1 %v5558_v21  ;;  %v5175_v61 = vmax.f32 %v5143_v5, 0.0  ;;  %v4722_v8 = vadd.f32 %v4690_v1, %v4640_v36  ;;  %v5664_v27 = vadd.f32 %v5632_v23, %v7998_v54  ;;  %v5714_v10 = vmul.f32 %v11022_v28, %v13669_v30  ;;  %14197 = vst [vmem:[#allocation175_spill] sm:$0xff] %v11422_v24 }
 0x449   :  { %v4803_v60 = vadd.f32 %v4771_v37, %v4721_v29  ;;  %v5665_v21 = vadd.f32 %v5633_v20, %v7998_v54  ;;  %v5715_v5 = vmul.f32 %v11025_v22, %v13669_v30  ;;  %v5796_v3 = vmul.f32 %v11039_v53, %v13670_v51  ;;  %v11431_v29 = vpop.xlane.xlu0 %4188 }
 0x44a   :  { %v5213_v47 = vadd.f32 %v5175_v61, %v5174_v32  ;;  %v4804_v48 = vadd.f32 %v4772_v33, %v4722_v8  ;;  %v5746_v1 = vadd.f32 %v5714_v10, %v5664_v27  ;;  %v5293_v37 = vmul.f32 %v10918_v4, %v14168_v57  ;;  %14198 = vst [vmem:[#allocation101_spill] sm:$0xff] %v11431_v29 }
 0x44b   :  { %v4835_v36 = vmax.f32 %v4803_v60, 0.0  ;;  %v5747_v41 = vadd.f32 %v5715_v5, %v5665_v21  ;;  %v5797_v32 = vmul.f32 %v11045_v46, %v13670_v51  ;;  %v5294_v54 = vmul.f32 %v10921_v43, %v14168_v57  ;;  %v11447_v21 = vpop.xlane.xlu1 %4179 }
 0x44c   :  { %5214 = vadd.xlane.f32.xlu0 %v5213_v47  ;;  %v4836_v23 = vmax.f32 %v4804_v48, 0.0  ;;  %v5828_v30 = vadd.f32 %v5796_v3, %v5746_v1  ;;  %v5325_v61 = vadd.f32 %v5293_v37, %v14169_v0  ;;  %v5375_v8 = vmul.f32 %v10925_v38, %v14170_v15  ;;  %14199 = vst [vmem:[#allocation102_spill] sm:$0xff] %v11447_v21  ;;  %v14205_v21 = vld [vmem:[#allocation371_spill] sm:$0xff] }
 0x44d   :  { %v5829_v20 = vadd.f32 %v5797_v32, %v5747_v41  ;;  %v5326_v60 = vadd.f32 %v5294_v54, %v14169_v0  ;;  %v5376_v27 = vmul.f32 %v10934_v25, %v14170_v15  ;;  %v5457_v51 = vmul.f32 %v10939_v6, %v14172_v7  ;;  %v11456_v32 = vpop.xlane.xlu0 %4194 }
 0x44e   :  { %v4877_v33 = vadd.f32 %v4836_v23, %v4835_v36  ;;  %v5860_v10 = vmax.f32 %v5828_v30, 0.0  ;;  %v5407_v47 = vadd.f32 %v5375_v8, %v5325_v61  ;;  %v4948_v48 = vmul.f32 %v14155_v17, %v14168_v57  ;;  %14200 = vst [vmem:[#allocation318_spill] sm:$0xff] %v11456_v32 }
 0x44f   :  { %v5861_v5 = vmax.f32 %v5829_v20, 0.0  ;;  %v5408_v1 = vadd.f32 %v5376_v27, %v5326_v60  ;;  %v5458_v41 = vmul.f32 %v10945_v19, %v14172_v7  ;;  %v4949_v36 = vmul.f32 %v14156_v62, %v14168_v57  ;;  %v14201_v27 = vld [vmem:[#allocation81_spill] sm:$0xff] }
 0x450   :  { %4878 = vadd.xlane.f32.xlu1 %v4877_v33  ;;  %v5489_v3 = vadd.f32 %v5457_v51, %v5407_v47  ;;  %v4980_v37 = vadd.f32 %v4948_v48, %v14169_v0  ;;  %v5030_v23 = vmul.f32 %v10830_v2, %v14170_v15  ;;  %v5031_v8 = vmul.f32 %v10833_v56, %v14170_v15 }
 0x451   :  { %v5897_v54 = vadd.f32 %v5861_v5, %v5860_v10  ;;  %v5490_v30 = vadd.f32 %v5458_v41, %v5408_v1  ;;  %v4981_v61 = vadd.f32 %v4949_v36, %v14169_v0  ;;  %v5112_v60 = vmul.f32 %v10845_v55, %v14172_v7  ;;  %v14202_v41 = vld [vmem:[#allocation326_spill] sm:$0xff] }
 0x452   :  { %v5521_v33 = vmax.f32 %v5489_v3, 0.0  ;;  %v5062_v20 = vadd.f32 %v5030_v23, %v4980_v37  ;;  %v4609_v47 = vmul.f32 %v10725_v26, %v14201_v27  ;;  %v5113_v10 = vmul.f32 %v14157_v52, %v14172_v7  ;;  %v14203_v3 = vld [vmem:[#allocation82_spill] sm:$0xff]  ;;  %v11472_v23 = vpop.xlane.xlu1 %4185 }
 0x453   :  { %5898 = vadd.xlane.f32.xlu0 %v5897_v54  ;;  %v5522_v51 = vmax.f32 %v5490_v30, 0.0  ;;  %v5063_v48 = vadd.f32 %v5031_v8, %v4981_v61  ;;  %v4610_v5 = vmul.f32 %v10728_v63, %v14201_v27  ;;  %v4691_v37 = vmul.f32 %v10733_v31, %v14203_v3  ;;  %14204 = vst [vmem:[#allocation319_spill] sm:$0xff] %v11472_v23 }
 0x454   :  { %v5144_v1 = vadd.f32 %v5112_v60, %v5062_v20  ;;  %v4641_v36 = vadd.f32 %v4609_v47, %v14202_v41  ;;  %v4692_v30 = vmul.f32 %v10736_v35, %v14203_v3  ;;  %v4773_v24 = vmul.f32 %v10749_v34, %v14205_v21  ;;  %v11481_v60 = vpop.xlane.xlu0 %4200 }
 0x455   :  { %v5561_v32 = vadd.f32 %v5522_v51, %v5521_v33  ;;  %v5145_v29 = vadd.f32 %v5113_v10, %v5063_v48  ;;  %v4642_v54 = vadd.f32 %v4610_v5, %v14202_v41  ;;  %v5634_v20 = vmul.f32 %v11012_v9, %v14146_v58  ;;  %14206 = vst [vmem:[#allocation378_spill] sm:$0xff] %v11481_v60 }
 0x456   :  { %v5176_v61 = vmax.f32 %v5144_v1, 0.0  ;;  %v4723_v8 = vadd.f32 %v4691_v37, %v4641_v36  ;;  %v4774_v33 = vmul.f32 %v10756_v59, %v14205_v21  ;;  %v5635_v51 = vmul.f32 %v11017_v50, %v14146_v58 }
 0x457   :  { %5562 = vadd.xlane.f32.xlu1 %v5561_v32  ;;  %v5177_v47 = vmax.f32 %v5145_v29, 0.0  ;;  %v4724_v23 = vadd.f32 %v4692_v30, %v4642_v54  ;;  %v5666_v10 = vadd.f32 %v5634_v20, %v14148_v12  ;;  %v5716_v5 = vmul.f32 %v11022_v28, %v14147_v14 }
 0x458   :  { %v4805_v48 = vadd.f32 %v4773_v24, %v4723_v8  ;;  %v5667_v37 = vadd.f32 %v5635_v51, %v14148_v12  ;;  %v5717_v29 = vmul.f32 %v11025_v22, %v14147_v14  ;;  %v5798_v30 = vmul.f32 %v11039_v53, %v14150_v45  ;;  %v11497_v24 = vpop.xlane.xlu1 %4191  ;;  %v11506_v51 = vpop.xlane.xlu0 %4503 }
 0x459   :  { %v5216_v1 = vadd.f32 %v5177_v47, %v5176_v61  ;;  %v4806_v36 = vadd.f32 %v4774_v33, %v4724_v23  ;;  %v5748_v54 = vadd.f32 %v5716_v5, %v5666_v10  ;;  %v5295_v58 = vmul.f32 %v10918_v4, %v14178_v39  ;;  %14207 = vst [vmem:[#allocation206_spill] sm:$0xff] %v11497_v24  ;;  %v14208_v47 = vld [vmem:[#allocation64_spill] sm:$0xff] }
 0x45a   :  { %v4837_v32 = vmax.f32 %v4805_v48, 0.0  ;;  %v5749_v20 = vadd.f32 %v5717_v29, %v5667_v37  ;;  %v5799_v23 = vmul.f32 %v11045_v46, %v14150_v45  ;;  %v5296_v12 = vmul.f32 %v10921_v43, %v14178_v39  ;;  %14209 = vst [vmem:[#allocation207_spill] sm:$0xff] %v11506_v51  ;;  %v14210_v37 = vld [vmem:[#allocation354_spill] sm:$0xff] }
 0x45b   :  { %5217 = vadd.xlane.f32.xlu0 %v5216_v1  ;;  %v4838_v8 = vmax.f32 %v4806_v36, 0.0  ;;  %v5830_v14 = vadd.f32 %v5798_v30, %v5748_v54  ;;  %v5327_v61 = vadd.f32 %v5295_v58, %v14180_v40  ;;  %v5377_v33 = vmul.f32 %v10925_v38, %v14208_v47 }
 0x45c   :  { %v5831_v10 = vadd.f32 %v5799_v23, %v5749_v20  ;;  %v5328_v5 = vadd.f32 %v5296_v12, %v14180_v40  ;;  %v5378_v1 = vmul.f32 %v10934_v25, %v14208_v47  ;;  %v5459_v29 = vmul.f32 %v10939_v6, %v14210_v37 }
 0x45d   :  { %v4880_v48 = vadd.f32 %v4838_v8, %v4837_v32  ;;  %v5862_v36 = vmax.f32 %v5830_v14, 0.0  ;;  %v5409_v45 = vadd.f32 %v5377_v33, %v5327_v61  ;;  %v4950_v54 = vmul.f32 %v14155_v17, %v14178_v39  ;;  %v11522_v14 = vpop.xlane.xlu1 %4197 }
 0x45e   :  { %v5863_v30 = vmax.f32 %v5831_v10, 0.0  ;;  %v5410_v58 = vadd.f32 %v5378_v1, %v5328_v5  ;;  %v5460_v32 = vmul.f32 %v10945_v19, %v14210_v37  ;;  %v4951_v8 = vmul.f32 %v14156_v62, %v14178_v39  ;;  %14211 = vst [vmem:[#allocation115_spill] sm:$0xff] %v11522_v14 }
 0x45f   :  { %4881 = vadd.xlane.f32.xlu1 %v4880_v48  ;;  %v5491_v20 = vadd.f32 %v5459_v29, %v5409_v45  ;;  %v4982_v23 = vadd.f32 %v4950_v54, %v14180_v40  ;;  %v5032_v12 = vmul.f32 %v10830_v2, %v14208_v47  ;;  %v5033_v10 = vmul.f32 %v10833_v56, %v14208_v47  ;;  %v14212_v45 = vld [vmem:[#allocation355_spill] sm:$0xff]  ;;  %v11531_v54 = vpop.xlane.xlu0 %4509 }
 0x460   :  { %v5900_v61 = vadd.f32 %v5863_v30, %v5862_v36  ;;  %v5492_v33 = vadd.f32 %v5460_v32, %v5410_v58  ;;  %v4983_v48 = vadd.f32 %v4951_v8, %v14180_v40  ;;  %v5114_v60 = vmul.f32 %v10845_v55, %v14210_v37  ;;  %14213 = vst [vmem:[#allocation116_spill] sm:$0xff] %v11531_v54  ;;  %v14214_v32 = vld [vmem:[#allocation17_spill] sm:$0xff] }
 0x461   :  { %v5523_v5 = vmax.f32 %v5491_v20, 0.0  ;;  %v5064_v1 = vadd.f32 %v5032_v12, %v4982_v23  ;;  %v4611_v29 = vmul.f32 %v10725_v26, %v14212_v45  ;;  %v5115_v36 = vmul.f32 %v14157_v52, %v14210_v37  ;;  %v14215_v20 = vld [vmem:[#allocation244_spill] sm:$0xff] }
 0x462   :  { %5901 = vadd.xlane.f32.xlu0 %v5900_v61  ;;  %v5524_v24 = vmax.f32 %v5492_v33, 0.0  ;;  %v5065_v14 = vadd.f32 %v5033_v10, %v4983_v48  ;;  %v4612_v30 = vmul.f32 %v10728_v63, %v14212_v45  ;;  %v4693_v23 = vmul.f32 %v10733_v31, %v14215_v20  ;;  %v14216_v10 = vld [vmem:[#allocation227_spill] sm:$0xff] }
 0x463   :  { %v5146_v58 = vadd.f32 %v5114_v60, %v5064_v1  ;;  %v4643_v8 = vadd.f32 %v4611_v29, %v14214_v32  ;;  %v4694_v61 = vmul.f32 %v10736_v35, %v14215_v20  ;;  %v4775_v54 = vmul.f32 %v10749_v34, %v14216_v10  ;;  %v11547_v1 = vpop.xlane.xlu1 %4203 }
 0x464   :  { %v5564_v12 = vadd.f32 %v5524_v24, %v5523_v5  ;;  %v5147_v51 = vadd.f32 %v5115_v36, %v5065_v14  ;;  %v4644_v47 = vadd.f32 %v4612_v30, %v14214_v32  ;;  %v5636_v60 = vmul.f32 %v11012_v9, %v14188_v49  ;;  %14217 = vst [vmem:[#allocation336_spill] sm:$0xff] %v11547_v1 }
 0x465   :  { %v5178_v33 = vmax.f32 %v5146_v58, 0.0  ;;  %v4725_v48 = vadd.f32 %v4693_v23, %v4643_v8  ;;  %v4776_v24 = vmul.f32 %v10756_v59, %v14216_v10  ;;  %v5637_v14 = vmul.f32 %v11017_v50, %v14188_v49  ;;  %v11556_v58 = vpop.xlane.xlu0 %4515 }
 0x466   :  { %5565 = vadd.xlane.f32.xlu1 %v5564_v12  ;;  %v5179_v29 = vmax.f32 %v5147_v51, 0.0  ;;  %v4726_v45 = vadd.f32 %v4694_v61, %v4644_v47  ;;  %v5668_v36 = vadd.f32 %v5636_v60, %v14162_v44  ;;  %v5718_v30 = vmul.f32 %v11022_v28, %v14160_v16  ;;  %14218 = vst [vmem:[#allocation192_spill] sm:$0xff] %v11556_v58 }
 0x467   :  { %v4807_v5 = vadd.f32 %v4775_v54, %v4725_v48  ;;  %v5669_v12 = vadd.f32 %v5637_v14, %v14162_v44  ;;  %v5719_v47 = vmul.f32 %v11025_v22, %v14160_v16  ;;  %v5800_v49 = vmul.f32 %v11039_v53, %v14163_v42  ;;  %v14219_v54 = vld [vmem:[#allocation339_spill] sm:$0xff] }
 0x468   :  { %v5219_v8 = vadd.f32 %v5179_v29, %v5178_v33  ;;  %v4808_v23 = vadd.f32 %v4776_v24, %v4726_v45  ;;  %v5750_v61 = vadd.f32 %v5718_v30, %v5668_v36  ;;  %v5297_v48 = vmul.f32 %v10918_v4, %v14219_v54  ;;  %v11572_v24 = vpop.xlane.xlu1 %4506 }
 0x469   :  { %v4839_v51 = vmax.f32 %v4807_v5, 0.0  ;;  %v5751_v1 = vadd.f32 %v5719_v47, %v5669_v12  ;;  %v5801_v33 = vmul.f32 %v11045_v46, %v14163_v42  ;;  %v5298_v44 = vmul.f32 %v10921_v43, %v14219_v54  ;;  %14220 = vst [vmem:[#allocation193_spill] sm:$0xff] %v11572_v24  ;;  %v11581_v47 = vpop.xlane.xlu0 %4521 }
 0x46a   :  { %5220 = vadd.xlane.f32.xlu0 %v5219_v8  ;;  %v4840_v60 = vmax.f32 %v4808_v23, 0.0  ;;  %v5832_v45 = vadd.f32 %v5800_v49, %v5750_v61  ;;  %v5329_v16 = vadd.f32 %v5297_v48, %v14193_v18  ;;  %v5379_v29 = vmul.f32 %v10925_v38, %v14194_v13  ;;  %14221 = vst [vmem:[#allocation119_spill] sm:$0xff] %v11581_v47 }
 0x46b   :  { %v5833_v5 = vadd.f32 %v5801_v33, %v5751_v1  ;;  %v5330_v36 = vadd.f32 %v5298_v44, %v14193_v18  ;;  %v5380_v30 = vmul.f32 %v10934_v25, %v14194_v13  ;;  %v5461_v23 = vmul.f32 %v10939_v6, %v14196_v11 }
 0x46c   :  { %v4883_v14 = vadd.f32 %v4840_v60, %v4839_v51  ;;  %v5864_v8 = vmax.f32 %v5832_v45, 0.0  ;;  %v5411_v42 = vadd.f32 %v5379_v29, %v5329_v16  ;;  %v4952_v12 = vmul.f32 %v14155_v17, %v14219_v54 }
 0x46d   :  { %v5865_v61 = vmax.f32 %v5833_v5, 0.0  ;;  %v5412_v49 = vadd.f32 %v5380_v30, %v5330_v36  ;;  %v5462_v1 = vmul.f32 %v10945_v19, %v14196_v11  ;;  %v4953_v51 = vmul.f32 %v14156_v62, %v14219_v54  ;;  %v14222_v30 = vld [vmem:[#allocation99_spill] sm:$0xff] }
 0x46e   :  { %4884 = vadd.xlane.f32.xlu1 %v4883_v14  ;;  %v5493_v48 = vadd.f32 %v5461_v23, %v5411_v42  ;;  %v4984_v60 = vadd.f32 %v4952_v12, %v14193_v18  ;;  %v5034_v33 = vmul.f32 %v10830_v2, %v14194_v13  ;;  %v5035_v29 = vmul.f32 %v10833_v56, %v14194_v13  ;;  %v11597_v23 = vpop.xlane.xlu1 %4512 }
 0x46f   :  { %v5903_v44 = vadd.f32 %v5865_v61, %v5864_v8  ;;  %v5494_v45 = vadd.f32 %v5462_v1, %v5412_v49  ;;  %v4985_v16 = vadd.f32 %v4953_v51, %v14193_v18  ;;  %v5116_v36 = vmul.f32 %v10845_v55, %v14196_v11  ;;  %14223 = vst [vmem:[#allocation120_spill] sm:$0xff] %v11597_v23  ;;  %v14224_v1 = vld [vmem:[#allocation52_spill] sm:$0xff]  ;;  %v14227_v23 = vld [vmem:[#allocation381_spill] sm:$0xff] }
 0x470   :  { %v5525_v14 = vmax.f32 %v5493_v48, 0.0  ;;  %v5066_v5 = vadd.f32 %v5034_v33, %v4984_v60  ;;  %v4613_v42 = vmul.f32 %v10725_v26, %v14222_v30  ;;  %v5117_v8 = vmul.f32 %v14157_v52, %v14196_v11  ;;  %v14225_v48 = vld [vmem:[#allocation100_spill] sm:$0xff]  ;;  %v11606_v33 = vpop.xlane.xlu0 %4527 }
 0x471   :  { %5904 = vadd.xlane.f32.xlu0 %v5903_v44  ;;  %v5526_v12 = vmax.f32 %v5494_v45, 0.0  ;;  %v5067_v47 = vadd.f32 %v5035_v29, %v4985_v16  ;;  %v4614_v61 = vmul.f32 %v10728_v63, %v14222_v30  ;;  %v4695_v60 = vmul.f32 %v10733_v31, %v14225_v48  ;;  %14226 = vst [vmem:[#allocation337_spill] sm:$0xff] %v11606_v33 }
 0x472   :  { %v5148_v49 = vadd.f32 %v5116_v36, %v5066_v5  ;;  %v4645_v51 = vadd.f32 %v4613_v42, %v14224_v1  ;;  %v4696_v45 = vmul.f32 %v10736_v35, %v14225_v48  ;;  %v4777_v63 = vmul.f32 %v10749_v34, %v14227_v23 }
 0x473   :  { %v5567_v58 = vadd.f32 %v5526_v12, %v5525_v14  ;;  %v5149_v24 = vadd.f32 %v5117_v8, %v5067_v47  ;;  %v4646_v44 = vadd.f32 %v4614_v61, %v14224_v1  ;;  %v5638_v5 = vmul.f32 %v11012_v9, %v14168_v57 }
 0x474   :  { %v5180_v16 = vmax.f32 %v5148_v49, 0.0  ;;  %v4727_v29 = vadd.f32 %v4695_v60, %v4645_v51  ;;  %v4778_v14 = vmul.f32 %v10756_v59, %v14227_v23  ;;  %v5639_v47 = vmul.f32 %v11017_v50, %v14168_v57  ;;  %v11622_v49 = vpop.xlane.xlu1 %4518 }
 0x475   :  { %5568 = vadd.xlane.f32.xlu1 %v5567_v58  ;;  %v5181_v36 = vmax.f32 %v5149_v24, 0.0  ;;  %v4728_v42 = vadd.f32 %v4696_v45, %v4646_v44  ;;  %v5670_v8 = vadd.f32 %v5638_v5, %v14169_v0  ;;  %v5720_v61 = vmul.f32 %v11022_v28, %v14170_v15  ;;  %14228 = vst [vmem:[#allocation224_spill] sm:$0xff] %v11622_v49 }
 0x476   :  { %v4809_v12 = vadd.f32 %v4777_v63, %v4727_v29  ;;  %v5671_v58 = vadd.f32 %v5639_v47, %v14169_v0  ;;  %v5721_v24 = vmul.f32 %v11025_v22, %v14170_v15  ;;  %v5802_v57 = vmul.f32 %v11039_v53, %v14172_v7  ;;  %v11631_v29 = vpop.xlane.xlu0 %4533 }
 0x477   :  { %v5222_v51 = vadd.f32 %v5181_v36, %v5180_v16  ;;  %v4810_v60 = vadd.f32 %v4778_v14, %v4728_v42  ;;  %v5752_v45 = vadd.f32 %v5720_v61, %v5670_v8  ;;  %v5299_v63 = vmul.f32 %v10918_v4, %v14201_v27  ;;  %14229 = vst [vmem:[#allocation134_spill] sm:$0xff] %v11631_v29 }
 0x478   :  { %v4841_v44 = vmax.f32 %v4809_v12, 0.0  ;;  %v5753_v33 = vadd.f32 %v5721_v24, %v5671_v58  ;;  %v5803_v16 = vmul.f32 %v11045_v46, %v14172_v7  ;;  %v5300_v0 = vmul.f32 %v10921_v43, %v14201_v27  ;;  %v11647_v58 = vpop.xlane.xlu1 %4524 }
 0x479   :  { %5223 = vadd.xlane.f32.xlu0 %v5222_v51  ;;  %v4842_v5 = vmax.f32 %v4810_v60, 0.0  ;;  %v5834_v15 = vadd.f32 %v5802_v57, %v5752_v45  ;;  %v5331_v36 = vadd.f32 %v5299_v63, %v14202_v41  ;;  %v5381_v42 = vmul.f32 %v10925_v38, %v14203_v3  ;;  %14230 = vst [vmem:[#allocation225_spill] sm:$0xff] %v11647_v58 }
 0x47a   :  { %v5835_v47 = vadd.f32 %v5803_v16, %v5753_v33  ;;  %v5332_v12 = vadd.f32 %v5300_v0, %v14202_v41  ;;  %v5382_v8 = vmul.f32 %v10934_v25, %v14203_v3  ;;  %v5463_v7 = vmul.f32 %v10939_v6, %v14205_v21  ;;  %v11656_v16 = vpop.xlane.xlu0 %4539  ;;  %v14240_v6 = vld [vmem:[#allocation387_spill] sm:$0xff]  ;;  %v14241_v25 = vld [vmem:[#allocation112_spill] sm:$0xff] }
 0x47b   :  { %v4886_v14 = vadd.f32 %v4842_v5, %v4841_v44  ;;  %v5866_v61 = vmax.f32 %v5834_v15, 0.0  ;;  %v5413_v51 = vadd.f32 %v5381_v42, %v5331_v36  ;;  %v4954_v60 = vmul.f32 %v14155_v17, %v14201_v27  ;;  %14231 = vst [vmem:[#allocation210_spill] sm:$0xff] %v11656_v16 }
 0x47c   :  { %v5867_v24 = vmax.f32 %v5835_v47, 0.0  ;;  %v5414_v45 = vadd.f32 %v5382_v8, %v5332_v12  ;;  %v5464_v33 = vmul.f32 %v10945_v19, %v14205_v21  ;;  %v4955_v44 = vmul.f32 %v14156_v62, %v14201_v27  ;;  %v14232_v8 = vld [vmem:[#allocation117_spill] sm:$0xff]  ;;  %v11672_v58 = vpop.xlane.xlu1 %4530 }
 0x47d   :  { %4887 = vadd.xlane.f32.xlu1 %v4886_v14  ;;  %v5495_v57 = vadd.f32 %v5463_v7, %v5413_v51  ;;  %v4986_v63 = vadd.f32 %v4954_v60, %v14202_v41  ;;  %v5036_v5 = vmul.f32 %v10830_v2, %v14203_v3  ;;  %v5037_v42 = vmul.f32 %v10833_v56, %v14203_v3  ;;  %v14233_v51 = vld [vmem:[#allocation96_spill] sm:$0xff] }
 0x47e   :  { %v5906_v0 = vadd.f32 %v5867_v24, %v5866_v61  ;;  %v5496_v15 = vadd.f32 %v5464_v33, %v5414_v45  ;;  %v4987_v36 = vadd.f32 %v4955_v44, %v14202_v41  ;;  %v5118_v12 = vmul.f32 %v10845_v55, %v14205_v21  ;;  %v14234_v24 = vld [vmem:[#allocation202_spill] sm:$0xff]  ;;  %14238 = vst [vmem:[#allocation135_spill] sm:$0xff] %v11672_v58 }
 0x47f   :  { %v5527_v14 = vmax.f32 %v5495_v57, 0.0  ;;  %v5068_v47 = vadd.f32 %v5036_v5, %v4986_v63  ;;  %v4272_v7 = vmul.f32 %v14233_v51, %v14232_v8  ;;  %v5119_v61 = vmul.f32 %v14157_v52, %v14205_v21  ;;  %v14235_v44 = vld [vmem:[#allocation146_spill] sm:$0xff]  ;;  %v14237_v63 = vld [vmem:[#allocation111_spill] sm:$0xff] }
 0x480   :  { %5907 = vadd.xlane.f32.xlu0 %v5906_v0  ;;  %v5528_v60 = vmax.f32 %v5496_v15, 0.0  ;;  %v5069_v29 = vadd.f32 %v5037_v42, %v4987_v36  ;;  %v4273_v45 = vmul.f32 %v14234_v24, %v14232_v8  ;;  %v14236_v57 = vld [vmem:[#allocation118_spill] sm:$0xff]  ;;  %v14239_v15 = vld [vmem:[#allocation203_spill] sm:$0xff]  ;;  %v4436_v24 = vmul.f32 %v14241_v25, %v14240_v6 }
 0x481   :  { %v5150_v33 = vadd.f32 %v5118_v12, %v5068_v47  ;;  %v4304_v16 = vadd.f32 %v4272_v7, %v14235_v44  ;;  %v4354_v5 = vmul.f32 %v14237_v63, %v14236_v57  ;;  %v4355_v36 = vmul.f32 %v14239_v15, %v14236_v57  ;;  %v11681_v12 = vpop.xlane.xlu0 %4545 }
 0x482   :  { %v5570_v49 = vadd.f32 %v5528_v60, %v5527_v14  ;;  %v5151_v19 = vadd.f32 %v5119_v61, %v5069_v29  ;;  %v4305_v0 = vadd.f32 %v4273_v45, %v14235_v44  ;;  %v5640_v47 = vmul.f32 %v11012_v9, %v14178_v39  ;;  %14242 = vst [vmem:[#allocation136_spill] sm:$0xff] %v11681_v12  ;;  %v14243_v29 = vld [vmem:[#allocation113_spill] sm:$0xff]  ;;  %v14244_v45 = vld [vmem:[#allocation64_spill] sm:$0xff] }
 0x483   :  { %v5182_v42 = vmax.f32 %v5150_v33, 0.0  ;;  %v4386_v51 = vadd.f32 %v4354_v5, %v4304_v16  ;;  %v4437_v14 = vmul.f32 %v14243_v29, %v14240_v6  ;;  %v5641_v60 = vmul.f32 %v11017_v50, %v14178_v39  ;;  %v14254_v12 = vld [vmem:[#allocation245_spill] sm:$0xff] }
 0x484   :  { %5571 = vadd.xlane.f32.xlu1 %v5570_v49  ;;  %v5183_v7 = vmax.f32 %v5151_v19, 0.0  ;;  %v4387_v63 = vadd.f32 %v4355_v36, %v4305_v0  ;;  %v5672_v16 = vadd.f32 %v5640_v47, %v14180_v40  ;;  %v5722_v25 = vmul.f32 %v11022_v28, %v14244_v45 }
 0x485   :  { %v4468_v61 = vadd.f32 %v4436_v24, %v4386_v51  ;;  %v5673_v15 = vadd.f32 %v5641_v60, %v14180_v40  ;;  %v5723_v19 = vmul.f32 %v11025_v22, %v14244_v45  ;;  %v5804_v36 = vmul.f32 %v11039_v53, %v14210_v37  ;;  %v11697_v51 = vpop.xlane.xlu1 %4536 }
 0x486   :  { %v5225_v33 = vadd.f32 %v5183_v7, %v5182_v42  ;;  %v4469_v5 = vadd.f32 %v4437_v14, %v4387_v63  ;;  %v5754_v0 = vadd.f32 %v5722_v25, %v5672_v16  ;;  %v4958_v39 = vmul.f32 %v14155_v17, %v14222_v30  ;;  %14245 = vst [vmem:[#allocation211_spill] sm:$0xff] %v11697_v51  ;;  %v11706_v14 = vpop.xlane.xlu0 %4851 }
 0x487   :  { %v4500_v49 = vmax.f32 %v4468_v61, 0.0  ;;  %v5755_v47 = vadd.f32 %v5723_v19, %v5673_v15  ;;  %v5805_v42 = vmul.f32 %v11045_v46, %v14210_v37  ;;  %v4959_v40 = vmul.f32 %v14156_v62, %v14222_v30 }
 0x488   :  { %5226 = vadd.xlane.f32.xlu0 %v5225_v33  ;;  %v4501_v24 = vmax.f32 %v4469_v5, 0.0  ;;  %v5836_v7 = vadd.f32 %v5804_v36, %v5754_v0  ;;  %v4990_v63 = vadd.f32 %v4958_v39, %v14224_v1  ;;  %v5040_v29 = vmul.f32 %v10830_v2, %v14225_v48  ;;  %v14246_v5 = vld [vmem:[#allocation355_spill] sm:$0xff] }
 0x489   :  { %v5837_v61 = vadd.f32 %v5805_v42, %v5755_v47  ;;  %v4991_v16 = vadd.f32 %v4959_v40, %v14224_v1  ;;  %v5041_v45 = vmul.f32 %v10833_v56, %v14225_v48  ;;  %v5122_v33 = vmul.f32 %v10845_v55, %v14227_v23  ;;  %v11722_v42 = vpop.xlane.xlu1 %4542 }
 0x48a   :  { %v4547_v60 = vadd.f32 %v4501_v24, %v4500_v49  ;;  %v5868_v25 = vmax.f32 %v5836_v7, 0.0  ;;  %v5072_v37 = vadd.f32 %v5040_v29, %v4990_v63  ;;  %v4956_v15 = vmul.f32 %v14155_v17, %v14246_v5  ;;  %14247 = vst [vmem:[#allocation137_spill] sm:$0xff] %v11722_v42 }
 0x48b   :  { %v5869_v19 = vmax.f32 %v5837_v61, 0.0  ;;  %v5073_v0 = vadd.f32 %v5041_v45, %v4991_v16  ;;  %v5123_v49 = vmul.f32 %v14157_v52, %v14227_v23  ;;  %v4957_v36 = vmul.f32 %v14156_v62, %v14246_v5 }
 0x48c   :  { %4548 = vadd.xlane.f32.xlu1 %v4547_v60  ;;  %v5154_v39 = vadd.f32 %v5122_v33, %v5072_v37  ;;  %v4988_v24 = vadd.f32 %v4956_v15, %v14214_v32  ;;  %v5038_v47 = vmul.f32 %v10830_v2, %v14215_v20  ;;  %v5039_v29 = vmul.f32 %v10833_v56, %v14215_v20  ;;  %v11731_v37 = vpop.xlane.xlu0 %5193 }
 0x48d   :  { %v5909_v40 = vadd.f32 %v5869_v19, %v5868_v25  ;;  %v5155_v7 = vadd.f32 %v5123_v49, %v5073_v0  ;;  %v4989_v63 = vadd.f32 %v4957_v36, %v14214_v32  ;;  %v5120_v16 = vmul.f32 %v10845_v55, %v14216_v10 }
 0x48e   :  { %v5186_v60 = vmax.f32 %v5154_v39, 0.0  ;;  %v5070_v61 = vadd.f32 %v5038_v47, %v4988_v24  ;;  %v5644_v45 = vmul.f32 %v11012_v9, %v14201_v27  ;;  %v5121_v25 = vmul.f32 %v14157_v52, %v14216_v10 }
 0x48f   :  { %5910 = vadd.xlane.f32.xlu0 %v5909_v40  ;;  %v5187_v33 = vmax.f32 %v5155_v7, 0.0  ;;  %v5071_v15 = vadd.f32 %v5039_v29, %v4989_v63  ;;  %v5645_v19 = vmul.f32 %v11017_v50, %v14201_v27  ;;  %v5726_v36 = vmul.f32 %v11022_v28, %v14203_v3 }
 0x490   :  { %v5152_v0 = vadd.f32 %v5120_v16, %v5070_v61  ;;  %v5676_v49 = vadd.f32 %v5644_v45, %v14202_v41  ;;  %v5727_v40 = vmul.f32 %v11025_v22, %v14203_v3  ;;  %v5808_v29 = vmul.f32 %v11039_v53, %v14205_v21  ;;  %v11747_v61 = vpop.xlane.xlu1 %4848 }
 0x491   :  { %v5231_v39 = vadd.f32 %v5187_v33, %v5186_v60  ;;  %v5153_v24 = vadd.f32 %v5121_v25, %v5071_v15  ;;  %v5677_v47 = vadd.f32 %v5645_v19, %v14202_v41  ;;  %v5642_v27 = vmul.f32 %v11012_v9, %v14219_v54  ;;  %v11756_v25 = vpop.xlane.xlu0 %4857 }
 0x492   :  { %v5184_v7 = vmax.f32 %v5152_v0, 0.0  ;;  %v5758_v63 = vadd.f32 %v5726_v36, %v5676_v49  ;;  %v5809_v60 = vmul.f32 %v11045_v46, %v14205_v21  ;;  %v5643_v41 = vmul.f32 %v11017_v50, %v14219_v54  ;;  %14248 = vst [vmem:[#allocation352_spill] sm:$0xff] %v11756_v25 }
 0x493   :  { %5232 = vadd.xlane.f32.xlu1 %v5231_v39  ;;  %v5185_v16 = vmax.f32 %v5153_v24, 0.0  ;;  %v5759_v45 = vadd.f32 %v5727_v40, %v5677_v47  ;;  %v5674_v33 = vadd.f32 %v5642_v27, %v14193_v18  ;;  %v5724_v15 = vmul.f32 %v11022_v28, %v14194_v13  ;;  %v14249_v24 = vld [vmem:[#allocation372_spill] sm:$0xff]  ;;  %v14251_v27 = vld [vmem:[#allocation350_spill] sm:$0xff] }
 0x494   :  { %v5840_v3 = vadd.f32 %v5808_v29, %v5758_v63  ;;  %v5675_v49 = vadd.f32 %v5643_v41, %v14193_v18  ;;  %v5725_v36 = vmul.f32 %v11025_v22, %v14194_v13  ;;  %v5806_v54 = vmul.f32 %v11039_v53, %v14196_v11  ;;  %v14250_v29 = vld [vmem:[#allocation273_spill] sm:$0xff]  ;;  %v14253_v41 = vld [vmem:[#allocation262_spill] sm:$0xff] }
 0x495   :  { %v5228_v19 = vadd.f32 %v5185_v16, %v5184_v7  ;;  %v5841_v0 = vadd.f32 %v5809_v60, %v5759_v45  ;;  %v5756_v21 = vadd.f32 %v5724_v15, %v5674_v33  ;;  %v4960_v47 = vmul.f32 %v14155_v17, %v14249_v24  ;;  %v14252_v45 = vld [vmem:[#allocation55_spill] sm:$0xff]  ;;  %v11776_v33 = vpop.xlane.xlu1 %4854 }
 0x496   :  { %v5872_v39 = vmax.f32 %v5840_v3, 0.0  ;;  %v5757_v63 = vadd.f32 %v5725_v36, %v5675_v49  ;;  %v5807_v7 = vmul.f32 %v11045_v46, %v14196_v11  ;;  %v4961_v18 = vmul.f32 %v14156_v62, %v14249_v24 }
 0x497   :  { %5229 = vadd.xlane.f32.xlu0 %v5228_v19  ;;  %v5873_v40 = vmax.f32 %v5841_v0, 0.0  ;;  %v11771_v13 = vadd.f32 %v14251_v27, %v14250_v29  ;;  %v5838_v16 = vadd.f32 %v5806_v54, %v5756_v21  ;;  %v4992_v60 = vadd.f32 %v4960_v47, %v14252_v45  ;;  %v11785_v54 = vpop.xlane.xlu0 %5538 }
 0x498   :  { %v5042_v3 = vmul.f32 %v10830_v2, %v14253_v41  ;;  %v5839_v19 = vadd.f32 %v5807_v7, %v5757_v63  ;;  %v4993_v0 = vadd.f32 %v4961_v18, %v14252_v45  ;;  %v5043_v11 = vmul.f32 %v10833_v56, %v14253_v41  ;;  %14255 = vst [vmem:[#allocation353_spill] sm:$0xff] %v11785_v54  ;;  %v14257_v7 = vld [vmem:[#allocation49_spill] sm:$0xff]  ;;  %v14258_v18 = vld [vmem:[#allocation79_spill] sm:$0xff] }
 0x499   :  { %v5915_v15 = vadd.f32 %v5873_v40, %v5872_v39  ;;  %v5870_v49 = vmax.f32 %v5838_v16, 0.0  ;;  %v5124_v29 = vmul.f32 %v10845_v55, %v14254_v12  ;;  %v4615_v21 = vmul.f32 %v10725_v26, %v14249_v24  ;;  %v14256_v40 = vld [vmem:[#allocation152_spill] sm:$0xff] }
 0x49a   :  { %v5074_v36 = vadd.f32 %v5042_v3, %v4992_v60  ;;  %v5871_v47 = vmax.f32 %v5839_v19, 0.0  ;;  %v5075_v27 = vadd.f32 %v5043_v11, %v4993_v0  ;;  %v5125_v39 = vmul.f32 %v14157_v52, %v14254_v12 }
 0x49b   :  { %5916 = vadd.xlane.f32.xlu1 %v5915_v15  ;;  %v4616_v63 = vmul.f32 %v14256_v40, %v14249_v24  ;;  %v11793_v16 = vadd.f32 %v14258_v18, %v14257_v7  ;;  %v4647_v3 = vadd.f32 %v4615_v21, %v14252_v45  ;;  %v4697_v42 = vmul.f32 %v10733_v31, %v14253_v41 }
 0x49c   :  { %v5156_v60 = vadd.f32 %v5124_v29, %v5074_v36  ;;  %v5912_v51 = vadd.f32 %v5871_v47, %v5870_v49  ;;  %v5157_v15 = vadd.f32 %v5125_v39, %v5075_v27  ;;  %v4698_v0 = vmul.f32 %v10736_v35, %v14253_v41  ;;  %v11805_v29 = vpop.xlane.xlu1 %5196  ;;  %v14260_v27 = vld [vmem:[#allocation259_spill] sm:$0xff]  ;;  %v14261_v39 = vld [vmem:[#allocation80_spill] sm:$0xff] }
 0x49d   :  { %v4648_v19 = vadd.f32 %v4616_v63, %v14252_v45  ;;  %v4729_v58 = vadd.f32 %v4697_v42, %v4647_v3  ;;  %v4779_v54 = vmul.f32 %v10749_v34, %v14254_v12  ;;  %v5646_v36 = vmul.f32 %v11012_v9, %v14246_v5  ;;  %14259 = vst [vmem:[#allocation288_spill] sm:$0xff] %v11805_v29  ;;  %v11818_v3 = vpop.xlane.xlu0 %4860 }
 0x49e   :  { %v5188_v11 = vmax.f32 %v5156_v60, 0.0  ;;  %5913 = vadd.xlane.f32.xlu0 %v5912_v51  ;;  %v5189_v21 = vmax.f32 %v5157_v15, 0.0  ;;  %v4780_v49 = vmul.f32 %v10756_v59, %v14254_v12  ;;  %v5647_v47 = vmul.f32 %v11017_v50, %v14246_v5  ;;  %14263 = vst [vmem:[#allocation242_spill] sm:$0xff] %v11818_v3 }
 0x49f   :  { %v4730_v7 = vadd.f32 %v4698_v0, %v4648_v19  ;;  %v11813_v42 = vadd.f32 %v14261_v39, %v14260_v27  ;;  %v4811_v63 = vadd.f32 %v4779_v54, %v4729_v58  ;;  %v5678_v18 = vadd.f32 %v5646_v36, %v14214_v32 }
 0x4a0   :  { %v5728_v60 = vmul.f32 %v11022_v28, %v14215_v20  ;;  %v5234_v51 = vadd.f32 %v5189_v21, %v5188_v11  ;;  %v5679_v19 = vadd.f32 %v5647_v47, %v14214_v32  ;;  %v5729_v0 = vmul.f32 %v11025_v22, %v14215_v20 }
 0x4a1   :  { %14262 = vst [vmem:[#allocation289_spill] sm:$0xff] %v11813_v42  ;;  %v4812_v15 = vadd.f32 %v4780_v49, %v4730_v7  ;;  %v4843_v29 = vmax.f32 %v4811_v63, 0.0  ;;  %v5810_v27 = vmul.f32 %v11039_v53, %v14216_v10  ;;  %v5301_v58 = vmul.f32 %v10918_v4, %v14246_v5  ;;  %v14264_v7 = vld [vmem:[#allocation241_spill] sm:$0xff] }
 0x4a2   :  { %v5760_v25 = vadd.f32 %v5728_v60, %v5678_v18  ;;  %5235 = vadd.xlane.f32.xlu1 %v5234_v51  ;;  %v5761_v36 = vadd.f32 %v5729_v0, %v5679_v19  ;;  %v5811_v11 = vmul.f32 %v11045_v46, %v14216_v10  ;;  %v5302_v21 = vmul.f32 %v10921_v43, %v14246_v5  ;;  %v14265_v49 = vld [vmem:[#allocation285_spill] sm:$0xff]  ;;  %v11838_v60 = vpop.xlane.xlu1 %5199 }
 0x4a3   :  { %v4844_v54 = vmax.f32 %v4812_v15, 0.0  ;;  %v11833_v47 = vadd.f32 %v14265_v49, %v14264_v7  ;;  %v5333_v63 = vadd.f32 %v5301_v58, %v14214_v32  ;;  %v5383_v18 = vmul.f32 %v10925_v38, %v14215_v20  ;;  %14266 = vst [vmem:[#allocation243_spill] sm:$0xff] %v11838_v60  ;;  %v14267_v0 = vld [vmem:[#allocation45_spill] sm:$0xff] }
 0x4a4   :  { %v5842_v39 = vadd.f32 %v5810_v27, %v5760_v25  ;;  %v5843_v15 = vadd.f32 %v5811_v11, %v5761_v36  ;;  %v5334_v19 = vadd.f32 %v5302_v21, %v14214_v32  ;;  %v5384_v3 = vmul.f32 %v14267_v0, %v14215_v20  ;;  %v14268_v7 = vld [vmem:[#allocation317_spill] sm:$0xff]  ;;  %v11847_v27 = vpop.xlane.xlu0 %5544  ;;  %v14271_v20 = vld [vmem:[#allocation316_spill] sm:$0xff] }
 0x4a5   :  { %v4889_v51 = vadd.f32 %v4844_v54, %v4843_v29  ;;  %v5415_v42 = vadd.f32 %v5383_v18, %v5333_v63  ;;  %v5465_v49 = vmul.f32 %v14268_v7, %v14216_v10  ;;  %v5305_v25 = vmul.f32 %v10918_v4, %v14249_v24  ;;  %14269 = vst [vmem:[#allocation158_spill] sm:$0xff] %v11847_v27  ;;  %v14270_v29 = vld [vmem:[#allocation46_spill] sm:$0xff]  ;;  %v14272_v36 = vld [vmem:[#allocation65_spill] sm:$0xff] }
 0x4a6   :  { %v5874_v5 = vmax.f32 %v5842_v39, 0.0  ;;  %v5875_v58 = vmax.f32 %v5843_v15, 0.0  ;;  %v5416_v60 = vadd.f32 %v5384_v3, %v5334_v19  ;;  %v5466_v54 = vmul.f32 %v14270_v29, %v14216_v10 }
 0x4a7   :  { %4890 = vadd.xlane.f32.xlu0 %v4889_v51  ;;  %v5306_v32 = vmul.f32 %v10921_v43, %v14249_v24  ;;  %v11855_v11 = vadd.f32 %v14272_v36, %v14271_v20  ;;  %v5497_v21 = vadd.f32 %v5465_v49, %v5415_v42  ;;  %v5337_v39 = vadd.f32 %v5305_v25, %v14252_v45  ;;  %v11867_v49 = vpop.xlane.xlu1 %5541 }
 0x4a8   :  { %v5387_v63 = vmul.f32 %v10925_v38, %v14253_v41  ;;  %v5918_v18 = vadd.f32 %v5875_v58, %v5874_v5  ;;  %v5498_v51 = vadd.f32 %v5466_v54, %v5416_v60  ;;  %v5388_v10 = vmul.f32 %v14267_v0, %v14253_v41  ;;  %v14273_v58 = vld [vmem:[#allocation272_spill] sm:$0xff]  ;;  %v14274_v54 = vld [vmem:[#allocation66_spill] sm:$0xff] }
 0x4a9   :  { %v5338_v3 = vadd.f32 %v5306_v32, %v14252_v45  ;;  %v5529_v15 = vmax.f32 %v5497_v21, 0.0  ;;  %v5469_v27 = vmul.f32 %v14268_v7, %v14254_v12  ;;  %v4617_v42 = vmul.f32 %v10725_v26, %v14232_v8 }
 0x4aa   :  { %v5419_v19 = vadd.f32 %v5387_v63, %v5337_v39  ;;  %5919 = vadd.xlane.f32.xlu1 %v5918_v18  ;;  %v5530_v25 = vmax.f32 %v5498_v51, 0.0  ;;  %v5470_v60 = vmul.f32 %v14270_v29, %v14254_v12  ;;  %v4618_v5 = vmul.f32 %v14256_v40, %v14232_v8  ;;  %v11880_v39 = vpop.xlane.xlu0 %5886 }
 0x4ab   :  { %v5420_v20 = vadd.f32 %v5388_v10, %v5338_v3  ;;  %v11875_v32 = vadd.f32 %v14274_v54, %v14273_v58  ;;  %v4649_v21 = vadd.f32 %v4617_v42, %v14235_v44  ;;  %v4699_v26 = vmul.f32 %v10733_v31, %v14236_v57 }
 0x4ac   :  { %v5501_v36 = vadd.f32 %v5469_v27, %v5419_v19  ;;  %v5573_v63 = vadd.f32 %v5530_v25, %v5529_v15  ;;  %v4650_v51 = vadd.f32 %v4618_v5, %v14235_v44  ;;  %v4700_v3 = vmul.f32 %v10736_v35, %v14236_v57  ;;  %v14275_v25 = vld [vmem:[#allocation188_spill] sm:$0xff]  ;;  %v11900_v5 = vpop.xlane.xlu1 %5202 }
 0x4ad   :  { %v5502_v18 = vadd.f32 %v5470_v60, %v5420_v20  ;;  %v4731_v10 = vadd.f32 %v4699_v26, %v4649_v21  ;;  %v4781_v58 = vmul.f32 %v10749_v34, %v14240_v6  ;;  %v5307_v27 = vmul.f32 %v10918_v4, %v14232_v8 }
 0x4ae   :  { %v5533_v40 = vmax.f32 %v5501_v36, 0.0  ;;  %5574 = vadd.xlane.f32.xlu0 %v5573_v63  ;;  %v4732_v31 = vadd.f32 %v4700_v3, %v4650_v51  ;;  %v4782_v15 = vmul.f32 %v10756_v59, %v14240_v6  ;;  %v5308_v42 = vmul.f32 %v10921_v43, %v14232_v8  ;;  %v11909_v51 = vpop.xlane.xlu0 %5205 }
 0x4af   :  { %v5534_v19 = vmax.f32 %v5502_v18, 0.0  ;;  %v11895_v35 = vadd.f32 %v14275_v25, %v11771_v13  ;;  %v4813_v20 = vadd.f32 %v4781_v58, %v4731_v10  ;;  %v5339_v60 = vadd.f32 %v5307_v27, %v14235_v44  ;;  %v14276_v27 = vld [vmem:[#allocation98_spill] sm:$0xff] }
 0x4b0   :  { %v5389_v34 = vmul.f32 %v10925_v38, %v14236_v57  ;;  %v4814_v36 = vadd.f32 %v4782_v15, %v4732_v31  ;;  %v5340_v21 = vadd.f32 %v5308_v42, %v14235_v44  ;;  %v5390_v59 = vmul.f32 %v14267_v0, %v14236_v57 }
 0x4b1   :  { %v5579_v54 = vadd.f32 %v5534_v19, %v5533_v40  ;;  %v4845_v26 = vmax.f32 %v4813_v20, 0.0  ;;  %v5471_v13 = vmul.f32 %v14268_v7, %v14240_v6  ;;  %v5303_v18 = vmul.f32 %v10918_v4, %v14222_v30 }
 0x4b2   :  { %v5421_v63 = vadd.f32 %v5389_v34, %v5339_v60  ;;  %v4846_v3 = vmax.f32 %v4814_v36, 0.0  ;;  %v5422_v10 = vadd.f32 %v5390_v59, %v5340_v21  ;;  %v5472_v40 = vmul.f32 %v14270_v29, %v14240_v6  ;;  %v11929_v36 = vpop.xlane.xlu1 %5883 }
 0x4b3   :  { %5580 = vadd.xlane.f32.xlu1 %v5579_v54  ;;  %v5304_v58 = vmul.f32 %v10921_v43, %v14222_v30  ;;  %v11917_v19 = vadd.f32 %v14276_v27, %v11793_v16  ;;  %v5335_v15 = vadd.f32 %v5303_v18, %v14224_v1  ;;  %v5385_v4 = vmul.f32 %v10925_v38, %v14225_v48 }
 0x4b4   :  { %v5503_v31 = vadd.f32 %v5471_v13, %v5421_v63  ;;  %v4892_v42 = vadd.f32 %v4846_v3, %v4845_v26  ;;  %v5504_v25 = vadd.f32 %v5472_v40, %v5422_v10  ;;  %v5386_v60 = vmul.f32 %v14267_v0, %v14225_v48  ;;  %v14277_v0 = vld [vmem:[#allocation303_spill] sm:$0xff]  ;;  %v11940_v3 = vpop.xlane.xlu0 %5889 }
 0x4b5   :  { %v5336_v20 = vadd.f32 %v5304_v58, %v14224_v1  ;;  %v5417_v54 = vadd.f32 %v5385_v4, %v5335_v15  ;;  %v5467_v43 = vmul.f32 %v14268_v7, %v14227_v23  ;;  %v5652_v16 = vmul.f32 %v11012_v9, %v14232_v8 }
 0x4b6   :  { %v5535_v34 = vmax.f32 %v5503_v31, 0.0  ;;  %4893 = vadd.xlane.f32.xlu0 %v4892_v42  ;;  %v5536_v21 = vmax.f32 %v5504_v25, 0.0  ;;  %v5468_v59 = vmul.f32 %v14270_v29, %v14227_v23  ;;  %v5653_v26 = vmul.f32 %v11017_v50, %v14232_v8 }
 0x4b7   :  { %v5418_v38 = vadd.f32 %v5386_v60, %v5336_v20  ;;  %v4205_v63 = vadd.f32 %v14277_v0, %v11833_v47  ;;  %v5499_v13 = vadd.f32 %v5467_v43, %v5417_v54  ;;  %v5684_v7 = vadd.f32 %v5652_v16, %v14235_v44  ;;  %v14278_v60 = vld [vmem:[#allocation367_spill] sm:$0xff] }
 0x4b8   :  { %v5734_v18 = vmul.f32 %v11022_v28, %v14236_v57  ;;  %v5582_v10 = vadd.f32 %v5536_v21, %v5535_v34  ;;  %v5685_v58 = vadd.f32 %v5653_v26, %v14235_v44  ;;  %v5735_v29 = vmul.f32 %v11025_v22, %v14236_v57  ;;  %v11958_v21 = vpop.xlane.xlu1 %4863 }
 0x4b9   :  { %v5500_v40 = vadd.f32 %v5468_v59, %v5418_v38  ;;  %v5531_v27 = vmax.f32 %v5499_v13, 0.0  ;;  %v5816_v47 = vmul.f32 %v11039_v53, %v14240_v6  ;;  %v4962_v15 = vmul.f32 %v14155_v17, %v14232_v8 }
 0x4ba   :  { %v5766_v31 = vadd.f32 %v5734_v18, %v5684_v7  ;;  %5583 = vadd.xlane.f32.xlu1 %v5582_v10  ;;  %v5767_v42 = vadd.f32 %v5735_v29, %v5685_v58  ;;  %v5817_v25 = vmul.f32 %v11045_v46, %v14240_v6  ;;  %v4963_v20 = vmul.f32 %v14156_v62, %v14232_v8 }
 0x4bb   :  { %v5532_v4 = vmax.f32 %v5500_v40, 0.0  ;;  %v4207_v34 = vadd.f32 %v14278_v60, %v11855_v11  ;;  %v4994_v43 = vadd.f32 %v4962_v15, %v14235_v44  ;;  %v5044_v16 = vmul.f32 %v10830_v2, %v14236_v57  ;;  %v11967_v13 = vpop.xlane.xlu0 %5208  ;;  %v14282_v60 = vld [vmem:[#allocation207_spill] sm:$0xff] }
 0x4bc   :  { %v5848_v54 = vadd.f32 %v5816_v47, %v5766_v31  ;;  %v5849_v38 = vadd.f32 %v5817_v25, %v5767_v42  ;;  %v4995_v59 = vadd.f32 %v4963_v20, %v14235_v44  ;;  %v5045_v26 = vmul.f32 %v10833_v56, %v14236_v57  ;;  %v14279_v56 = vld [vmem:[#allocation368_spill] sm:$0xff]  ;;  %v5548_v15 = vpop.xlane.xlu1 %5547 }
 0x4bd   :  { %v5576_v17 = vadd.f32 %v5532_v4, %v5531_v27  ;;  %v5076_v62 = vadd.f32 %v5044_v16, %v4994_v43  ;;  %v5126_v8 = vmul.f32 %v10845_v55, %v14240_v6  ;;  %v5127_v11 = vmul.f32 %v14157_v52, %v14240_v6  ;;  %v14280_v27 = vld [vmem:[#allocation193_spill] sm:$0xff] }
 0x4be   :  { %v5880_v0 = vmax.f32 %v5848_v54, 0.0  ;;  %v5881_v2 = vmax.f32 %v5849_v38, 0.0  ;;  %v5077_v7 = vadd.f32 %v5045_v26, %v4995_v59  ;;  %v5648_v18 = vmul.f32 %v11012_v9, %v14222_v30  ;;  %v14283_v26 = vld [vmem:[#allocation116_spill] sm:$0xff] }
 0x4bf   :  { %5577 = vadd.xlane.f32.xlu0 %v5576_v17  ;;  %v5649_v44 = vmul.f32 %v11017_v50, %v14222_v30  ;;  %v4209_v57 = vadd.f32 %v14279_v56, %v11875_v32  ;;  %v5158_v10 = vadd.f32 %v5126_v8, %v5076_v62  ;;  %v5730_v55 = vmul.f32 %v11022_v28, %v14225_v48  ;;  %v14284_v8 = vld [vmem:[#allocation192_spill] sm:$0xff]  ;;  %v14286_v56 = vld [vmem:[#allocation175_spill] sm:$0xff] }
 0x4c0   :  { %v5731_v6 = vmul.f32 %v11025_v22, %v14225_v48  ;;  %v5927_v52 = vadd.f32 %v5881_v2, %v5880_v0  ;;  %v5159_v40 = vadd.f32 %v5127_v11, %v5077_v7  ;;  %v5680_v58 = vadd.f32 %v5648_v18, %v14224_v1  ;;  %v12008_v7 = vpop.xlane.xlu1 %4866 }
 0x4c1   :  { %v5681_v29 = vadd.f32 %v5649_v44, %v14224_v1  ;;  %v4551_v31 = vadd.f32 %v14280_v27, %v11895_v35  ;;  %v5190_v30 = vmax.f32 %v5158_v10, 0.0  ;;  %v5812_v32 = vmul.f32 %v11039_v53, %v14227_v23  ;;  %v14281_v1 = vld [vmem:[#allocation120_spill] sm:$0xff]  ;;  %v14285_v44 = vld [vmem:[#allocation289_spill] sm:$0xff]  ;;  %v14291_v27 = vld [vmem:[#allocation242_spill] sm:$0xff] }
 0x4c2   :  { %v5813_v47 = vmul.f32 %v11045_v46, %v14227_v23  ;;  %5928 = vadd.xlane.f32.xlu1 %v5927_v52  ;;  %v5191_v4 = vmax.f32 %v5159_v40, 0.0  ;;  %v5762_v48 = vadd.f32 %v5730_v55, %v5680_v58  ;;  %v5650_v25 = vmul.f32 %v11012_v9, %v14249_v24  ;;  %v14287_v55 = vld [vmem:[#allocation243_spill] sm:$0xff]  ;;  %v14290_v58 = vld [vmem:[#allocation353_spill] sm:$0xff] }
 0x4c3   :  { %v5763_v42 = vadd.f32 %v5731_v6, %v5681_v29  ;;  %v4553_v20 = vadd.f32 %v14281_v1, %v11917_v19  ;;  %v4550_v35 = vadd.f32 %v14282_v60, %v4205_v63  ;;  %v5651_v54 = vmul.f32 %v11017_v50, %v14249_v24  ;;  %v5893_v23 = vpop.xlane.xlu0 %5892  ;;  %v14288_v6 = vld [vmem:[#allocation352_spill] sm:$0xff] }
 0x4c4   :  { %v5732_v43 = vmul.f32 %v11022_v28, %v14253_v41  ;;  %v5237_v16 = vadd.f32 %v5191_v4, %v5190_v30  ;;  %v5844_v17 = vadd.f32 %v5812_v32, %v5762_v48  ;;  %v5682_v59 = vadd.f32 %v5650_v25, %v14252_v45  ;;  %v14293_v4 = vld [vmem:[#allocation158_spill] sm:$0xff]  ;;  %v5551_v60 = vpop.xlane.xlu1 %5550 }
 0x4c5   :  { %v5845_v38 = vadd.f32 %v5813_v47, %v5763_v42  ;;  %v4552_v0 = vadd.f32 %v14283_v26, %v4207_v34  ;;  %v5683_v9 = vadd.f32 %v5651_v54, %v14252_v45  ;;  %v5733_v19 = vmul.f32 %v11025_v22, %v14253_v41 }
 0x4c6   :  { %v5814_v63 = vmul.f32 %v11039_v53, %v14254_v12  ;;  %5238 = vadd.xlane.f32.xlu0 %v5237_v16  ;;  %v5876_v50 = vmax.f32 %v5844_v17, 0.0  ;;  %v5764_v28 = vadd.f32 %v5732_v43, %v5682_v59  ;;  %v4895_v62 = vadd.f32 %v11747_v61, %v4550_v35 }
 0x4c7   :  { %v5877_v24 = vmax.f32 %v5845_v38, 0.0  ;;  %v4554_v11 = vadd.f32 %v14284_v8, %v4209_v57  ;;  %v5765_v2 = vadd.f32 %v5733_v19, %v5683_v9  ;;  %v5815_v34 = vmul.f32 %v11045_v46, %v14254_v12  ;;  %v14289_v12 = vld [vmem:[#allocation288_spill] sm:$0xff] }
 0x4c8   :  { %v4897_v45 = vadd.f32 %v11776_v33, %v4552_v0  ;;  %v5846_v41 = vadd.f32 %v5814_v63, %v5764_v28  ;;  %v4896_v53 = vadd.f32 %v11706_v14, %v4551_v31  ;;  %v5240_v18 = vadd.f32 %v11731_v37, %v4895_v62  ;;  %v14292_v31 = vld [vmem:[#allocation224_spill] sm:$0xff]  ;;  %v12049_v59 = vpop.xlane.xlu1 %4869 }
 0x4c9   :  { %v5921_v22 = vadd.f32 %v5877_v24, %v5876_v50  ;;  %v4210_v10 = vadd.f32 %v14286_v56, %v14285_v44  ;;  %v5847_v61 = vadd.f32 %v5815_v34, %v5765_v2  ;;  %v4898_v52 = vadd.f32 %v14288_v6, %v4553_v20  ;;  %v12057_v50 = vld [vmem:[%s12442_s3 + $0x18] sm:$0xff]  ;;  %v12066_v34 = vld [vmem:[%s12442_s3 + $0x20] sm:$0xff] }
 0x4ca   :  { %v5242_v57 = vadd.f32 %v14287_v55, %v4897_v45  ;;  %v12016_v40 = vpop.xlane.xlu0 %5211  ;;  %v5878_v46 = vmax.f32 %v5846_v41, 0.0  ;;  %v5241_v33 = vadd.f32 %v14289_v12, %v4896_v53  ;;  %v5585_v29 = vadd.f32 %v14290_v58, %v5240_v18  ;;  %v14295_v55 = vld [vmem:[#allocation26_spill] sm:$0xff]  ;;  %v14297_v58 = vld [vmem:[#allocation119_spill] sm:$0xff] }
 0x4cb   :  { %5922 = vadd.xlane.f32.xlu0 %v5921_v22  ;;  %v4899_v14 = vadd.f32 %v14291_v27, %v4554_v11  ;;  %v4555_v37 = vadd.f32 %v14292_v31, %v4210_v10  ;;  %v5879_v30 = vmax.f32 %v5847_v61, 0.0  ;;  %v5243_v20 = vadd.f32 %v11900_v5, %v4898_v52  ;;  %v14294_v61 = vld [vmem:[#allocation258_spill] sm:$0xff] }
 0x4cc   :  { %v5586_v32 = vadd.f32 %v11867_v49, %v5241_v33  ;;  %v5930_v47 = vadd.f32 %v11929_v36, %v5585_v29  ;;  %v5587_v48 = vadd.f32 %v14293_v4, %v5242_v57  ;;  %v12033_v49 = vld [vmem:[%s12442_s3] sm:$0xff]  ;;  %v5554_v45 = vpop.xlane.xlu1 %5553  ;;  %v3866_v57 = vadd.f32 %v14295_v55, %v14294_v61  ;;  %v12075_v52 = vld [vmem:[%s12442_s3 + $0x28] sm:$0xff] }
 0x4cd   :  { %v5244_v42 = vadd.f32 %v11909_v51, %v4899_v14  ;;  %v5924_v25 = vadd.f32 %v5879_v30, %v5878_v46  ;;  %v4900_v1 = vadd.f32 %v11958_v21, %v4555_v37  ;;  %v5588_v36 = vadd.f32 %v5548_v15, %v5243_v20  ;;  %v14296_v46 = vld [vmem:[#allocation189_spill] sm:$0xff]  ;;  %v14313_v55 = vld [vmem:[#allocation58_spill] sm:$0xff] }
 0x4ce   :  { %v5946_v35 = vmul.f32 0.00048828125, %v5930_v47  ;;  %v5931_v54 = vadd.f32 %v11880_v39, %v5586_v32  ;;  %v5932_v43 = vadd.f32 %v11940_v3, %v5587_v48  ;;  %v12040_v39 = vld [vmem:[%s12442_s3 + $0x8] sm:$0xff]  ;;  %v12045_v3 = vld [vmem:[%s12442_s3 + $0x10] sm:$0xff]  ;;  %v4211_v12 = vadd.f32 %v14296_v46, %v3866_v57 }
 0x4cf   :  { %5925 = vadd.xlane.f32.xlu0 %v5924_v25  ;;  %v5245_v51 = vadd.f32 %v11967_v13, %v4900_v1  ;;  %v5933_v38 = vadd.f32 %v5893_v23, %v5588_v36  ;;  %v5589_v0 = vadd.f32 %v5551_v60, %v5244_v42  ;;  %v12090_v1 = vld [vmem:[%s12442_s3 + $0x30] sm:$0xff]  ;;  %v14298_v36 = vld [vmem:[#allocation56_spill] sm:$0xff] }
 0x4d0   :  { %v5962_v21 = vmul.f32 %v5946_v35, %v12033_v49  ;;  %v5947_v17 = vmul.f32 0.00048828125, %v5931_v54  ;;  %v5948_v5 = vmul.f32 0.00048828125, %v5932_v43  ;;  %v4556_v29 = vadd.f32 %v14297_v58, %v4211_v12  ;;  %v12081_v14 = vpop.xlane.xlu1 %4872  ;;  %v14315_v12 = vld [vmem:[#allocation167_spill] sm:$0xff] }
 0x4d1   :  { %v5896_v16 = vpop.xlane.xlu0 %5895  ;;  %v5949_v26 = vmul.f32 0.00048828125, %v5933_v38  ;;  %v5590_v53 = vadd.f32 %v5554_v45, %v5245_v51  ;;  %v14299_v51 = vld [vmem:[#allocation91_spill] sm:$0xff] }
 0x4d2   :  { %v5963_v15 = vmul.f32 %v5947_v17, %v12040_v39  ;;  %v5964_v13 = vmul.f32 %v5948_v5, %v12045_v3  ;;  %v5978_v9 = vsel %vm3148_vm0, %v5962_v21, 0.0  ;;  %v5934_v28 = vadd.f32 %v5896_v16, %v5589_v0  ;;  %v14300_v17 = vld [vmem:[#allocation161_spill] sm:$0xff]  ;;  %v14301_v5 = vld [vmem:[#allocation88_spill] sm:$0xff]  ;;  %v14304_v0 = vld [vmem:[#allocation110_spill] sm:$0xff] }
 0x4d3   :  { %v5965_v24 = vmul.f32 %v5949_v26, %v12057_v50  ;;  %v4901_v37 = vadd.f32 %v12008_v7, %v4556_v29  ;;  %v1014_v16 = vadd.f32 %v14299_v51, %v14298_v36  ;;  %v1015_v38 = vadd.f32 %v14301_v5, %v14300_v17  ;;  %v14316_v29 = vld [vmem:[#allocation70_spill] sm:$0xff]  ;;  %v14323_v51 = vld [vmem:[#allocation312_spill] sm:$0xff] }
 0x4d4   :  { %v5979_v19 = vsel %vm3148_vm0, %v5963_v15, 0.0  ;;  %v5981_v63 = vsel %vm3148_vm0, %v5964_v13, 0.0  ;;  %v5950_v2 = vmul.f32 0.00048828125, %v5934_v28  ;;  %v5557_v47 = vpop.xlane.xlu1 %5556  ;;  %v14302_v15 = vld [vmem:[#allocation292_spill] sm:$0xff]  ;;  %v14303_v13 = vld [vmem:[#allocation310_spill] sm:$0xff] }
 0x4d5   :  { %v5980_v23 = vadd.f32 %v5979_v19, %v5978_v9  ;;  %v5983_v11 = vsel %vm3148_vm0, %v5965_v24, 0.0  ;;  %v5246_v32 = vadd.f32 %v12016_v40, %v4901_v37  ;;  %v1016_v26 = vadd.f32 %v14303_v13, %v14302_v15  ;;  %v14306_v24 = vld [vmem:[#allocation329_spill] sm:$0xff]  ;;  %v14318_v37 = vld [vmem:[#allocation200_spill] sm:$0xff]  ;;  %v14324_v17 = vld [vmem:[#allocation114_spill] sm:$0xff] }
 0x4d6   :  { %v5966_v41 = vmul.f32 %v5950_v2, %v12066_v34  ;;  %v1359_v9 = vadd.f32 %v14304_v0, %v1014_v16  ;;  %v14308_v2 = vld [vmem:[#allocation362_spill] sm:$0xff]  ;;  %v14326_v13 = vld [vmem:[#allocation348_spill] sm:$0xff] }
 0x4d7   :  { %v5982_v8 = vadd.f32 %v5981_v63, %v5980_v23  ;;  %v5591_v4 = vadd.f32 %v5557_v47, %v5246_v32  ;;  %v14305_v63 = vld [vmem:[#allocation215_spill] sm:$0xff]  ;;  %v1361_v28 = vadd.f32 %v14306_v24, %v1016_v26  ;;  %v14319_v47 = vld [vmem:[#allocation297_spill] sm:$0xff] }
 0x4d8   :  { %v5985_v18 = vsel %vm3148_vm0, %v5966_v41, 0.0  ;;  %v12093_v60 = vpop.xlane.xlu1 %4875  ;;  %v1360_v23 = vadd.f32 %v14305_v63, %v1015_v38  ;;  %v14325_v38 = vld [vmem:[#allocation315_spill] sm:$0xff] }
 0x4d9   :  { %v12060_v62 = vpop.xlane.xlu0 %5214  ;;  %v5984_v22 = vadd.f32 %v5983_v11, %v5982_v8  ;;  %v14307_v8 = vld [vmem:[#allocation218_spill] sm:$0xff] }
 0x4da   :  { %v1704_v11 = vadd.f32 %v14307_v8, %v1359_v9  ;;  %v1705_v45 = vadd.f32 %v14308_v2, %v1360_v23  ;;  %v14327_v9 = vld [vmem:[#allocation219_spill] sm:$0xff] }
 0x4db   :  { %v5986_v56 = vadd.f32 %v5985_v18, %v5984_v22  ;;  %v14309_v22 = vld [vmem:[#allocation151_spill] sm:$0xff] }
 0x4dc   :  { %v12098_v54 = vpop.xlane.xlu1 %5559  ;;  %v1706_v41 = vadd.f32 %v14309_v22, %v1361_v28  ;;  %v2050_v57 = vadd.f32 %v14313_v55, %v1705_v45  ;;  %v14328_v23 = vld [vmem:[#allocation331_spill] sm:$0xff]  ;;  %v14331_v22 = vld [vmem:[#allocation160_spill] sm:$0xff] }
 0x4dd   :  { %v14329_v28 = vld [vmem:[#allocation283_spill] sm:$0xff] }
 0x4e0   :  { %v5899_v44 = vpop.xlane.xlu0 %5898  ;;  %v12100_v40 = vpop.xlane.xlu1 %4878 }
 0x4e1   :  { %v5935_v10 = vadd.f32 %v5899_v44, %v5590_v53  ;;  %v14310_v53 = vld [vmem:[#allocation254_spill] sm:$0xff] }
 0x4e2   :  { %v2049_v18 = vadd.f32 %v14310_v53, %v1704_v11  ;;  %v14330_v11 = vld [vmem:[#allocation282_spill] sm:$0xff] }
 0x4e3   :  { %v5951_v6 = vmul.f32 0.00048828125, %v5935_v10  ;;  %v14312_v10 = vld [vmem:[#allocation164_spill] sm:$0xff] }
 0x4e4   :  { %v12102_v43 = vpop.xlane.xlu1 %5562 }
 0x4e5   :  { %v5967_v33 = vmul.f32 %v5951_v6, %v12075_v52  ;;  %v14314_v6 = vld [vmem:[#allocation43_spill] sm:$0xff] }
 0x4e6   :  { %v2051_v46 = vadd.f32 %v14314_v6, %v1706_v41  ;;  %v14332_v41 = vld [vmem:[#allocation92_spill] sm:$0xff]  ;;  %v14336_v6 = vld [vmem:[#allocation311_spill] sm:$0xff] }
 0x4e7   :  { %v5987_v27 = vsel %vm3148_vm0, %v5967_v33, 0.0  ;;  %v2394_v33 = vadd.f32 %v14315_v12, %v2049_v18  ;;  %v1019_v53 = vadd.f32 %v14332_v41, %v14331_v22  ;;  %v14333_v18 = vld [vmem:[#allocation57_spill] sm:$0xff]  ;;  %v14337_v12 = vld [vmem:[#allocation344_spill] sm:$0xff] }
 0x4e8   :  { %v5988_v31 = vadd.f32 %v5987_v27, %v5986_v56  ;;  %v12084_v30 = vpop.xlane.xlu0 %5217  ;;  %v14311_v56 = vld [vmem:[#allocation18_spill] sm:$0xff]  ;;  %v14317_v27 = vld [vmem:[#allocation165_spill] sm:$0xff]  ;;  %v14350_v41 = vld [vmem:[#allocation184_spill] sm:$0xff] }
 0x4e9   :  { %v1017_v61 = vadd.f32 %v14312_v10, %v14311_v56  ;;  %v14334_v10 = vld [vmem:[#allocation363_spill] sm:$0xff] }
 0x4eb   :  { %v1362_v32 = vadd.f32 %v14318_v37, %v1017_v61 }
 0x4ec   :  { %v12106_v21 = vpop.xlane.xlu1 %4881 }
 0x4ed   :  { %v1707_v16 = vadd.f32 %v14323_v51, %v1362_v32  ;;  %v14343_v51 = vld [vmem:[#allocation222_spill] sm:$0xff] }
 0x4ef   :  { %v5902_v48 = vpop.xlane.xlu0 %5901  ;;  %v2052_v24 = vadd.f32 %v14328_v23, %v1707_v16 }
 0x4f0   :  { %v5936_v42 = vadd.f32 %v5902_v48, %v5591_v4  ;;  %v2395_v4 = vadd.f32 %v14319_v47, %v2050_v57  ;;  %v14320_v48 = vld [vmem:[#allocation77_spill] sm:$0xff] }
 0x4f1   :  { %v2397_v61 = vadd.f32 %v14334_v10, %v2052_v24  ;;  %v14335_v57 = vld [vmem:[#allocation73_spill] sm:$0xff] }
 0x4f2   :  { %v5952_v25 = vmul.f32 0.00048828125, %v5936_v42  ;;  %v2396_v42 = vadd.f32 %v14320_v48, %v2051_v46  ;;  %v2740_v5 = vadd.f32 %v14324_v17, %v2395_v4  ;;  %v1020_v46 = vadd.f32 %v14336_v6, %v14335_v57  ;;  %v14340_v4 = vld [vmem:[#allocation124_spill] sm:$0xff]  ;;  %v14352_v10 = vld [vmem:[#allocation105_spill] sm:$0xff]  ;;  %v14354_v6 = vld [vmem:[#allocation78_spill] sm:$0xff] }
 0x4f3   :  { %v12121_v44 = vpop.xlane.xlu1 %5565 }
 0x4f4   :  { %v5968_v20 = vmul.f32 %v5952_v25, %v12090_v1  ;;  %v14321_v25 = vld [vmem:[#allocation314_spill] sm:$0xff]  ;;  %v2741_v15 = vadd.f32 %v14325_v38, %v2396_v42  ;;  %v3085_v8 = vadd.f32 %v14329_v28, %v2740_v5  ;;  %v1365_v48 = vadd.f32 %v14340_v4, %v1020_v46  ;;  %v14347_v28 = vld [vmem:[#allocation69_spill] sm:$0xff] }
 0x4f5   :  { %v14344_v38 = vld [vmem:[#allocation250_spill] sm:$0xff]  ;;  %v14357_v4 = vld [vmem:[#allocation237_spill] sm:$0xff] }
 0x4f6   :  { %v5989_v7 = vsel %vm3148_vm0, %v5968_v20, 0.0  ;;  %v2739_v20 = vadd.f32 %v14321_v25, %v2394_v33  ;;  %v3086_v2 = vadd.f32 %v14330_v11, %v2741_v15  ;;  %v1364_v33 = vadd.f32 %v14337_v12, %v1019_v53  ;;  %v14341_v25 = vld [vmem:[#allocation313_spill] sm:$0xff] }
 0x4f7   :  { %v12096_v35 = vadd.f32 %v5989_v7, %v5988_v31  ;;  %v12113_v19 = vpop.xlane.xlu0 %5220  ;;  %v1018_v31 = vadd.f32 %v14317_v27, %v14316_v29  ;;  %v14322_v7 = vld [vmem:[#allocation123_spill] sm:$0xff]  ;;  %v14338_v29 = vld [vmem:[#allocation296_spill] sm:$0xff]  ;;  %v3101_v32 = vmul.f32 0.00048828125, %v3085_v8  ;;  %v1710_v15 = vadd.f32 %v14344_v38, %v1365_v48 }
 0x4f8   :  { %v3084_v26 = vadd.f32 %v14326_v13, %v2739_v20  ;;  %v3102_v47 = vmul.f32 0.00048828125, %v3086_v2  ;;  %v1709_v20 = vadd.f32 %v14341_v25, %v1364_v33  ;;  %v14345_v13 = vld [vmem:[#allocation60_spill] sm:$0xff]  ;;  %v14349_v2 = vld [vmem:[#allocation330_spill] sm:$0xff] }
 0x4f9   :  { %v1363_v36 = vadd.f32 %v14322_v7, %v1018_v31  ;;  %v14339_v31 = vld [vmem:[#allocation333_spill] sm:$0xff]  ;;  %v14342_v7 = vld [vmem:[#allocation187_spill] sm:$0xff]  ;;  %v3133_v23 = vmul.f32 %v12040_v39, %v3101_v32  ;;  %v14348_v8 = vld [vmem:[#allocation196_spill] sm:$0xff]  ;;  %v2055_v22 = vadd.f32 %v14349_v2, %v1710_v15 }
 0x4fa   :  { %v3100_v55 = vmul.f32 0.00048828125, %v3084_v26  ;;  %v2742_v37 = vadd.f32 %v14339_v31, %v2397_v61  ;;  %v2054_v26 = vadd.f32 %v14345_v13, %v1709_v20  ;;  %v3134_v24 = vmul.f32 %v12045_v3, %v3102_v47  ;;  %v14355_v3 = vld [vmem:[#allocation129_spill] sm:$0xff]  ;;  %v14358_v25 = vld [vmem:[#allocation332_spill] sm:$0xff] }
 0x4fb   :  { %v12141_v0 = vpop.xlane.xlu1 %4884  ;;  %v1708_v63 = vadd.f32 %v14327_v9, %v1363_v36  ;;  %v14346_v9 = vld [vmem:[#allocation239_spill] sm:$0xff]  ;;  %v1021_v11 = vadd.f32 %v14348_v8, %v14347_v28  ;;  %v2400_v46 = vadd.f32 %v14354_v6, %v2055_v22  ;;  %v14361_v15 = vld [vmem:[#allocation20_spill] sm:$0xff] }
 0x4fc   :  { %v3087_v16 = vadd.f32 %v14343_v51, %v2742_v37  ;;  %v3132_v17 = vmul.f32 %v12033_v49, %v3100_v55  ;;  %v2399_v53 = vadd.f32 %v14350_v41, %v2054_v26  ;;  %v14353_v55 = vld [vmem:[#allocation128_spill] sm:$0xff]  ;;  %v14356_v37 = vld [vmem:[#allocation127_spill] sm:$0xff]  ;;  %v14362_v26 = vld [vmem:[#allocation365_spill] sm:$0xff] }
 0x4fd   :  { %v2053_v56 = vadd.f32 %v14333_v18, %v1708_v63  ;;  %v1366_v57 = vadd.f32 %v14353_v55, %v1021_v11  ;;  %v2745_v20 = vadd.f32 %v14358_v25, %v2400_v46  ;;  %v14365_v11 = vld [vmem:[#allocation59_spill] sm:$0xff]  ;;  %v14366_v22 = vld [vmem:[#allocation364_spill] sm:$0xff]  ;;  %v14371_v46 = vld [vmem:[#allocation130_spill] sm:$0xff] }
 0x4fe   :  { %v12128_v58 = vpop.xlane.xlu0 %5904  ;;  %v3103_v49 = vmul.f32 0.00048828125, %v3087_v16  ;;  %v3149_v18 = vsel %vm3148_vm0, %v3132_v17, 0.0  ;;  %v2744_v12 = vadd.f32 %v14355_v3, %v2399_v53  ;;  %v14360_v17 = vld [vmem:[#allocation251_spill] sm:$0xff] }
 0x4ff   :  { %v2398_v27 = vadd.f32 %v14338_v29, %v2053_v56  ;;  %v14351_v56 = vld [vmem:[#allocation294_spill] sm:$0xff]  ;;  %v3150_v29 = vsel %vm3148_vm0, %v3133_v23, 0.0  ;;  %v1711_v48 = vadd.f32 %v14357_v4, %v1366_v57  ;;  %v14363_v23 = vld [vmem:[#allocation293_spill] sm:$0xff]  ;;  %v14370_v57 = vld [vmem:[#allocation299_spill] sm:$0xff] }
 0x500   :  { %v1022_v61 = vadd.f32 %v14352_v10, %v14351_v56  ;;  %v3151_v47 = vadd.f32 %v3150_v29, %v3149_v18  ;;  %v3135_v51 = vmul.f32 %v12057_v50, %v3103_v49  ;;  %v14367_v18 = vld [vmem:[#allocation87_spill] sm:$0xff]  ;;  %v14368_v56 = vld [vmem:[#allocation197_spill] sm:$0xff] }
 0x501   :  { %v2743_v36 = vadd.f32 %v14342_v7, %v2398_v27  ;;  %v3152_v27 = vsel %vm3148_vm0, %v3134_v24, 0.0  ;;  %v14359_v7 = vld [vmem:[#allocation153_spill] sm:$0xff]  ;;  %v2056_v13 = vadd.f32 %v14361_v15, %v1711_v48  ;;  %v14364_v24 = vld [vmem:[#allocation182_spill] sm:$0xff]  ;;  %v1024_v10 = vadd.f32 %v14368_v56, %v14367_v18  ;;  %v14375_v48 = vld [vmem:[#allocation156_spill] sm:$0xff] }
 0x502   :  { %v12159_v42 = vpop.xlane.xlu1 %5568  ;;  %v1367_v32 = vadd.f32 %v14356_v37, %v1022_v61  ;;  %v3153_v16 = vadd.f32 %v3152_v27, %v3151_v47  ;;  %v1023_v28 = vadd.f32 %v14364_v24, %v14363_v23  ;;  %v3154_v50 = vsel %vm3148_vm0, %v3135_v51, 0.0  ;;  %v14369_v61 = vld [vmem:[#allocation232_spill] sm:$0xff]  ;;  %v14372_v29 = vld [vmem:[#allocation201_spill] sm:$0xff]  ;;  %v14382_v24 = vld [vmem:[#allocation223_spill] sm:$0xff] }
 0x503   :  { %v3088_v63 = vadd.f32 %v14346_v9, %v2743_v36  ;;  %v3089_v36 = vadd.f32 %v14359_v7, %v2744_v12  ;;  %v3090_v9 = vadd.f32 %v14362_v26, %v2745_v20  ;;  %v2401_v41 = vadd.f32 %v14366_v22, %v2056_v13  ;;  %v14373_v37 = vld [vmem:[#allocation269_spill] sm:$0xff]  ;;  %v14374_v47 = vld [vmem:[#allocation220_spill] sm:$0xff]  ;;  %v14376_v7 = vld [vmem:[#allocation74_spill] sm:$0xff] }
 0x504   :  { %v1712_v38 = vadd.f32 %v14360_v17, %v1367_v32  ;;  %v1368_v55 = vadd.f32 %v14369_v61, %v1023_v28  ;;  %v1369_v27 = vadd.f32 %v14372_v29, %v1024_v10  ;;  %v14379_v13 = vld [vmem:[#allocation295_spill] sm:$0xff]  ;;  %v14384_v22 = vld [vmem:[#allocation214_spill] sm:$0xff]  ;;  %v14388_v10 = vld [vmem:[#allocation328_spill] sm:$0xff] }
 0x505   :  { %v3104_v33 = vmul.f32 0.00048828125, %v3088_v63  ;;  %v3105_v53 = vmul.f32 0.00048828125, %v3089_v36  ;;  %v2746_v3 = vadd.f32 %v14371_v46, %v2401_v41  ;;  %v3106_v12 = vmul.f32 0.00048828125, %v3090_v9  ;;  %v14377_v36 = vld [vmem:[#allocation109_spill] sm:$0xff]  ;;  %v14380_v26 = vld [vmem:[#allocation183_spill] sm:$0xff]  ;;  %v14391_v46 = vld [vmem:[#allocation168_spill] sm:$0xff] }
 0x506   :  { %v12147_v45 = vpop.xlane.xlu0 %5223  ;;  %v2057_v2 = vadd.f32 %v14365_v11, %v1712_v38  ;;  %v1713_v32 = vadd.f32 %v14373_v37, %v1368_v55  ;;  %v1025_v51 = vadd.f32 %v14377_v36, %v14376_v7  ;;  %v1027_v9 = vadd.f32 %v14380_v26, %v14379_v13  ;;  %v14387_v56 = vld [vmem:[#allocation179_spill] sm:$0xff]  ;;  %v14395_v7 = vld [vmem:[#allocation345_spill] sm:$0xff]  ;;  %v14398_v26 = vld [vmem:[#allocation42_spill] sm:$0xff] }
 0x507   :  { %v3136_v63 = vmul.f32 %v12066_v34, %v3104_v33  ;;  %v3155_v34 = vadd.f32 %v3154_v50, %v3153_v16  ;;  %v3091_v25 = vadd.f32 %v14375_v48, %v2746_v3  ;;  %v3137_v20 = vmul.f32 %v12075_v52, %v3105_v53  ;;  %v14378_v16 = vld [vmem:[#allocation236_spill] sm:$0xff]  ;;  %v14383_v52 = vld [vmem:[#allocation178_spill] sm:$0xff]  ;;  %v14389_v55 = vld [vmem:[#allocation19_spill] sm:$0xff] }
 0x508   :  { %v2402_v6 = vadd.f32 %v14370_v57, %v2057_v2  ;;  %v1714_v17 = vadd.f32 %v14378_v16, %v1369_v27  ;;  %v3138_v11 = vmul.f32 %v12090_v1, %v3106_v12  ;;  %v1029_v41 = vadd.f32 %v14384_v22, %v14383_v52  ;;  %v14385_v53 = vld [vmem:[#allocation360_spill] sm:$0xff]  ;;  %v14386_v50 = vld [vmem:[#allocation106_spill] sm:$0xff]  ;;  %v14390_v57 = vld [vmem:[#allocation233_spill] sm:$0xff] }
 0x509   :  { %v3156_v33 = vsel %vm3148_vm0, %v3136_v63, 0.0  ;;  %v14381_v63 = vld [vmem:[#allocation346_spill] sm:$0xff]  ;;  %v1026_v18 = vadd.f32 %v14386_v50, %v14385_v53  ;;  %v1028_v61 = vadd.f32 %v14388_v10, %v14387_v56  ;;  %v3158_v1 = vsel %vm3148_vm0, %v3137_v20, 0.0  ;;  %v14393_v27 = vld [vmem:[#allocation361_spill] sm:$0xff]  ;;  %v12245_v48 = vld [vmem:[%s12442_s3 + $0x38] sm:$0xff] }
 0x50a   :  { %v12181_v39 = vpop.xlane.xlu1 %4887  ;;  %v2747_v4 = vadd.f32 %v14374_v47, %v2402_v6  ;;  %v3157_v38 = vadd.f32 %v3156_v33, %v3155_v34  ;;  %v2058_v23 = vadd.f32 %v14381_v63, %v1713_v32  ;;  %v2059_v34 = vadd.f32 %v14389_v55, %v1714_v17  ;;  %v14392_v12 = vld [vmem:[#allocation150_spill] sm:$0xff]  ;;  %v14394_v32 = vld [vmem:[#allocation93_spill] sm:$0xff]  ;;  %v14399_v63 = vld [vmem:[#allocation255_spill] sm:$0xff] }
 0x50b   :  { %v1370_v6 = vadd.f32 %v14390_v57, %v1025_v51  ;;  %v3107_v33 = vmul.f32 0.00048828125, %v3091_v25  ;;  %v1372_v29 = vadd.f32 %v14392_v12, %v1027_v9  ;;  %v1374_v37 = vadd.f32 %v14393_v27, %v1029_v41  ;;  %v14396_v51 = vld [vmem:[#allocation132_spill] sm:$0xff]  ;;  %v14397_v20 = vld [vmem:[#allocation149_spill] sm:$0xff]  ;;  %v14409_v27 = vld [vmem:[#allocation171_spill] sm:$0xff] }
 0x50c   :  { %v3092_v28 = vadd.f32 %v14382_v24, %v2747_v4  ;;  %v2403_v3 = vadd.f32 %v14391_v46, %v2058_v23  ;;  %v2404_v47 = vadd.f32 %v14394_v32, %v2059_v34  ;;  %v3159_v4 = vadd.f32 %v3158_v1, %v3157_v38  ;;  %v14400_v24 = vld [vmem:[#allocation221_spill] sm:$0xff]  ;;  %v14401_v41 = vld [vmem:[#allocation44_spill] sm:$0xff]  ;;  %v14405_v34 = vld [vmem:[#allocation166_spill] sm:$0xff] }
 0x50d   :  { %v12165_v5 = vpop.xlane.xlu0 %5907  ;;  %v1371_v36 = vadd.f32 %v14395_v7, %v1026_v18  ;;  %v3160_v25 = vsel %vm3148_vm0, %v3138_v11, 0.0  ;;  %v1373_v13 = vadd.f32 %v14397_v20, %v1028_v61  ;;  %v1715_v9 = vadd.f32 %v14398_v26, %v1370_v6  ;;  %v12257_v52 = vld [vmem:[%s12442_s3 + $0x40] sm:$0xff]  ;;  %v14403_v11 = vld [vmem:[#allocation31_spill] sm:$0xff]  ;;  %v14406_v6 = vld [vmem:[#allocation366_spill] sm:$0xff] }
 0x50e   :  { %v2748_v16 = vadd.f32 %v14396_v51, %v2403_v3  ;;  %v3108_v17 = vmul.f32 0.00048828125, %v3092_v28  ;;  %v1717_v23 = vadd.f32 %v14399_v63, %v1372_v29  ;;  %v2749_v38 = vadd.f32 %v14400_v24, %v2404_v47  ;;  %v14402_v28 = vld [vmem:[#allocation268_spill] sm:$0xff]  ;;  %v14404_v61 = vld [vmem:[#allocation41_spill] sm:$0xff]  ;;  %v14408_v29 = vld [vmem:[#allocation22_spill] sm:$0xff] }
 0x50f   :  { %v1719_v53 = vadd.f32 %v14401_v41, %v1374_v37  ;;  %v1716_v50 = vadd.f32 %v14402_v28, %v1371_v36  ;;  %v3139_v56 = vmul.f32 %v12245_v48, %v3107_v33  ;;  %v1718_v55 = vadd.f32 %v14404_v61, %v1373_v13  ;;  %v14407_v1 = vld [vmem:[#allocation76_spill] sm:$0xff]  ;;  %v14410_v47 = vld [vmem:[#allocation298_spill] sm:$0xff]  ;;  %v14411_v36 = vld [vmem:[#allocation75_spill] sm:$0xff] }
 0x510   :  { %v3093_v18 = vadd.f32 %v14403_v11, %v2748_v16  ;;  %v2060_v57 = vadd.f32 %v14405_v34, %v1715_v9  ;;  %v3094_v46 = vadd.f32 %v14406_v6, %v2749_v38  ;;  %v3161_v3 = vadd.f32 %v3160_v25, %v3159_v4  ;;  %v14412_v51 = vld [vmem:[#allocation347_spill] sm:$0xff]  ;;  %v14414_v9 = vld [vmem:[#allocation21_spill] sm:$0xff]  ;;  %v14415_v63 = vld [vmem:[#allocation170_spill] sm:$0xff] }
 0x511   :  { %v12199_v8 = vpop.xlane.xlu1 %5571  ;;  %v2062_v12 = vadd.f32 %v14407_v1, %v1717_v23  ;;  %v3867_v37 = vadd.f32 %v14409_v27, %v14408_v29  ;;  %v3140_v32 = vmul.f32 %v12257_v52, %v3108_v17  ;;  %v2064_v7 = vadd.f32 %v14410_v47, %v1719_v53  ;;  %v14413_v20 = vld [vmem:[#allocation95_spill] sm:$0xff]  ;;  %v14416_v4 = vld [vmem:[#allocation102_spill] sm:$0xff]  ;;  %v14417_v38 = vld [vmem:[#allocation185_spill] sm:$0xff] }
 0x512   :  { %v2061_v33 = vadd.f32 %v14411_v36, %v1716_v50  ;;  %v2063_v16 = vadd.f32 %v14412_v51, %v1718_v55  ;;  %v2405_v13 = vadd.f32 %v14413_v20, %v2060_v57  ;;  %v3109_v26 = vmul.f32 0.00048828125, %v3093_v18  ;;  %v14418_v28 = vld [vmem:[#allocation133_spill] sm:$0xff]  ;;  %v14419_v18 = vld [vmem:[#allocation284_spill] sm:$0xff]  ;;  %v14421_v57 = vld [vmem:[#allocation174_spill] sm:$0xff] }
 0x513   :  { %v3868_v24 = vadd.f32 %v14415_v63, %v14414_v9  ;;  %v4212_v25 = vadd.f32 %v14416_v4, %v3867_v37  ;;  %v3162_v23 = vsel %vm3148_vm0, %v3139_v56, 0.0  ;;  %v3110_v11 = vmul.f32 0.00048828125, %v3094_v46  ;;  %v12287_v50 = vld [vmem:[%s12442_s3 + $0x48] sm:$0xff]  ;;  %v14420_v55 = vld [vmem:[#allocation300_spill] sm:$0xff]  ;;  %v14425_v36 = vld [vmem:[#allocation35_spill] sm:$0xff] }
 0x514   :  { %v2406_v41 = vadd.f32 %v14417_v38, %v2061_v33  ;;  %v2750_v17 = vadd.f32 %v14418_v28, %v2405_v13  ;;  %v3163_v53 = vadd.f32 %v3162_v23, %v3161_v3  ;;  %v3869_v34 = vadd.f32 %v14420_v55, %v14419_v18  ;;  %v14422_v1 = vld [vmem:[#allocation225_spill] sm:$0xff]  ;;  %v14424_v37 = vld [vmem:[#allocation204_spill] sm:$0xff]  ;;  %v14426_v51 = vld [vmem:[#allocation50_spill] sm:$0xff] }
 0x515   :  { %v12186_v31 = vpop.xlane.xlu0 %5226  ;;  %v4213_v6 = vadd.f32 %v14421_v57, %v3868_v24  ;;  %v4557_v56 = vadd.f32 %v14422_v1, %v4212_v25  ;;  %v3164_v29 = vsel %vm3148_vm0, %v3140_v32, 0.0  ;;  %v14423_v46 = vld [vmem:[#allocation169_spill] sm:$0xff]  ;;  %v14427_v20 = vld [vmem:[#allocation351_spill] sm:$0xff]  ;;  %v14430_v23 = vld [vmem:[#allocation186_spill] sm:$0xff] }
 0x516   :  { %v2407_v3 = vadd.f32 %v14423_v46, %v2062_v12  ;;  %v2751_v47 = vadd.f32 %v14424_v37, %v2406_v41  ;;  %v3095_v33 = vadd.f32 %v14425_v36, %v2750_v17  ;;  %v3870_v13 = vadd.f32 %v14427_v20, %v14426_v51  ;;  %v12306_v9 = vld [vmem:[%s12442_s3 + $0x50] sm:$0xff]  ;;  %v14429_v4 = vld [vmem:[#allocation337_spill] sm:$0xff]  ;;  %v14431_v41 = vld [vmem:[#allocation256_spill] sm:$0xff] }
 0x517   :  { %v14428_v63 = vld [vmem:[#allocation319_spill] sm:$0xff]  ;;  %v4558_v32 = vadd.f32 %v14429_v4, %v4213_v6  ;;  %v4902_v25 = vadd.f32 %v12049_v59, %v4557_v56  ;;  %v3141_v12 = vmul.f32 %v12287_v50, %v3109_v26  ;;  %v2409_v38 = vadd.f32 %v14430_v23, %v2064_v7  ;;  %v14432_v17 = vld [vmem:[#allocation101_spill] sm:$0xff]  ;;  %v14434_v6 = vld [vmem:[#allocation94_spill] sm:$0xff] }
 0x518   :  { %v4214_v24 = vadd.f32 %v14428_v63, %v3869_v34  ;;  %v3096_v28 = vadd.f32 %v14431_v41, %v2751_v47  ;;  %v4215_v18 = vadd.f32 %v14432_v17, %v3870_v13  ;;  %v3165_v55 = vadd.f32 %v3164_v29, %v3163_v53  ;;  %v14433_v57 = vld [vmem:[#allocation135_spill] sm:$0xff]  ;;  %v14435_v59 = vld [vmem:[#allocation349_spill] sm:$0xff]  ;;  %v14436_v26 = vld [vmem:[#allocation238_spill] sm:$0xff] }
 0x519   :  { %v12220_v15 = vpop.xlane.xlu1 %4548  ;;  %v4903_v46 = vadd.f32 %v12081_v14, %v4558_v32  ;;  %v5247_v37 = vadd.f32 %v12060_v62, %v4902_v25  ;;  %v3142_v34 = vmul.f32 %v12306_v9, %v3110_v11  ;;  %v2408_v36 = vadd.f32 %v14434_v6, %v2063_v16  ;;  %v14437_v47 = vld [vmem:[#allocation134_spill] sm:$0xff]  ;;  %v12331_v62 = vld [vmem:[%s12442_s3 + $0x58] sm:$0xff]  ;;  %v14442_v41 = vld [vmem:[#allocation205_spill] sm:$0xff] }
 0x51a   :  { %v4559_v1 = vadd.f32 %v14433_v57, %v4214_v24  ;;  %v2752_v56 = vadd.f32 %v14435_v59, %v2407_v3  ;;  %v2754_v51 = vadd.f32 %v14436_v26, %v2409_v38  ;;  %v3111_v7 = vmul.f32 0.00048828125, %v3095_v33  ;;  %v14438_v3 = vld [vmem:[#allocation335_spill] sm:$0xff]  ;;  %v14439_v63 = vld [vmem:[#allocation302_spill] sm:$0xff]  ;;  %v14443_v17 = vld [vmem:[#allocation36_spill] sm:$0xff] }
 0x51b   :  { %v4560_v13 = vadd.f32 %v14437_v47, %v4215_v18  ;;  %v5248_v29 = vadd.f32 %v12084_v30, %v4903_v46  ;;  %v3166_v14 = vsel %vm3148_vm0, %v3141_v12, 0.0  ;;  %v3112_v11 = vmul.f32 0.00048828125, %v3096_v28  ;;  %v14440_v24 = vld [vmem:[#allocation334_spill] sm:$0xff]  ;;  %v14441_v4 = vld [vmem:[#allocation83_spill] sm:$0xff]  ;;  %v12340_v30 = vld [vmem:[%s12442_s3 + $0x60] sm:$0xff] }
 0x51c   :  { %v12204_v49 = vpop.xlane.xlu0 %5910  ;;  %v4904_v53 = vadd.f32 %v12093_v60, %v4559_v1  ;;  %v3871_v33 = vadd.f32 %v14439_v63, %v14438_v3  ;;  %v3872_v32 = vadd.f32 %v14441_v4, %v14440_v24  ;;  %v3167_v25 = vadd.f32 %v3166_v14, %v3165_v55  ;;  %v14444_v57 = vld [vmem:[#allocation206_spill] sm:$0xff]  ;;  %v14447_v26 = vld [vmem:[#allocation211_spill] sm:$0xff]  ;;  %v14449_v63 = vld [vmem:[#allocation377_spill] sm:$0xff] }
 0x51d   :  { %v4905_v60 = vadd.f32 %v12100_v40, %v4560_v13  ;;  %v5592_v23 = vadd.f32 %v12098_v54, %v5247_v37  ;;  %v3168_v38 = vsel %vm3148_vm0, %v3142_v34, 0.0  ;;  %v2753_v28 = vadd.f32 %v14442_v41, %v2408_v36  ;;  %v14445_v46 = vld [vmem:[#allocation318_spill] sm:$0xff]  ;;  %v14446_v37 = vld [vmem:[#allocation240_spill] sm:$0xff] }
 0x51e   :  { %v5249_v12 = vadd.f32 %v12113_v19, %v4904_v53  ;;  %v3097_v18 = vadd.f32 %v14443_v17, %v2752_v56  ;;  %v4216_v1 = vadd.f32 %v14444_v57, %v3871_v33  ;;  %v3143_v55 = vmul.f32 %v12331_v62, %v3111_v7  ;;  %v14448_v13 = vld [vmem:[#allocation210_spill] sm:$0xff] }
 0x51f   :  { %v4217_v6 = vadd.f32 %v14445_v46, %v3872_v32  ;;  %v5937_v59 = vadd.f32 %v12128_v58, %v5592_v23  ;;  %v5250_v40 = vadd.f32 %v12147_v45, %v4905_v60  ;;  %v5593_v19 = vadd.f32 %v12102_v43, %v5248_v29  ;;  %v14455_v46 = vld [vmem:[#allocation84_spill] sm:$0xff] }
 0x520   :  { %v12259_v22 = vpop.xlane.xlu1 %5232  ;;  %v3144_v54 = vmul.f32 %v12340_v30, %v3112_v11  ;;  %v3098_v34 = vadd.f32 %v14446_v37, %v2753_v28  ;;  %v4561_v36 = vadd.f32 %v14447_v26, %v4216_v1  ;;  %v3169_v47 = vadd.f32 %v3168_v38, %v3167_v25  ;;  %v14453_v38 = vld [vmem:[#allocation97_spill] sm:$0xff] }
 0x521   :  { %v4562_v53 = vadd.f32 %v14448_v13, %v4217_v6  ;;  %v5938_v7 = vadd.f32 %v12165_v5, %v5593_v19  ;;  %v5594_v14 = vadd.f32 %v12121_v44, %v5249_v12  ;;  %v3113_v58 = vmul.f32 0.00048828125, %v3097_v18  ;;  %v12369_v5 = vld [vmem:[%s12442_s3 + $0x68] sm:$0xff]  ;;  %v12383_v18 = vld [vmem:[%s12442_s3 + $0x70] sm:$0xff]  ;;  %v14457_v19 = vld [vmem:[#allocation336_spill] sm:$0xff] }
 0x522   :  { %v3099_v45 = vadd.f32 %v14449_v63, %v2754_v51  ;;  %v4906_v43 = vadd.f32 %v12106_v21, %v4561_v36  ;;  %v3170_v29 = vsel %vm3148_vm0, %v3143_v55, 0.0  ;;  %v5953_v33 = vmul.f32 0.00048828125, %v5937_v59  ;;  %v14450_v12 = vld [vmem:[#allocation62_spill] sm:$0xff]  ;;  %v14454_v55 = vld [vmem:[#allocation61_spill] sm:$0xff]  ;;  %v14456_v59 = vld [vmem:[#allocation115_spill] sm:$0xff] }
 0x523   :  { %v4907_v11 = vadd.f32 %v12141_v0, %v4562_v53  ;;  %v5939_v24 = vadd.f32 %v12204_v49, %v5594_v14  ;;  %v5595_v4 = vadd.f32 %v12159_v42, %v5250_v40  ;;  %v3172_v44 = vsel %vm3148_vm0, %v3144_v54, 0.0  ;;  %v14451_v49 = vld [vmem:[#allocation301_spill] sm:$0xff]  ;;  %v14458_v13 = vld [vmem:[#allocation378_spill] sm:$0xff] }
 0x524   :  { %v12227_v2 = vpop.xlane.xlu0 %5229  ;;  %v3114_v32 = vmul.f32 0.00048828125, %v3098_v34  ;;  %v3171_v51 = vadd.f32 %v3170_v29, %v3169_v47  ;;  %v5954_v25 = vmul.f32 0.00048828125, %v5938_v7  ;;  %v5251_v21 = vadd.f32 %v12186_v31, %v4906_v43  ;;  %v14452_v42 = vld [vmem:[#allocation25_spill] sm:$0xff] }
 0x525   :  { %v5252_v60 = vadd.f32 %v12227_v2, %v4907_v11  ;;  %v3873_v23 = vadd.f32 %v14451_v49, %v14450_v12  ;;  %v3875_v41 = vadd.f32 %v14453_v38, %v14452_v42  ;;  %v3145_v17 = vmul.f32 %v12369_v5, %v3113_v58  ;;  %v14459_v53 = vld [vmem:[#allocation137_spill] sm:$0xff]  ;;  %v3131_v58 = vld [vmem:[%s12442_s3 + $0x78] sm:$0xff] }
 0x526   :  { %v3115_v57 = vmul.f32 0.00048828125, %v3099_v45  ;;  %v5969_v31 = vmul.f32 %v5953_v33, %v12245_v48  ;;  %v5955_v2 = vmul.f32 0.00048828125, %v5939_v24  ;;  %v3874_v6 = vadd.f32 %v14455_v46, %v14454_v55  ;;  %v14460_v24 = vld [vmem:[#allocation136_spill] sm:$0xff] }
 0x527   :  { %v4218_v40 = vadd.f32 %v14456_v59, %v3873_v23  ;;  %v4220_v54 = vadd.f32 %v14457_v19, %v3875_v41  ;;  %v3173_v37 = vadd.f32 %v3172_v44, %v3171_v51  ;;  %v5970_v34 = vmul.f32 %v5954_v25, %v12257_v52 }
 0x528   :  { %v12289_v61 = vpop.xlane.xlu1 %5916  ;;  %v5596_v26 = vadd.f32 %v12199_v8, %v5251_v21  ;;  %v3146_v47 = vmul.f32 %v12383_v18, %v3114_v32  ;;  %v4219_v48 = vadd.f32 %v14458_v13, %v3874_v6  ;;  %v3174_v14 = vsel %vm3148_vm0, %v3145_v17, 0.0 }
 0x529   :  { %v4565_v7 = vadd.f32 %v12220_v15, %v4220_v54  ;;  %v5991_v63 = vsel %vm3148_vm0, %v5969_v31, 0.0  ;;  %v5971_v52 = vmul.f32 %v5955_v2, %v12287_v50  ;;  %v3175_v33 = vadd.f32 %v3174_v14, %v3173_v37 }
 0x52a   :  { %v5941_v8 = vadd.f32 %v12289_v61, %v5596_v26  ;;  %v4564_v15 = vadd.f32 %v14460_v24, %v4219_v48  ;;  %v3176_v51 = vsel %vm3148_vm0, %v3146_v47, 0.0  ;;  %v3147_v25 = vmul.f32 %v3131_v58, %v3115_v57 }
 0x52b   :  { %v12265_v10 = vpop.xlane.xlu0 %5913  ;;  %v5992_v50 = vadd.f32 %v5991_v63, %v12096_v35  ;;  %v3177_v23 = vadd.f32 %v3176_v51, %v3175_v33 }
 0x52c   :  { %v5940_v0 = vadd.f32 %v12265_v10, %v5595_v4  ;;  %v5993_v4 = vsel %vm3148_vm0, %v5970_v34, 0.0  ;;  %v3178_v38 = vsel %vm3148_vm0, %v3147_v25, 0.0 }
 0x52e   :  { %v5956_v36 = vmul.f32 0.00048828125, %v5940_v0  ;;  %v5994_v0 = vadd.f32 %v5993_v4, %v5992_v50 }
 0x52f   :  { %v12322_v20 = vpop.xlane.xlu1 %5235 }
 0x530   :  { %v5972_v44 = vmul.f32 %v5956_v36, %v12306_v9 }
 0x532   :  { %v5997_v9 = vsel %vm3148_vm0, %v5972_v44, 0.0 }
 0x534   :  { %v12296_v27 = vpop.xlane.xlu0 %4890 }
 0x535   :  { %v4909_v21 = vadd.f32 %v12296_v27, %v4564_v15 }
 0x537   :  { %v5920_v56 = vpop.xlane.xlu1 %5919  ;;  %v5254_v31 = vadd.f32 %v12322_v20, %v4909_v21 }
 0x53b   :  { %v5575_v16 = vpop.xlane.xlu0 %5574 }
 0x53c   :  { %v5597_v1 = vadd.f32 %v5575_v16, %v5252_v60  ;;  %v4563_v16 = vadd.f32 %v14459_v53, %v4218_v40 }
 0x53e   :  { %v5942_v45 = vadd.f32 %v5920_v56, %v5597_v1  ;;  %v4908_v43 = vadd.f32 %v12181_v39, %v4563_v16  ;;  %v5995_v39 = vsel %vm3148_vm0, %v5971_v52, 0.0 }
 0x53f   :  { %v5996_v41 = vadd.f32 %v5995_v39, %v5994_v0 }
 0x540   :  { %v5581_v28 = vpop.xlane.xlu1 %5580  ;;  %v5253_v61 = vadd.f32 %v12259_v22, %v4908_v43  ;;  %v5958_v60 = vmul.f32 0.00048828125, %v5942_v45 }
 0x541   :  { %v5998_v2 = vadd.f32 %v5997_v9, %v5996_v41  ;;  %v5599_v55 = vadd.f32 %v5581_v28, %v5254_v31 }
 0x542   :  { %v5974_v57 = vmul.f32 %v5958_v60, %v12340_v30 }
 0x543   :  { %v4894_v3 = vpop.xlane.xlu0 %4893 }
 0x544   :  { %v4910_v29 = vadd.f32 %v4894_v3, %v4565_v7  ;;  %v5957_v3 = vmul.f32 0.00048828125, %v5941_v8  ;;  %v6001_v40 = vsel %vm3148_vm0, %v5974_v57, 0.0 }
 0x546   :  { %v5973_v22 = vmul.f32 %v5957_v3, %v12331_v62 }
 0x547   :  { %v5584_v11 = vpop.xlane.xlu1 %5583 }
 0x548   :  { %v5999_v59 = vsel %vm3148_vm0, %v5973_v22, 0.0 }
 0x549   :  { %v6000_v37 = vadd.f32 %v5999_v59, %v5998_v2 }
 0x54b   :  { %v6002_v20 = vadd.f32 %v6001_v40, %v6000_v37 }
 0x54c   :  { %v5578_v10 = vpop.xlane.xlu0 %5577 }
 0x54d   :  { %v5598_v12 = vadd.f32 %v5578_v10, %v5253_v61  ;;  %v3179_v10 = vadd.f32 %v3178_v38, %v3177_v23 }
 0x54f   :  { %v5929_v35 = vpop.xlane.xlu1 %5928  ;;  %v3180_v62 = vrot.slane %v3179_v10, 4 }
 0x551   :  { %v3181_v28 = vadd.f32 %v3180_v62, %v3179_v10 }
 0x553   :  { %v5239_v32 = vpop.xlane.xlu0 %5238  ;;  %v3182_v16 = vrot.slane %v3181_v28, 2 }
 0x554   :  { %v5255_v56 = vadd.f32 %v5239_v32, %v4910_v29 }
 0x555   :  { %v3183_v63 = vadd.f32 %v3182_v16, %v3181_v28 }
 0x556   :  { %v5600_v49 = vadd.f32 %v5584_v11, %v5255_v56 }
 0x557   :  { %v3184_v8 = vrot.slane %v3183_v63, 1 }
 0x558   :  { %v5923_v42 = vpop.xlane.xlu0 %5922  ;;  %v5945_v27 = vadd.f32 %v5929_v35, %v5600_v49 }
 0x559   :  { %v5943_v17 = vadd.f32 %v5923_v42, %v5598_v12 }
 0x55a   :  { %v5961_v19 = vmul.f32 0.00048828125, %v5945_v27 }
 0x55b   :  { %v5959_v1 = vmul.f32 0.00048828125, %v5943_v17 }
 0x55c   :  { %v5926_v6 = vpop.xlane.xlu0 %5925  ;;  %v5977_v26 = vmul.f32 %v5961_v19, %v3131_v58  ;;  %v3185_v58 = vadd.f32 %v3184_v8, %v3183_v63 }
 0x55d   :  { %v5975_v46 = vmul.f32 %v5959_v1, %v12369_v5  ;;  %v5944_v54 = vadd.f32 %v5926_v6, %v5599_v55 }
 0x55e   :  { %v6007_v48 = vsel %vm3148_vm0, %v5977_v26, 0.0 }
 0x55f   :  { %v6003_v30 = vsel %vm3148_vm0, %v5975_v46, 0.0  ;;  %v5960_v34 = vmul.f32 0.00048828125, %v5944_v54 }
 0x560   :  { %v6004_v47 = vadd.f32 %v6003_v30, %v6002_v20 }
 0x561   :  { %v5976_v36 = vmul.f32 %v5960_v34, %v12383_v18  ;;  %v6056_v18 = vld [vmem:[%s12443_s4] ss:$0 sm:$0xff] }
 0x563   :  { %v6005_v5 = vsel %vm3148_vm0, %v5976_v36, 0.0 }
 0x564   :  { %v6006_v13 = vadd.f32 %v6005_v5, %v6004_v47 }
 0x566   :  { %v6008_v53 = vadd.f32 %v6007_v48, %v6006_v13 }
 0x568   :  { %v6009_v7 = vrot.slane %v6008_v53, 4 }
 0x56a   :  { %v6010_v14 = vadd.f32 %v6009_v7, %v6008_v53 }
 0x56c   :  { %v6011_v52 = vrot.slane %v6010_v14, 2 }
 0x56e   :  { %v6012_v45 = vadd.f32 %v6011_v52, %v6010_v14 }
 0x570   :  { %v6013_v43 = vrot.slane %v6012_v45, 1 }
 0x572   :  { %v6014_v29 = vadd.f32 %v6013_v43, %v6012_v45 }
 0x574   :  { %v6016_v11 = vsel %vm6015_vm1, %v3185_v58, %v6014_v29 }
 0x575   :  { %v6024_v33 = vadd.f32 %v6056_v18, %v6016_v11 }
 0x577   :  { %6026 = vst.msk [vmem:[#allocation2] sm:$0x3] %vm6025_vm2, %v6024_v33 }
 0x578   :  { %6079 = shalt.err (!%p6076_p4)
}
 0x579   :  { %s6080_s18 = scalar_lea.hbm %s12444_s5, 32 }
 0x57a   :  { %p6081_p5 = scmp.ne.s32.totalorder %s12444_s5, %s6080_s18  ;;  %p6084_p6 = scmp.lt.u32.totalorder %s6080_s18, %s12444_s5 }
 0x57c   :  { %p6086_p7 = pnand %p6084_p6, %p6081_p5 }
 0x57e   :  { %6089 = shalt.err (!%p6086_p7)
}
 0x57f   :  { %6036 = dma.vmem_to_hbm [thread:$0]  %s6034_s14, 32, %s12444_s5, [#allocation3]  }
 0x580   :  { %6090 = dma.done.wait [#allocation3], 32  }
 0x581   :  { %6091 = vsyncadd [#allocation3], 4294967264 }
 0x582   :  { %6040 = vsyncpa [#allocation3], 1 }

</bundles_post_ra>
